<compile_context>
chip_gen: v7x
topology: tpu7x:2x2x1
jax: 0.10.0
libtpu: 0.0.40
codegen_flags: <defaults>
</compile_context>

<pallas_src>
import functools
import math

import jax
import jax.numpy as jnp
from jax.experimental import pallas as pl
from jax.experimental.pallas import tpu as pltpu

LRELU_SLOPE = 0.2
_MAX_TM = 512      # rows per grid step when M is large (multiple of 16 for bf16 packing)


def _round_up(x, m):
    return (x + m - 1) // m * m


# ----------------------------------------------------------------------------
# Pallas kernel: single-shot GEMM (K collapsed), fused bias + LeakyReLU epilogue.
# ----------------------------------------------------------------------------
def _gemm_bias_act_kernel(x_ref, w_ref, b_ref, o_ref, *, apply_act):
    acc = jnp.dot(x_ref[...], w_ref[...], preferred_element_type=jnp.float32)
    acc = acc + b_ref[...]                       # (tm, Np) + (1, Np), f32
    if apply_act:
        acc = jnp.where(acc > 0, acc, LRELU_SLOPE * acc)
    o_ref[...] = acc.astype(o_ref.dtype)


def gemm_bias_act(x, w_packed, b_packed, apply_act, out_dtype):
    """x: (M, K); w_packed: (K, Np) bf16; b_packed: (1, Np) f32 -> (M, Np)."""
    x = x.astype(jnp.bfloat16)
    M, K = x.shape
    Kw, Np = w_packed.shape
    assert Kw == K, (Kw, K)

    if M <= _MAX_TM:
        # Whole-array block: any M is legal when the block equals the full dim,
        # so we avoid the HBM pad + post-slice entirely.
        tm, Mp = M, M
    else:
        tm = _MAX_TM
        Mp = _round_up(M, tm)
        x = jnp.pad(x, ((0, Mp - M), (0, 0)))

    out = pl.pallas_call(
        functools.partial(_gemm_bias_act_kernel, apply_act=apply_act),
        out_shape=jax.ShapeDtypeStruct((Mp, Np), out_dtype),
        grid=(Mp // tm,),
        in_specs=[
            pl.BlockSpec((tm, K), lambda i: (i, 0)),    # K == full dim (no K grid)
            pl.BlockSpec((K, Np), lambda i: (0, 0)),    # whole weight resident
            pl.BlockSpec((1, Np), lambda i: (0, 0)),
        ],
        out_specs=pl.BlockSpec((tm, Np), lambda i: (i, 0)),
        compiler_params=pltpu.CompilerParams(
            dimension_semantics=("parallel",),
            vmem_limit_bytes=32 * 1024 * 1024,          # worst layer ~9 MB; fits v7x too
        ),
    )(x, w_packed, b_packed)
    return out if Mp == M else out[:M]


# ----------------------------------------------------------------------------
# Patch extraction glue (single XLA op per layer, NHWC, channel-slowest K order)
# ----------------------------------------------------------------------------
def _patches_nhwc(x, kh, kw, stride, pad):
    """NHWC -> ((N*OH*OW, Cin*kh*kw), OH, OW); K index = c*kh*kw + i*kw + j."""
    out = jax.lax.conv_general_dilated_patches(
        x, filter_shape=(kh, kw), window_strides=(stride, stride),
        padding=((pad, pad), (pad, pad)),
        dimension_numbers=("NHWC", "HWIO", "NHWC"))
    n, oh, ow, k = out.shape
    return out.reshape(n * oh * ow, k), oh, ow


# ----------------------------------------------------------------------------
# Discriminator: layer specs, init, weight packing, forward
# ----------------------------------------------------------------------------
def _layer_specs(in_channels=2):
    return [
        # (cin, cout, (kh, kw), stride, pad, leaky_relu)
        (in_channels, 64, (4, 4), 2, 1, True),
        (64, 128, (4, 4), 2, 3, True),
        (128, 256, (4, 4), 2, 3, True),
        (256, 512, (4, 4), 2, 1, True),
        (512, 1, (4, 2), 1, 0, False),
    ]


def init_params(key, in_channels=2):
    params = []
    for cin, cout, (kh, kw), _, _, _ in _layer_specs(in_channels):
        key, k_w, k_b = jax.random.split(key, 3)
        fan_in = cin * kh * kw
        bound = 1.0 / math.sqrt(fan_in)                       # PyTorch-style uniform init
        wgt = jax.random.uniform(k_w, (cout, cin, kh, kw), jnp.float32, -bound, bound)
        bias = jax.random.uniform(k_b, (cout,), jnp.float32, -bound, bound)
        params.append((wgt, bias))
    return params


def pack_params(params, in_channels=2):
    """One-time packing: OIHW -> (K, Np) bf16, K matching the patch ordering and the
    channel-padded previous layer; bias -> (1, Np) f32."""
    specs = _layer_specs(in_channels)
    n_layers = len(specs)
    packed, meta = [], []
    cin_pad = in_channels                                     # layer-1 K stays at 2*16 = 32
    for idx, ((w, b), (cin, cout, (kh, kw), stride, pad, act)) in enumerate(zip(params, specs)):
        is_last = idx == n_layers - 1
        cout_pad = cout if is_last else _round_up(cout, 128)  # lane-dense intermediate outputs
        wt = jnp.transpose(w, (1, 2, 3, 0))                   # (Cin, kh, kw, Cout)
        wt = jnp.pad(wt, ((0, cin_pad - cin), (0, 0), (0, 0), (0, cout_pad - cout)))
        wp = wt.reshape(cin_pad * kh * kw, cout_pad).astype(jnp.bfloat16)
        bp = jnp.pad(b.astype(jnp.float32), (0, cout_pad - cout)).reshape(1, cout_pad)
        packed.append((wp, bp))
        meta.append(dict(kh=kh, kw=kw, stride=stride, pad=pad, act=act,
                         use_pallas=not is_last))
        cin_pad = cout_pad
    return packed, meta


def make_forward(meta):
    @jax.jit
    def forward(packed, x_nchw):
        n = x_nchw.shape[0]
        x = jnp.transpose(x_nchw, (0, 2, 3, 1)).astype(jnp.bfloat16)   # NCHW -> NHWC once
        for (wp, bp), m in zip(packed, meta):
            mat, oh, ow = _patches_nhwc(x, m["kh"], m["kw"], m["stride"], m["pad"])
            if m["use_pallas"]:
                y = gemm_bias_act(mat, wp, bp, m["act"], jnp.bfloat16)
            else:
                # conv5: M<=8 rows, 1 output channel -- cheaper as a plain XLA dot
                # than another kernel launch (per perf review).
                y = jnp.dot(mat, wp, preferred_element_type=jnp.float32) + bp
            x = y.reshape(n, oh, ow, -1)                               # stays NHWC (padded C)
        return jnp.transpose(x, (0, 3, 1, 2))                          # NHWC -> NCHW once
    return forward


# ----------------------------------------------------------------------------
# Pure-JAX reference (bf16-matched, for correctness check)
# ----------------------------------------------------------------------------
def _reference_forward(params, x, in_channels=2):
    dn = ("NCHW", "OIHW", "NCHW")
    specs = _layer_specs(in_channels)
    n_layers = len(params)
    x = x.astype(jnp.bfloat16)
    for idx, ((w, b), (_, _, _, stride, pad, act)) in enumerate(zip(params, specs)):
        y = jax.lax.conv_general_dilated(
            x.astype(jnp.bfloat16), w.astype(jnp.bfloat16),
            window_strides=(stride, stride),
            padding=[(pad, pad), (pad, pad)],
            dimension_numbers=dn,
            preferred_element_type=jnp.float32)
        y = y + b.reshape(1, -1, 1, 1).astype(jnp.float32)
        if act:
            y = jnp.where(y > 0, y, LRELU_SLOPE * y)
        x = y.astype(jnp.bfloat16) if idx < n_layers - 1 else y
    return x


if __name__ == "__main__":
    key = jax.random.PRNGKey(0)
    k_params, k_x = jax.random.split(key)

    in_channels = 2
    params = init_params(k_params, in_channels=in_channels)
    packed, meta = pack_params(params, in_channels=in_channels)
    forward = make_forward(meta)

    # Small "field" input (N, C, H, W); big enough to survive the four stride-2
    # convs plus the final (4, 2) valid conv.
    x = jax.random.normal(k_x, (2, in_channels, 64, 16), jnp.float32)

    out = jax.block_until_ready(forward(packed, x))
    ref = jax.block_until_ready(_reference_forward(params, x, in_channels=in_channels))

    assert out.shape == ref.shape, (out.shape, ref.shape)
    max_err = float(jnp.max(jnp.abs(out.astype(jnp.float32) - ref)))
    assert jnp.allclose(out.astype(jnp.float32), ref, atol=1e-2, rtol=3e-2), max_err

    print("KERNEL_OK")
</pallas_src>

<mosaic_0001>
module attributes {stable_mosaic.version = 11 : i64} {
  func.func @_gemm_bias_act_kernel(%arg0: i32, %arg1: memref<512x32xbf16, #tpu.memory_space<vmem>>, %arg2: memref<32x128xbf16, #tpu.memory_space<vmem>>, %arg3: memref<1x128xf32, #tpu.memory_space<vmem>>, %arg4: memref<512x128xbf16, #tpu.memory_space<vmem>>) attributes {dimension_semantics = [#tpu.dimension_semantics<parallel>], iteration_bounds = array<i64: 1>, scalar_prefetch = 0 : i64, scratch_operands = 0 : i64, tpu.core_type = #tpu.core_type<tc>, window_params = [{transform_indices = @transform_0, window_bounds = array<i64: 512, 32>}, {pipeline_mode = #tpu.pipeline_mode<synchronous>, transform_indices = @transform_1, window_bounds = array<i64: 32, 128>}, {pipeline_mode = #tpu.pipeline_mode<synchronous>, transform_indices = @transform_2, window_bounds = array<i64: 1, 128>}, {transform_indices = @transform_3, window_bounds = array<i64: 512, 128>}]} {
    %c0 = arith.constant 0 : index
    %c0_0 = arith.constant 0 : index
    %0 = vector.load %arg1[%c0, %c0_0] : memref<512x32xbf16, #tpu.memory_space<vmem>>, vector<512x32xbf16>
    %c0_1 = arith.constant 0 : index
    %c0_2 = arith.constant 0 : index
    %1 = vector.load %arg2[%c0_1, %c0_2] : memref<32x128xbf16, #tpu.memory_space<vmem>>, vector<32x128xbf16>
    %cst = arith.constant dense<0.000000e+00> : vector<512x128xf32>
    %2 = tpu.matmul %0, %1, %cst {dimension_numbers = #tpu.dot_dimension_numbers<[1], [0], [0], [1], [0, 0, 1, 1], [], []>} : vector<512x32xbf16>, vector<32x128xbf16>, vector<512x128xf32> -> vector<512x128xf32>
    %c0_3 = arith.constant 0 : index
    %c0_4 = arith.constant 0 : index
    %3 = vector.load %arg3[%c0_3, %c0_4] : memref<1x128xf32, #tpu.memory_space<vmem>>, vector<1x128xf32>
    %4 = vector.broadcast %3 : vector<1x128xf32> to vector<512x128xf32>
    %5 = arith.addf %2, %4 : vector<512x128xf32>
    %cst_5 = arith.constant 0.000000e+00 : f32
    %6 = vector.broadcast %cst_5 : f32 to vector<512x128xf32>
    %7 = arith.cmpf ogt, %5, %6 : vector<512x128xf32>
    %cst_6 = arith.constant 2.000000e-01 : f32
    %8 = vector.broadcast %cst_6 : f32 to vector<512x128xf32>
    %9 = arith.mulf %8, %5 : vector<512x128xf32>
    %10 = arith.select %7, %5, %9 : vector<512x128xi1>, vector<512x128xf32>
    %11 = arith.truncf %10 : vector<512x128xf32> to vector<512x128xbf16>
    %c0_7 = arith.constant 0 : index
    %c0_8 = arith.constant 0 : index
    %12 = vector.load %arg4[%c0_7, %c0_8] : memref<512x128xbf16, #tpu.memory_space<vmem>>, vector<512x128xbf16>
    tpu.vector_store %arg4[%c0_7, %c0_8], %11 {strides = array<i32>} : memref<512x128xbf16, #tpu.memory_space<vmem>>, vector<512x128xbf16>,
    return
  }
  func.func @transform_0(%arg0: i32) -> (i32, i32) {
    %c0_i32 = arith.constant 0 : i32
    %c0_i32_0 = arith.constant 0 : i32
    return %arg0, %c0_i32 : i32, i32
  }
  func.func @transform_1(%arg0: i32) -> (i32, i32) {
    %c0_i32 = arith.constant 0 : i32
    %c0_i32_0 = arith.constant 0 : i32
    %c0_i32_1 = arith.constant 0 : i32
    return %c0_i32, %c0_i32_0 : i32, i32
  }
  func.func @transform_2(%arg0: i32) -> (i32, i32) {
    %c0_i32 = arith.constant 0 : i32
    %c0_i32_0 = arith.constant 0 : i32
    %c0_i32_1 = arith.constant 0 : i32
    return %c0_i32, %c0_i32_0 : i32, i32
  }
  func.func @transform_3(%arg0: i32) -> (i32, i32) {
    %c0_i32 = arith.constant 0 : i32
    %c0_i32_0 = arith.constant 0 : i32
    return %arg0, %c0_i32 : i32, i32
  }
}

module attributes {stable_mosaic.version = 11 : i64} {
  func.func @_gemm_bias_act_kernel(%arg0: i32, %arg1: memref<216x2048xbf16, #tpu.memory_space<vmem>>, %arg2: memref<2048x128xbf16, #tpu.memory_space<vmem>>, %arg3: memref<1x128xf32, #tpu.memory_space<vmem>>, %arg4: memref<216x128xbf16, #tpu.memory_space<vmem>>) attributes {dimension_semantics = [#tpu.dimension_semantics<parallel>], iteration_bounds = array<i64: 1>, scalar_prefetch = 0 : i64, scratch_operands = 0 : i64, tpu.core_type = #tpu.core_type<tc>, window_params = [{transform_indices = @transform_0, window_bounds = array<i64: 216, 2048>}, {pipeline_mode = #tpu.pipeline_mode<synchronous>, transform_indices = @transform_1, window_bounds = array<i64: 2048, 128>}, {pipeline_mode = #tpu.pipeline_mode<synchronous>, transform_indices = @transform_2, window_bounds = array<i64: 1, 128>}, {transform_indices = @transform_3, window_bounds = array<i64: 216, 128>}]} {
    %c0 = arith.constant 0 : index
    %c0_0 = arith.constant 0 : index
    %0 = vector.load %arg1[%c0, %c0_0] : memref<216x2048xbf16, #tpu.memory_space<vmem>>, vector<216x2048xbf16>
    %c0_1 = arith.constant 0 : index
    %c0_2 = arith.constant 0 : index
    %1 = vector.load %arg2[%c0_1, %c0_2] : memref<2048x128xbf16, #tpu.memory_space<vmem>>, vector<2048x128xbf16>
    %cst = arith.constant dense<0.000000e+00> : vector<216x128xf32>
    %2 = tpu.matmul %0, %1, %cst {dimension_numbers = #tpu.dot_dimension_numbers<[1], [0], [0], [1], [0, 0, 1, 1], [], []>} : vector<216x2048xbf16>, vector<2048x128xbf16>, vector<216x128xf32> -> vector<216x128xf32>
    %c0_3 = arith.constant 0 : index
    %c0_4 = arith.constant 0 : index
    %3 = vector.load %arg3[%c0_3, %c0_4] : memref<1x128xf32, #tpu.memory_space<vmem>>, vector<1x128xf32>
    %4 = vector.broadcast %3 : vector<1x128xf32> to vector<216x128xf32>
    %5 = arith.addf %2, %4 : vector<216x128xf32>
    %cst_5 = arith.constant 0.000000e+00 : f32
    %6 = vector.broadcast %cst_5 : f32 to vector<216x128xf32>
    %7 = arith.cmpf ogt, %5, %6 : vector<216x128xf32>
    %cst_6 = arith.constant 2.000000e-01 : f32
    %8 = vector.broadcast %cst_6 : f32 to vector<216x128xf32>
    %9 = arith.mulf %8, %5 : vector<216x128xf32>
    %10 = arith.select %7, %5, %9 : vector<216x128xi1>, vector<216x128xf32>
    %11 = arith.truncf %10 : vector<216x128xf32> to vector<216x128xbf16>
    %c0_7 = arith.constant 0 : index
    %c0_8 = arith.constant 0 : index
    %12 = vector.load %arg4[%c0_7, %c0_8] : memref<216x128xbf16, #tpu.memory_space<vmem>>, vector<216x128xbf16>
    tpu.vector_store %arg4[%c0_7, %c0_8], %11 {strides = array<i32>} : memref<216x128xbf16, #tpu.memory_space<vmem>>, vector<216x128xbf16>,
    return
  }
  func.func @transform_0(%arg0: i32) -> (i32, i32) {
    %c0_i32 = arith.constant 0 : i32
    %c0_i32_0 = arith.constant 0 : i32
    return %arg0, %c0_i32 : i32, i32
  }
  func.func @transform_1(%arg0: i32) -> (i32, i32) {
    %c0_i32 = arith.constant 0 : i32
    %c0_i32_0 = arith.constant 0 : i32
    %c0_i32_1 = arith.constant 0 : i32
    return %c0_i32, %c0_i32_0 : i32, i32
  }
  func.func @transform_2(%arg0: i32) -> (i32, i32) {
    %c0_i32 = arith.constant 0 : i32
    %c0_i32_0 = arith.constant 0 : i32
    %c0_i32_1 = arith.constant 0 : i32
    return %c0_i32, %c0_i32_0 : i32, i32
  }
  func.func @transform_3(%arg0: i32) -> (i32, i32) {
    %c0_i32 = arith.constant 0 : i32
    %c0_i32_0 = arith.constant 0 : i32
    return %arg0, %c0_i32 : i32, i32
  }
}

module attributes {stable_mosaic.version = 11 : i64} {
  func.func @_gemm_bias_act_kernel(%arg0: i32, %arg1: memref<110x2048xbf16, #tpu.memory_space<vmem>>, %arg2: memref<2048x256xbf16, #tpu.memory_space<vmem>>, %arg3: memref<1x256xf32, #tpu.memory_space<vmem>>, %arg4: memref<110x256xbf16, #tpu.memory_space<vmem>>) attributes {dimension_semantics = [#tpu.dimension_semantics<parallel>], iteration_bounds = array<i64: 1>, scalar_prefetch = 0 : i64, scratch_operands = 0 : i64, tpu.core_type = #tpu.core_type<tc>, window_params = [{transform_indices = @transform_0, window_bounds = array<i64: 110, 2048>}, {pipeline_mode = #tpu.pipeline_mode<synchronous>, transform_indices = @transform_1, window_bounds = array<i64: 2048, 256>}, {pipeline_mode = #tpu.pipeline_mode<synchronous>, transform_indices = @transform_2, window_bounds = array<i64: 1, 256>}, {transform_indices = @transform_3, window_bounds = array<i64: 110, 256>}]} {
    %c0 = arith.constant 0 : index
    %c0_0 = arith.constant 0 : index
    %0 = vector.load %arg1[%c0, %c0_0] : memref<110x2048xbf16, #tpu.memory_space<vmem>>, vector<110x2048xbf16>
    %c0_1 = arith.constant 0 : index
    %c0_2 = arith.constant 0 : index
    %1 = vector.load %arg2[%c0_1, %c0_2] : memref<2048x256xbf16, #tpu.memory_space<vmem>>, vector<2048x256xbf16>
    %cst = arith.constant dense<0.000000e+00> : vector<110x256xf32>
    %2 = tpu.matmul %0, %1, %cst {dimension_numbers = #tpu.dot_dimension_numbers<[1], [0], [0], [1], [0, 0, 1, 1], [], []>} : vector<110x2048xbf16>, vector<2048x256xbf16>, vector<110x256xf32> -> vector<110x256xf32>
    %c0_3 = arith.constant 0 : index
    %c0_4 = arith.constant 0 : index
    %3 = vector.load %arg3[%c0_3, %c0_4] : memref<1x256xf32, #tpu.memory_space<vmem>>, vector<1x256xf32>
    %4 = vector.broadcast %3 : vector<1x256xf32> to vector<110x256xf32>
    %5 = arith.addf %2, %4 : vector<110x256xf32>
    %cst_5 = arith.constant 0.000000e+00 : f32
    %6 = vector.broadcast %cst_5 : f32 to vector<110x256xf32>
    %7 = arith.cmpf ogt, %5, %6 : vector<110x256xf32>
    %cst_6 = arith.constant 2.000000e-01 : f32
    %8 = vector.broadcast %cst_6 : f32 to vector<110x256xf32>
    %9 = arith.mulf %8, %5 : vector<110x256xf32>
    %10 = arith.select %7, %5, %9 : vector<110x256xi1>, vector<110x256xf32>
    %11 = arith.truncf %10 : vector<110x256xf32> to vector<110x256xbf16>
    %c0_7 = arith.constant 0 : index
    %c0_8 = arith.constant 0 : index
    %12 = vector.load %arg4[%c0_7, %c0_8] : memref<110x256xbf16, #tpu.memory_space<vmem>>, vector<110x256xbf16>
    tpu.vector_store %arg4[%c0_7, %c0_8], %11 {strides = array<i32>} : memref<110x256xbf16, #tpu.memory_space<vmem>>, vector<110x256xbf16>,
    return
  }
  func.func @transform_0(%arg0: i32) -> (i32, i32) {
    %c0_i32 = arith.constant 0 : i32
    %c0_i32_0 = arith.constant 0 : i32
    return %arg0, %c0_i32 : i32, i32
  }
  func.func @transform_1(%arg0: i32) -> (i32, i32) {
    %c0_i32 = arith.constant 0 : i32
    %c0_i32_0 = arith.constant 0 : i32
    %c0_i32_1 = arith.constant 0 : i32
    return %c0_i32, %c0_i32_0 : i32, i32
  }
  func.func @transform_2(%arg0: i32) -> (i32, i32) {
    %c0_i32 = arith.constant 0 : i32
    %c0_i32_0 = arith.constant 0 : i32
    %c0_i32_1 = arith.constant 0 : i32
    return %c0_i32, %c0_i32_0 : i32, i32
  }
  func.func @transform_3(%arg0: i32) -> (i32, i32) {
    %c0_i32 = arith.constant 0 : i32
    %c0_i32_0 = arith.constant 0 : i32
    return %arg0, %c0_i32 : i32, i32
  }
}

module attributes {stable_mosaic.version = 11 : i64} {
  func.func @_gemm_bias_act_kernel(%arg0: i32, %arg1: memref<20x4096xbf16, #tpu.memory_space<vmem>>, %arg2: memref<4096x512xbf16, #tpu.memory_space<vmem>>, %arg3: memref<1x512xf32, #tpu.memory_space<vmem>>, %arg4: memref<20x512xbf16, #tpu.memory_space<vmem>>) attributes {dimension_semantics = [#tpu.dimension_semantics<parallel>], iteration_bounds = array<i64: 1>, scalar_prefetch = 0 : i64, scratch_operands = 0 : i64, tpu.core_type = #tpu.core_type<tc>, window_params = [{transform_indices = @transform_0, window_bounds = array<i64: 20, 4096>}, {pipeline_mode = #tpu.pipeline_mode<synchronous>, transform_indices = @transform_1, window_bounds = array<i64: 4096, 512>}, {pipeline_mode = #tpu.pipeline_mode<synchronous>, transform_indices = @transform_2, window_bounds = array<i64: 1, 512>}, {transform_indices = @transform_3, window_bounds = array<i64: 20, 512>}]} {
    %c0 = arith.constant 0 : index
    %c0_0 = arith.constant 0 : index
    %0 = vector.load %arg1[%c0, %c0_0] : memref<20x4096xbf16, #tpu.memory_space<vmem>>, vector<20x4096xbf16>
    %c0_1 = arith.constant 0 : index
    %c0_2 = arith.constant 0 : index
    %1 = vector.load %arg2[%c0_1, %c0_2] : memref<4096x512xbf16, #tpu.memory_space<vmem>>, vector<4096x512xbf16>
    %cst = arith.constant dense<0.000000e+00> : vector<20x512xf32>
    %2 = tpu.matmul %0, %1, %cst {dimension_numbers = #tpu.dot_dimension_numbers<[1], [0], [0], [1], [0, 0, 1, 1], [], []>} : vector<20x4096xbf16>, vector<4096x512xbf16>, vector<20x512xf32> -> vector<20x512xf32>
    %c0_3 = arith.constant 0 : index
    %c0_4 = arith.constant 0 : index
    %3 = vector.load %arg3[%c0_3, %c0_4] : memref<1x512xf32, #tpu.memory_space<vmem>>, vector<1x512xf32>
    %4 = vector.broadcast %3 : vector<1x512xf32> to vector<20x512xf32>
    %5 = arith.addf %2, %4 : vector<20x512xf32>
    %cst_5 = arith.constant 0.000000e+00 : f32
    %6 = vector.broadcast %cst_5 : f32 to vector<20x512xf32>
    %7 = arith.cmpf ogt, %5, %6 : vector<20x512xf32>
    %cst_6 = arith.constant 2.000000e-01 : f32
    %8 = vector.broadcast %cst_6 : f32 to vector<20x512xf32>
    %9 = arith.mulf %8, %5 : vector<20x512xf32>
    %10 = arith.select %7, %5, %9 : vector<20x512xi1>, vector<20x512xf32>
    %11 = arith.truncf %10 : vector<20x512xf32> to vector<20x512xbf16>
    %c0_7 = arith.constant 0 : index
    %c0_8 = arith.constant 0 : index
    %12 = vector.load %arg4[%c0_7, %c0_8] : memref<20x512xbf16, #tpu.memory_space<vmem>>, vector<20x512xbf16>
    tpu.vector_store %arg4[%c0_7, %c0_8], %11 {strides = array<i32>} : memref<20x512xbf16, #tpu.memory_space<vmem>>, vector<20x512xbf16>,
    return
  }
  func.func @transform_0(%arg0: i32) -> (i32, i32) {
    %c0_i32 = arith.constant 0 : i32
    %c0_i32_0 = arith.constant 0 : i32
    return %arg0, %c0_i32 : i32, i32
  }
  func.func @transform_1(%arg0: i32) -> (i32, i32) {
    %c0_i32 = arith.constant 0 : i32
    %c0_i32_0 = arith.constant 0 : i32
    %c0_i32_1 = arith.constant 0 : i32
    return %c0_i32, %c0_i32_0 : i32, i32
  }
  func.func @transform_2(%arg0: i32) -> (i32, i32) {
    %c0_i32 = arith.constant 0 : i32
    %c0_i32_0 = arith.constant 0 : i32
    %c0_i32_1 = arith.constant 0 : i32
    return %c0_i32, %c0_i32_0 : i32, i32
  }
  func.func @transform_3(%arg0: i32) -> (i32, i32) {
    %c0_i32 = arith.constant 0 : i32
    %c0_i32_0 = arith.constant 0 : i32
    return %arg0, %c0_i32 : i32, i32
  }
}

</mosaic_0001>

<bundles_post_ra>
// kernel: forward.4
= control target key start
LH: loop header
LB: loop body
LE: loop exit
PB: predicated region body
PF: predicated region fallthrough
CT: control target
= control target key end

     0   :  { %vm262_vm0 = vcmask 261120   ;;  %s2018_s1 = inlined_call_operand.vmem [shape: bf16[32,128], index: 1, kind: input, shape index: {}]   ;;  %s2019_s0 = inlined_call_operand.vmem [shape: bf16[512,32], index: 0, kind: input, shape index: {}]   ;;  %s2020_s2 = inlined_call_operand.vmem [shape: f32[1,128], index: 2, kind: input, shape index: {}]   ;;  %s2021_s3 = inlined_call_operand.vmem [shape: bf16[512,128], index: 3, kind: output, shape index: {}]  }
   0x1   :  { %v1656_v0 = vld [vmem:[%s2018_s1] sm:$0xff]   ;;  %v1657_v1 = vld [vmem:[%s2018_s1 + $0x8] sm:$0xff]   ;;  %v1662_v6 = vld [vmem:[%s2019_s0 + $0x10] sm:$0xff]  }
   0x2   :  { %1584 = vmatprep.subr.bf16.mxu0 %v1656_v0  ;;  %1652 = vmatprep.subr.bf16.mxu1 %v1656_v0  ;;  %v1658_v2 = vld [vmem:[%s2019_s0] sm:$0xff]   ;;  %v1660_v4 = vld [vmem:[%s2019_s0 + $0x8] sm:$0xff]   ;;  %v1663_v7 = vld [vmem:[%s2019_s0 + $0x90] sm:$0xff]  }
   0x3   :  { %1585 = vmatpush3.bf16.msra.mxu0 %v1656_v0  ;;  %1654 = vmatpush3.bf16.msra.mxu1 %v1656_v0  ;;  %v1659_v3 = vld [vmem:[%s2019_s0 + $0x80] sm:$0xff]   ;;  %v1661_v5 = vld [vmem:[%s2019_s0 + $0x88] sm:$0xff]   ;;  %v1664_v8 = vld [vmem:[%s2019_s0 + $0x18] sm:$0xff]  }
   0x4   :  { %1586 = vmatprep.subr.bf16.mxu0 %v1657_v1  ;;  %1653 = vmatprep.subr.bf16.mxu1 %v1657_v1  ;;  %v1665_v9 = vld [vmem:[%s2019_s0 + $0x98] sm:$0xff]   ;;  %v1666_v10 = vld [vmem:[%s2019_s0 + $0x20] sm:$0xff]   ;;  %v1668_v12 = vld [vmem:[%s2019_s0 + $0x28] sm:$0xff]  }
   0x5   :  { %1588 = vmatprep.mubr.msk.bf16.mxu0 %vm262_vm0, %v1658_v2  ;;  %1620 = vmatprep.mubr.msk.bf16.mxu1 %vm262_vm0, %v1659_v3  ;;  %v1667_v11 = vld [vmem:[%s2019_s0 + $0xa0] sm:$0xff]   ;;  %v1669_v13 = vld [vmem:[%s2019_s0 + $0xa8] sm:$0xff]   ;;  %v1670_v14 = vld [vmem:[%s2019_s0 + $0x30] sm:$0xff]  }
   0x6   :  { %v1671_v15 = vld [vmem:[%s2019_s0 + $0xb0] sm:$0xff]   ;;  %v1672_v16 = vld [vmem:[%s2019_s0 + $0x38] sm:$0xff]   ;;  %v1674_v18 = vld [vmem:[%s2019_s0 + $0x40] sm:$0xff]  }
   0x7   :  { %1587 = vmatpush3.bf16.msra.mxu0 %v1657_v1  ;;  %1655 = vmatpush3.bf16.msra.mxu1 %v1657_v1  ;;  %v1673_v17 = vld [vmem:[%s2019_s0 + $0xb8] sm:$0xff]   ;;  %v1675_v19 = vld [vmem:[%s2019_s0 + $0xc0] sm:$0xff]   ;;  %v1676_v20 = vld [vmem:[%s2019_s0 + $0x48] sm:$0xff]  }
   0x8   :  { %v1677_v21 = vld [vmem:[%s2019_s0 + $0xc8] sm:$0xff]   ;;  %v1678_v22 = vld [vmem:[%s2019_s0 + $0x50] sm:$0xff]   ;;  %v1680_v24 = vld [vmem:[%s2019_s0 + $0x58] sm:$0xff]  }
   0x9   :  { %v1679_v23 = vld [vmem:[%s2019_s0 + $0xd0] sm:$0xff]   ;;  %v1681_v25 = vld [vmem:[%s2019_s0 + $0xd8] sm:$0xff]   ;;  %v1682_v26 = vld [vmem:[%s2019_s0 + $0x60] sm:$0xff]  }
   0xa   :  { %1589 = vmatmul.mubr.msk.bf16.vlgmr.msra.gmra.mrb[0].mxu0 %vm262_vm0, %v1660_v4  ;;  %1621 = vmatmul.mubr.msk.bf16.vlgmr.msra.gmra.mrb[0].mxu1 %vm262_vm0, %v1661_v5  ;;  %v1683_v27 = vld [vmem:[%s2019_s0 + $0xe0] sm:$0xff]   ;;  %v1684_v28 = vld [vmem:[%s2019_s0 + $0x68] sm:$0xff]   ;;  %v1686_v30 = vld [vmem:[%s2019_s0 + $0x70] sm:$0xff]  }
   0xb   :  { %1592 = vmatprep.mubr.msk.bf16.mxu0 %vm262_vm0, %v1662_v6  ;;  %1624 = vmatprep.mubr.msk.bf16.mxu1 %vm262_vm0, %v1663_v7  ;;  %v1685_v29 = vld [vmem:[%s2019_s0 + $0xe8] sm:$0xff]   ;;  %v1687_v31 = vld [vmem:[%s2019_s0 + $0xf0] sm:$0xff]   ;;  %v1688_v32 = vld [vmem:[%s2019_s0 + $0x78] sm:$0xff]  }
   0xc   :  { %v1689_v33 = vld [vmem:[%s2019_s0 + $0xf8] sm:$0xff]   ;;  %v1847_v34 = vld [vmem:[%s2020_s2] ss:$0 sm:$0xff] }
  0x12   :  { %1593 = vmatmul.mubr.msk.bf16.gmra.mrb[4].mxu0 %vm262_vm0, %v1664_v8  ;;  %1625 = vmatmul.mubr.msk.bf16.gmra.mrb[4].mxu1 %vm262_vm0, %v1665_v9 }
  0x13   :  { %1596 = vmatprep.mubr.msk.bf16.mxu0 %vm262_vm0, %v1666_v10  ;;  %1628 = vmatprep.mubr.msk.bf16.mxu1 %vm262_vm0, %v1667_v11 }
  0x1a   :  { %1597 = vmatmul.mubr.msk.bf16.gmra.mrb[8].mxu0 %vm262_vm0, %v1668_v12  ;;  %1629 = vmatmul.mubr.msk.bf16.gmra.mrb[8].mxu1 %vm262_vm0, %v1669_v13 }
  0x1b   :  { %1600 = vmatprep.mubr.msk.bf16.mxu0 %vm262_vm0, %v1670_v14  ;;  %1632 = vmatprep.mubr.msk.bf16.mxu1 %vm262_vm0, %v1671_v15 }
  0x22   :  { %1601 = vmatmul.mubr.msk.bf16.gmra.mrb[12].mxu0 %vm262_vm0, %v1672_v16  ;;  %1633 = vmatmul.mubr.msk.bf16.gmra.mrb[12].mxu1 %vm262_vm0, %v1673_v17 }
  0x23   :  { %1604 = vmatprep.mubr.msk.bf16.mxu0 %vm262_vm0, %v1674_v18  ;;  %1636 = vmatprep.mubr.msk.bf16.mxu1 %vm262_vm0, %v1675_v19 }
  0x2a   :  { %1605 = vmatmul.mubr.msk.bf16.gmra.mrb[16].mxu0 %vm262_vm0, %v1676_v20  ;;  %1637 = vmatmul.mubr.msk.bf16.gmra.mrb[16].mxu1 %vm262_vm0, %v1677_v21 }
  0x2b   :  { %1608 = vmatprep.mubr.msk.bf16.mxu0 %vm262_vm0, %v1678_v22  ;;  %1640 = vmatprep.mubr.msk.bf16.mxu1 %vm262_vm0, %v1679_v23 }
  0x32   :  { %1609 = vmatmul.mubr.msk.bf16.gmra.mrb[20].mxu0 %vm262_vm0, %v1680_v24  ;;  %1641 = vmatmul.mubr.msk.bf16.gmra.mrb[20].mxu1 %vm262_vm0, %v1681_v25 }
  0x33   :  { %1612 = vmatprep.mubr.msk.bf16.mxu0 %vm262_vm0, %v1682_v26  ;;  %1644 = vmatprep.mubr.msk.bf16.mxu1 %vm262_vm0, %v1683_v27 }
  0x3a   :  { %1613 = vmatmul.mubr.msk.bf16.gmra.mrb[24].mxu0 %vm262_vm0, %v1684_v28  ;;  %1645 = vmatmul.mubr.msk.bf16.gmra.mrb[24].mxu1 %vm262_vm0, %v1685_v29 }
  0x3b   :  { %1616 = vmatprep.mubr.msk.bf16.mxu0 %vm262_vm0, %v1686_v30  ;;  %1648 = vmatprep.mubr.msk.bf16.mxu1 %vm262_vm0, %v1687_v31 }
  0x42   :  { %1617 = vmatmul.mubr.msk.bf16.gmra.mrb[28].mxu0 %vm262_vm0, %v1688_v32  ;;  %1649 = vmatmul.mubr.msk.bf16.gmra.mrb[28].mxu1 %vm262_vm0, %v1689_v33 }
  0xdd   :  { %v1590_v35 = vpop.f32.mrb[0].mxu0  ;;  %v1622_v36 = vpop.f32.mrb[0].mxu1 }
  0xde   :  { %v402_v37 = vadd.f32 %v1590_v35, %v1847_v34  ;;  %v530_v38 = vadd.f32 %v1622_v36, %v1847_v34  ;;  %v393_v39 = vpop.f32.mrb[1].mxu0  ;;  %v521_v40 = vpop.f32.mrb[1].mxu1 }
  0xdf   :  { %v394_v41 = vadd.f32 %v1847_v34, %v393_v39  ;;  %v522_v42 = vadd.f32 %v1847_v34, %v521_v40  ;;  %v1591_v43 = vpop.f32.mrb[2].mxu0  ;;  %v1623_v44 = vpop.f32.mrb[2].mxu1 }
  0xe0   :  { %vm650_vm1 = vcmp.gt.f32.partialorder %v402_v37, 0.0  ;;  %v714_v45 = vmul.f32 0.2, %v402_v37  ;;  %vm682_vm2 = vcmp.gt.f32.partialorder %v530_v38, 0.0  ;;  %v746_v46 = vmul.f32 0.2, %v530_v38 }
  0xe1   :  { %vm648_vm3 = vcmp.gt.f32.partialorder %v394_v41, 0.0  ;;  %v712_v47 = vmul.f32 0.2, %v394_v41  ;;  %vm680_vm4 = vcmp.gt.f32.partialorder %v522_v42, 0.0  ;;  %v744_v48 = vmul.f32 0.2, %v522_v42 }
  0xe2   :  { %v405_v49 = vadd.f32 %v1591_v43, %v1847_v34  ;;  %v533_v50 = vadd.f32 %v1623_v44, %v1847_v34  ;;  %v396_v51 = vpop.f32.mrb[3].mxu0  ;;  %v524_v52 = vpop.f32.mrb[3].mxu1  ;;  %v778_v53 = vsel %vm650_vm1, %v402_v37, %v714_v45  ;;  %v810_v54 = vsel %vm682_vm2, %v530_v38, %v746_v46 }
  0xe3   :  { %v397_v55 = vadd.f32 %v1847_v34, %v396_v51  ;;  %v525_v56 = vadd.f32 %v1847_v34, %v524_v52  ;;  %v776_v61 = vsel %vm648_vm3, %v394_v41, %v712_v47  ;;  %v808_v62 = vsel %vm680_vm4, %v522_v42, %v744_v48 }
  0xe4   :  { %vm651_vm5 = vcmp.gt.f32.partialorder %v405_v49, 0.0  ;;  %v715_v57 = vmul.f32 0.2, %v405_v49  ;;  %vm683_vm6 = vcmp.gt.f32.partialorder %v533_v50, 0.0  ;;  %v747_v58 = vmul.f32 0.2, %v533_v50 }
  0xe5   :  { %vm649_vm7 = vcmp.gt.f32.partialorder %v397_v55, 0.0  ;;  %v713_v59 = vmul.f32 0.2, %v397_v55  ;;  %vm681_vm8 = vcmp.gt.f32.partialorder %v525_v56, 0.0  ;;  %v745_v60 = vmul.f32 0.2, %v525_v56 }
  0xe6   :  { %v779_v63 = vsel %vm651_vm5, %v405_v49, %v715_v57  ;;  %v811_v0 = vsel %vm683_vm6, %v533_v50, %v747_v58  ;;  %v1594_v1 = vpop.f32.mrb[4].mxu0  ;;  %v1626_v2 = vpop.f32.mrb[4].mxu1 }
  0xe7   :  { %v1367_v3 = vpack.c.bf16 %v779_v63, %v778_v53  ;;  %v1447_v4 = vpack.c.bf16 %v811_v0, %v810_v54  ;;  %v777_v5 = vsel %vm649_vm7, %v397_v55, %v713_v59  ;;  %v809_v6 = vsel %vm681_vm8, %v525_v56, %v745_v60  ;;  %v409_v7 = vpop.f32.mrb[5].mxu0  ;;  %v537_v8 = vpop.f32.mrb[5].mxu1 }
  0xe8   :  { %v1362_v9 = vpack.c.bf16 %v777_v5, %v776_v61  ;;  %v1442_v10 = vpack.c.bf16 %v809_v6, %v808_v62  ;;  %v418_v11 = vadd.f32 %v1594_v1, %v1847_v34  ;;  %v546_v12 = vadd.f32 %v1626_v2, %v1847_v34  ;;  %v1595_v13 = vpop.f32.mrb[6].mxu0  ;;  %v1627_v14 = vpop.f32.mrb[6].mxu1 }
  0xe9   :  { %1519 = vst [vmem:[%s2021_s3 + $0x8] sm:$0xff] %v1367_v3   ;;  %1535 = vst [vmem:[%s2021_s3 + $0x88] sm:$0xff] %v1447_v4   ;;  %v410_v15 = vadd.f32 %v1847_v34, %v409_v7  ;;  %v538_v16 = vadd.f32 %v1847_v34, %v537_v8  ;;  %v421_v17 = vadd.f32 %v1595_v13, %v1847_v34  ;;  %v412_v19 = vpop.f32.mrb[7].mxu0  ;;  %v540_v20 = vpop.f32.mrb[7].mxu1 }
  0xea   :  { %v549_v18 = vadd.f32 %v1627_v14, %v1847_v34  ;;  %1363 = vst [vmem:[%s2021_s3] sm:$0xff] %v1362_v9   ;;  %1534 = vst [vmem:[%s2021_s3 + $0x80] sm:$0xff] %v1442_v10   ;;  %vm654_vm9 = vcmp.gt.f32.partialorder %v418_v11, 0.0  ;;  %v718_v21 = vmul.f32 0.2, %v418_v11  ;;  %vm686_vm10 = vcmp.gt.f32.partialorder %v546_v12, 0.0 }
  0xeb   :  { %v750_v22 = vmul.f32 0.2, %v546_v12  ;;  %vm652_vm11 = vcmp.gt.f32.partialorder %v410_v15, 0.0  ;;  %v716_v23 = vmul.f32 0.2, %v410_v15  ;;  %vm684_vm12 = vcmp.gt.f32.partialorder %v538_v16, 0.0 }
  0xec   :  { %v748_v24 = vmul.f32 0.2, %v538_v16  ;;  %v782_v25 = vsel %vm654_vm9, %v418_v11, %v718_v21  ;;  %vm655_vm13 = vcmp.gt.f32.partialorder %v421_v17, 0.0  ;;  %v719_v27 = vmul.f32 0.2, %v421_v17 }
  0xed   :  { %v814_v26 = vsel %vm686_vm10, %v546_v12, %v750_v22  ;;  %v780_v28 = vsel %vm652_vm11, %v410_v15, %v716_v23  ;;  %vm687_vm14 = vcmp.gt.f32.partialorder %v549_v18, 0.0  ;;  %v751_v30 = vmul.f32 0.2, %v549_v18  ;;  %v1598_v31 = vpop.f32.mrb[8].mxu0  ;;  %v1630_v32 = vpop.f32.mrb[8].mxu1 }
  0xee   :  { %v812_v29 = vsel %vm684_vm12, %v538_v16, %v748_v24  ;;  %v783_v33 = vsel %vm655_vm13, %v421_v17, %v719_v27  ;;  %v413_v35 = vadd.f32 %v1847_v34, %v412_v19  ;;  %v541_v36 = vadd.f32 %v1847_v34, %v540_v20  ;;  %v425_v38 = vpop.f32.mrb[9].mxu0  ;;  %v553_v39 = vpop.f32.mrb[9].mxu1 }
  0xef   :  { %v434_v37 = vadd.f32 %v1598_v31, %v1847_v34  ;;  %v1377_v40 = vpack.c.bf16 %v783_v33, %v782_v25  ;;  %v815_v41 = vsel %vm687_vm14, %v549_v18, %v751_v30  ;;  %v562_v42 = vadd.f32 %v1630_v32, %v1847_v34  ;;  %v1599_v44 = vpop.f32.mrb[10].mxu0  ;;  %v1631_v45 = vpop.f32.mrb[10].mxu1 }
  0xf0   :  { %v426_v43 = vadd.f32 %v1847_v34, %v425_v38  ;;  %v1457_v46 = vpack.c.bf16 %v815_v41, %v814_v26  ;;  %vm653_vm15 = vcmp.gt.f32.partialorder %v413_v35, 0.0  ;;  %v717_v47 = vmul.f32 0.2, %v413_v35  ;;  %v428_v48 = vpop.f32.mrb[11].mxu0  ;;  %v556_v49 = vpop.f32.mrb[11].mxu1 }
  0xf1   :  { %vm685_vm0 = vcmp.gt.f32.partialorder %v541_v36, 0.0  ;;  %1521 = vst [vmem:[%s2021_s3 + $0x18] sm:$0xff] %v1377_v40   ;;  %v749_v50 = vmul.f32 0.2, %v541_v36  ;;  %vm658_vm1 = vcmp.gt.f32.partialorder %v434_v37, 0.0  ;;  %vm690_vm2 = vcmp.gt.f32.partialorder %v562_v42, 0.0 }
  0xf2   :  { %v722_v51 = vmul.f32 0.2, %v434_v37  ;;  %1537 = vst [vmem:[%s2021_s3 + $0x98] sm:$0xff] %v1457_v46   ;;  %v781_v52 = vsel %vm653_vm15, %v413_v35, %v717_v47  ;;  %v754_v53 = vmul.f32 0.2, %v562_v42  ;;  %vm656_vm3 = vcmp.gt.f32.partialorder %v426_v43, 0.0 }
  0xf3   :  { %v720_v54 = vmul.f32 0.2, %v426_v43  ;;  %v1372_v55 = vpack.c.bf16 %v781_v52, %v780_v28  ;;  %v813_v56 = vsel %vm685_vm0, %v541_v36, %v749_v50  ;;  %v554_v58 = vadd.f32 %v1847_v34, %v553_v39 }
  0xf4   :  { %v786_v57 = vsel %vm658_vm1, %v434_v37, %v722_v51  ;;  %v1452_v59 = vpack.c.bf16 %v813_v56, %v812_v29  ;;  %v818_v60 = vsel %vm690_vm2, %v562_v42, %v754_v53  ;;  %v437_v62 = vadd.f32 %v1599_v44, %v1847_v34 }
  0xf5   :  { %v784_v61 = vsel %vm656_vm3, %v426_v43, %v720_v54  ;;  %1520 = vst [vmem:[%s2021_s3 + $0x10] sm:$0xff] %v1372_v55   ;;  %vm688_vm4 = vcmp.gt.f32.partialorder %v554_v58, 0.0  ;;  %v752_v63 = vmul.f32 0.2, %v554_v58  ;;  %v565_v0 = vadd.f32 %v1631_v45, %v1847_v34  ;;  %v1602_v2 = vpop.f32.mrb[12].mxu0  ;;  %v1634_v3 = vpop.f32.mrb[12].mxu1 }
  0xf6   :  { %v429_v1 = vadd.f32 %v1847_v34, %v428_v48  ;;  %1536 = vst [vmem:[%s2021_s3 + $0x90] sm:$0xff] %v1452_v59   ;;  %vm659_vm5 = vcmp.gt.f32.partialorder %v437_v62, 0.0  ;;  %v723_v4 = vmul.f32 0.2, %v437_v62  ;;  %v557_v5 = vadd.f32 %v1847_v34, %v556_v49  ;;  %v441_v7 = vpop.f32.mrb[13].mxu0  ;;  %v569_v8 = vpop.f32.mrb[13].mxu1 }
  0xf7   :  { %v450_v6 = vadd.f32 %v1602_v2, %v1847_v34  ;;  %v816_v9 = vsel %vm688_vm4, %v554_v58, %v752_v63  ;;  %vm691_vm6 = vcmp.gt.f32.partialorder %v565_v0, 0.0  ;;  %v755_v10 = vmul.f32 0.2, %v565_v0  ;;  %v1603_v11 = vpop.f32.mrb[14].mxu0  ;;  %v1635_v12 = vpop.f32.mrb[14].mxu1 }
  0xf8   :  { %vm657_vm7 = vcmp.gt.f32.partialorder %v429_v1, 0.0  ;;  %v787_v13 = vsel %vm659_vm5, %v437_v62, %v723_v4  ;;  %v721_v14 = vmul.f32 0.2, %v429_v1  ;;  %vm689_vm8 = vcmp.gt.f32.partialorder %v557_v5, 0.0  ;;  %v444_v16 = vpop.f32.mrb[15].mxu0  ;;  %v572_v20 = vpop.f32.mrb[15].mxu1 }
  0xf9   :  { %v753_v15 = vmul.f32 0.2, %v557_v5  ;;  %v1387_v17 = vpack.c.bf16 %v787_v13, %v786_v57  ;;  %v819_v18 = vsel %vm691_vm6, %v565_v0, %v755_v10  ;;  %vm662_vm9 = vcmp.gt.f32.partialorder %v450_v6, 0.0 }
  0xfa   :  { %v726_v19 = vmul.f32 0.2, %v450_v6  ;;  %v1467_v21 = vpack.c.bf16 %v819_v18, %v818_v60  ;;  %v785_v22 = vsel %vm657_vm7, %v429_v1, %v721_v14  ;;  %v578_v24 = vadd.f32 %v1634_v3, %v1847_v34 }
  0xfb   :  { %v817_v23 = vsel %vm689_vm8, %v557_v5, %v753_v15  ;;  %1523 = vst [vmem:[%s2021_s3 + $0x28] sm:$0xff] %v1387_v17   ;;  %v1382_v25 = vpack.c.bf16 %v785_v22, %v784_v61  ;;  %v442_v28 = vadd.f32 %v1847_v34, %v441_v7  ;;  %v570_v30 = vadd.f32 %v1847_v34, %v569_v8 }
  0xfc   :  { %v1462_v26 = vpack.c.bf16 %v817_v23, %v816_v9  ;;  %v790_v27 = vsel %vm662_vm9, %v450_v6, %v726_v19  ;;  %1539 = vst [vmem:[%s2021_s3 + $0xa8] sm:$0xff] %v1467_v21   ;;  %vm694_vm10 = vcmp.gt.f32.partialorder %v578_v24, 0.0  ;;  %v758_v29 = vmul.f32 0.2, %v578_v24 }
  0xfd   :  { %v453_v31 = vadd.f32 %v1603_v11, %v1847_v34  ;;  %1522 = vst [vmem:[%s2021_s3 + $0x20] sm:$0xff] %v1382_v25   ;;  %vm660_vm11 = vcmp.gt.f32.partialorder %v442_v28, 0.0  ;;  %v724_v32 = vmul.f32 0.2, %v442_v28  ;;  %v581_v33 = vadd.f32 %v1635_v12, %v1847_v34  ;;  %v1606_v36 = vpop.f32.mrb[16].mxu0  ;;  %v1638_v37 = vpop.f32.mrb[16].mxu1 }
  0xfe   :  { %1538 = vst [vmem:[%s2021_s3 + $0xa0] sm:$0xff] %v1462_v26   ;;  %v445_v35 = vadd.f32 %v1847_v34, %v444_v16  ;;  %v822_v38 = vsel %vm694_vm10, %v578_v24, %v758_v29  ;;  %vm692_vm12 = vcmp.gt.f32.partialorder %v570_v30, 0.0  ;;  %v756_v39 = vmul.f32 0.2, %v570_v30  ;;  %v457_v40 = vpop.f32.mrb[17].mxu0  ;;  %v585_v41 = vpop.f32.mrb[17].mxu1 }
  0xff   :  { %vm663_vm13 = vcmp.gt.f32.partialorder %v453_v31, 0.0  ;;  %v788_v42 = vsel %vm660_vm11, %v442_v28, %v724_v32  ;;  %v727_v43 = vmul.f32 0.2, %v453_v31  ;;  %vm695_vm14 = vcmp.gt.f32.partialorder %v581_v33, 0.0  ;;  %v1607_v45 = vpop.f32.mrb[18].mxu0  ;;  %v1639_v49 = vpop.f32.mrb[18].mxu1 }
 0x100   :  { %v759_v44 = vmul.f32 0.2, %v581_v33  ;;  %v820_v46 = vsel %vm692_vm12, %v570_v30, %v756_v39  ;;  %vm661_vm15 = vcmp.gt.f32.partialorder %v445_v35, 0.0  ;;  %v725_v47 = vmul.f32 0.2, %v445_v35  ;;  %v460_v50 = vpop.f32.mrb[19].mxu0 }
 0x101   :  { %v573_v48 = vadd.f32 %v1847_v34, %v572_v20  ;;  %v791_v51 = vsel %vm663_vm13, %v453_v31, %v727_v43  ;;  %v466_v53 = vadd.f32 %v1606_v36, %v1847_v34  ;;  %v594_v54 = vadd.f32 %v1638_v37, %v1847_v34  ;;  %v588_v55 = vpop.f32.mrb[19].mxu1 }
 0x102   :  { %v823_v52 = vsel %vm695_vm14, %v581_v33, %v759_v44  ;;  %v1397_v56 = vpack.c.bf16 %v791_v51, %v790_v27  ;;  %v789_v58 = vsel %vm661_vm15, %v445_v35, %v725_v47  ;;  %v458_v63 = vadd.f32 %v1847_v34, %v457_v40 }
 0x103   :  { %v1477_v57 = vpack.c.bf16 %v823_v52, %v822_v38  ;;  %vm693_vm0 = vcmp.gt.f32.partialorder %v573_v48, 0.0  ;;  %v1392_v59 = vpack.c.bf16 %v789_v58, %v788_v42  ;;  %v757_v60 = vmul.f32 0.2, %v573_v48 }
 0x104   :  { %vm666_vm1 = vcmp.gt.f32.partialorder %v466_v53, 0.0  ;;  %v730_v61 = vmul.f32 0.2, %v466_v53  ;;  %1525 = vst [vmem:[%s2021_s3 + $0x38] sm:$0xff] %v1397_v56   ;;  %vm698_vm2 = vcmp.gt.f32.partialorder %v594_v54, 0.0  ;;  %v586_v0 = vadd.f32 %v1847_v34, %v585_v41 }
 0x105   :  { %1541 = vst [vmem:[%s2021_s3 + $0xb8] sm:$0xff] %v1477_v57   ;;  %v762_v62 = vmul.f32 0.2, %v594_v54  ;;  %1524 = vst [vmem:[%s2021_s3 + $0x30] sm:$0xff] %v1392_v59   ;;  %v821_v1 = vsel %vm693_vm0, %v573_v48, %v757_v60  ;;  %v469_v3 = vadd.f32 %v1607_v45, %v1847_v34  ;;  %v597_v4 = vadd.f32 %v1639_v49, %v1847_v34  ;;  %v1610_v5 = vpop.f32.mrb[20].mxu0  ;;  %v1642_v6 = vpop.f32.mrb[20].mxu1 }
 0x106   :  { %v794_v2 = vsel %vm666_vm1, %v466_v53, %v730_v61  ;;  %v1472_v7 = vpack.c.bf16 %v821_v1, %v820_v46  ;;  %vm664_vm3 = vcmp.gt.f32.partialorder %v458_v63, 0.0  ;;  %v728_v9 = vmul.f32 0.2, %v458_v63  ;;  %v473_v10 = vpop.f32.mrb[21].mxu0  ;;  %v601_v11 = vpop.f32.mrb[21].mxu1 }
 0x107   :  { %v826_v8 = vsel %vm698_vm2, %v594_v54, %v762_v62  ;;  %vm696_vm4 = vcmp.gt.f32.partialorder %v586_v0, 0.0  ;;  %v760_v12 = vmul.f32 0.2, %v586_v0  ;;  %vm667_vm5 = vcmp.gt.f32.partialorder %v469_v3, 0.0  ;;  %v1611_v17 = vpop.f32.mrb[22].mxu0  ;;  %v1643_v18 = vpop.f32.mrb[22].mxu1 }
 0x108   :  { %v731_v13 = vmul.f32 0.2, %v469_v3  ;;  %1540 = vst [vmem:[%s2021_s3 + $0xb0] sm:$0xff] %v1472_v7   ;;  %v792_v14 = vsel %vm664_vm3, %v458_v63, %v728_v9  ;;  %vm699_vm6 = vcmp.gt.f32.partialorder %v597_v4, 0.0  ;;  %v763_v15 = vmul.f32 0.2, %v597_v4 }
 0x109   :  { %v461_v16 = vadd.f32 %v1847_v34, %v460_v50  ;;  %v824_v19 = vsel %vm696_vm4, %v586_v0, %v760_v12  ;;  %v589_v21 = vadd.f32 %v1847_v34, %v588_v55  ;;  %v482_v22 = vadd.f32 %v1610_v5, %v1847_v34  ;;  %v476_v23 = vpop.f32.mrb[23].mxu0  ;;  %v604_v24 = vpop.f32.mrb[23].mxu1 }
 0x10a   :  { %v795_v20 = vsel %vm667_vm5, %v469_v3, %v731_v13  ;;  %v827_v26 = vsel %vm699_vm6, %v597_v4, %v763_v15  ;;  %v610_v32 = vadd.f32 %v1642_v6, %v1847_v34  ;;  %v474_v33 = vadd.f32 %v1847_v34, %v473_v10 }
 0x10b   :  { %v1407_v25 = vpack.c.bf16 %v795_v20, %v794_v2  ;;  %vm665_vm7 = vcmp.gt.f32.partialorder %v461_v16, 0.0  ;;  %v729_v27 = vmul.f32 0.2, %v461_v16  ;;  %v1487_v28 = vpack.c.bf16 %v827_v26, %v826_v8 }
 0x10c   :  { %vm697_vm8 = vcmp.gt.f32.partialorder %v589_v21, 0.0  ;;  %v761_v29 = vmul.f32 0.2, %v589_v21  ;;  %vm670_vm9 = vcmp.gt.f32.partialorder %v482_v22, 0.0  ;;  %v734_v31 = vmul.f32 0.2, %v482_v22 }
 0x10d   :  { %1527 = vst [vmem:[%s2021_s3 + $0x48] sm:$0xff] %v1407_v25   ;;  %v793_v30 = vsel %vm665_vm7, %v461_v16, %v729_v27  ;;  %1543 = vst [vmem:[%s2021_s3 + $0xc8] sm:$0xff] %v1487_v28   ;;  %v602_v37 = vadd.f32 %v1847_v34, %v601_v11  ;;  %v485_v38 = vadd.f32 %v1611_v17, %v1847_v34  ;;  %v1614_v39 = vpop.f32.mrb[24].mxu0  ;;  %v1646_v40 = vpop.f32.mrb[24].mxu1  ;;  %vm702_vm10 = vcmp.gt.f32.partialorder %v610_v32, 0.0 }
 0x10e   :  { %v1402_v35 = vpack.c.bf16 %v793_v30, %v792_v14  ;;  %v825_v36 = vsel %vm697_vm8, %v589_v21, %v761_v29  ;;  %v766_v42 = vmul.f32 0.2, %v610_v32  ;;  %v489_v43 = vpop.f32.mrb[25].mxu0  ;;  %v617_v44 = vpop.f32.mrb[25].mxu1  ;;  %v798_v45 = vsel %vm670_vm9, %v482_v22, %v734_v31 }
 0x10f   :  { %v1482_v41 = vpack.c.bf16 %v825_v36, %v824_v19  ;;  %vm668_vm11 = vcmp.gt.f32.partialorder %v474_v33, 0.0  ;;  %v732_v46 = vmul.f32 0.2, %v474_v33  ;;  %v764_v47 = vmul.f32 0.2, %v602_v37  ;;  %v1615_v50 = vpop.f32.mrb[26].mxu0 }
 0x110   :  { %1526 = vst [vmem:[%s2021_s3 + $0x40] sm:$0xff] %v1402_v35   ;;  %vm700_vm12 = vcmp.gt.f32.partialorder %v602_v37, 0.0  ;;  %vm671_vm13 = vcmp.gt.f32.partialorder %v485_v38, 0.0  ;;  %v735_v48 = vmul.f32 0.2, %v485_v38  ;;  %v613_v49 = vadd.f32 %v1643_v18, %v1847_v34  ;;  %v1647_v51 = vpop.f32.mrb[26].mxu1 }
 0x111   :  { %1542 = vst [vmem:[%s2021_s3 + $0xc0] sm:$0xff] %v1482_v41   ;;  %v830_v52 = vsel %vm702_vm10, %v610_v32, %v766_v42  ;;  %v796_v53 = vsel %vm668_vm11, %v474_v33, %v732_v46  ;;  %v477_v54 = vadd.f32 %v1847_v34, %v476_v23  ;;  %v605_v55 = vadd.f32 %v1847_v34, %v604_v24  ;;  %v492_v56 = vpop.f32.mrb[27].mxu0  ;;  %v620_v57 = vpop.f32.mrb[27].mxu1 }
 0x112   :  { %v799_v58 = vsel %vm671_vm13, %v485_v38, %v735_v48  ;;  %vm703_vm14 = vcmp.gt.f32.partialorder %v613_v49, 0.0  ;;  %v767_v59 = vmul.f32 0.2, %v613_v49  ;;  %v498_v60 = vadd.f32 %v1614_v39, %v1847_v34 }
 0x113   :  { %v1417_v61 = vpack.c.bf16 %v799_v58, %v798_v45  ;;  %vm669_vm15 = vcmp.gt.f32.partialorder %v477_v54, 0.0  ;;  %v733_v62 = vmul.f32 0.2, %v477_v54  ;;  %vm701_vm0 = vcmp.gt.f32.partialorder %v605_v55, 0.0 }
 0x114   :  { %v831_v63 = vsel %vm703_vm14, %v613_v49, %v767_v59  ;;  %v765_v0 = vmul.f32 0.2, %v605_v55  ;;  %vm674_vm1 = vcmp.gt.f32.partialorder %v498_v60, 0.0  ;;  %v738_v1 = vmul.f32 0.2, %v498_v60 }
 0x115   :  { %1529 = vst [vmem:[%s2021_s3 + $0x58] sm:$0xff] %v1417_v61   ;;  %v1497_v2 = vpack.c.bf16 %v831_v63, %v830_v52  ;;  %v797_v3 = vsel %vm669_vm15, %v477_v54, %v733_v62  ;;  %v626_v4 = vadd.f32 %v1646_v40, %v1847_v34  ;;  %v490_v5 = vadd.f32 %v1847_v34, %v489_v43  ;;  %v1618_v6 = vpop.f32.mrb[28].mxu0  ;;  %v1650_v7 = vpop.f32.mrb[28].mxu1 }
 0x116   :  { %v828_v8 = vsel %vm700_vm12, %v602_v37, %v764_v47  ;;  %v1412_v9 = vpack.c.bf16 %v797_v3, %v796_v53  ;;  %v829_v10 = vsel %vm701_vm0, %v605_v55, %v765_v0  ;;  %v618_v11 = vadd.f32 %v1847_v34, %v617_v44  ;;  %v505_v12 = vpop.f32.mrb[29].mxu0  ;;  %v633_v13 = vpop.f32.mrb[29].mxu1 }
 0x117   :  { %1545 = vst [vmem:[%s2021_s3 + $0xd8] sm:$0xff] %v1497_v2   ;;  %v1492_v14 = vpack.c.bf16 %v829_v10, %v828_v8  ;;  %vm706_vm2 = vcmp.gt.f32.partialorder %v626_v4, 0.0  ;;  %v770_v15 = vmul.f32 0.2, %v626_v4  ;;  %vm672_vm3 = vcmp.gt.f32.partialorder %v490_v5, 0.0  ;;  %v1619_v16 = vpop.f32.mrb[30].mxu0 }
 0x118   :  { %v1651_v17 = vpop.f32.mrb[30].mxu1  ;;  %1528 = vst [vmem:[%s2021_s3 + $0x50] sm:$0xff] %v1412_v9   ;;  %v802_v18 = vsel %vm674_vm1, %v498_v60, %v738_v1  ;;  %v736_v19 = vmul.f32 0.2, %v490_v5  ;;  %vm704_vm4 = vcmp.gt.f32.partialorder %v618_v11, 0.0  ;;  %v501_v20 = vadd.f32 %v1615_v50, %v1847_v34  ;;  %v508_v21 = vpop.f32.mrb[31].mxu0 }
 0x119   :  { %1544 = vst [vmem:[%s2021_s3 + $0xd0] sm:$0xff] %v1492_v14   ;;  %v768_v22 = vmul.f32 0.2, %v618_v11  ;;  %v629_v23 = vadd.f32 %v1647_v51, %v1847_v34  ;;  %v493_v24 = vadd.f32 %v1847_v34, %v492_v56  ;;  %v621_v25 = vadd.f32 %v1847_v34, %v620_v57  ;;  %v636_v26 = vpop.f32.mrb[31].mxu1 }
 0x11a   :  { %v834_v27 = vsel %vm706_vm2, %v626_v4, %v770_v15  ;;  %v800_v28 = vsel %vm672_vm3, %v490_v5, %v736_v19  ;;  %vm675_vm5 = vcmp.gt.f32.partialorder %v501_v20, 0.0  ;;  %v739_v29 = vmul.f32 0.2, %v501_v20 }
 0x11b   :  { %vm707_vm6 = vcmp.gt.f32.partialorder %v629_v23, 0.0  ;;  %v771_v30 = vmul.f32 0.2, %v629_v23  ;;  %vm673_vm7 = vcmp.gt.f32.partialorder %v493_v24, 0.0  ;;  %v737_v31 = vmul.f32 0.2, %v493_v24 }
 0x11c   :  { %v803_v32 = vsel %vm675_vm5, %v501_v20, %v739_v29  ;;  %vm705_vm8 = vcmp.gt.f32.partialorder %v621_v25, 0.0  ;;  %v769_v33 = vmul.f32 0.2, %v621_v25  ;;  %v514_v35 = vadd.f32 %v1618_v6, %v1847_v34 }
 0x11d   :  { %v1427_v36 = vpack.c.bf16 %v803_v32, %v802_v18  ;;  %v835_v37 = vsel %vm707_vm6, %v629_v23, %v771_v30  ;;  %v801_v38 = vsel %vm673_vm7, %v493_v24, %v737_v31  ;;  %v642_v39 = vadd.f32 %v1650_v7, %v1847_v34 }
 0x11e   :  { %v832_v40 = vsel %vm704_vm4, %v618_v11, %v768_v22  ;;  %v1507_v41 = vpack.c.bf16 %v835_v37, %v834_v27  ;;  %v1422_v42 = vpack.c.bf16 %v801_v38, %v800_v28  ;;  %v833_v43 = vsel %vm705_vm8, %v621_v25, %v769_v33 }
 0x11f   :  { %1531 = vst [vmem:[%s2021_s3 + $0x68] sm:$0xff] %v1427_v36   ;;  %v1502_v44 = vpack.c.bf16 %v833_v43, %v832_v40  ;;  %vm678_vm9 = vcmp.gt.f32.partialorder %v514_v35, 0.0  ;;  %v742_v45 = vmul.f32 0.2, %v514_v35  ;;  %v774_v46 = vmul.f32 0.2, %v642_v39 }
 0x120   :  { %1547 = vst [vmem:[%s2021_s3 + $0xe8] sm:$0xff] %v1507_v41   ;;  %1530 = vst [vmem:[%s2021_s3 + $0x60] sm:$0xff] %v1422_v42   ;;  %v506_v47 = vadd.f32 %v1847_v34, %v505_v12  ;;  %v634_v48 = vadd.f32 %v1847_v34, %v633_v13  ;;  %v517_v49 = vadd.f32 %v1619_v16, %v1847_v34  ;;  %vm710_vm10 = vcmp.gt.f32.partialorder %v642_v39, 0.0 }
 0x121   :  { %v645_v50 = vadd.f32 %v1651_v17, %v1847_v34  ;;  %1546 = vst [vmem:[%s2021_s3 + $0xe0] sm:$0xff] %v1502_v44   ;;  %v509_v51 = vadd.f32 %v1847_v34, %v508_v21  ;;  %v637_v52 = vadd.f32 %v1847_v34, %v636_v26  ;;  %v806_v53 = vsel %vm678_vm9, %v514_v35, %v742_v45 }
 0x122   :  { %vm676_vm11 = vcmp.gt.f32.partialorder %v506_v47, 0.0  ;;  %v740_v54 = vmul.f32 0.2, %v506_v47  ;;  %v772_v55 = vmul.f32 0.2, %v634_v48  ;;  %vm679_vm12 = vcmp.gt.f32.partialorder %v517_v49, 0.0 }
 0x123   :  { %v743_v56 = vmul.f32 0.2, %v517_v49  ;;  %vm711_vm13 = vcmp.gt.f32.partialorder %v645_v50, 0.0  ;;  %v775_v57 = vmul.f32 0.2, %v645_v50  ;;  %v838_v58 = vsel %vm710_vm10, %v642_v39, %v774_v46 }
 0x124   :  { %vm708_vm14 = vcmp.gt.f32.partialorder %v634_v48, 0.0  ;;  %vm677_vm15 = vcmp.gt.f32.partialorder %v509_v51, 0.0  ;;  %v741_v59 = vmul.f32 0.2, %v509_v51  ;;  %vm709_vm0 = vcmp.gt.f32.partialorder %v637_v52, 0.0 }
 0x125   :  { %v807_v60 = vsel %vm679_vm12, %v517_v49, %v743_v56  ;;  %v839_v61 = vsel %vm711_vm13, %v645_v50, %v775_v57  ;;  %v773_v62 = vmul.f32 0.2, %v637_v52  ;;  %v804_v63 = vsel %vm676_vm11, %v506_v47, %v740_v54 }
 0x126   :  { %v1437_v0 = vpack.c.bf16 %v807_v60, %v806_v53  ;;  %v1517_v1 = vpack.c.bf16 %v839_v61, %v838_v58  ;;  %v805_v34 = vsel %vm677_vm15, %v509_v51, %v741_v59  ;;  %v836_v2 = vsel %vm708_vm14, %v634_v48, %v772_v55 }
 0x127   :  { %v1432_v3 = vpack.c.bf16 %v805_v34, %v804_v63  ;;  %v837_v4 = vsel %vm709_vm0, %v637_v52, %v773_v62 }
 0x128   :  { %1533 = vst [vmem:[%s2021_s3 + $0x78] sm:$0xff] %v1437_v0   ;;  %1549 = vst [vmem:[%s2021_s3 + $0xf8] sm:$0xff] %v1517_v1   ;;  %v1512_v5 = vpack.c.bf16 %v837_v4, %v836_v2 }
 0x129   :  { %1532 = vst [vmem:[%s2021_s3 + $0x70] sm:$0xff] %v1432_v3  }
 0x12a   :  { %1548 = vst [vmem:[%s2021_s3 + $0xf0] sm:$0xff] %v1512_v5  }

// kernel: forward.5
= control target key start
LH: loop header
LB: loop body
LE: loop exit
PB: predicated region body
PF: predicated region fallthrough
CT: control target
= control target key end

     0   :  { %s6592_s1 = inlined_call_operand.vmem [shape: bf16[2048,128], index: 1, kind: input, shape index: {}]   ;;  %s6593_s0 = inlined_call_operand.vmem [shape: bf16[216,2048], index: 0, kind: input, shape index: {}]   ;;  %s6594_s2 = inlined_call_operand.vmem [shape: f32[1,128], index: 2, kind: input, shape index: {}]   ;;  %s6595_s3 = inlined_call_operand.vmem [shape: bf16[216,128], index: 3, kind: output, shape index: {}]  }
   0x1   :  { %v5015_v0 = vld [vmem:[%s6592_s1 + $0x40] sm:$0xff]   ;;  %v5019_v4 = vld [vmem:[%s6592_s1 + $0x48] sm:$0xff]   ;;  %v5023_v8 = vld [vmem:[%s6592_s1 + $0x50] sm:$0xff]  }
   0x2   :  { %v5016_v1 = vld [vmem:[%s6592_s1 + $0xc0] sm:$0xff]   ;;  %4215 = vmatprep.subr.bf16.mxu0 %v5015_v0  ;;  %v5020_v5 = vld [vmem:[%s6592_s1 + $0xc8] sm:$0xff]   ;;  %v5024_v9 = vld [vmem:[%s6592_s1 + $0xd0] sm:$0xff]  }
   0x3   :  { %v5017_v2 = vld [vmem:[%s6592_s1] sm:$0xff]   ;;  %4315 = vmatprep.subr.bf16.mxu1 %v5016_v1  ;;  %v5021_v6 = vld [vmem:[%s6592_s1 + $0x8] sm:$0xff]   ;;  %v5025_v10 = vld [vmem:[%s6592_s1 + $0x10] sm:$0xff]  }
   0x4   :  { %v5018_v3 = vld [vmem:[%s6592_s1 + $0x80] sm:$0xff]   ;;  %4216 = vmatpush3.bf16.msra.mxu0 %v5017_v2  ;;  %v5022_v7 = vld [vmem:[%s6592_s1 + $0x88] sm:$0xff]   ;;  %v5026_v11 = vld [vmem:[%s6592_s1 + $0x90] sm:$0xff]  }
   0x5   :  { %4316 = vmatpush3.bf16.msra.mxu1 %v5018_v3  ;;  %4217 = vmatprep.subr.bf16.mxu0 %v5019_v4  ;;  %v5027_v12 = vld [vmem:[%s6592_s1 + $0x58] sm:$0xff]   ;;  %v5031_v16 = vld [vmem:[%s6592_s1 + $0x60] sm:$0xff]   ;;  %v5035_v20 = vld [vmem:[%s6592_s1 + $0x68] sm:$0xff]  }
   0x6   :  { %4317 = vmatprep.subr.bf16.mxu1 %v5020_v5  ;;  %v5028_v13 = vld [vmem:[%s6592_s1 + $0xd8] sm:$0xff]   ;;  %v5032_v17 = vld [vmem:[%s6592_s1 + $0xe0] sm:$0xff]   ;;  %v5036_v21 = vld [vmem:[%s6592_s1 + $0xe8] sm:$0xff]  }
   0x7   :  { %v5029_v14 = vld [vmem:[%s6592_s1 + $0x18] sm:$0xff]   ;;  %v5033_v18 = vld [vmem:[%s6592_s1 + $0x20] sm:$0xff]   ;;  %v5037_v22 = vld [vmem:[%s6592_s1 + $0x28] sm:$0xff]  }
   0x8   :  { %4218 = vmatpush3.bf16.msra.mxu0 %v5021_v6  ;;  %v5030_v15 = vld [vmem:[%s6592_s1 + $0x98] sm:$0xff]   ;;  %v5034_v19 = vld [vmem:[%s6592_s1 + $0xa0] sm:$0xff]   ;;  %v5038_v23 = vld [vmem:[%s6592_s1 + $0xa8] sm:$0xff]  }
   0x9   :  { %4318 = vmatpush3.bf16.msra.mxu1 %v5022_v7  ;;  %4219 = vmatprep.subr.bf16.mxu0 %v5023_v8  ;;  %v5039_v24 = vld [vmem:[%s6592_s1 + $0x70] sm:$0xff]   ;;  %v5043_v28 = vld [vmem:[%s6592_s1 + $0x78] sm:$0xff]   ;;  %v15_v32 = vld [vmem:[%s6593_s0] sm:$0xff] }
   0xa   :  { %4319 = vmatprep.subr.bf16.mxu1 %v5024_v9  ;;  %v5040_v25 = vld [vmem:[%s6592_s1 + $0xf0] sm:$0xff]   ;;  %v5044_v29 = vld [vmem:[%s6592_s1 + $0xf8] sm:$0xff]   ;;  %v23_v33 = vld [vmem:[%s6593_s0 + $0x40] sm:$0xff] }
   0xb   :  { %v5041_v26 = vld [vmem:[%s6592_s1 + $0x30] sm:$0xff]   ;;  %v5045_v30 = vld [vmem:[%s6592_s1 + $0x38] sm:$0xff]   ;;  %v16_v34 = vld [vmem:[%s6593_s0 + $0x8] sm:$0xff]  ;;  %v3732_v35 = vcombine.low %v15_v32, %v23_v33  ;;  %v3733_v36 = vcombine.high %v15_v32, %v23_v33 }
   0xc   :  { %4220 = vmatpush3.bf16.msra.mxu0 %v5025_v10  ;;  %v5042_v27 = vld [vmem:[%s6592_s1 + $0xb0] sm:$0xff]   ;;  %v5046_v31 = vld [vmem:[%s6592_s1 + $0xb8] sm:$0xff]   ;;  %v24_v37 = vld [vmem:[%s6593_s0 + $0x48] sm:$0xff] }
   0xd   :  { %4320 = vmatpush3.bf16.msra.mxu1 %v5026_v11  ;;  %4221 = vmatprep.subr.bf16.mxu0 %v5027_v12  ;;  %v3734_v38 = vcombine.low %v16_v34, %v24_v37  ;;  %v3735_v39 = vcombine.high %v16_v34, %v24_v37  ;;  %v5047_v40 = vld [vmem:[%s6592_s1 + $0x140] sm:$0xff]   ;;  %v32_v47 = vld [vmem:[%s6593_s0 + $0x88] sm:$0xff]  ;;  %v5055_v2 = vld [vmem:[%s6592_s1 + $0x150] sm:$0xff]  }
   0xe   :  { %4321 = vmatprep.subr.bf16.mxu1 %v5028_v13  ;;  %2390 = vmatprep.mubr.bf16.mxu0 %v3733_v36  ;;  %v5048_v41 = vld [vmem:[%s6592_s1 + $0x100] sm:$0xff]   ;;  %v40_v48 = vld [vmem:[%s6593_s0 + $0xc8] sm:$0xff]  ;;  %v5056_v3 = vld [vmem:[%s6592_s1 + $0x110] sm:$0xff]  }
   0xf   :  { %2534 = vmatprep.mubr.bf16.mxu1 %v3735_v39  ;;  %v5049_v42 = vld [vmem:[%s6592_s1 + $0x1c0] sm:$0xff]   ;;  %v3751_v49 = vcombine.high %v32_v47, %v40_v48  ;;  %v5051_v50 = vld [vmem:[%s6592_s1 + $0x148] sm:$0xff]   ;;  %v3750_v56 = vcombine.low %v32_v47, %v40_v48  ;;  %v5057_v5 = vld [vmem:[%s6592_s1 + $0x1d0] sm:$0xff]  }
  0x10   :  { %4222 = vmatpush3.bf16.msra.mxu0 %v5029_v14  ;;  %v5050_v43 = vld [vmem:[%s6592_s1 + $0x180] sm:$0xff]   ;;  %v48_v54 = vld [vmem:[%s6593_s0 + $0x108] sm:$0xff]  ;;  %v5058_v9 = vld [vmem:[%s6592_s1 + $0x190] sm:$0xff]  }
  0x11   :  { %4322 = vmatpush3.bf16.msra.mxu1 %v5030_v15  ;;  %4223 = vmatprep.subr.bf16.mxu0 %v5031_v16  ;;  %v31_v44 = vld [vmem:[%s6593_s0 + $0x80] sm:$0xff]  ;;  %v56_v55 = vld [vmem:[%s6593_s0 + $0x148] sm:$0xff]  ;;  %v5059_v12 = vld [vmem:[%s6592_s1 + $0x158] sm:$0xff]  }
  0x12   :  { %4323 = vmatprep.subr.bf16.mxu1 %v5032_v17  ;;  %v39_v45 = vld [vmem:[%s6593_s0 + $0xc0] sm:$0xff]  ;;  %v5052_v58 = vld [vmem:[%s6592_s1 + $0x108] sm:$0xff]   ;;  %v3767_v59 = vcombine.high %v48_v54, %v56_v55  ;;  %v3766_v6 = vcombine.low %v48_v54, %v56_v55  ;;  %v5060_v15 = vld [vmem:[%s6592_s1 + $0x118] sm:$0xff]  }
  0x13   :  { %v3749_v46 = vcombine.high %v31_v44, %v39_v45  ;;  %v47_v51 = vld [vmem:[%s6593_s0 + $0x100] sm:$0xff]  ;;  %v3748_v52 = vcombine.low %v31_v44, %v39_v45  ;;  %v5053_v60 = vld [vmem:[%s6592_s1 + $0x1c8] sm:$0xff]   ;;  %v5061_v16 = vld [vmem:[%s6592_s1 + $0x1d8] sm:$0xff]  }
  0x14   :  { %4224 = vmatpush3.bf16.msra.mxu0 %v5033_v18  ;;  %v55_v53 = vld [vmem:[%s6593_s0 + $0x140] sm:$0xff]  ;;  %v5054_v61 = vld [vmem:[%s6592_s1 + $0x188] sm:$0xff]   ;;  %v5062_v17 = vld [vmem:[%s6592_s1 + $0x198] sm:$0xff]  }
  0x15   :  { %4324 = vmatpush3.bf16.msra.mxu1 %v5034_v19  ;;  %4225 = vmatprep.subr.bf16.mxu0 %v5035_v20  ;;  %v3765_v57 = vcombine.high %v47_v51, %v55_v53  ;;  %v63_v62 = vld [vmem:[%s6593_s0 + $0x180] sm:$0xff]  ;;  %v64_v0 = vld [vmem:[%s6593_s0 + $0x188] sm:$0xff]  ;;  %v3764_v4 = vcombine.low %v47_v51, %v55_v53  ;;  %v5072_v44 = vld [vmem:[%s6592_s1 + $0x130] sm:$0xff]  }
  0x16   :  { %4325 = vmatprep.subr.bf16.mxu1 %v5036_v21  ;;  %v71_v63 = vld [vmem:[%s6593_s0 + $0x1c0] sm:$0xff]  ;;  %v72_v1 = vld [vmem:[%s6593_s0 + $0x1c8] sm:$0xff]  ;;  %v5073_v47 = vld [vmem:[%s6592_s1 + $0x1f0] sm:$0xff]  }
  0x17   :  { %v3781_v7 = vcombine.high %v63_v62, %v71_v63  ;;  %v3783_v8 = vcombine.high %v64_v0, %v72_v1  ;;  %v79_v10 = vld [vmem:[%s6593_s0 + $0x200] sm:$0xff]  ;;  %v80_v13 = vld [vmem:[%s6593_s0 + $0x208] sm:$0xff]  ;;  %v3780_v18 = vcombine.low %v63_v62, %v71_v63  ;;  %v3782_v19 = vcombine.low %v64_v0, %v72_v1  ;;  %v5075_v54 = vld [vmem:[%s6592_s1 + $0x178] sm:$0xff]  }
  0x18   :  { %4226 = vmatpush3.bf16.msra.mxu0 %v5037_v22  ;;  %v87_v11 = vld [vmem:[%s6593_s0 + $0x240] sm:$0xff]  ;;  %v88_v14 = vld [vmem:[%s6593_s0 + $0x248] sm:$0xff]  ;;  %v5076_v55 = vld [vmem:[%s6592_s1 + $0x138] sm:$0xff]  }
  0x19   :  { %4326 = vmatpush3.bf16.msra.mxu1 %v5038_v23  ;;  %4227 = vmatprep.subr.bf16.mxu0 %v5039_v24  ;;  %v3797_v20 = vcombine.high %v79_v10, %v87_v11  ;;  %v3799_v21 = vcombine.high %v80_v13, %v88_v14  ;;  %v5063_v22 = vld [vmem:[%s6592_s1 + $0x160] sm:$0xff]   ;;  %v3798_v32 = vcombine.low %v80_v13, %v88_v14  ;;  %v5069_v36 = vld [vmem:[%s6592_s1 + $0x1e8] sm:$0xff]  }
  0x1a   :  { %4327 = vmatprep.subr.bf16.mxu1 %v5040_v25  ;;  %v95_v23 = vld [vmem:[%s6593_s0 + $0x280] sm:$0xff]  ;;  %v5070_v39 = vld [vmem:[%s6592_s1 + $0x1a8] sm:$0xff]  }
  0x1b   :  { %v5064_v24 = vld [vmem:[%s6592_s1 + $0x120] sm:$0xff]   ;;  %v136_v53 = vld [vmem:[%s6593_s0 + $0x3c8] sm:$0xff] }
  0x1c   :  { %4228 = vmatpush3.bf16.msra.mxu0 %v5041_v26  ;;  %v5065_v25 = vld [vmem:[%s6592_s1 + $0x1e0] sm:$0xff]  }
  0x1d   :  { %4328 = vmatpush3.bf16.msra.mxu1 %v5042_v27  ;;  %4229 = vmatprep.subr.bf16.mxu0 %v5043_v28  ;;  %v103_v26 = vld [vmem:[%s6593_s0 + $0x2c0] sm:$0xff]  ;;  %v96_v28 = vld [vmem:[%s6593_s0 + $0x288] sm:$0xff] }
  0x1e   :  { %4329 = vmatprep.subr.bf16.mxu1 %v5044_v29  ;;  %v5066_v27 = vld [vmem:[%s6592_s1 + $0x1a0] sm:$0xff]   ;;  %v104_v29 = vld [vmem:[%s6593_s0 + $0x2c8] sm:$0xff]  ;;  %v3813_v33 = vcombine.high %v95_v23, %v103_v26 }
  0x1f   :  { %v3815_v34 = vcombine.high %v96_v28, %v104_v29  ;;  %v111_v37 = vld [vmem:[%s6593_s0 + $0x300] sm:$0xff]  ;;  %v3814_v45 = vcombine.low %v96_v28, %v104_v29 }
  0x20   :  { %4230 = vmatpush3.bf16.msra.mxu0 %v5045_v30  ;;  %v3796_v30 = vcombine.low %v79_v10, %v87_v11  ;;  %v135_v51 = vld [vmem:[%s6593_s0 + $0x3c0] sm:$0xff]  ;;  %v160_v10 = vld [vmem:[%s6593_s0 + $0x488] sm:$0xff] }
  0x21   :  { %4330 = vmatpush3.bf16.msra.mxu1 %v5046_v31  ;;  %4415 = vmatprep.subr.bf16.mxu0 %v5047_v40  ;;  %v5067_v31 = vld [vmem:[%s6592_s1 + $0x168] sm:$0xff]   ;;  %v143_v62 = vld [vmem:[%s6593_s0 + $0x400] sm:$0xff] }
  0x22   :  { %4515 = vmatprep.subr.bf16.mxu1 %v5049_v42  ;;  %v112_v40 = vld [vmem:[%s6593_s0 + $0x308] sm:$0xff]  ;;  %v5071_v42 = vld [vmem:[%s6592_s1 + $0x170] sm:$0xff]   ;;  %v5083_v63 = vld [vmem:[%s6592_s1 + $0x240] sm:$0xff]  }
  0x23   :  { %2391 = vmatmul.mubr.bf16.vlgmr.msra.gmra.mrb[0].mxu0 %v3732_v35  ;;  %v5068_v35 = vld [vmem:[%s6592_s1 + $0x128] sm:$0xff]   ;;  %v151_v0 = vld [vmem:[%s6593_s0 + $0x440] sm:$0xff] }
  0x24   :  { %2535 = vmatmul.mubr.bf16.vlgmr.msra.gmra.mrb[0].mxu1 %v3734_v38  ;;  %4416 = vmatpush3.bf16.msra.mxu0 %v5048_v41  ;;  %v119_v38 = vld [vmem:[%s6593_s0 + $0x340] sm:$0xff]  ;;  %v120_v41 = vld [vmem:[%s6593_s0 + $0x348] sm:$0xff] }
  0x25   :  { %4516 = vmatpush3.bf16.msra.mxu1 %v5050_v43  ;;  %2398 = vmatprep.mubr.bf16.mxu0 %v3749_v46  ;;  %v3812_v43 = vcombine.low %v95_v23, %v103_v26  ;;  %v3829_v46 = vcombine.high %v111_v37, %v119_v38  ;;  %v3831_v48 = vcombine.high %v112_v40, %v120_v41  ;;  %v5085_v1 = vld [vmem:[%s6592_s1 + $0x2c0] sm:$0xff]   ;;  %v168_v11 = vld [vmem:[%s6593_s0 + $0x4c8] sm:$0xff] }
  0x26   :  { %2542 = vmatprep.mubr.bf16.mxu1 %v3751_v49  ;;  %4417 = vmatprep.subr.bf16.mxu0 %v5051_v50  ;;  %v5074_v49 = vld [vmem:[%s6592_s1 + $0x1b0] sm:$0xff]   ;;  %v127_v50 = vld [vmem:[%s6593_s0 + $0x380] sm:$0xff]  ;;  %v192_v26 = vld [vmem:[%s6593_s0 + $0x588] sm:$0xff] }
  0x27   :  { %4517 = vmatprep.subr.bf16.mxu1 %v5053_v60  ;;  %v5078_v60 = vld [vmem:[%s6592_s1 + $0x1b8] sm:$0xff]  }
  0x28   :  { %4418 = vmatpush3.bf16.msra.mxu0 %v5052_v58  ;;  %v3830_v58 = vcombine.low %v112_v40, %v120_v41  ;;  %v223_v40 = vld [vmem:[%s6593_s0 + $0x680] sm:$0xff]  ;;  %v224_v41 = vld [vmem:[%s6593_s0 + $0x688] sm:$0xff] }
  0x29   :  { %4518 = vmatpush3.bf16.msra.mxu1 %v5054_v61  ;;  %4419 = vmatprep.subr.bf16.mxu0 %v5055_v2  ;;  %v144_v2 = vld [vmem:[%s6593_s0 + $0x408] sm:$0xff] }
  0x2a   :  { %4519 = vmatprep.subr.bf16.mxu1 %v5057_v5 }
  0x2b   :  { %2399 = vmatmul.mubr.bf16.gmra.mrb[4].mxu0 %v3748_v52  ;;  %v128_v52 = vld [vmem:[%s6593_s0 + $0x388] sm:$0xff] }
  0x2c   :  { %2543 = vmatmul.mubr.bf16.gmra.mrb[4].mxu1 %v3750_v56  ;;  %2406 = vmatprep.mubr.bf16.mxu0 %v3765_v57  ;;  %v3828_v56 = vcombine.low %v111_v37, %v119_v38  ;;  %v5077_v57 = vld [vmem:[%s6592_s1 + $0x1f8] sm:$0xff]   ;;  %v3847_v61 = vcombine.high %v128_v52, %v136_v53  ;;  %v3846_v5 = vcombine.low %v128_v52, %v136_v53 }
  0x2d   :  { %2550 = vmatprep.mubr.bf16.mxu1 %v3767_v59  ;;  %4420 = vmatpush3.bf16.msra.mxu0 %v5056_v3  ;;  %v3845_v59 = vcombine.high %v127_v50, %v135_v51  ;;  %v152_v3 = vld [vmem:[%s6593_s0 + $0x448] sm:$0xff] }
  0x2e   :  { %4520 = vmatpush3.bf16.msra.mxu1 %v5058_v9  ;;  %4421 = vmatprep.subr.bf16.mxu0 %v5059_v12  ;;  %v167_v9 = vld [vmem:[%s6593_s0 + $0x4c0] sm:$0xff]  ;;  %v3860_v12 = vcombine.low %v143_v62, %v151_v0  ;;  %v3862_v13 = vcombine.low %v144_v2, %v152_v3 }
  0x2f   :  { %4521 = vmatprep.subr.bf16.mxu1 %v5061_v16  ;;  %v175_v16 = vld [vmem:[%s6593_s0 + $0x500] sm:$0xff] }
  0x31   :  { %4422 = vmatpush3.bf16.msra.mxu0 %v5060_v15  ;;  %v3879_v15 = vcombine.high %v160_v10, %v168_v11 }
  0x32   :  { %4522 = vmatpush3.bf16.msra.mxu1 %v5062_v17  ;;  %4423 = vmatprep.subr.bf16.mxu0 %v5063_v22  ;;  %v183_v17 = vld [vmem:[%s6593_s0 + $0x540] sm:$0xff] }
  0x33   :  { %2407 = vmatmul.mubr.bf16.gmra.mrb[8].mxu0 %v3764_v4  ;;  %4523 = vmatprep.subr.bf16.mxu1 %v5065_v25  ;;  %v3844_v4 = vcombine.low %v127_v50, %v135_v51  ;;  %v3893_v22 = vcombine.high %v175_v16, %v183_v17  ;;  %v199_v25 = vld [vmem:[%s6593_s0 + $0x5c0] sm:$0xff]  ;;  %v3892_v28 = vcombine.low %v175_v16, %v183_v17  ;;  %v5097_v17 = vld [vmem:[%s6592_s1 + $0x2d8] sm:$0xff]  }
  0x34   :  { %2551 = vmatmul.mubr.bf16.gmra.mrb[8].mxu1 %v3766_v6  ;;  %2414 = vmatprep.mubr.bf16.mxu0 %v3781_v7  ;;  %v3861_v6 = vcombine.high %v143_v62, %v151_v0  ;;  %v3863_v7 = vcombine.high %v144_v2, %v152_v3  ;;  %v3940_v50 = vcombine.low %v223_v40, %v223_v40  ;;  %v5087_v62 = vld [vmem:[%s6592_s1 + $0x248] sm:$0xff]   ;;  %v49_v3 = vld [vmem:[%s6593_s0 + $0x110] sm:$0xff] }
  0x35   :  { %2558 = vmatprep.mubr.bf16.mxu1 %v3783_v8  ;;  %4424 = vmatpush3.bf16.msra.mxu0 %v5064_v24  ;;  %v159_v8 = vld [vmem:[%s6593_s0 + $0x480] sm:$0xff]  ;;  %v3942_v51 = vcombine.low %v224_v41, %v224_v41  ;;  %v5089_v0 = vld [vmem:[%s6592_s1 + $0x2c8] sm:$0xff]  }
  0x36   :  { %4524 = vmatpush3.bf16.msra.mxu1 %v5066_v27  ;;  %4425 = vmatprep.subr.bf16.mxu0 %v5067_v31  ;;  %v3877_v14 = vcombine.high %v159_v8, %v167_v9  ;;  %v191_v24 = vld [vmem:[%s6593_s0 + $0x580] sm:$0xff]  ;;  %v200_v27 = vld [vmem:[%s6593_s0 + $0x5c8] sm:$0xff] }
  0x37   :  { %4525 = vmatprep.subr.bf16.mxu1 %v5069_v36  ;;  %v3911_v31 = vcombine.high %v192_v26, %v200_v27  ;;  %v3908_v36 = vcombine.low %v191_v24, %v199_v25  ;;  %v3910_v37 = vcombine.low %v192_v26, %v200_v27  ;;  %v5088_v2 = vld [vmem:[%s6592_s1 + $0x208] sm:$0xff]  }
  0x39   :  { %4426 = vmatpush3.bf16.msra.mxu0 %v5068_v35  ;;  %v216_v35 = vld [vmem:[%s6593_s0 + $0x648] sm:$0xff] }
  0x3a   :  { %4526 = vmatpush3.bf16.msra.mxu1 %v5070_v39  ;;  %4427 = vmatprep.subr.bf16.mxu0 %v5071_v42 }
  0x3b   :  { %2415 = vmatmul.mubr.bf16.gmra.mrb[12].mxu0 %v3780_v18  ;;  %4527 = vmatprep.subr.bf16.mxu1 %v5073_v47  ;;  %v176_v18 = vld [vmem:[%s6593_s0 + $0x508] sm:$0xff]  ;;  %v25_v47 = vld [vmem:[%s6593_s0 + $0x50] sm:$0xff] }
  0x3c   :  { %2559 = vmatmul.mubr.bf16.gmra.mrb[12].mxu1 %v3782_v19  ;;  %2422 = vmatprep.mubr.bf16.mxu0 %v3797_v20  ;;  %v184_v19 = vld [vmem:[%s6593_s0 + $0x548] sm:$0xff]  ;;  %v3876_v20 = vcombine.low %v159_v8, %v167_v9  ;;  %v58_v8 = vld [vmem:[%s6593_s0 + $0x158] sm:$0xff]  ;;  %v5093_v9 = vld [vmem:[%s6592_s1 + $0x2d0] sm:$0xff]  }
  0x3d   :  { %2566 = vmatprep.mubr.bf16.mxu1 %v3799_v21  ;;  %4428 = vmatpush3.bf16.msra.mxu0 %v5072_v44  ;;  %v3878_v21 = vcombine.low %v160_v10, %v168_v11  ;;  %v3895_v23 = vcombine.high %v176_v18, %v184_v19  ;;  %v3894_v29 = vcombine.low %v176_v18, %v184_v19  ;;  %v65_v18 = vld [vmem:[%s6593_s0 + $0x190] sm:$0xff] }
  0x3e   :  { %4528 = vmatpush3.bf16.msra.mxu1 %v5074_v49  ;;  %4429 = vmatprep.subr.bf16.mxu0 %v5075_v54  ;;  %v3941_v44 = vcombine.high %v223_v40, %v223_v40  ;;  %v26_v49 = vld [vmem:[%s6593_s0 + $0x58] sm:$0xff]  ;;  %v33_v54 = vld [vmem:[%s6593_s0 + $0x90] sm:$0xff] }
  0x3f   :  { %4529 = vmatprep.subr.bf16.mxu1 %v5077_v57  ;;  %v42_v57 = vld [vmem:[%s6593_s0 + $0xd8] sm:$0xff]  ;;  %v73_v19 = vld [vmem:[%s6593_s0 + $0x1d0] sm:$0xff] }
  0x40   :  { %v5107_v40 = vld [vmem:[%s6592_s1 + $0x270] sm:$0xff]  }
  0x41   :  { %4430 = vmatpush3.bf16.msra.mxu0 %v5076_v55  ;;  %v41_v55 = vld [vmem:[%s6593_s0 + $0xd0] sm:$0xff] }
  0x42   :  { %4530 = vmatpush3.bf16.msra.mxu1 %v5078_v60  ;;  %4615 = vmatprep.subr.bf16.mxu0 %v5083_v63  ;;  %v5084_v60 = vld [vmem:[%s6592_s1 + $0x200] sm:$0xff]   ;;  %v3753_v63 = vcombine.high %v33_v54, %v41_v55  ;;  %v3752_v10 = vcombine.low %v33_v54, %v41_v55  ;;  %v106_v54 = vld [vmem:[%s6593_s0 + $0x2d8] sm:$0xff] }
  0x43   :  { %2423 = vmatmul.mubr.bf16.gmra.mrb[16].mxu0 %v3796_v30  ;;  %4715 = vmatprep.subr.bf16.mxu1 %v5085_v1  ;;  %v3909_v30 = vcombine.high %v191_v24, %v199_v25  ;;  %v5099_v24 = vld [vmem:[%s6592_s1 + $0x260] sm:$0xff]   ;;  %v5114_v55 = vld [vmem:[%s6592_s1 + $0x2b8] sm:$0xff]  }
  0x44   :  { %2567 = vmatmul.mubr.bf16.gmra.mrb[16].mxu1 %v3798_v32  ;;  %2430 = vmatprep.mubr.bf16.mxu0 %v3813_v33  ;;  %v207_v32 = vld [vmem:[%s6593_s0 + $0x600] sm:$0xff] }
  0x45   :  { %2574 = vmatprep.mubr.bf16.mxu1 %v3815_v34  ;;  %v215_v33 = vld [vmem:[%s6593_s0 + $0x640] sm:$0xff]  ;;  %v208_v34 = vld [vmem:[%s6593_s0 + $0x608] sm:$0xff] }
  0x46   :  { %v3925_v38 = vcombine.high %v207_v32, %v215_v33  ;;  %v3927_v39 = vcombine.high %v208_v34, %v216_v35  ;;  %v3924_v42 = vcombine.low %v207_v32, %v215_v33  ;;  %v5101_v25 = vld [vmem:[%s6592_s1 + $0x2e0] sm:$0xff]   ;;  %v5103_v32 = vld [vmem:[%s6592_s1 + $0x268] sm:$0xff]  }
  0x47   :  { %v5105_v33 = vld [vmem:[%s6592_s1 + $0x2e8] sm:$0xff]  }
  0x4b   :  { %2431 = vmatmul.mubr.bf16.gmra.mrb[20].mxu0 %v3812_v43  ;;  %v3926_v43 = vcombine.low %v208_v34, %v216_v35  ;;  %v81_v34 = vld [vmem:[%s6593_s0 + $0x210] sm:$0xff] }
  0x4c   :  { %2575 = vmatmul.mubr.bf16.gmra.mrb[20].mxu1 %v3814_v45  ;;  %2438 = vmatprep.mubr.bf16.mxu0 %v3829_v46  ;;  %v3943_v45 = vcombine.high %v224_v41, %v224_v41  ;;  %v17_v46 = vld [vmem:[%s6593_s0 + $0x10] sm:$0xff]  ;;  %v3784_v41 = vcombine.low %v65_v18, %v73_v19 }
  0x4d   :  { %2582 = vmatprep.mubr.bf16.mxu1 %v3831_v48  ;;  %v18_v48 = vld [vmem:[%s6593_s0 + $0x18] sm:$0xff]  ;;  %v3737_v52 = vcombine.high %v17_v46, %v25_v47  ;;  %v89_v35 = vld [vmem:[%s6593_s0 + $0x250] sm:$0xff] }
  0x4e   :  { %v3739_v53 = vcombine.high %v18_v48, %v26_v49 }
  0x53   :  { %2439 = vmatmul.mubr.bf16.gmra.mrb[24].mxu0 %v3828_v56  ;;  %v34_v56 = vld [vmem:[%s6593_s0 + $0x98] sm:$0xff] }
  0x54   :  { %2583 = vmatmul.mubr.bf16.gmra.mrb[24].mxu1 %v3830_v58  ;;  %2446 = vmatprep.mubr.bf16.mxu0 %v3845_v59  ;;  %v3736_v58 = vcombine.low %v17_v46, %v25_v47  ;;  %v3738_v59 = vcombine.low %v18_v48, %v26_v49  ;;  %v3755_v1 = vcombine.high %v34_v56, %v42_v57  ;;  %v5108_v46 = vld [vmem:[%s6592_s1 + $0x230] sm:$0xff]   ;;  %v5111_v48 = vld [vmem:[%s6592_s1 + $0x278] sm:$0xff]  }
  0x55   :  { %2590 = vmatprep.mubr.bf16.mxu1 %v3847_v61  ;;  %v5086_v61 = vld [vmem:[%s6592_s1 + $0x280] sm:$0xff]   ;;  %v3754_v11 = vcombine.low %v34_v56, %v42_v57  ;;  %v5110_v47 = vld [vmem:[%s6592_s1 + $0x2b0] sm:$0xff]   ;;  %v5113_v49 = vld [vmem:[%s6592_s1 + $0x2f8] sm:$0xff]   ;;  %v3800_v57 = vcombine.low %v81_v34, %v89_v35 }
  0x56   :  { %v5119_v56 = vld [vmem:[%s6592_s1 + $0x340] sm:$0xff]  }
  0x5b   :  { %2447 = vmatmul.mubr.bf16.gmra.mrb[28].mxu0 %v3844_v4  ;;  %v57_v4 = vld [vmem:[%s6593_s0 + $0x150] sm:$0xff] }
  0x5c   :  { %2591 = vmatmul.mubr.bf16.gmra.mrb[28].mxu1 %v3846_v5  ;;  %2454 = vmatprep.mubr.bf16.mxu0 %v3861_v6  ;;  %v5090_v5 = vld [vmem:[%s6592_s1 + $0x288] sm:$0xff]   ;;  %v5091_v6 = vld [vmem:[%s6592_s1 + $0x250] sm:$0xff]   ;;  %v3768_v26 = vcombine.low %v49_v3, %v57_v4 }
  0x5d   :  { %2598 = vmatprep.mubr.bf16.mxu1 %v3863_v7  ;;  %v50_v7 = vld [vmem:[%s6593_s0 + $0x118] sm:$0xff] }
  0x5e   :  { %v3771_v16 = vcombine.high %v50_v7, %v58_v8  ;;  %v3770_v27 = vcombine.low %v50_v7, %v58_v8  ;;  %v137_v7 = vld [vmem:[%s6593_s0 + $0x3d0] sm:$0xff]  ;;  %v130_v8 = vld [vmem:[%s6593_s0 + $0x398] sm:$0xff] }
  0x63   :  { %2455 = vmatmul.mubr.bf16.gmra.mrb[32].mxu0 %v3860_v12  ;;  %v3769_v12 = vcombine.high %v49_v3, %v57_v4 }
  0x64   :  { %2599 = vmatmul.mubr.bf16.gmra.mrb[32].mxu1 %v3862_v13  ;;  %2462 = vmatprep.mubr.bf16.mxu0 %v3877_v14  ;;  %v5092_v13 = vld [vmem:[%s6592_s1 + $0x210] sm:$0xff]  }
  0x65   :  { %2606 = vmatprep.mubr.bf16.mxu1 %v3879_v15  ;;  %v5094_v14 = vld [vmem:[%s6592_s1 + $0x290] sm:$0xff]   ;;  %v5095_v15 = vld [vmem:[%s6592_s1 + $0x258] sm:$0xff]  }
  0x6b   :  { %2463 = vmatmul.mubr.bf16.gmra.mrb[36].mxu0 %v3876_v20  ;;  %v5096_v20 = vld [vmem:[%s6592_s1 + $0x218] sm:$0xff]  }
  0x6c   :  { %2607 = vmatmul.mubr.bf16.gmra.mrb[36].mxu1 %v3878_v21  ;;  %2470 = vmatprep.mubr.bf16.mxu0 %v3893_v22  ;;  %v66_v21 = vld [vmem:[%s6593_s0 + $0x198] sm:$0xff] }
  0x6d   :  { %2614 = vmatprep.mubr.bf16.mxu1 %v3895_v23  ;;  %v74_v22 = vld [vmem:[%s6593_s0 + $0x1d8] sm:$0xff] }
  0x6e   :  { %v5098_v23 = vld [vmem:[%s6592_s1 + $0x298] sm:$0xff]  }
  0x73   :  { %2471 = vmatmul.mubr.bf16.gmra.mrb[40].mxu0 %v3892_v28  ;;  %v3785_v28 = vcombine.high %v65_v18, %v73_v19 }
  0x74   :  { %2615 = vmatmul.mubr.bf16.gmra.mrb[40].mxu1 %v3894_v29  ;;  %2478 = vmatprep.mubr.bf16.mxu0 %v3909_v30  ;;  %v3787_v29 = vcombine.high %v66_v21, %v74_v22  ;;  %v5100_v30 = vld [vmem:[%s6592_s1 + $0x220] sm:$0xff]  }
  0x75   :  { %2622 = vmatprep.mubr.bf16.mxu1 %v3911_v31  ;;  %v5102_v31 = vld [vmem:[%s6592_s1 + $0x2a0] sm:$0xff]  }
  0x7b   :  { %2479 = vmatmul.mubr.bf16.gmra.mrb[44].mxu0 %v3908_v36  ;;  %v82_v36 = vld [vmem:[%s6593_s0 + $0x218] sm:$0xff] }
  0x7c   :  { %2623 = vmatmul.mubr.bf16.gmra.mrb[44].mxu1 %v3910_v37  ;;  %2486 = vmatprep.mubr.bf16.mxu0 %v3925_v38  ;;  %v5104_v37 = vld [vmem:[%s6592_s1 + $0x228] sm:$0xff]   ;;  %v90_v38 = vld [vmem:[%s6593_s0 + $0x258] sm:$0xff] }
  0x7d   :  { %2630 = vmatprep.mubr.bf16.mxu1 %v3927_v39  ;;  %v5106_v39 = vld [vmem:[%s6592_s1 + $0x2a8] sm:$0xff]  }
  0x83   :  { %2487 = vmatmul.mubr.bf16.gmra.mrb[48].mxu0 %v3924_v42  ;;  %v5109_v42 = vld [vmem:[%s6592_s1 + $0x2f0] sm:$0xff]  }
  0x84   :  { %2631 = vmatmul.mubr.bf16.gmra.mrb[48].mxu1 %v3926_v43  ;;  %2494 = vmatprep.mubr.bf16.mxu0 %v3941_v44  ;;  %v3786_v43 = vcombine.low %v66_v21, %v74_v22  ;;  %v3801_v44 = vcombine.high %v81_v34, %v89_v35  ;;  %v161_v22 = vld [vmem:[%s6593_s0 + $0x490] sm:$0xff] }
  0x85   :  { %2638 = vmatprep.mubr.bf16.mxu1 %v3943_v45  ;;  %v3803_v45 = vcombine.high %v82_v36, %v90_v38 }
  0x8b   :  { %2495 = vmatmul.mubr.bf16.gmra.mrb[52].mxu0 %v3940_v50  ;;  %v97_v50 = vld [vmem:[%s6593_s0 + $0x290] sm:$0xff] }
  0x8c   :  { %2639 = vmatmul.mubr.bf16.gmra.mrb[52].mxu1 %v3942_v51  ;;  %2678 = vmatprep.mubr.bf16.mxu0 %v3737_v52  ;;  %v105_v51 = vld [vmem:[%s6593_s0 + $0x2d0] sm:$0xff]  ;;  %v98_v52 = vld [vmem:[%s6593_s0 + $0x298] sm:$0xff] }
  0x8d   :  { %2822 = vmatprep.mubr.bf16.mxu1 %v3739_v53  ;;  %v5112_v53 = vld [vmem:[%s6592_s1 + $0x238] sm:$0xff]   ;;  %v3818_v3 = vcombine.low %v98_v52, %v106_v54 }
  0x93   :  { %2679 = vmatmul.mubr.bf16.vlgmr.msra.gmra.mrb[56].mxu0 %v3736_v58  ;;  %v5121_v58 = vld [vmem:[%s6592_s1 + $0x3c0] sm:$0xff]  }
  0x94   :  { %2823 = vmatmul.mubr.bf16.vlgmr.msra.gmra.mrb[56].mxu1 %v3738_v59  ;;  %4616 = vmatpush3.bf16.msra.mxu0 %v5084_v60  ;;  %v3802_v59 = vcombine.low %v82_v36, %v90_v38  ;;  %v3817_v60 = vcombine.high %v97_v50, %v105_v51  ;;  %v193_v38 = vld [vmem:[%s6593_s0 + $0x590] sm:$0xff] }
  0x95   :  { %4716 = vmatpush3.bf16.msra.mxu1 %v5086_v61  ;;  %2686 = vmatprep.mubr.bf16.mxu0 %v3753_v63  ;;  %v3819_v61 = vcombine.high %v98_v52, %v106_v54  ;;  %v121_v63 = vld [vmem:[%s6593_s0 + $0x350] sm:$0xff] }
  0x96   :  { %2830 = vmatprep.mubr.bf16.mxu1 %v3755_v1  ;;  %4617 = vmatprep.subr.bf16.mxu0 %v5087_v62  ;;  %v113_v62 = vld [vmem:[%s6593_s0 + $0x310] sm:$0xff]  ;;  %v122_v1 = vld [vmem:[%s6593_s0 + $0x358] sm:$0xff] }
  0x97   :  { %4717 = vmatprep.subr.bf16.mxu1 %v5089_v0  ;;  %v114_v0 = vld [vmem:[%s6593_s0 + $0x318] sm:$0xff]  ;;  %v3833_v4 = vcombine.high %v113_v62, %v121_v63  ;;  %v225_v54 = vld [vmem:[%s6593_s0 + $0x690] sm:$0xff] }
  0x98   :  { %4618 = vmatpush3.bf16.msra.mxu0 %v5088_v2  ;;  %v3816_v2 = vcombine.low %v97_v50, %v105_v51 }
  0x99   :  { %4718 = vmatpush3.bf16.msra.mxu1 %v5090_v5  ;;  %4619 = vmatprep.subr.bf16.mxu0 %v5091_v6  ;;  %v3835_v5 = vcombine.high %v114_v0, %v122_v1  ;;  %v129_v6 = vld [vmem:[%s6593_s0 + $0x390] sm:$0xff] }
  0x9a   :  { %4719 = vmatprep.subr.bf16.mxu1 %v5093_v9  ;;  %v138_v9 = vld [vmem:[%s6593_s0 + $0x3d8] sm:$0xff]  ;;  %v3848_v18 = vcombine.low %v129_v6, %v137_v7 }
  0x9b   :  { %2687 = vmatmul.mubr.bf16.gmra.mrb[60].mxu0 %v3752_v10  ;;  %v3832_v10 = vcombine.low %v113_v62, %v121_v63  ;;  %v3850_v19 = vcombine.low %v130_v8, %v138_v9  ;;  %v20_v63 = vld [vmem:[%s6593_s0 + $0x28] sm:$0xff] }
  0x9c   :  { %2831 = vmatmul.mubr.bf16.gmra.mrb[60].mxu1 %v3754_v11  ;;  %2694 = vmatprep.mubr.bf16.mxu0 %v3769_v12  ;;  %v3834_v11 = vcombine.low %v114_v0, %v122_v1  ;;  %v3849_v12 = vcombine.high %v129_v6, %v137_v7  ;;  %v28_v0 = vld [vmem:[%s6593_s0 + $0x68] sm:$0xff] }
  0x9d   :  { %2838 = vmatprep.mubr.bf16.mxu1 %v3771_v16  ;;  %4620 = vmatpush3.bf16.msra.mxu0 %v5092_v13  ;;  %v3851_v13 = vcombine.high %v130_v8, %v138_v9  ;;  %v146_v16 = vld [vmem:[%s6593_s0 + $0x418] sm:$0xff] }
  0x9e   :  { %4720 = vmatpush3.bf16.msra.mxu1 %v5094_v14  ;;  %4621 = vmatprep.subr.bf16.mxu0 %v5095_v15  ;;  %v145_v14 = vld [vmem:[%s6593_s0 + $0x410] sm:$0xff] }
  0x9f   :  { %4721 = vmatprep.subr.bf16.mxu1 %v5097_v17  ;;  %v153_v15 = vld [vmem:[%s6593_s0 + $0x450] sm:$0xff]  ;;  %v154_v17 = vld [vmem:[%s6593_s0 + $0x458] sm:$0xff] }
  0xa0   :  { %v3867_v21 = vcombine.high %v146_v16, %v154_v17 }
  0xa1   :  { %4622 = vmatpush3.bf16.msra.mxu0 %v5096_v20  ;;  %v3865_v20 = vcombine.high %v145_v14, %v153_v15 }
  0xa2   :  { %4722 = vmatpush3.bf16.msra.mxu1 %v5098_v23  ;;  %4623 = vmatprep.subr.bf16.mxu0 %v5099_v24  ;;  %v169_v23 = vld [vmem:[%s6593_s0 + $0x4d0] sm:$0xff]  ;;  %v162_v24 = vld [vmem:[%s6593_s0 + $0x498] sm:$0xff] }
  0xa3   :  { %2695 = vmatmul.mubr.bf16.gmra.mrb[64].mxu0 %v3768_v26  ;;  %4723 = vmatprep.subr.bf16.mxu1 %v5101_v25  ;;  %v170_v25 = vld [vmem:[%s6593_s0 + $0x4d8] sm:$0xff]  ;;  %v3864_v26 = vcombine.low %v145_v14, %v153_v15  ;;  %v3880_v34 = vcombine.low %v161_v22, %v169_v23 }
  0xa4   :  { %2839 = vmatmul.mubr.bf16.gmra.mrb[64].mxu1 %v3770_v27  ;;  %2702 = vmatprep.mubr.bf16.mxu0 %v3785_v28  ;;  %v3866_v27 = vcombine.low %v146_v16, %v154_v17  ;;  %v3881_v28 = vcombine.high %v161_v22, %v169_v23  ;;  %v3882_v35 = vcombine.low %v162_v24, %v170_v25  ;;  %v5823_v22 = vld [vmem:[%s6593_s0 + $0xa0] sm:$0xff] }
  0xa5   :  { %2846 = vmatprep.mubr.bf16.mxu1 %v3787_v29  ;;  %4624 = vmatpush3.bf16.msra.mxu0 %v5100_v30  ;;  %v3883_v29 = vcombine.high %v162_v24, %v170_v25  ;;  %v177_v30 = vld [vmem:[%s6593_s0 + $0x510] sm:$0xff]  ;;  %v5828_v23 = vld [vmem:[%s6593_s0 + $0xe0] sm:$0xff] }
  0xa6   :  { %4724 = vmatpush3.bf16.msra.mxu1 %v5102_v31  ;;  %4625 = vmatprep.subr.bf16.mxu0 %v5103_v32  ;;  %v185_v31 = vld [vmem:[%s6593_s0 + $0x550] sm:$0xff]  ;;  %v178_v32 = vld [vmem:[%s6593_s0 + $0x518] sm:$0xff] }
  0xa7   :  { %4725 = vmatprep.subr.bf16.mxu1 %v5105_v33  ;;  %v186_v33 = vld [vmem:[%s6593_s0 + $0x558] sm:$0xff]  ;;  %v3897_v36 = vcombine.high %v177_v30, %v185_v31 }
  0xa9   :  { %4626 = vmatpush3.bf16.msra.mxu0 %v5104_v37  ;;  %v3899_v37 = vcombine.high %v178_v32, %v186_v33 }
  0xaa   :  { %4726 = vmatpush3.bf16.msra.mxu1 %v5106_v39  ;;  %4627 = vmatprep.subr.bf16.mxu0 %v5107_v40  ;;  %v201_v39 = vld [vmem:[%s6593_s0 + $0x5d0] sm:$0xff]  ;;  %v194_v40 = vld [vmem:[%s6593_s0 + $0x598] sm:$0xff] }
  0xab   :  { %2703 = vmatmul.mubr.bf16.gmra.mrb[68].mxu0 %v3784_v41  ;;  %4727 = vmatprep.subr.bf16.mxu1 %v5109_v42  ;;  %v202_v41 = vld [vmem:[%s6593_s0 + $0x5d8] sm:$0xff]  ;;  %v3896_v42 = vcombine.low %v177_v30, %v185_v31  ;;  %v3912_v50 = vcombine.low %v193_v38, %v201_v39 }
  0xac   :  { %2847 = vmatmul.mubr.bf16.gmra.mrb[68].mxu1 %v3786_v43  ;;  %2710 = vmatprep.mubr.bf16.mxu0 %v3801_v44  ;;  %v3898_v43 = vcombine.low %v178_v32, %v186_v33  ;;  %v3913_v44 = vcombine.high %v193_v38, %v201_v39  ;;  %v3914_v51 = vcombine.low %v194_v40, %v202_v41  ;;  %v5120_v33 = vld [vmem:[%s6592_s1 + $0x300] sm:$0xff]  }
  0xad   :  { %2854 = vmatprep.mubr.bf16.mxu1 %v3803_v45  ;;  %4628 = vmatpush3.bf16.msra.mxu0 %v5108_v46  ;;  %v3915_v45 = vcombine.high %v194_v40, %v202_v41  ;;  %v209_v46 = vld [vmem:[%s6593_s0 + $0x610] sm:$0xff]  ;;  %v3742_v32 = vcombine.low %v20_v63, %v28_v0  ;;  %v3757_v38 = vcombine.high %v5823_v22, %v5828_v23 }
  0xae   :  { %4728 = vmatpush3.bf16.msra.mxu1 %v5110_v47  ;;  %4629 = vmatprep.subr.bf16.mxu0 %v5111_v48  ;;  %v217_v47 = vld [vmem:[%s6593_s0 + $0x650] sm:$0xff]  ;;  %v210_v48 = vld [vmem:[%s6593_s0 + $0x618] sm:$0xff] }
  0xaf   :  { %4729 = vmatprep.subr.bf16.mxu1 %v5113_v49  ;;  %v218_v49 = vld [vmem:[%s6593_s0 + $0x658] sm:$0xff]  ;;  %v3929_v52 = vcombine.high %v209_v46, %v217_v47 }
  0xb1   :  { %4630 = vmatpush3.bf16.msra.mxu0 %v5112_v53  ;;  %v3931_v53 = vcombine.high %v210_v48, %v218_v49 }
  0xb2   :  { %4730 = vmatpush3.bf16.msra.mxu1 %v5114_v55  ;;  %4815 = vmatprep.subr.bf16.mxu0 %v5119_v56  ;;  %v226_v55 = vld [vmem:[%s6593_s0 + $0x698] sm:$0xff]  ;;  %v3928_v56 = vcombine.low %v209_v46, %v217_v47 }
  0xb3   :  { %2711 = vmatmul.mubr.bf16.gmra.mrb[72].mxu0 %v3800_v57  ;;  %4915 = vmatprep.subr.bf16.mxu1 %v5121_v58  ;;  %v3930_v57 = vcombine.low %v210_v48, %v218_v49  ;;  %v3945_v58 = vcombine.high %v225_v54, %v225_v54  ;;  %v3946_v8 = vcombine.low %v226_v55, %v226_v55  ;;  %v5863_v48 = vld [vmem:[%s6593_s0 + $0x120] sm:$0xff]  ;;  %v5124_v49 = vld [vmem:[%s6592_s1 + $0x308] sm:$0xff]  }
  0xb4   :  { %2855 = vmatmul.mubr.bf16.gmra.mrb[72].mxu1 %v3802_v59  ;;  %2718 = vmatprep.mubr.bf16.mxu0 %v3817_v60  ;;  %v3947_v59 = vcombine.high %v226_v55, %v226_v55  ;;  %v19_v60 = vld [vmem:[%s6593_s0 + $0x20] sm:$0xff]  ;;  %v5884_v55 = vld [vmem:[%s6593_s0 + $0x128] sm:$0xff] }
  0xb5   :  { %2862 = vmatprep.mubr.bf16.mxu1 %v3819_v61  ;;  %v27_v61 = vld [vmem:[%s6593_s0 + $0x60] sm:$0xff] }
  0xb6   :  { %v3741_v9 = vcombine.high %v19_v60, %v27_v61 }
  0xbb   :  { %2719 = vmatmul.mubr.bf16.gmra.mrb[76].mxu0 %v3816_v2  ;;  %v5812_v2 = vld [vmem:[%s6594_s2] ss:$0 sm:$0xff] }
  0xbc   :  { %2863 = vmatmul.mubr.bf16.gmra.mrb[76].mxu1 %v3818_v3  ;;  %2726 = vmatprep.mubr.bf16.mxu0 %v3833_v4  ;;  %v3944_v4 = vcombine.low %v225_v54, %v225_v54 }
  0xbd   :  { %2870 = vmatprep.mubr.bf16.mxu1 %v3835_v5 }
  0xc3   :  { %2727 = vmatmul.mubr.bf16.gmra.mrb[80].mxu0 %v3832_v10 }
  0xc4   :  { %2871 = vmatmul.mubr.bf16.gmra.mrb[80].mxu1 %v3834_v11  ;;  %2734 = vmatprep.mubr.bf16.mxu0 %v3849_v12 }
  0xc5   :  { %2878 = vmatprep.mubr.bf16.mxu1 %v3851_v13  ;;  %v3743_v13 = vcombine.high %v20_v63, %v28_v0 }
  0xcb   :  { %2735 = vmatmul.mubr.bf16.gmra.mrb[84].mxu0 %v3848_v18 }
  0xcc   :  { %2879 = vmatmul.mubr.bf16.gmra.mrb[84].mxu1 %v3850_v19  ;;  %2742 = vmatprep.mubr.bf16.mxu0 %v3865_v20 }
  0xcd   :  { %2886 = vmatprep.mubr.bf16.mxu1 %v3867_v21 }
  0xd3   :  { %2743 = vmatmul.mubr.bf16.gmra.mrb[88].mxu0 %v3864_v26  ;;  %v3740_v26 = vcombine.low %v19_v60, %v27_v61  ;;  %v3756_v60 = vcombine.low %v5823_v22, %v5828_v23  ;;  %v5132_v22 = vld [vmem:[%s6592_s1 + $0x318] sm:$0xff]  }
  0xd4   :  { %2887 = vmatmul.mubr.bf16.gmra.mrb[88].mxu1 %v3866_v27  ;;  %2750 = vmatprep.mubr.bf16.mxu0 %v3881_v28  ;;  %v5833_v27 = vld [vmem:[%s6593_s0 + $0xa8] sm:$0xff] }
  0xd5   :  { %2894 = vmatprep.mubr.bf16.mxu1 %v3883_v29  ;;  %v5838_v28 = vld [vmem:[%s6593_s0 + $0xe8] sm:$0xff] }
  0xd6   :  { %v3758_v0 = vcombine.low %v5833_v27, %v5838_v28 }
  0xdb   :  { %2751 = vmatmul.mubr.bf16.gmra.mrb[92].mxu0 %v3880_v34 }
  0xdc   :  { %2895 = vmatmul.mubr.bf16.gmra.mrb[92].mxu1 %v3882_v35  ;;  %2758 = vmatprep.mubr.bf16.mxu0 %v3897_v36 }
  0xdd   :  { %2902 = vmatprep.mubr.bf16.mxu1 %v3899_v37  ;;  %v5122_v37 = vld [vmem:[%s6592_s1 + $0x380] sm:$0xff]  }
  0xe3   :  { %2759 = vmatmul.mubr.bf16.gmra.mrb[96].mxu0 %v3896_v42  ;;  %v3759_v42 = vcombine.high %v5833_v27, %v5838_v28  ;;  %v5135_v27 = vld [vmem:[%s6592_s1 + $0x360] sm:$0xff]  }
  0xe4   :  { %2903 = vmatmul.mubr.bf16.gmra.mrb[96].mxu1 %v3898_v43  ;;  %2766 = vmatprep.mubr.bf16.mxu0 %v3913_v44  ;;  %v5123_v43 = vld [vmem:[%s6592_s1 + $0x348] sm:$0xff]  }
  0xe5   :  { %2910 = vmatprep.mubr.bf16.mxu1 %v3915_v45  ;;  %v5125_v45 = vld [vmem:[%s6592_s1 + $0x3c8] sm:$0xff]  }
  0xeb   :  { %2767 = vmatmul.mubr.bf16.gmra.mrb[100].mxu0 %v3912_v50  ;;  %v5871_v50 = vld [vmem:[%s6593_s0 + $0x160] sm:$0xff] }
  0xec   :  { %2911 = vmatmul.mubr.bf16.gmra.mrb[100].mxu1 %v3914_v51  ;;  %2774 = vmatprep.mubr.bf16.mxu0 %v3929_v52  ;;  %v5126_v51 = vld [vmem:[%s6592_s1 + $0x388] sm:$0xff]   ;;  %v5127_v52 = vld [vmem:[%s6592_s1 + $0x350] sm:$0xff]  }
  0xed   :  { %2918 = vmatprep.mubr.bf16.mxu1 %v3931_v53 }
  0xf3   :  { %2775 = vmatmul.mubr.bf16.gmra.mrb[104].mxu0 %v3928_v56  ;;  %v5889_v56 = vld [vmem:[%s6593_s0 + $0x168] sm:$0xff] }
  0xf4   :  { %2919 = vmatmul.mubr.bf16.gmra.mrb[104].mxu1 %v3930_v57  ;;  %2782 = vmatprep.mubr.bf16.mxu0 %v3945_v58  ;;  %v5129_v57 = vld [vmem:[%s6592_s1 + $0x3d0] sm:$0xff]  }
  0xf5   :  { %2926 = vmatprep.mubr.bf16.mxu1 %v3947_v59 }
  0xf6   :  { %v4231_v62 = vpop.f32.mrb[0].mxu0 }
  0xf7   :  { %v4331_v1 = vpop.f32.mrb[0].mxu1  ;;  %v4232_v3 = vpop.f32.mrb[1].mxu0 }
  0xf8   :  { %v4233_v5 = vadd.f32 %v4232_v3, %v4231_v62  ;;  %v4332_v6 = vpop.f32.mrb[1].mxu1  ;;  %v4234_v7 = vpop.f32.mrb[2].mxu0 }
  0xf9   :  { %v4333_v10 = vadd.f32 %v4332_v6, %v4331_v1  ;;  %v4334_v11 = vpop.f32.mrb[2].mxu1  ;;  %v4235_v12 = vpop.f32.mrb[3].mxu0  ;;  %v3773_v1 = vcombine.high %v5863_v48, %v5871_v50  ;;  %v3775_v6 = vcombine.high %v5884_v55, %v5889_v56 }
  0xfa   :  { %v2393_v14 = vadd.f32 %v4233_v5, %v5812_v2  ;;  %v4236_v15 = vadd.f32 %v4235_v12, %v4234_v7  ;;  %v4335_v16 = vpop.f32.mrb[3].mxu1  ;;  %v5128_v7 = vld [vmem:[%s6592_s1 + $0x310] sm:$0xff]   ;;  %v5131_v12 = vld [vmem:[%s6592_s1 + $0x358] sm:$0xff]  }
  0xfb   :  { %v4336_v17 = vadd.f32 %v4335_v16, %v4334_v11  ;;  %2783 = vmatmul.mubr.bf16.gmra.mrb[108].mxu0 %v3944_v4  ;;  %v5130_v11 = vld [vmem:[%s6592_s1 + $0x390] sm:$0xff]  }
  0xfc   :  { %v5815_v18 = vadd.f32 %v4333_v10, %v2393_v14  ;;  %v2396_v19 = vadd.f32 %v4236_v15, %v5812_v2  ;;  %2927 = vmatmul.mubr.bf16.gmra.mrb[108].mxu1 %v3946_v8  ;;  %2966 = vmatprep.mubr.bf16.mxu0 %v3741_v9  ;;  %v5133_v14 = vld [vmem:[%s6592_s1 + $0x3d8] sm:$0xff]  }
  0xfd   :  { %3110 = vmatprep.mubr.bf16.mxu1 %v3743_v13 }
  0xfe   :  { %v5818_v20 = vadd.f32 %v4336_v17, %v2396_v19  ;;  %v4237_v21 = vpop.f32.mrb[4].mxu0  ;;  %v5921_v17 = vld [vmem:[%s6593_s0 + $0x1a0] sm:$0xff] }
  0xff   :  { %v4337_v24 = vpop.f32.mrb[4].mxu1  ;;  %v4238_v25 = vpop.f32.mrb[5].mxu0  ;;  %v5926_v19 = vld [vmem:[%s6593_s0 + $0x1e0] sm:$0xff] }
 0x100   :  { %v4239_v29 = vadd.f32 %v4238_v25, %v4237_v21  ;;  %v4338_v30 = vpop.f32.mrb[5].mxu1  ;;  %v4240_v31 = vpop.f32.mrb[6].mxu0  ;;  %v5931_v21 = vld [vmem:[%s6593_s0 + $0x1a8] sm:$0xff] }
 0x101   :  { %v4339_v34 = vadd.f32 %v4338_v30, %v4337_v24  ;;  %v4340_v35 = vpop.f32.mrb[6].mxu1  ;;  %v4241_v36 = vpop.f32.mrb[7].mxu0  ;;  %v5941_v25 = vld [vmem:[%s6593_s0 + $0x1e8] sm:$0xff]  ;;  %v3772_v30 = vcombine.low %v5863_v48, %v5871_v50 }
 0x102   :  { %v2401_v39 = vadd.f32 %v4239_v29, %v5812_v2  ;;  %v4242_v40 = vadd.f32 %v4241_v36, %v4240_v31  ;;  %v4341_v41 = vpop.f32.mrb[7].mxu1  ;;  %v5137_v31 = vld [vmem:[%s6592_s1 + $0x3e0] sm:$0xff]   ;;  %v3789_v36 = vcombine.high %v5921_v17, %v5926_v19 }
 0x103   :  { %v4342_v44 = vadd.f32 %v4341_v41, %v4340_v35  ;;  %2967 = vmatmul.mubr.bf16.vlgmr.msra.gmra.mrb[112].mxu0 %v3740_v26  ;;  %v5134_v26 = vld [vmem:[%s6592_s1 + $0x398] sm:$0xff]   ;;  %v3774_v35 = vcombine.low %v5884_v55, %v5889_v56  ;;  %v5136_v41 = vld [vmem:[%s6592_s1 + $0x320] sm:$0xff]   ;;  %v5989_v55 = vld [vmem:[%s6593_s0 + $0x228] sm:$0xff] }
 0x104   :  { %v5857_v46 = vadd.f32 %v4339_v34, %v2401_v39  ;;  %v2404_v47 = vadd.f32 %v4242_v40, %v5812_v2  ;;  %3111 = vmatmul.mubr.bf16.vlgmr.msra.gmra.mrb[112].mxu1 %v3742_v32  ;;  %4816 = vmatpush3.bf16.msra.mxu0 %v5120_v33  ;;  %v3791_v40 = vcombine.high %v5931_v21, %v5941_v25  ;;  %v5140_v56 = vld [vmem:[%s6592_s1 + $0x328] sm:$0xff]  }
 0x105   :  { %4916 = vmatpush3.bf16.msra.mxu1 %v5122_v37  ;;  %2974 = vmatprep.mubr.bf16.mxu0 %v3757_v38 }
 0x106   :  { %v5879_v53 = vadd.f32 %v4342_v44, %v2404_v47  ;;  %v4243_v54 = vpop.f32.mrb[8].mxu0  ;;  %3118 = vmatprep.mubr.bf16.mxu1 %v3759_v42  ;;  %4817 = vmatprep.subr.bf16.mxu0 %v5123_v43  ;;  %v5139_v47 = vld [vmem:[%s6592_s1 + $0x368] sm:$0xff]  }
 0x107   :  { %v4343_v58 = vpop.f32.mrb[8].mxu1  ;;  %v4244_v59 = vpop.f32.mrb[9].mxu0  ;;  %4917 = vmatprep.subr.bf16.mxu1 %v5125_v45  ;;  %v5138_v45 = vld [vmem:[%s6592_s1 + $0x3a0] sm:$0xff]  }
 0x108   :  { %v4245_v61 = vadd.f32 %v4244_v59, %v4243_v54  ;;  %v4344_v62 = vpop.f32.mrb[9].mxu1  ;;  %v4246_v63 = vpop.f32.mrb[10].mxu0  ;;  %4818 = vmatpush3.bf16.msra.mxu0 %v5124_v49  ;;  %v5141_v49 = vld [vmem:[%s6592_s1 + $0x3e8] sm:$0xff]   ;;  %v5984_v54 = vld [vmem:[%s6593_s0 + $0x260] sm:$0xff] }
 0x109   :  { %v4345_v3 = vadd.f32 %v4344_v62, %v4343_v58  ;;  %v4346_v4 = vpop.f32.mrb[10].mxu1  ;;  %v4247_v5 = vpop.f32.mrb[11].mxu0  ;;  %4918 = vmatpush3.bf16.msra.mxu1 %v5126_v51  ;;  %4819 = vmatprep.subr.bf16.mxu0 %v5127_v52  ;;  %v5979_v52 = vld [vmem:[%s6593_s0 + $0x220] sm:$0xff]  ;;  %v5999_v59 = vld [vmem:[%s6593_s0 + $0x268] sm:$0xff] }
 0x10a   :  { %v2409_v8 = vadd.f32 %v4245_v61, %v5812_v2  ;;  %v4248_v9 = vadd.f32 %v4247_v5, %v4246_v63  ;;  %v4347_v10 = vpop.f32.mrb[11].mxu1  ;;  %4919 = vmatprep.subr.bf16.mxu1 %v5129_v57  ;;  %v5143_v61 = vld [vmem:[%s6592_s1 + $0x370] sm:$0xff]  }
 0x10b   :  { %v4348_v13 = vadd.f32 %v4347_v10, %v4346_v4  ;;  %2975 = vmatmul.mubr.bf16.gmra.mrb[116].mxu0 %v3756_v60  ;;  %v5142_v60 = vld [vmem:[%s6592_s1 + $0x3a8] sm:$0xff]  }
 0x10c   :  { %v5915_v15 = vadd.f32 %v4345_v3, %v2409_v8  ;;  %v2412_v16 = vadd.f32 %v4248_v9, %v5812_v2  ;;  %3119 = vmatmul.mubr.bf16.gmra.mrb[116].mxu1 %v3758_v0  ;;  %2982 = vmatprep.mubr.bf16.mxu0 %v3773_v1  ;;  %v3788_v0 = vcombine.low %v5921_v17, %v5926_v19  ;;  %v5145_v1 = vld [vmem:[%s6592_s1 + $0x3f0] sm:$0xff]   ;;  %v5147_v19 = vld [vmem:[%s6592_s1 + $0x378] sm:$0xff]  }
 0x10d   :  { %3126 = vmatprep.mubr.bf16.mxu1 %v3775_v6  ;;  %4820 = vmatpush3.bf16.msra.mxu0 %v5128_v7  ;;  %v3790_v6 = vcombine.low %v5931_v21, %v5941_v25  ;;  %v3805_v7 = vcombine.high %v5979_v52, %v5984_v54  ;;  %v5146_v17 = vld [vmem:[%s6592_s1 + $0x3b0] sm:$0xff]  }
 0x10e   :  { %v5936_v23 = vadd.f32 %v4348_v13, %v2412_v16  ;;  %v4249_v24 = vpop.f32.mrb[12].mxu0  ;;  %4920 = vmatpush3.bf16.msra.mxu1 %v5130_v11  ;;  %4821 = vmatprep.subr.bf16.mxu0 %v5131_v12  ;;  %v3807_v11 = vcombine.high %v5989_v55, %v5999_v59  ;;  %v5144_v12 = vld [vmem:[%s6592_s1 + $0x330] sm:$0xff]  }
 0x10f   :  { %v4349_v28 = vpop.f32.mrb[12].mxu1  ;;  %v4250_v29 = vpop.f32.mrb[13].mxu0  ;;  %4921 = vmatprep.subr.bf16.mxu1 %v5133_v14 }
 0x110   :  { %v4251_v32 = vadd.f32 %v4250_v29, %v4249_v24  ;;  %v4350_v33 = vpop.f32.mrb[13].mxu1  ;;  %v4252_v34 = vpop.f32.mrb[14].mxu0 }
 0x111   :  { %v4351_v37 = vadd.f32 %v4350_v33, %v4349_v28  ;;  %v4352_v38 = vpop.f32.mrb[14].mxu1  ;;  %v4253_v39 = vpop.f32.mrb[15].mxu0  ;;  %4822 = vmatpush3.bf16.msra.mxu0 %v5132_v22  ;;  %v5149_v22 = vld [vmem:[%s6592_s1 + $0x3f8] sm:$0xff]  }
 0x112   :  { %v2417_v42 = vadd.f32 %v4251_v32, %v5812_v2  ;;  %v4254_v43 = vadd.f32 %v4253_v39, %v4252_v34  ;;  %v4353_v44 = vpop.f32.mrb[15].mxu1  ;;  %4922 = vmatpush3.bf16.msra.mxu1 %v5134_v26  ;;  %4823 = vmatprep.subr.bf16.mxu0 %v5135_v27  ;;  %v99_v26 = vld [vmem:[%s6593_s0 + $0x2a0] sm:$0xff]  ;;  %v5148_v28 = vld [vmem:[%s6592_s1 + $0x338] sm:$0xff]   ;;  %v108_v32 = vld [vmem:[%s6593_s0 + $0x2e8] sm:$0xff] }
 0x113   :  { %v4354_v48 = vadd.f32 %v4353_v44, %v4352_v38  ;;  %2983 = vmatmul.mubr.bf16.gmra.mrb[120].mxu0 %v3772_v30  ;;  %4923 = vmatprep.subr.bf16.mxu1 %v5137_v31  ;;  %v107_v27 = vld [vmem:[%s6593_s0 + $0x2e0] sm:$0xff]  ;;  %v100_v31 = vld [vmem:[%s6593_s0 + $0x2a8] sm:$0xff]  ;;  %v5150_v33 = vld [vmem:[%s6592_s1 + $0x3b8] sm:$0xff]  }
 0x114   :  { %v5973_v50 = vadd.f32 %v4351_v37, %v2417_v42  ;;  %v2420_v51 = vadd.f32 %v4254_v43, %v5812_v2  ;;  %3127 = vmatmul.mubr.bf16.gmra.mrb[120].mxu1 %v3774_v35  ;;  %2990 = vmatprep.mubr.bf16.mxu0 %v3789_v36  ;;  %v3804_v36 = vcombine.low %v5979_v52, %v5984_v54 }
 0x115   :  { %3134 = vmatprep.mubr.bf16.mxu1 %v3791_v40  ;;  %4824 = vmatpush3.bf16.msra.mxu0 %v5136_v41  ;;  %v3806_v40 = vcombine.low %v5989_v55, %v5999_v59  ;;  %v3821_v41 = vcombine.high %v99_v26, %v107_v27  ;;  %v115_v55 = vld [vmem:[%s6593_s0 + $0x320] sm:$0xff] }
 0x116   :  { %v5994_v57 = vadd.f32 %v4354_v48, %v2420_v51  ;;  %v4255_v58 = vpop.f32.mrb[16].mxu0  ;;  %4924 = vmatpush3.bf16.msra.mxu1 %v5138_v45  ;;  %4825 = vmatprep.subr.bf16.mxu0 %v5139_v47  ;;  %v3823_v45 = vcombine.high %v100_v31, %v108_v32 }
 0x117   :  { %v4355_v62 = vpop.f32.mrb[16].mxu1  ;;  %v4256_v63 = vpop.f32.mrb[17].mxu0  ;;  %4925 = vmatprep.subr.bf16.mxu1 %v5141_v49 }
 0x118   :  { %v4257_v3 = vadd.f32 %v4256_v63, %v4255_v58  ;;  %v4356_v4 = vpop.f32.mrb[17].mxu1  ;;  %v4258_v5 = vpop.f32.mrb[18].mxu0 }
 0x119   :  { %v4357_v8 = vadd.f32 %v4356_v4, %v4355_v62  ;;  %v4358_v9 = vpop.f32.mrb[18].mxu1  ;;  %v4259_v10 = vpop.f32.mrb[19].mxu0  ;;  %4826 = vmatpush3.bf16.msra.mxu0 %v5140_v56  ;;  %v123_v56 = vld [vmem:[%s6593_s0 + $0x360] sm:$0xff] }
 0x11a   :  { %v2425_v13 = vadd.f32 %v4257_v3, %v5812_v2  ;;  %v4260_v14 = vadd.f32 %v4259_v10, %v4258_v5  ;;  %v4359_v16 = vpop.f32.mrb[19].mxu1  ;;  %4926 = vmatpush3.bf16.msra.mxu1 %v5142_v60  ;;  %4827 = vmatprep.subr.bf16.mxu0 %v5143_v61  ;;  %v116_v60 = vld [vmem:[%s6593_s0 + $0x328] sm:$0xff]  ;;  %v3822_v5 = vcombine.low %v100_v31, %v108_v32 }
 0x11b   :  { %v4360_v21 = vadd.f32 %v4359_v16, %v4358_v9  ;;  %2991 = vmatmul.mubr.bf16.gmra.mrb[124].mxu0 %v3788_v0  ;;  %4927 = vmatprep.subr.bf16.mxu1 %v5145_v1  ;;  %v124_v61 = vld [vmem:[%s6593_s0 + $0x368] sm:$0xff]  ;;  %v3820_v0 = vcombine.low %v99_v26, %v107_v27  ;;  %v3836_v31 = vcombine.low %v115_v55, %v123_v56 }
 0x11c   :  { %v6031_v24 = vadd.f32 %v4357_v8, %v2425_v13  ;;  %v2428_v25 = vadd.f32 %v4260_v14, %v5812_v2  ;;  %3135 = vmatmul.mubr.bf16.gmra.mrb[124].mxu1 %v3790_v6  ;;  %2998 = vmatprep.mubr.bf16.mxu0 %v3805_v7  ;;  %v3837_v6 = vcombine.high %v115_v55, %v123_v56  ;;  %v132_v26 = vld [vmem:[%s6593_s0 + $0x3a8] sm:$0xff] }
 0x11d   :  { %3142 = vmatprep.mubr.bf16.mxu1 %v3807_v11  ;;  %4828 = vmatpush3.bf16.msra.mxu0 %v5144_v12  ;;  %v3839_v10 = vcombine.high %v116_v60, %v124_v61  ;;  %v140_v27 = vld [vmem:[%s6593_s0 + $0x3e8] sm:$0xff] }
 0x11e   :  { %v6043_v29 = vadd.f32 %v4360_v21, %v2428_v25  ;;  %v4261_v30 = vpop.f32.mrb[20].mxu0  ;;  %4928 = vmatpush3.bf16.msra.mxu1 %v5146_v17  ;;  %4829 = vmatprep.subr.bf16.mxu0 %v5147_v19  ;;  %v131_v19 = vld [vmem:[%s6593_s0 + $0x3a0] sm:$0xff]  ;;  %v148_v55 = vld [vmem:[%s6593_s0 + $0x428] sm:$0xff] }
 0x11f   :  { %v4361_v34 = vpop.f32.mrb[20].mxu1  ;;  %v4262_v35 = vpop.f32.mrb[21].mxu0  ;;  %4929 = vmatprep.subr.bf16.mxu1 %v5149_v22  ;;  %v139_v21 = vld [vmem:[%s6593_s0 + $0x3e0] sm:$0xff]  ;;  %v156_v56 = vld [vmem:[%s6593_s0 + $0x468] sm:$0xff] }
 0x120   :  { %v4263_v37 = vadd.f32 %v4262_v35, %v4261_v30  ;;  %v4362_v38 = vpop.f32.mrb[21].mxu1  ;;  %v4264_v39 = vpop.f32.mrb[22].mxu0  ;;  %v3838_v35 = vcombine.low %v116_v60, %v124_v61  ;;  %v3852_v61 = vcombine.low %v131_v19, %v139_v21 }
 0x121   :  { %v4363_v42 = vadd.f32 %v4362_v38, %v4361_v34  ;;  %v4364_v43 = vpop.f32.mrb[22].mxu1  ;;  %v4265_v44 = vpop.f32.mrb[23].mxu0  ;;  %4830 = vmatpush3.bf16.msra.mxu0 %v5148_v28 }
 0x122   :  { %v2433_v47 = vadd.f32 %v4263_v37, %v5812_v2  ;;  %v4266_v48 = vadd.f32 %v4265_v44, %v4264_v39  ;;  %v4365_v49 = vpop.f32.mrb[23].mxu1  ;;  %4930 = vmatpush3.bf16.msra.mxu1 %v5150_v33 }
 0x123   :  { %v4366_v51 = vadd.f32 %v4365_v49, %v4364_v43  ;;  %2999 = vmatmul.mubr.bf16.gmra.mrb[128].mxu0 %v3804_v36  ;;  %v3853_v36 = vcombine.high %v131_v19, %v139_v21  ;;  %v155_v49 = vld [vmem:[%s6593_s0 + $0x460] sm:$0xff] }
 0x124   :  { %v6059_v52 = vadd.f32 %v4363_v42, %v2433_v47  ;;  %v2436_v54 = vadd.f32 %v4266_v48, %v5812_v2  ;;  %3143 = vmatmul.mubr.bf16.gmra.mrb[128].mxu1 %v3806_v40  ;;  %3006 = vmatprep.mubr.bf16.mxu0 %v3821_v41  ;;  %v3855_v40 = vcombine.high %v132_v26, %v140_v27  ;;  %v147_v48 = vld [vmem:[%s6593_s0 + $0x420] sm:$0xff] }
 0x125   :  { %3150 = vmatprep.mubr.bf16.mxu1 %v3823_v45 }
 0x126   :  { %v6068_v58 = vadd.f32 %v4366_v51, %v2436_v54  ;;  %v4267_v59 = vpop.f32.mrb[24].mxu0 }
 0x127   :  { %v4367_v62 = vpop.f32.mrb[24].mxu1  ;;  %v4268_v63 = vpop.f32.mrb[25].mxu0 }
 0x128   :  { %v4269_v1 = vadd.f32 %v4268_v63, %v4267_v59  ;;  %v4368_v3 = vpop.f32.mrb[25].mxu1  ;;  %v4270_v4 = vpop.f32.mrb[26].mxu0 }
 0x129   :  { %v4369_v7 = vadd.f32 %v4368_v3, %v4367_v62  ;;  %v4370_v8 = vpop.f32.mrb[26].mxu1  ;;  %v4271_v9 = vpop.f32.mrb[27].mxu0  ;;  %v3869_v3 = vcombine.high %v147_v48, %v155_v49 }
 0x12a   :  { %v2441_v11 = vadd.f32 %v4269_v1, %v5812_v2  ;;  %v4272_v12 = vadd.f32 %v4271_v9, %v4270_v4  ;;  %v4371_v13 = vpop.f32.mrb[27].mxu1  ;;  %v3854_v1 = vcombine.low %v132_v26, %v140_v27  ;;  %v172_v26 = vld [vmem:[%s6593_s0 + $0x4e8] sm:$0xff] }
 0x12b   :  { %v4372_v14 = vadd.f32 %v4371_v13, %v4370_v8  ;;  %3007 = vmatmul.mubr.bf16.gmra.mrb[132].mxu0 %v3820_v0 }
 0x12c   :  { %v6077_v16 = vadd.f32 %v4369_v7, %v2441_v11  ;;  %v2444_v17 = vadd.f32 %v4272_v12, %v5812_v2  ;;  %3151 = vmatmul.mubr.bf16.gmra.mrb[132].mxu1 %v3822_v5  ;;  %3014 = vmatprep.mubr.bf16.mxu0 %v3837_v6  ;;  %v3871_v7 = vcombine.high %v148_v55, %v156_v56 }
 0x12d   :  { %3158 = vmatprep.mubr.bf16.mxu1 %v3839_v10 }
 0x12e   :  { %v6086_v22 = vadd.f32 %v4372_v14, %v2444_v17  ;;  %v4273_v25 = vpop.f32.mrb[28].mxu0  ;;  %v163_v14 = vld [vmem:[%s6593_s0 + $0x4a0] sm:$0xff] }
 0x12f   :  { %v4373_v28 = vpop.f32.mrb[28].mxu1  ;;  %v4274_v30 = vpop.f32.mrb[29].mxu0  ;;  %v171_v17 = vld [vmem:[%s6593_s0 + $0x4e0] sm:$0xff] }
 0x130   :  { %v4275_v32 = vadd.f32 %v4274_v30, %v4273_v25  ;;  %v4374_v33 = vpop.f32.mrb[29].mxu1  ;;  %v4276_v34 = vpop.f32.mrb[30].mxu0  ;;  %v164_v25 = vld [vmem:[%s6593_s0 + $0x4a8] sm:$0xff]  ;;  %v3868_v30 = vcombine.low %v147_v48, %v155_v49  ;;  %v179_v48 = vld [vmem:[%s6593_s0 + $0x520] sm:$0xff] }
 0x131   :  { %v4375_v37 = vadd.f32 %v4374_v33, %v4373_v28  ;;  %v4376_v38 = vpop.f32.mrb[30].mxu1  ;;  %v4277_v39 = vpop.f32.mrb[31].mxu0  ;;  %v187_v49 = vld [vmem:[%s6593_s0 + $0x560] sm:$0xff] }
 0x132   :  { %v2449_v41 = vadd.f32 %v4275_v32, %v5812_v2  ;;  %v4278_v42 = vadd.f32 %v4277_v39, %v4276_v34  ;;  %v4377_v43 = vpop.f32.mrb[31].mxu1  ;;  %v3870_v34 = vcombine.low %v148_v55, %v156_v56  ;;  %v3887_v39 = vcombine.high %v164_v25, %v172_v26  ;;  %v180_v56 = vld [vmem:[%s6593_s0 + $0x528] sm:$0xff] }
 0x133   :  { %v4378_v44 = vadd.f32 %v4377_v43, %v4376_v38  ;;  %3015 = vmatmul.mubr.bf16.gmra.mrb[136].mxu0 %v3836_v31 }
 0x134   :  { %v6095_v45 = vadd.f32 %v4375_v37, %v2449_v41  ;;  %v2452_v47 = vadd.f32 %v4278_v42, %v5812_v2  ;;  %3159 = vmatmul.mubr.bf16.gmra.mrb[136].mxu1 %v3838_v35  ;;  %3022 = vmatprep.mubr.bf16.mxu0 %v3853_v36  ;;  %v3885_v35 = vcombine.high %v163_v14, %v171_v17 }
 0x135   :  { %3166 = vmatprep.mubr.bf16.mxu1 %v3855_v40 }
 0x136   :  { %v6104_v51 = vadd.f32 %v4378_v44, %v2452_v47  ;;  %v4279_v54 = vpop.f32.mrb[32].mxu0 }
 0x137   :  { %v4379_v59 = vpop.f32.mrb[32].mxu1  ;;  %v4280_v60 = vpop.f32.mrb[33].mxu0 }
 0x138   :  { %v4281_v62 = vadd.f32 %v4280_v60, %v4279_v54  ;;  %v4380_v63 = vpop.f32.mrb[33].mxu1  ;;  %v4282_v0 = vpop.f32.mrb[34].mxu0 }
 0x139   :  { %v4381_v4 = vadd.f32 %v4380_v63, %v4379_v59  ;;  %v4382_v5 = vpop.f32.mrb[34].mxu1  ;;  %v4283_v6 = vpop.f32.mrb[35].mxu0  ;;  %v188_v59 = vld [vmem:[%s6593_s0 + $0x568] sm:$0xff] }
 0x13a   :  { %v2457_v8 = vadd.f32 %v4281_v62, %v5812_v2  ;;  %v4284_v9 = vadd.f32 %v4283_v6, %v4282_v0  ;;  %v4383_v10 = vpop.f32.mrb[35].mxu1  ;;  %v3884_v62 = vcombine.low %v163_v14, %v171_v17  ;;  %v195_v14 = vld [vmem:[%s6593_s0 + $0x5a0] sm:$0xff] }
 0x13b   :  { %v4384_v11 = vadd.f32 %v4383_v10, %v4382_v5  ;;  %3023 = vmatmul.mubr.bf16.gmra.mrb[140].mxu0 %v3852_v61  ;;  %v203_v17 = vld [vmem:[%s6593_s0 + $0x5e0] sm:$0xff] }
 0x13c   :  { %v6113_v12 = vadd.f32 %v4381_v4, %v2457_v8  ;;  %v2460_v13 = vadd.f32 %v4284_v9, %v5812_v2  ;;  %3167 = vmatmul.mubr.bf16.gmra.mrb[140].mxu1 %v3854_v1  ;;  %3030 = vmatprep.mubr.bf16.mxu0 %v3869_v3  ;;  %v3886_v3 = vcombine.low %v164_v25, %v172_v26 }
 0x13d   :  { %3174 = vmatprep.mubr.bf16.mxu1 %v3871_v7  ;;  %v3901_v4 = vcombine.high %v179_v48, %v187_v49  ;;  %v3903_v8 = vcombine.high %v180_v56, %v188_v59 }
 0x13e   :  { %v6122_v19 = vadd.f32 %v4384_v11, %v2460_v13  ;;  %v4285_v21 = vpop.f32.mrb[36].mxu0 }
 0x13f   :  { %v4385_v27 = vpop.f32.mrb[36].mxu1  ;;  %v4286_v28 = vpop.f32.mrb[37].mxu0 }
 0x140   :  { %v4287_v31 = vadd.f32 %v4286_v28, %v4285_v21  ;;  %v4386_v32 = vpop.f32.mrb[37].mxu1  ;;  %v4288_v33 = vpop.f32.mrb[38].mxu0  ;;  %v196_v28 = vld [vmem:[%s6593_s0 + $0x5a8] sm:$0xff] }
 0x141   :  { %v4387_v36 = vadd.f32 %v4386_v32, %v4385_v27  ;;  %v4388_v37 = vpop.f32.mrb[38].mxu1  ;;  %v4289_v38 = vpop.f32.mrb[39].mxu0 }
 0x142   :  { %v2465_v40 = vadd.f32 %v4287_v31, %v5812_v2  ;;  %v4290_v41 = vadd.f32 %v4289_v38, %v4288_v33  ;;  %v4389_v42 = vpop.f32.mrb[39].mxu1  ;;  %v3900_v33 = vcombine.low %v179_v48, %v187_v49  ;;  %v3917_v38 = vcombine.high %v195_v14, %v203_v17  ;;  %v211_v48 = vld [vmem:[%s6593_s0 + $0x620] sm:$0xff] }
 0x143   :  { %v4390_v43 = vadd.f32 %v4389_v42, %v4388_v37  ;;  %3031 = vmatmul.mubr.bf16.gmra.mrb[144].mxu0 %v3868_v30  ;;  %v204_v30 = vld [vmem:[%s6593_s0 + $0x5e8] sm:$0xff]  ;;  %v3902_v37 = vcombine.low %v180_v56, %v188_v59  ;;  %v219_v49 = vld [vmem:[%s6593_s0 + $0x660] sm:$0xff] }
 0x144   :  { %v6131_v44 = vadd.f32 %v4387_v36, %v2465_v40  ;;  %v2468_v47 = vadd.f32 %v4290_v41, %v5812_v2  ;;  %3175 = vmatmul.mubr.bf16.gmra.mrb[144].mxu1 %v3870_v34  ;;  %3038 = vmatprep.mubr.bf16.mxu0 %v3885_v35  ;;  %v3919_v42 = vcombine.high %v196_v28, %v204_v30 }
 0x145   :  { %3182 = vmatprep.mubr.bf16.mxu1 %v3887_v39 }
 0x146   :  { %v6140_v54 = vadd.f32 %v4390_v43, %v2468_v47  ;;  %v4291_v55 = vpop.f32.mrb[40].mxu0 }
 0x147   :  { %v4391_v60 = vpop.f32.mrb[40].mxu1  ;;  %v4292_v61 = vpop.f32.mrb[41].mxu0 }
 0x148   :  { %v4293_v63 = vadd.f32 %v4292_v61, %v4291_v55  ;;  %v4392_v0 = vpop.f32.mrb[41].mxu1  ;;  %v4294_v1 = vpop.f32.mrb[42].mxu0 }
 0x149   :  { %v4393_v5 = vadd.f32 %v4392_v0, %v4391_v60  ;;  %v4394_v6 = vpop.f32.mrb[42].mxu1  ;;  %v4295_v7 = vpop.f32.mrb[43].mxu0  ;;  %v220_v0 = vld [vmem:[%s6593_s0 + $0x668] sm:$0xff] }
 0x14a   :  { %v2473_v9 = vadd.f32 %v4293_v63, %v5812_v2  ;;  %v4296_v10 = vadd.f32 %v4295_v7, %v4294_v1  ;;  %v4395_v11 = vpop.f32.mrb[43].mxu1  ;;  %v212_v63 = vld [vmem:[%s6593_s0 + $0x628] sm:$0xff] }
 0x14b   :  { %v4396_v13 = vadd.f32 %v4395_v11, %v4394_v6  ;;  %3039 = vmatmul.mubr.bf16.gmra.mrb[148].mxu0 %v3884_v62 }
 0x14c   :  { %v6149_v21 = vadd.f32 %v4393_v5, %v2473_v9  ;;  %v2476_v27 = vadd.f32 %v4296_v10, %v5812_v2  ;;  %3183 = vmatmul.mubr.bf16.gmra.mrb[148].mxu1 %v3886_v3  ;;  %3046 = vmatprep.mubr.bf16.mxu0 %v3901_v4  ;;  %v3916_v4 = vcombine.low %v195_v14, %v203_v17  ;;  %v227_v14 = vld [vmem:[%s6593_s0 + $0x6a0] sm:$0xff] }
 0x14d   :  { %3190 = vmatprep.mubr.bf16.mxu1 %v3903_v8  ;;  %v3918_v8 = vcombine.low %v196_v28, %v204_v30  ;;  %v3933_v9 = vcombine.high %v211_v48, %v219_v49  ;;  %v228_v30 = vld [vmem:[%s6593_s0 + $0x6a8] sm:$0xff] }
 0x14e   :  { %v6158_v25 = vadd.f32 %v4396_v13, %v2476_v27  ;;  %v4297_v26 = vpop.f32.mrb[44].mxu0  ;;  %v3935_v27 = vcombine.high %v212_v63, %v220_v0 }
 0x14f   :  { %v4397_v31 = vpop.f32.mrb[44].mxu1  ;;  %v4298_v32 = vpop.f32.mrb[45].mxu0 }
 0x150   :  { %v4299_v34 = vadd.f32 %v4298_v32, %v4297_v26  ;;  %v4398_v35 = vpop.f32.mrb[45].mxu1  ;;  %v4300_v36 = vpop.f32.mrb[46].mxu0 }
 0x151   :  { %v4399_v39 = vadd.f32 %v4398_v35, %v4397_v31  ;;  %v4400_v40 = vpop.f32.mrb[46].mxu1  ;;  %v4301_v41 = vpop.f32.mrb[47].mxu0 }
 0x152   :  { %v2481_v43 = vadd.f32 %v4299_v34, %v5812_v2  ;;  %v4302_v47 = vadd.f32 %v4301_v41, %v4300_v36  ;;  %v4401_v55 = vpop.f32.mrb[47].mxu1 }
 0x153   :  { %v4402_v60 = vadd.f32 %v4401_v55, %v4400_v40  ;;  %3047 = vmatmul.mubr.bf16.gmra.mrb[152].mxu0 %v3900_v33 }
 0x154   :  { %v6167_v61 = vadd.f32 %v4399_v39, %v2481_v43  ;;  %v2484_v62 = vadd.f32 %v4302_v47, %v5812_v2  ;;  %3191 = vmatmul.mubr.bf16.gmra.mrb[152].mxu1 %v3902_v37  ;;  %3054 = vmatprep.mubr.bf16.mxu0 %v3917_v38  ;;  %v3932_v38 = vcombine.low %v211_v48, %v219_v49  ;;  %v21_v48 = vld [vmem:[%s6593_s0 + $0x30] sm:$0xff] }
 0x155   :  { %3198 = vmatprep.mubr.bf16.mxu1 %v3919_v42  ;;  %v3934_v42 = vcombine.low %v212_v63, %v220_v0  ;;  %v3949_v43 = vcombine.high %v227_v14, %v227_v14  ;;  %v29_v49 = vld [vmem:[%s6593_s0 + $0x70] sm:$0xff]  ;;  %v30_v0 = vld [vmem:[%s6593_s0 + $0x78] sm:$0xff] }
 0x156   :  { %v6176_v56 = vadd.f32 %v4402_v60, %v2484_v62  ;;  %v4303_v59 = vpop.f32.mrb[48].mxu0  ;;  %v3951_v62 = vcombine.high %v228_v30, %v228_v30 }
 0x157   :  { %v4403_v1 = vpop.f32.mrb[48].mxu1  ;;  %v4304_v3 = vpop.f32.mrb[49].mxu0 }
 0x158   :  { %v4305_v5 = vadd.f32 %v4304_v3, %v4303_v59  ;;  %v4404_v6 = vpop.f32.mrb[49].mxu1  ;;  %v4306_v7 = vpop.f32.mrb[50].mxu0 }
 0x159   :  { %v4405_v10 = vadd.f32 %v4404_v6, %v4403_v1  ;;  %v4406_v11 = vpop.f32.mrb[50].mxu1  ;;  %v4307_v13 = vpop.f32.mrb[51].mxu0  ;;  %v3948_v6 = vcombine.low %v227_v14, %v227_v14  ;;  %v37_v14 = vld [vmem:[%s6593_s0 + $0xb0] sm:$0xff] }
 0x15a   :  { %v2489_v26 = vadd.f32 %v4305_v5, %v5812_v2  ;;  %v4308_v31 = vadd.f32 %v4307_v13, %v4306_v7  ;;  %v4407_v32 = vpop.f32.mrb[51].mxu1 }
 0x15b   :  { %v4408_v33 = vadd.f32 %v4407_v32, %v4406_v11  ;;  %3055 = vmatmul.mubr.bf16.gmra.mrb[156].mxu0 %v3916_v4  ;;  %v3745_v11 = vcombine.high %v21_v48, %v29_v49 }
 0x15c   :  { %v6185_v34 = vadd.f32 %v4405_v10, %v2489_v26  ;;  %v2492_v35 = vadd.f32 %v4308_v31, %v5812_v2  ;;  %3199 = vmatmul.mubr.bf16.gmra.mrb[156].mxu1 %v3918_v8  ;;  %3062 = vmatprep.mubr.bf16.mxu0 %v3933_v9  ;;  %v3950_v10 = vcombine.low %v228_v30, %v228_v30  ;;  %v45_v30 = vld [vmem:[%s6593_s0 + $0xf0] sm:$0xff] }
 0x15d   :  { %3206 = vmatprep.mubr.bf16.mxu1 %v3935_v27 }
 0x15e   :  { %v6191_v17 = vadd.f32 %v4408_v33, %v2492_v35  ;;  %v4309_v28 = vpop.f32.mrb[52].mxu0 }
 0x15f   :  { %v4409_v36 = vpop.f32.mrb[52].mxu1  ;;  %v4310_v37 = vpop.f32.mrb[53].mxu0 }
 0x160   :  { %v4311_v39 = vadd.f32 %v4310_v37, %v4309_v28  ;;  %v4410_v40 = vpop.f32.mrb[53].mxu1  ;;  %v4312_v41 = vpop.f32.mrb[54].mxu0 }
 0x161   :  { %v4411_v47 = vadd.f32 %v4410_v40, %v4409_v36  ;;  %v4412_v55 = vpop.f32.mrb[54].mxu1  ;;  %v4313_v60 = vpop.f32.mrb[55].mxu0 }
 0x162   :  { %v2497_v59 = vadd.f32 %v4311_v39, %v5812_v2  ;;  %v4413_v1 = vpop.f32.mrb[55].mxu1  ;;  %v22_v2 = vld [vmem:[%s6593_s0 + $0x38] sm:$0xff] }
 0x163   :  { %3063 = vmatmul.mubr.bf16.gmra.mrb[160].mxu0 %v3932_v38  ;;  %v3747_v31 = vcombine.high %v22_v2, %v30_v0  ;;  %v38_v39 = vld [vmem:[%s6593_s0 + $0xb8] sm:$0xff]  ;;  %v3746_v60 = vcombine.low %v22_v2, %v30_v0 }
 0x164   :  { %v6197_v3 = vadd.f32 %v4411_v47, %v2497_v59  ;;  %3207 = vmatmul.mubr.bf16.gmra.mrb[160].mxu1 %v3934_v42  ;;  %3070 = vmatprep.mubr.bf16.mxu0 %v3949_v43  ;;  %v3744_v42 = vcombine.low %v21_v48, %v29_v49  ;;  %v53_v48 = vld [vmem:[%s6593_s0 + $0x130] sm:$0xff]  ;;  %v54_v0 = vld [vmem:[%s6593_s0 + $0x138] sm:$0xff] }
 0x165   :  { %3214 = vmatprep.mubr.bf16.mxu1 %v3951_v62  ;;  %v3761_v62 = vcombine.high %v37_v14, %v45_v30  ;;  %v61_v49 = vld [vmem:[%s6593_s0 + $0x170] sm:$0xff] }
 0x166   :  { %v4431_v63 = vpop.f32.mrb[56].mxu0 }
 0x167   :  { %v4531_v4 = vpop.f32.mrb[56].mxu1  ;;  %v4432_v5 = vpop.f32.mrb[57].mxu0 }
 0x168   :  { %v4433_v7 = vadd.f32 %v4432_v5, %v4431_v63  ;;  %v4532_v8 = vpop.f32.mrb[57].mxu1  ;;  %v4434_v9 = vpop.f32.mrb[58].mxu0 }
 0x169   :  { %v4533_v13 = vadd.f32 %v4532_v8, %v4531_v4  ;;  %v4534_v27 = vpop.f32.mrb[58].mxu1  ;;  %v4435_v26 = vpop.f32.mrb[59].mxu0 }
 0x16a   :  { %v2681_v32 = vadd.f32 %v4433_v7, %v5815_v18  ;;  %v4436_v33 = vadd.f32 %v4435_v26, %v4434_v9  ;;  %v4535_v35 = vpop.f32.mrb[59].mxu1 }
 0x16b   :  { %v4536_v28 = vadd.f32 %v4535_v35, %v4534_v27  ;;  %3071 = vmatmul.mubr.bf16.gmra.mrb[164].mxu0 %v3948_v6  ;;  %v3760_v27 = vcombine.low %v37_v14, %v45_v30  ;;  %v3777_v35 = vcombine.high %v53_v48, %v61_v49  ;;  %v69_v14 = vld [vmem:[%s6593_s0 + $0x1b0] sm:$0xff] }
 0x16c   :  { %v6212_v36 = vadd.f32 %v4533_v13, %v2681_v32  ;;  %v2684_v37 = vadd.f32 %v4436_v33, %v5818_v20  ;;  %3215 = vmatmul.mubr.bf16.gmra.mrb[164].mxu1 %v3950_v10  ;;  %3254 = vmatprep.mubr.bf16.mxu0 %v3745_v11  ;;  %v46_v20 = vld [vmem:[%s6593_s0 + $0xf8] sm:$0xff]  ;;  %v77_v30 = vld [vmem:[%s6593_s0 + $0x1f0] sm:$0xff] }
 0x16d   :  { %3398 = vmatprep.mubr.bf16.mxu1 %v3747_v31  ;;  %v3763_v4 = vcombine.high %v38_v39, %v46_v20  ;;  %v3762_v33 = vcombine.low %v38_v39, %v46_v20  ;;  %v70_v20 = vld [vmem:[%s6593_s0 + $0x1b8] sm:$0xff] }
 0x16e   :  { %v6221_v18 = vadd.f32 %v4536_v28, %v2684_v37  ;;  %v4437_v38 = vpop.f32.mrb[60].mxu0 }
 0x16f   :  { %v4537_v40 = vpop.f32.mrb[60].mxu1  ;;  %v4438_v41 = vpop.f32.mrb[61].mxu0 }
 0x170   :  { %v4439_v43 = vadd.f32 %v4438_v41, %v4437_v38  ;;  %v4538_v47 = vpop.f32.mrb[61].mxu1  ;;  %v4440_v55 = vpop.f32.mrb[62].mxu0 }
 0x171   :  { %v4539_v59 = vadd.f32 %v4538_v47, %v4537_v40  ;;  %v4540_v1 = vpop.f32.mrb[62].mxu1  ;;  %v4441_v63 = vpop.f32.mrb[63].mxu0 }
 0x172   :  { %v2689_v5 = vadd.f32 %v4439_v43, %v5857_v46  ;;  %v4442_v6 = vadd.f32 %v4441_v63, %v4440_v55  ;;  %v4541_v7 = vpop.f32.mrb[63].mxu1 }
 0x173   :  { %v4542_v8 = vadd.f32 %v4541_v7, %v4540_v1  ;;  %3255 = vmatmul.mubr.bf16.vlgmr.msra.gmra.mrb[168].mxu0 %v3744_v42  ;;  %v3776_v1 = vcombine.low %v53_v48, %v61_v49  ;;  %v3793_v7 = vcombine.high %v69_v14, %v77_v30  ;;  %v85_v48 = vld [vmem:[%s6593_s0 + $0x230] sm:$0xff] }
 0x174   :  { %v6230_v9 = vadd.f32 %v4539_v59, %v2689_v5  ;;  %v2692_v10 = vadd.f32 %v4442_v6, %v5879_v53  ;;  %3399 = vmatmul.mubr.bf16.vlgmr.msra.gmra.mrb[168].mxu1 %v3746_v60  ;;  %3262 = vmatprep.mubr.bf16.mxu0 %v3761_v62  ;;  %v62_v53 = vld [vmem:[%s6593_s0 + $0x178] sm:$0xff]  ;;  %v93_v49 = vld [vmem:[%s6593_s0 + $0x270] sm:$0xff] }
 0x175   :  { %3406 = vmatprep.mubr.bf16.mxu1 %v3763_v4  ;;  %v3779_v40 = vcombine.high %v54_v0, %v62_v53  ;;  %v3778_v6 = vcombine.low %v54_v0, %v62_v53  ;;  %v86_v53 = vld [vmem:[%s6593_s0 + $0x238] sm:$0xff] }
 0x176   :  { %v6239_v46 = vadd.f32 %v4542_v8, %v2692_v10  ;;  %v4443_v2 = vpop.f32.mrb[64].mxu0 }
 0x177   :  { %v4543_v11 = vpop.f32.mrb[64].mxu1  ;;  %v4444_v13 = vpop.f32.mrb[65].mxu0 }
 0x178   :  { %v4445_v26 = vadd.f32 %v4444_v13, %v4443_v2  ;;  %v4544_v31 = vpop.f32.mrb[65].mxu1  ;;  %v4446_v32 = vpop.f32.mrb[66].mxu0 }
 0x179   :  { %v4545_v28 = vadd.f32 %v4544_v31, %v4543_v11  ;;  %v4546_v37 = vpop.f32.mrb[66].mxu1  ;;  %v4447_v38 = vpop.f32.mrb[67].mxu0 }
 0x17a   :  { %v2697_v41 = vadd.f32 %v4445_v26, %v5915_v15  ;;  %v4448_v42 = vadd.f32 %v4447_v38, %v4446_v32  ;;  %v4547_v43 = vpop.f32.mrb[67].mxu1 }
 0x17b   :  { %v4548_v47 = vadd.f32 %v4547_v43, %v4546_v37  ;;  %3263 = vmatmul.mubr.bf16.gmra.mrb[172].mxu0 %v3760_v27  ;;  %v3792_v37 = vcombine.low %v69_v14, %v77_v30  ;;  %v3809_v43 = vcombine.high %v85_v48, %v93_v49  ;;  %v101_v14 = vld [vmem:[%s6593_s0 + $0x2b0] sm:$0xff] }
 0x17c   :  { %v6248_v55 = vadd.f32 %v4545_v28, %v2697_v41  ;;  %v2700_v60 = vadd.f32 %v4448_v42, %v5936_v23  ;;  %3407 = vmatmul.mubr.bf16.gmra.mrb[172].mxu1 %v3762_v33  ;;  %3270 = vmatprep.mubr.bf16.mxu0 %v3777_v35  ;;  %v78_v23 = vld [vmem:[%s6593_s0 + $0x1f8] sm:$0xff]  ;;  %v109_v30 = vld [vmem:[%s6593_s0 + $0x2f0] sm:$0xff] }
 0x17d   :  { %3414 = vmatprep.mubr.bf16.mxu1 %v3779_v40  ;;  %v3795_v11 = vcombine.high %v70_v20, %v78_v23  ;;  %v3794_v42 = vcombine.low %v70_v20, %v78_v23  ;;  %v102_v23 = vld [vmem:[%s6593_s0 + $0x2b8] sm:$0xff] }
 0x17e   :  { %v6257_v15 = vadd.f32 %v4548_v47, %v2700_v60  ;;  %v4449_v39 = vpop.f32.mrb[68].mxu0 }
 0x17f   :  { %v4549_v62 = vpop.f32.mrb[68].mxu1  ;;  %v4450_v59 = vpop.f32.mrb[69].mxu0 }
 0x180   :  { %v4451_v63 = vadd.f32 %v4450_v59, %v4449_v39  ;;  %v4550_v4 = vpop.f32.mrb[69].mxu1  ;;  %v4452_v5 = vpop.f32.mrb[70].mxu0 }
 0x181   :  { %v4551_v8 = vadd.f32 %v4550_v4, %v4549_v62  ;;  %v4552_v10 = vpop.f32.mrb[70].mxu1  ;;  %v4453_v2 = vpop.f32.mrb[71].mxu0 }
 0x182   :  { %v2705_v13 = vadd.f32 %v4451_v63, %v5973_v50  ;;  %v4454_v27 = vadd.f32 %v4453_v2, %v4452_v5  ;;  %v4553_v26 = vpop.f32.mrb[71].mxu1 }
 0x183   :  { %v4554_v31 = vadd.f32 %v4553_v26, %v4552_v10  ;;  %3271 = vmatmul.mubr.bf16.gmra.mrb[176].mxu0 %v3776_v1  ;;  %v3808_v10 = vcombine.low %v85_v48, %v93_v49  ;;  %v3825_v26 = vcombine.high %v101_v14, %v109_v30  ;;  %v117_v48 = vld [vmem:[%s6593_s0 + $0x330] sm:$0xff] }
 0x184   :  { %v6266_v32 = vadd.f32 %v4551_v8, %v2705_v13  ;;  %v2708_v33 = vadd.f32 %v4454_v27, %v5994_v57  ;;  %3415 = vmatmul.mubr.bf16.gmra.mrb[176].mxu1 %v3778_v6  ;;  %3278 = vmatprep.mubr.bf16.mxu0 %v3793_v7  ;;  %v94_v57 = vld [vmem:[%s6593_s0 + $0x278] sm:$0xff]  ;;  %v125_v49 = vld [vmem:[%s6593_s0 + $0x370] sm:$0xff] }
 0x185   :  { %3422 = vmatprep.mubr.bf16.mxu1 %v3795_v11  ;;  %v3811_v62 = vcombine.high %v86_v53, %v94_v57  ;;  %v3810_v27 = vcombine.low %v86_v53, %v94_v57  ;;  %v118_v57 = vld [vmem:[%s6593_s0 + $0x338] sm:$0xff] }
 0x186   :  { %v6275_v50 = vadd.f32 %v4554_v31, %v2708_v33  ;;  %v4455_v0 = vpop.f32.mrb[72].mxu0 }
 0x187   :  { %v4555_v35 = vpop.f32.mrb[72].mxu1  ;;  %v4456_v28 = vpop.f32.mrb[73].mxu0 }
 0x188   :  { %v4457_v38 = vadd.f32 %v4456_v28, %v4455_v0  ;;  %v4556_v40 = vpop.f32.mrb[73].mxu1  ;;  %v4458_v41 = vpop.f32.mrb[74].mxu0 }
 0x189   :  { %v4557_v47 = vadd.f32 %v4556_v40, %v4555_v35  ;;  %v4558_v60 = vpop.f32.mrb[74].mxu1  ;;  %v4459_v39 = vpop.f32.mrb[75].mxu0 }
 0x18a   :  { %v2713_v59 = vadd.f32 %v4457_v38, %v6031_v24  ;;  %v4460_v1 = vadd.f32 %v4459_v39, %v4458_v41  ;;  %v4559_v63 = vpop.f32.mrb[75].mxu1 }
 0x18b   :  { %v4560_v4 = vadd.f32 %v4559_v63, %v4558_v60  ;;  %3279 = vmatmul.mubr.bf16.gmra.mrb[180].mxu0 %v3792_v37  ;;  %v3824_v60 = vcombine.low %v101_v14, %v109_v30  ;;  %v3841_v63 = vcombine.high %v117_v48, %v125_v49  ;;  %v133_v14 = vld [vmem:[%s6593_s0 + $0x3b0] sm:$0xff] }
 0x18c   :  { %v6284_v5 = vadd.f32 %v4557_v47, %v2713_v59  ;;  %v2716_v6 = vadd.f32 %v4460_v1, %v6043_v29  ;;  %3423 = vmatmul.mubr.bf16.gmra.mrb[180].mxu1 %v3794_v42  ;;  %3286 = vmatprep.mubr.bf16.mxu0 %v3809_v43  ;;  %v110_v29 = vld [vmem:[%s6593_s0 + $0x2f8] sm:$0xff]  ;;  %v141_v30 = vld [vmem:[%s6593_s0 + $0x3f0] sm:$0xff] }
 0x18d   :  { %3430 = vmatprep.mubr.bf16.mxu1 %v3811_v62  ;;  %v3827_v35 = vcombine.high %v102_v23, %v110_v29  ;;  %v3826_v1 = vcombine.low %v102_v23, %v110_v29  ;;  %v134_v29 = vld [vmem:[%s6593_s0 + $0x3b8] sm:$0xff] }
 0x18e   :  { %v6293_v24 = vadd.f32 %v4560_v4, %v2716_v6  ;;  %v4461_v20 = vpop.f32.mrb[76].mxu0 }
 0x18f   :  { %v4561_v7 = vpop.f32.mrb[76].mxu1  ;;  %v4462_v8 = vpop.f32.mrb[77].mxu0 }
 0x190   :  { %v4463_v2 = vadd.f32 %v4462_v8, %v4461_v20  ;;  %v4562_v11 = vpop.f32.mrb[77].mxu1  ;;  %v4464_v13 = vpop.f32.mrb[78].mxu0 }
 0x191   :  { %v4563_v31 = vadd.f32 %v4562_v11, %v4561_v7  ;;  %v4564_v33 = vpop.f32.mrb[78].mxu1  ;;  %v4465_v0 = vpop.f32.mrb[79].mxu0 }
 0x192   :  { %v2721_v28 = vadd.f32 %v4463_v2, %v6059_v52  ;;  %v4466_v37 = vadd.f32 %v4465_v0, %v4464_v13  ;;  %v4565_v38 = vpop.f32.mrb[79].mxu1 }
 0x193   :  { %v4566_v40 = vadd.f32 %v4565_v38, %v4564_v33  ;;  %3287 = vmatmul.mubr.bf16.gmra.mrb[184].mxu0 %v3808_v10  ;;  %v3840_v33 = vcombine.low %v117_v48, %v125_v49  ;;  %v3857_v38 = vcombine.high %v133_v14, %v141_v30  ;;  %v149_v48 = vld [vmem:[%s6593_s0 + $0x430] sm:$0xff] }
 0x194   :  { %v6302_v41 = vadd.f32 %v4563_v31, %v2721_v28  ;;  %v2724_v42 = vadd.f32 %v4466_v37, %v6068_v58  ;;  %3431 = vmatmul.mubr.bf16.gmra.mrb[184].mxu1 %v3810_v27  ;;  %3294 = vmatprep.mubr.bf16.mxu0 %v3825_v26  ;;  %v126_v58 = vld [vmem:[%s6593_s0 + $0x378] sm:$0xff]  ;;  %v157_v49 = vld [vmem:[%s6593_s0 + $0x470] sm:$0xff] }
 0x195   :  { %3438 = vmatprep.mubr.bf16.mxu1 %v3827_v35  ;;  %v3843_v7 = vcombine.high %v118_v57, %v126_v58  ;;  %v3842_v37 = vcombine.low %v118_v57, %v126_v58  ;;  %v150_v58 = vld [vmem:[%s6593_s0 + $0x438] sm:$0xff] }
 0x196   :  { %v6311_v52 = vadd.f32 %v4566_v40, %v2724_v42  ;;  %v4467_v53 = vpop.f32.mrb[80].mxu0 }
 0x197   :  { %v4567_v43 = vpop.f32.mrb[80].mxu1  ;;  %v4468_v47 = vpop.f32.mrb[81].mxu0 }
 0x198   :  { %v4469_v39 = vadd.f32 %v4468_v47, %v4467_v53  ;;  %v4568_v62 = vpop.f32.mrb[81].mxu1  ;;  %v4470_v59 = vpop.f32.mrb[82].mxu0 }
 0x199   :  { %v4569_v4 = vadd.f32 %v4568_v62, %v4567_v43  ;;  %v4570_v6 = vpop.f32.mrb[82].mxu1  ;;  %v4471_v20 = vpop.f32.mrb[83].mxu0 }
 0x19a   :  { %v2729_v8 = vadd.f32 %v4469_v39, %v6077_v16  ;;  %v4472_v10 = vadd.f32 %v4471_v20, %v4470_v59  ;;  %v4571_v2 = vpop.f32.mrb[83].mxu1 }
 0x19b   :  { %v4572_v11 = vadd.f32 %v4571_v2, %v4570_v6  ;;  %3295 = vmatmul.mubr.bf16.gmra.mrb[188].mxu0 %v3824_v60  ;;  %v3856_v6 = vcombine.low %v133_v14, %v141_v30  ;;  %v3873_v2 = vcombine.high %v149_v48, %v157_v49  ;;  %v165_v14 = vld [vmem:[%s6593_s0 + $0x4b0] sm:$0xff] }
 0x19c   :  { %v6320_v13 = vadd.f32 %v4569_v4, %v2729_v8  ;;  %v2732_v27 = vadd.f32 %v4472_v10, %v6086_v22  ;;  %3439 = vmatmul.mubr.bf16.gmra.mrb[188].mxu1 %v3826_v1  ;;  %3302 = vmatprep.mubr.bf16.mxu0 %v3841_v63  ;;  %v142_v22 = vld [vmem:[%s6593_s0 + $0x3f8] sm:$0xff]  ;;  %v173_v30 = vld [vmem:[%s6593_s0 + $0x4f0] sm:$0xff] }
 0x19d   :  { %3446 = vmatprep.mubr.bf16.mxu1 %v3843_v7  ;;  %v3859_v43 = vcombine.high %v134_v29, %v142_v22  ;;  %v3858_v10 = vcombine.low %v134_v29, %v142_v22  ;;  %v166_v22 = vld [vmem:[%s6593_s0 + $0x4b8] sm:$0xff] }
 0x19e   :  { %v6329_v16 = vadd.f32 %v4572_v11, %v2732_v27  ;;  %v4473_v23 = vpop.f32.mrb[84].mxu0 }
 0x19f   :  { %v4573_v26 = vpop.f32.mrb[84].mxu1  ;;  %v4474_v31 = vpop.f32.mrb[85].mxu0 }
 0x1a0   :  { %v4475_v0 = vadd.f32 %v4474_v31, %v4473_v23  ;;  %v4574_v35 = vpop.f32.mrb[85].mxu1  ;;  %v4476_v28 = vpop.f32.mrb[86].mxu0 }
 0x1a1   :  { %v4575_v40 = vadd.f32 %v4574_v35, %v4573_v26  ;;  %v4576_v42 = vpop.f32.mrb[86].mxu1  ;;  %v4477_v53 = vpop.f32.mrb[87].mxu0 }
 0x1a2   :  { %v2737_v47 = vadd.f32 %v4475_v0, %v6095_v45  ;;  %v4478_v60 = vadd.f32 %v4477_v53, %v4476_v28  ;;  %v4577_v39 = vpop.f32.mrb[87].mxu1 }
 0x1a3   :  { %v4578_v62 = vadd.f32 %v4577_v39, %v4576_v42  ;;  %3303 = vmatmul.mubr.bf16.gmra.mrb[192].mxu0 %v3840_v33  ;;  %v3872_v42 = vcombine.low %v149_v48, %v157_v49  ;;  %v3889_v39 = vcombine.high %v165_v14, %v173_v30  ;;  %v181_v48 = vld [vmem:[%s6593_s0 + $0x530] sm:$0xff] }
 0x1a4   :  { %v6338_v59 = vadd.f32 %v4575_v40, %v2737_v47  ;;  %v2740_v1 = vadd.f32 %v4478_v60, %v6104_v51  ;;  %3447 = vmatmul.mubr.bf16.gmra.mrb[192].mxu1 %v3842_v37  ;;  %3310 = vmatprep.mubr.bf16.mxu0 %v3857_v38  ;;  %v158_v51 = vld [vmem:[%s6593_s0 + $0x478] sm:$0xff]  ;;  %v189_v49 = vld [vmem:[%s6593_s0 + $0x570] sm:$0xff] }
 0x1a5   :  { %3454 = vmatprep.mubr.bf16.mxu1 %v3859_v43  ;;  %v3875_v26 = vcombine.high %v150_v58, %v158_v51  ;;  %v3874_v60 = vcombine.low %v150_v58, %v158_v51  ;;  %v182_v51 = vld [vmem:[%s6593_s0 + $0x538] sm:$0xff] }
 0x1a6   :  { %v6347_v45 = vadd.f32 %v4578_v62, %v2740_v1  ;;  %v4479_v57 = vpop.f32.mrb[88].mxu0 }
 0x1a7   :  { %v4579_v63 = vpop.f32.mrb[88].mxu1  ;;  %v4480_v4 = vpop.f32.mrb[89].mxu0 }
 0x1a8   :  { %v4481_v20 = vadd.f32 %v4480_v4, %v4479_v57  ;;  %v4580_v7 = vpop.f32.mrb[89].mxu1  ;;  %v4482_v8 = vpop.f32.mrb[90].mxu0 }
 0x1a9   :  { %v4581_v11 = vadd.f32 %v4580_v7, %v4579_v63  ;;  %v4582_v27 = vpop.f32.mrb[90].mxu1  ;;  %v4483_v23 = vpop.f32.mrb[91].mxu0 }
 0x1aa   :  { %v2745_v31 = vadd.f32 %v4481_v20, %v6113_v12  ;;  %v4484_v33 = vadd.f32 %v4483_v23, %v4482_v8  ;;  %v4583_v0 = vpop.f32.mrb[91].mxu1 }
 0x1ab   :  { %v4584_v35 = vadd.f32 %v4583_v0, %v4582_v27  ;;  %3311 = vmatmul.mubr.bf16.gmra.mrb[196].mxu0 %v3856_v6  ;;  %v3888_v27 = vcombine.low %v165_v14, %v173_v30  ;;  %v3905_v0 = vcombine.high %v181_v48, %v189_v49  ;;  %v197_v14 = vld [vmem:[%s6593_s0 + $0x5b0] sm:$0xff] }
 0x1ac   :  { %v6356_v28 = vadd.f32 %v4581_v11, %v2745_v31  ;;  %v2748_v37 = vadd.f32 %v4484_v33, %v6122_v19  ;;  %3455 = vmatmul.mubr.bf16.gmra.mrb[196].mxu1 %v3858_v10  ;;  %3318 = vmatprep.mubr.bf16.mxu0 %v3873_v2  ;;  %v174_v19 = vld [vmem:[%s6593_s0 + $0x4f8] sm:$0xff]  ;;  %v205_v30 = vld [vmem:[%s6593_s0 + $0x5f0] sm:$0xff] }
 0x1ad   :  { %3462 = vmatprep.mubr.bf16.mxu1 %v3875_v26  ;;  %v3891_v63 = vcombine.high %v166_v22, %v174_v19  ;;  %v3890_v33 = vcombine.low %v166_v22, %v174_v19  ;;  %v198_v19 = vld [vmem:[%s6593_s0 + $0x5b8] sm:$0xff] }
 0x1ae   :  { %v6365_v12 = vadd.f32 %v4584_v35, %v2748_v37  ;;  %v4485_v29 = vpop.f32.mrb[92].mxu0 }
 0x1af   :  { %v4585_v38 = vpop.f32.mrb[92].mxu1  ;;  %v4486_v40 = vpop.f32.mrb[93].mxu0 }
 0x1b0   :  { %v4487_v53 = vadd.f32 %v4486_v40, %v4485_v29  ;;  %v4586_v43 = vpop.f32.mrb[93].mxu1  ;;  %v4488_v47 = vpop.f32.mrb[94].mxu0 }
 0x1b1   :  { %v4587_v62 = vadd.f32 %v4586_v43, %v4585_v38  ;;  %v4588_v1 = vpop.f32.mrb[94].mxu1  ;;  %v4489_v57 = vpop.f32.mrb[95].mxu0 }
 0x1b2   :  { %v2753_v4 = vadd.f32 %v4487_v53, %v6131_v44  ;;  %v4490_v6 = vadd.f32 %v4489_v57, %v4488_v47  ;;  %v4589_v20 = vpop.f32.mrb[95].mxu1 }
 0x1b3   :  { %v4590_v7 = vadd.f32 %v4589_v20, %v4588_v1  ;;  %3319 = vmatmul.mubr.bf16.gmra.mrb[200].mxu0 %v3872_v42  ;;  %v3904_v1 = vcombine.low %v181_v48, %v189_v49  ;;  %v3921_v20 = vcombine.high %v197_v14, %v205_v30  ;;  %v213_v48 = vld [vmem:[%s6593_s0 + $0x630] sm:$0xff] }
 0x1b4   :  { %v6374_v8 = vadd.f32 %v4587_v62, %v2753_v4  ;;  %v2756_v10 = vadd.f32 %v4490_v6, %v6140_v54  ;;  %3463 = vmatmul.mubr.bf16.gmra.mrb[200].mxu1 %v3874_v60  ;;  %3326 = vmatprep.mubr.bf16.mxu0 %v3889_v39  ;;  %v190_v54 = vld [vmem:[%s6593_s0 + $0x578] sm:$0xff]  ;;  %v221_v49 = vld [vmem:[%s6593_s0 + $0x670] sm:$0xff] }
 0x1b5   :  { %3470 = vmatprep.mubr.bf16.mxu1 %v3891_v63  ;;  %v3907_v38 = vcombine.high %v182_v51, %v190_v54  ;;  %v3906_v6 = vcombine.low %v182_v51, %v190_v54  ;;  %v214_v54 = vld [vmem:[%s6593_s0 + $0x638] sm:$0xff] }
 0x1b6   :  { %v6383_v44 = vadd.f32 %v4590_v7, %v2756_v10  ;;  %v4491_v58 = vpop.f32.mrb[96].mxu0 }
 0x1b7   :  { %v4591_v2 = vpop.f32.mrb[96].mxu1  ;;  %v4492_v11 = vpop.f32.mrb[97].mxu0 }
 0x1b8   :  { %v4493_v23 = vadd.f32 %v4492_v11, %v4491_v58  ;;  %v4592_v26 = vpop.f32.mrb[97].mxu1  ;;  %v4494_v31 = vpop.f32.mrb[98].mxu0 }
 0x1b9   :  { %v4593_v35 = vadd.f32 %v4592_v26, %v4591_v2  ;;  %v4594_v37 = vpop.f32.mrb[98].mxu1  ;;  %v4495_v29 = vpop.f32.mrb[99].mxu0 }
 0x1ba   :  { %v2761_v40 = vadd.f32 %v4493_v23, %v6149_v21  ;;  %v4496_v42 = vadd.f32 %v4495_v29, %v4494_v31  ;;  %v4595_v53 = vpop.f32.mrb[99].mxu1 }
 0x1bb   :  { %v4596_v43 = vadd.f32 %v4595_v53, %v4594_v37  ;;  %3327 = vmatmul.mubr.bf16.gmra.mrb[204].mxu0 %v3888_v27  ;;  %v3920_v37 = vcombine.low %v197_v14, %v205_v30  ;;  %v3937_v53 = vcombine.high %v213_v48, %v221_v49  ;;  %v229_v14 = vld [vmem:[%s6593_s0 + $0x6b0] sm:$0xff] }
 0x1bc   :  { %v6392_v47 = vadd.f32 %v4593_v35, %v2761_v40  ;;  %v2764_v60 = vadd.f32 %v4496_v42, %v6158_v25  ;;  %3471 = vmatmul.mubr.bf16.gmra.mrb[204].mxu1 %v3890_v33  ;;  %3334 = vmatprep.mubr.bf16.mxu0 %v3905_v0  ;;  %v206_v25 = vld [vmem:[%s6593_s0 + $0x5f8] sm:$0xff] }
 0x1bd   :  { %3478 = vmatprep.mubr.bf16.mxu1 %v3907_v38  ;;  %v3923_v2 = vcombine.high %v198_v19, %v206_v25  ;;  %v3922_v42 = vcombine.low %v198_v19, %v206_v25 }
 0x1be   :  { %v6401_v21 = vadd.f32 %v4596_v43, %v2764_v60  ;;  %v4497_v22 = vpop.f32.mrb[100].mxu0 }
 0x1bf   :  { %v4597_v39 = vpop.f32.mrb[100].mxu1  ;;  %v4498_v62 = vpop.f32.mrb[101].mxu0 }
 0x1c0   :  { %v4499_v57 = vadd.f32 %v4498_v62, %v4497_v22  ;;  %v4598_v63 = vpop.f32.mrb[101].mxu1  ;;  %v4500_v4 = vpop.f32.mrb[102].mxu0 }
 0x1c1   :  { %v4599_v7 = vadd.f32 %v4598_v63, %v4597_v39  ;;  %v4600_v10 = vpop.f32.mrb[102].mxu1  ;;  %v4501_v58 = vpop.f32.mrb[103].mxu0 }
 0x1c2   :  { %v2769_v11 = vadd.f32 %v4499_v57, %v6167_v61  ;;  %v4502_v27 = vadd.f32 %v4501_v58, %v4500_v4  ;;  %v4601_v23 = vpop.f32.mrb[103].mxu1 }
 0x1c3   :  { %v4602_v26 = vadd.f32 %v4601_v23, %v4600_v10  ;;  %3335 = vmatmul.mubr.bf16.gmra.mrb[208].mxu0 %v3904_v1 }
 0x1c4   :  { %v6410_v31 = vadd.f32 %v4599_v7, %v2769_v11  ;;  %v2772_v33 = vadd.f32 %v4502_v27, %v6176_v56  ;;  %3479 = vmatmul.mubr.bf16.gmra.mrb[208].mxu1 %v3906_v6  ;;  %3342 = vmatprep.mubr.bf16.mxu0 %v3921_v20  ;;  %v222_v56 = vld [vmem:[%s6593_s0 + $0x678] sm:$0xff]  ;;  %v3936_v7 = vcombine.low %v213_v48, %v221_v49 }
 0x1c5   :  { %3486 = vmatprep.mubr.bf16.mxu1 %v3923_v2  ;;  %v3939_v39 = vcombine.high %v214_v54, %v222_v56  ;;  %v3938_v2 = vcombine.low %v214_v54, %v222_v56  ;;  %v3953_v11 = vcombine.high %v229_v14, %v229_v14 }
 0x1c6   :  { %v6419_v61 = vadd.f32 %v4602_v26, %v2772_v33  ;;  %v4503_v51 = vpop.f32.mrb[104].mxu0 }
 0x1c7   :  { %v4603_v0 = vpop.f32.mrb[104].mxu1  ;;  %v4504_v35 = vpop.f32.mrb[105].mxu0 }
 0x1c8   :  { %v4505_v29 = vadd.f32 %v4504_v35, %v4503_v51  ;;  %v4604_v38 = vpop.f32.mrb[105].mxu1  ;;  %v4506_v40 = vpop.f32.mrb[106].mxu0 }
 0x1c9   :  { %v4605_v43 = vadd.f32 %v4604_v38, %v4603_v0  ;;  %v4606_v60 = vpop.f32.mrb[106].mxu1  ;;  %v4507_v22 = vpop.f32.mrb[107].mxu0 }
 0x1ca   :  { %v2777_v62 = vadd.f32 %v4505_v29, %v6185_v34  ;;  %v4508_v1 = vadd.f32 %v4507_v22, %v4506_v40  ;;  %v4607_v57 = vpop.f32.mrb[107].mxu1  ;;  %v230_v34 = vld [vmem:[%s6593_s0 + $0x6b8] sm:$0xff]  ;;  %v3952_v29 = vcombine.low %v229_v14, %v229_v14 }
 0x1cb   :  { %v4608_v63 = vadd.f32 %v4607_v57, %v4606_v60  ;;  %3343 = vmatmul.mubr.bf16.gmra.mrb[212].mxu0 %v3920_v37  ;;  %v3955_v33 = vcombine.high %v230_v34, %v230_v34  ;;  %v3954_v40 = vcombine.low %v230_v34, %v230_v34 }
 0x1cc   :  { %v6428_v4 = vadd.f32 %v4605_v43, %v2777_v62  ;;  %v2780_v6 = vadd.f32 %v4508_v1, %v6191_v17  ;;  %3487 = vmatmul.mubr.bf16.gmra.mrb[212].mxu1 %v3922_v42  ;;  %3350 = vmatprep.mubr.bf16.mxu0 %v3937_v53 }
 0x1cd   :  { %3494 = vmatprep.mubr.bf16.mxu1 %v3939_v39 }
 0x1ce   :  { %v6434_v30 = vadd.f32 %v4608_v63, %v2780_v6  ;;  %v4509_v19 = vpop.f32.mrb[108].mxu0 }
 0x1cf   :  { %v4609_v25 = vpop.f32.mrb[108].mxu1  ;;  %v4510_v20 = vpop.f32.mrb[109].mxu0 }
 0x1d0   :  { %v4511_v10 = vadd.f32 %v4510_v20, %v4509_v19  ;;  %v4610_v58 = vpop.f32.mrb[109].mxu1  ;;  %v4512_v17 = vpop.f32.mrb[110].mxu0 }
 0x1d1   :  { %v4611_v27 = vadd.f32 %v4610_v58, %v4609_v25  ;;  %v4612_v23 = vpop.f32.mrb[110].mxu1  ;;  %v4513_v26 = vpop.f32.mrb[111].mxu0 }
 0x1d2   :  { %v2785_v51 = vadd.f32 %v4511_v10, %v6197_v3  ;;  %v4613_v0 = vpop.f32.mrb[111].mxu1 }
 0x1d3   :  { %3351 = vmatmul.mubr.bf16.gmra.mrb[216].mxu0 %v3936_v7 }
 0x1d4   :  { %v6440_v35 = vadd.f32 %v4611_v27, %v2785_v51  ;;  %3495 = vmatmul.mubr.bf16.gmra.mrb[216].mxu1 %v3938_v2  ;;  %3358 = vmatprep.mubr.bf16.mxu0 %v3953_v11 }
 0x1d5   :  { %3502 = vmatprep.mubr.bf16.mxu1 %v3955_v33 }
 0x1d6   :  { %v4631_v37 = vpop.f32.mrb[112].mxu0 }
 0x1d7   :  { %v4731_v48 = vpop.f32.mrb[112].mxu1  ;;  %v4632_v49 = vpop.f32.mrb[113].mxu0 }
 0x1d8   :  { %v4633_v38 = vadd.f32 %v4632_v49, %v4631_v37  ;;  %v4732_v54 = vpop.f32.mrb[113].mxu1  ;;  %v4634_v56 = vpop.f32.mrb[114].mxu0 }
 0x1d9   :  { %v4733_v42 = vadd.f32 %v4732_v54, %v4731_v48  ;;  %v4734_v53 = vpop.f32.mrb[114].mxu1  ;;  %v4635_v43 = vpop.f32.mrb[115].mxu0 }
 0x1da   :  { %v2969_v3 = vadd.f32 %v4633_v38, %v6212_v36  ;;  %v4636_v60 = vadd.f32 %v4635_v43, %v4634_v56  ;;  %v4735_v22 = vpop.f32.mrb[115].mxu1 }
 0x1db   :  { %v4736_v39 = vadd.f32 %v4735_v22, %v4734_v53  ;;  %3359 = vmatmul.mubr.bf16.gmra.mrb[220].mxu0 %v3952_v29 }
 0x1dc   :  { %v6443_v62 = vadd.f32 %v4733_v42, %v2969_v3  ;;  %v2972_v1 = vadd.f32 %v4636_v60, %v6221_v18  ;;  %3503 = vmatmul.mubr.bf16.gmra.mrb[220].mxu1 %v3954_v40 }
 0x1de   :  { %v6446_v57 = vadd.f32 %v4736_v39, %v2972_v1  ;;  %v4637_v63 = vpop.f32.mrb[116].mxu0 }
 0x1df   :  { %v4737_v6 = vpop.f32.mrb[116].mxu1  ;;  %v4638_v14 = vpop.f32.mrb[117].mxu0 }
 0x1e0   :  { %v4639_v19 = vadd.f32 %v4638_v14, %v4637_v63  ;;  %v4738_v34 = vpop.f32.mrb[117].mxu1  ;;  %v4640_v25 = vpop.f32.mrb[118].mxu0 }
 0x1e1   :  { %v4739_v20 = vadd.f32 %v4738_v34, %v4737_v6  ;;  %v4740_v7 = vpop.f32.mrb[118].mxu1  ;;  %v4641_v36 = vpop.f32.mrb[119].mxu0 }
 0x1e2   :  { %v2977_v10 = vadd.f32 %v4639_v19, %v6230_v9  ;;  %v4642_v58 = vadd.f32 %v4641_v36, %v4640_v25  ;;  %v4741_v17 = vpop.f32.mrb[119].mxu1 }
 0x1e3   :  { %v4742_v2 = vadd.f32 %v4741_v17, %v4740_v7 }
 0x1e4   :  { %v6449_v11 = vadd.f32 %v4739_v20, %v2977_v10  ;;  %v2980_v18 = vadd.f32 %v4642_v58, %v6239_v46 }
 0x1e6   :  { %v6452_v27 = vadd.f32 %v4742_v2, %v2980_v18  ;;  %v4643_v23 = vpop.f32.mrb[120].mxu0 }
 0x1e7   :  { %v4743_v26 = vpop.f32.mrb[120].mxu1  ;;  %v4644_v33 = vpop.f32.mrb[121].mxu0 }
 0x1e8   :  { %v4645_v51 = vadd.f32 %v4644_v33, %v4643_v23  ;;  %v4744_v0 = vpop.f32.mrb[121].mxu1  ;;  %v4646_v37 = vpop.f32.mrb[122].mxu0 }
 0x1e9   :  { %v4745_v48 = vadd.f32 %v4744_v0, %v4743_v26  ;;  %v4746_v49 = vpop.f32.mrb[122].mxu1  ;;  %v4647_v29 = vpop.f32.mrb[123].mxu0 }
 0x1ea   :  { %v2985_v9 = vadd.f32 %v4645_v51, %v6248_v55  ;;  %v4648_v38 = vadd.f32 %v4647_v29, %v4646_v37  ;;  %v4747_v54 = vpop.f32.mrb[123].mxu1 }
 0x1eb   :  { %v4748_v56 = vadd.f32 %v4747_v54, %v4746_v49 }
 0x1ec   :  { %v6455_v40 = vadd.f32 %v4745_v48, %v2985_v9  ;;  %v2988_v46 = vadd.f32 %v4648_v38, %v6257_v15 }
 0x1ee   :  { %v6458_v42 = vadd.f32 %v4748_v56, %v2988_v46  ;;  %v4649_v53 = vpop.f32.mrb[124].mxu0 }
 0x1ef   :  { %v4749_v43 = vpop.f32.mrb[124].mxu1  ;;  %v4650_v3 = vpop.f32.mrb[125].mxu0 }
 0x1f0   :  { %v4651_v60 = vadd.f32 %v4650_v3, %v4649_v53  ;;  %v4750_v22 = vpop.f32.mrb[125].mxu1  ;;  %v4652_v39 = vpop.f32.mrb[126].mxu0 }
 0x1f1   :  { %v4751_v1 = vadd.f32 %v4750_v22, %v4749_v43  ;;  %v4752_v63 = vpop.f32.mrb[126].mxu1  ;;  %v4653_v6 = vpop.f32.mrb[127].mxu0 }
 0x1f2   :  { %v2993_v55 = vadd.f32 %v4651_v60, %v6266_v32  ;;  %v4654_v14 = vadd.f32 %v4653_v6, %v4652_v39  ;;  %v4753_v19 = vpop.f32.mrb[127].mxu1 }
 0x1f3   :  { %v4754_v34 = vadd.f32 %v4753_v19, %v4752_v63 }
 0x1f4   :  { %v6461_v25 = vadd.f32 %v4751_v1, %v2993_v55  ;;  %v2996_v15 = vadd.f32 %v4654_v14, %v6275_v50 }
 0x1f6   :  { %v6464_v20 = vadd.f32 %v4754_v34, %v2996_v15  ;;  %v4655_v7 = vpop.f32.mrb[128].mxu0 }
 0x1f7   :  { %v4755_v36 = vpop.f32.mrb[128].mxu1  ;;  %v4656_v10 = vpop.f32.mrb[129].mxu0 }
 0x1f8   :  { %v4657_v58 = vadd.f32 %v4656_v10, %v4655_v7  ;;  %v4756_v17 = vpop.f32.mrb[129].mxu1  ;;  %v4658_v2 = vpop.f32.mrb[130].mxu0 }
 0x1f9   :  { %v4757_v18 = vadd.f32 %v4756_v17, %v4755_v36  ;;  %v4758_v23 = vpop.f32.mrb[130].mxu1  ;;  %v4659_v26 = vpop.f32.mrb[131].mxu0 }
 0x1fa   :  { %v3001_v32 = vadd.f32 %v4657_v58, %v6284_v5  ;;  %v4660_v33 = vadd.f32 %v4659_v26, %v4658_v2  ;;  %v4759_v51 = vpop.f32.mrb[131].mxu1 }
 0x1fb   :  { %v4760_v0 = vadd.f32 %v4759_v51, %v4758_v23 }
 0x1fc   :  { %v6467_v37 = vadd.f32 %v4757_v18, %v3001_v32  ;;  %v3004_v50 = vadd.f32 %v4660_v33, %v6293_v24 }
 0x1fe   :  { %v6470_v48 = vadd.f32 %v4760_v0, %v3004_v50  ;;  %v4661_v49 = vpop.f32.mrb[132].mxu0 }
 0x1ff   :  { %v4761_v29 = vpop.f32.mrb[132].mxu1  ;;  %v4662_v9 = vpop.f32.mrb[133].mxu0 }
 0x200   :  { %v4663_v38 = vadd.f32 %v4662_v9, %v4661_v49  ;;  %v4762_v54 = vpop.f32.mrb[133].mxu1  ;;  %v4664_v56 = vpop.f32.mrb[134].mxu0 }
 0x201   :  { %v4763_v46 = vadd.f32 %v4762_v54, %v4761_v29  ;;  %v4764_v53 = vpop.f32.mrb[134].mxu1  ;;  %v4665_v43 = vpop.f32.mrb[135].mxu0 }
 0x202   :  { %v3009_v5 = vadd.f32 %v4663_v38, %v6302_v41  ;;  %v4666_v3 = vadd.f32 %v4665_v43, %v4664_v56  ;;  %v4765_v60 = vpop.f32.mrb[135].mxu1 }
 0x203   :  { %v4766_v22 = vadd.f32 %v4765_v60, %v4764_v53 }
 0x204   :  { %v6473_v39 = vadd.f32 %v4763_v46, %v3009_v5  ;;  %v3012_v24 = vadd.f32 %v4666_v3, %v6311_v52 }
 0x206   :  { %v6476_v1 = vadd.f32 %v4766_v22, %v3012_v24  ;;  %v4667_v63 = vpop.f32.mrb[136].mxu0 }
 0x207   :  { %v4767_v6 = vpop.f32.mrb[136].mxu1  ;;  %v4668_v55 = vpop.f32.mrb[137].mxu0 }
 0x208   :  { %v4669_v14 = vadd.f32 %v4668_v55, %v4667_v63  ;;  %v4768_v19 = vpop.f32.mrb[137].mxu1  ;;  %v4670_v34 = vpop.f32.mrb[138].mxu0 }
 0x209   :  { %v4769_v15 = vadd.f32 %v4768_v19, %v4767_v6  ;;  %v4770_v7 = vpop.f32.mrb[138].mxu1  ;;  %v4671_v36 = vpop.f32.mrb[139].mxu0 }
 0x20a   :  { %v3017_v41 = vadd.f32 %v4669_v14, %v6320_v13  ;;  %v4672_v10 = vadd.f32 %v4671_v36, %v4670_v34  ;;  %v4771_v58 = vpop.f32.mrb[139].mxu1 }
 0x20b   :  { %v4772_v17 = vadd.f32 %v4771_v58, %v4770_v7 }
 0x20c   :  { %v6479_v2 = vadd.f32 %v4769_v15, %v3017_v41  ;;  %v3020_v52 = vadd.f32 %v4672_v10, %v6329_v16 }
 0x20e   :  { %v6482_v18 = vadd.f32 %v4772_v17, %v3020_v52  ;;  %v4673_v23 = vpop.f32.mrb[140].mxu0 }
 0x20f   :  { %v4773_v26 = vpop.f32.mrb[140].mxu1  ;;  %v4674_v32 = vpop.f32.mrb[141].mxu0 }
 0x210   :  { %v4675_v33 = vadd.f32 %v4674_v32, %v4673_v23  ;;  %v4774_v51 = vpop.f32.mrb[141].mxu1  ;;  %v4676_v0 = vpop.f32.mrb[142].mxu0 }
 0x211   :  { %v4775_v50 = vadd.f32 %v4774_v51, %v4773_v26  ;;  %v4776_v49 = vpop.f32.mrb[142].mxu1  ;;  %v4677_v29 = vpop.f32.mrb[143].mxu0 }
 0x212   :  { %v3025_v13 = vadd.f32 %v4675_v33, %v6338_v59  ;;  %v4678_v9 = vadd.f32 %v4677_v29, %v4676_v0  ;;  %v4777_v38 = vpop.f32.mrb[143].mxu1 }
 0x213   :  { %v4778_v54 = vadd.f32 %v4777_v38, %v4776_v49 }
 0x214   :  { %v6485_v56 = vadd.f32 %v4775_v50, %v3025_v13  ;;  %v3028_v16 = vadd.f32 %v4678_v9, %v6347_v45 }
 0x216   :  { %v6488_v46 = vadd.f32 %v4778_v54, %v3028_v16  ;;  %v4679_v53 = vpop.f32.mrb[144].mxu0 }
 0x217   :  { %v4779_v43 = vpop.f32.mrb[144].mxu1  ;;  %v4680_v5 = vpop.f32.mrb[145].mxu0 }
 0x218   :  { %v4681_v3 = vadd.f32 %v4680_v5, %v4679_v53  ;;  %v4780_v60 = vpop.f32.mrb[145].mxu1  ;;  %v4682_v22 = vpop.f32.mrb[146].mxu0 }
 0x219   :  { %v4781_v24 = vadd.f32 %v4780_v60, %v4779_v43  ;;  %v4782_v63 = vpop.f32.mrb[146].mxu1  ;;  %v4683_v6 = vpop.f32.mrb[147].mxu0 }
 0x21a   :  { %v3033_v59 = vadd.f32 %v4681_v3, %v6356_v28  ;;  %v4684_v55 = vadd.f32 %v4683_v6, %v4682_v22  ;;  %v4783_v14 = vpop.f32.mrb[147].mxu1 }
 0x21b   :  { %v4784_v19 = vadd.f32 %v4783_v14, %v4782_v63 }
 0x21c   :  { %v6491_v34 = vadd.f32 %v4781_v24, %v3033_v59  ;;  %v3036_v45 = vadd.f32 %v4684_v55, %v6365_v12 }
 0x21e   :  { %v6494_v15 = vadd.f32 %v4784_v19, %v3036_v45  ;;  %v4685_v7 = vpop.f32.mrb[148].mxu0 }
 0x21f   :  { %v4785_v36 = vpop.f32.mrb[148].mxu1  ;;  %v4686_v41 = vpop.f32.mrb[149].mxu0 }
 0x220   :  { %v4687_v10 = vadd.f32 %v4686_v41, %v4685_v7  ;;  %v4786_v58 = vpop.f32.mrb[149].mxu1  ;;  %v4688_v17 = vpop.f32.mrb[150].mxu0 }
 0x221   :  { %v4787_v52 = vadd.f32 %v4786_v58, %v4785_v36  ;;  %v4788_v23 = vpop.f32.mrb[150].mxu1  ;;  %v4689_v26 = vpop.f32.mrb[151].mxu0 }
 0x222   :  { %v3041_v28 = vadd.f32 %v4687_v10, %v6374_v8  ;;  %v4690_v32 = vadd.f32 %v4689_v26, %v4688_v17  ;;  %v4789_v33 = vpop.f32.mrb[151].mxu1 }
 0x223   :  { %v4790_v51 = vadd.f32 %v4789_v33, %v4788_v23 }
 0x224   :  { %v6497_v0 = vadd.f32 %v4787_v52, %v3041_v28  ;;  %v3044_v12 = vadd.f32 %v4690_v32, %v6383_v44 }
 0x226   :  { %v6500_v50 = vadd.f32 %v4790_v51, %v3044_v12  ;;  %v4691_v49 = vpop.f32.mrb[152].mxu0 }
 0x227   :  { %v4791_v29 = vpop.f32.mrb[152].mxu1  ;;  %v4692_v13 = vpop.f32.mrb[153].mxu0 }
 0x228   :  { %v4693_v9 = vadd.f32 %v4692_v13, %v4691_v49  ;;  %v4792_v38 = vpop.f32.mrb[153].mxu1  ;;  %v4694_v54 = vpop.f32.mrb[154].mxu0 }
 0x229   :  { %v4793_v16 = vadd.f32 %v4792_v38, %v4791_v29  ;;  %v4794_v53 = vpop.f32.mrb[154].mxu1  ;;  %v4695_v43 = vpop.f32.mrb[155].mxu0 }
 0x22a   :  { %v3049_v8 = vadd.f32 %v4693_v9, %v6392_v47  ;;  %v4696_v5 = vadd.f32 %v4695_v43, %v4694_v54  ;;  %v4795_v3 = vpop.f32.mrb[155].mxu1 }
 0x22b   :  { %v4796_v60 = vadd.f32 %v4795_v3, %v4794_v53 }
 0x22c   :  { %v6503_v22 = vadd.f32 %v4793_v16, %v3049_v8  ;;  %v3052_v44 = vadd.f32 %v4696_v5, %v6401_v21 }
 0x22e   :  { %v6506_v24 = vadd.f32 %v4796_v60, %v3052_v44  ;;  %v4697_v63 = vpop.f32.mrb[156].mxu0 }
 0x22f   :  { %v4797_v6 = vpop.f32.mrb[156].mxu1  ;;  %v4698_v59 = vpop.f32.mrb[157].mxu0 }
 0x230   :  { %v4699_v55 = vadd.f32 %v4698_v59, %v4697_v63  ;;  %v4798_v14 = vpop.f32.mrb[157].mxu1  ;;  %v4700_v19 = vpop.f32.mrb[158].mxu0 }
 0x231   :  { %v4799_v45 = vadd.f32 %v4798_v14, %v4797_v6  ;;  %v4800_v7 = vpop.f32.mrb[158].mxu1  ;;  %v4701_v36 = vpop.f32.mrb[159].mxu0 }
 0x232   :  { %v3057_v47 = vadd.f32 %v4699_v55, %v6410_v31  ;;  %v4702_v41 = vadd.f32 %v4701_v36, %v4700_v19  ;;  %v4801_v10 = vpop.f32.mrb[159].mxu1 }
 0x233   :  { %v4802_v58 = vadd.f32 %v4801_v10, %v4800_v7 }
 0x234   :  { %v6509_v17 = vadd.f32 %v4799_v45, %v3057_v47  ;;  %v3060_v21 = vadd.f32 %v4702_v41, %v6419_v61 }
 0x236   :  { %v6512_v52 = vadd.f32 %v4802_v58, %v3060_v21  ;;  %v4703_v23 = vpop.f32.mrb[160].mxu0 }
 0x237   :  { %v4803_v26 = vpop.f32.mrb[160].mxu1  ;;  %v4704_v28 = vpop.f32.mrb[161].mxu0 }
 0x238   :  { %v4705_v32 = vadd.f32 %v4704_v28, %v4703_v23  ;;  %v4804_v33 = vpop.f32.mrb[161].mxu1  ;;  %v4706_v51 = vpop.f32.mrb[162].mxu0 }
 0x239   :  { %v4805_v12 = vadd.f32 %v4804_v33, %v4803_v26  ;;  %v4806_v49 = vpop.f32.mrb[162].mxu1  ;;  %v4707_v29 = vpop.f32.mrb[163].mxu0 }
 0x23a   :  { %v3065_v31 = vadd.f32 %v4705_v32, %v6428_v4  ;;  %v4708_v13 = vadd.f32 %v4707_v29, %v4706_v51  ;;  %v4807_v9 = vpop.f32.mrb[163].mxu1 }
 0x23b   :  { %v4808_v38 = vadd.f32 %v4807_v9, %v4806_v49 }
 0x23c   :  { %v6515_v54 = vadd.f32 %v4805_v12, %v3065_v31  ;;  %v3068_v61 = vadd.f32 %v4708_v13, %v6434_v30 }
 0x23e   :  { %v6518_v16 = vadd.f32 %v4808_v38, %v3068_v61  ;;  %v4709_v53 = vpop.f32.mrb[164].mxu0 }
 0x23f   :  { %v4809_v43 = vpop.f32.mrb[164].mxu1  ;;  %v4710_v8 = vpop.f32.mrb[165].mxu0 }
 0x240   :  { %v4711_v5 = vadd.f32 %v4710_v8, %v4709_v53  ;;  %v4810_v3 = vpop.f32.mrb[165].mxu1  ;;  %v4712_v60 = vpop.f32.mrb[166].mxu0 }
 0x241   :  { %v4811_v44 = vadd.f32 %v4810_v3, %v4809_v43  ;;  %v4812_v63 = vpop.f32.mrb[166].mxu1  ;;  %v4713_v6 = vpop.f32.mrb[167].mxu0 }
 0x242   :  { %v3073_v4 = vadd.f32 %v4711_v5, %v6440_v35  ;;  %v4813_v59 = vpop.f32.mrb[167].mxu1 }
 0x244   :  { %v6521_v55 = vadd.f32 %v4811_v44, %v3073_v4 }
 0x246   :  { %v4831_v14 = vpop.f32.mrb[168].mxu0 }
 0x247   :  { %v4931_v19 = vpop.f32.mrb[168].mxu1  ;;  %v4832_v45 = vpop.f32.mrb[169].mxu0 }
 0x248   :  { %v4833_v30 = vadd.f32 %v4832_v45, %v4831_v14  ;;  %v4932_v7 = vpop.f32.mrb[169].mxu1  ;;  %v4834_v36 = vpop.f32.mrb[170].mxu0 }
 0x249   :  { %v4933_v47 = vadd.f32 %v4932_v7, %v4931_v19  ;;  %v4934_v41 = vpop.f32.mrb[170].mxu1  ;;  %v4835_v10 = vpop.f32.mrb[171].mxu0 }
 0x24a   :  { %v3257_v58 = vadd.f32 %v4833_v30, %v6443_v62  ;;  %v4836_v21 = vadd.f32 %v4835_v10, %v4834_v36  ;;  %v4935_v23 = vpop.f32.mrb[171].mxu1 }
 0x24b   :  { %v4936_v26 = vadd.f32 %v4935_v23, %v4934_v41 }
 0x24c   :  { %v3401_v28 = vadd.f32 %v4933_v47, %v3257_v58  ;;  %v3260_v35 = vadd.f32 %v4836_v21, %v6446_v57 }
 0x24e   :  { %v3537_v32 = vmul.f32 0.2, %v3401_v28  ;;  %v3404_v33 = vadd.f32 %v4936_v26, %v3260_v35  ;;  %v4837_v51 = vpop.f32.mrb[172].mxu0  ;;  %vm3510_vm0 = vcmp.gt.f32.partialorder %v3401_v28, 0.0 }
 0x24f   :  { %v4937_v12 = vpop.f32.mrb[172].mxu1  ;;  %v4838_v49 = vpop.f32.mrb[173].mxu0 }
 0x250   :  { %vm3511_vm1 = vcmp.gt.f32.partialorder %v3404_v33, 0.0  ;;  %v3538_v29 = vmul.f32 0.2, %v3404_v33  ;;  %v4839_v31 = vadd.f32 %v4838_v49, %v4837_v51  ;;  %v4938_v13 = vpop.f32.mrb[173].mxu1  ;;  %v4840_v9 = vpop.f32.mrb[174].mxu0  ;;  %v3564_v53 = vsel %vm3510_vm0, %v3401_v28, %v3537_v32 }
 0x251   :  { %v4939_v38 = vadd.f32 %v4938_v13, %v4937_v12  ;;  %v4940_v61 = vpop.f32.mrb[174].mxu1  ;;  %v4841_v62 = vpop.f32.mrb[175].mxu0 }
 0x252   :  { %v3565_v43 = vsel %vm3511_vm1, %v3404_v33, %v3538_v29  ;;  %v3265_v8 = vadd.f32 %v4839_v31, %v6449_v11  ;;  %v4842_v5 = vadd.f32 %v4841_v62, %v4840_v9  ;;  %v4941_v57 = vpop.f32.mrb[175].mxu1 }
 0x253   :  { %v4141_v3 = vpack.c.bf16 %v3565_v43, %v3564_v53  ;;  %v4942_v60 = vadd.f32 %v4941_v57, %v4940_v61 }
 0x254   :  { %v3409_v44 = vadd.f32 %v4939_v38, %v3265_v8  ;;  %v3268_v63 = vadd.f32 %v4842_v5, %v6452_v27 }
 0x255   :  { %4142 = vst [vmem:[%s6595_s3] sm:$0xff] %v4141_v3  }
 0x256   :  { %v3539_v6 = vmul.f32 0.2, %v3409_v44  ;;  %v3412_v4 = vadd.f32 %v4942_v60, %v3268_v63  ;;  %v4843_v59 = vpop.f32.mrb[176].mxu0  ;;  %vm3512_vm2 = vcmp.gt.f32.partialorder %v3409_v44, 0.0 }
 0x257   :  { %v4943_v14 = vpop.f32.mrb[176].mxu1  ;;  %v4844_v19 = vpop.f32.mrb[177].mxu0 }
 0x258   :  { %vm3513_vm3 = vcmp.gt.f32.partialorder %v3412_v4, 0.0  ;;  %v3540_v45 = vmul.f32 0.2, %v3412_v4  ;;  %v4845_v11 = vadd.f32 %v4844_v19, %v4843_v59  ;;  %v4944_v30 = vpop.f32.mrb[177].mxu1  ;;  %v4846_v7 = vpop.f32.mrb[178].mxu0  ;;  %v3566_v10 = vsel %vm3512_vm2, %v3409_v44, %v3539_v6 }
 0x259   :  { %v4945_v36 = vadd.f32 %v4944_v30, %v4943_v14  ;;  %v4946_v47 = vpop.f32.mrb[178].mxu1  ;;  %v4847_v41 = vpop.f32.mrb[179].mxu0 }
 0x25a   :  { %v3567_v27 = vsel %vm3513_vm3, %v3412_v4, %v3540_v45  ;;  %v3273_v58 = vadd.f32 %v4845_v11, %v6455_v40  ;;  %v4848_v21 = vadd.f32 %v4847_v41, %v4846_v7  ;;  %v4947_v23 = vpop.f32.mrb[179].mxu1 }
 0x25b   :  { %v4146_v26 = vpack.c.bf16 %v3567_v27, %v3566_v10  ;;  %v4948_v28 = vadd.f32 %v4947_v23, %v4946_v47 }
 0x25c   :  { %v3417_v35 = vadd.f32 %v4945_v36, %v3273_v58  ;;  %v3276_v32 = vadd.f32 %v4848_v21, %v6458_v42 }
 0x25d   :  { %4203 = vst [vmem:[%s6595_s3 + $0x8] sm:$0xff] %v4146_v26  }
 0x25e   :  { %v3541_v33 = vmul.f32 0.2, %v3417_v35  ;;  %v3420_v51 = vadd.f32 %v4948_v28, %v3276_v32  ;;  %v4849_v12 = vpop.f32.mrb[180].mxu0  ;;  %vm3514_vm4 = vcmp.gt.f32.partialorder %v3417_v35, 0.0 }
 0x25f   :  { %v4949_v49 = vpop.f32.mrb[180].mxu1  ;;  %v4850_v29 = vpop.f32.mrb[181].mxu0 }
 0x260   :  { %vm3515_vm5 = vcmp.gt.f32.partialorder %v3420_v51, 0.0  ;;  %v3542_v31 = vmul.f32 0.2, %v3420_v51  ;;  %v4851_v40 = vadd.f32 %v4850_v29, %v4849_v12  ;;  %v4950_v13 = vpop.f32.mrb[181].mxu1  ;;  %v4852_v9 = vpop.f32.mrb[182].mxu0  ;;  %v3568_v53 = vsel %vm3514_vm4, %v3417_v35, %v3541_v33 }
 0x261   :  { %v4951_v38 = vadd.f32 %v4950_v13, %v4949_v49  ;;  %v4952_v61 = vpop.f32.mrb[182].mxu1  ;;  %v4853_v62 = vpop.f32.mrb[183].mxu0 }
 0x262   :  { %v3569_v42 = vsel %vm3515_vm5, %v3420_v51, %v3542_v31  ;;  %v3281_v43 = vadd.f32 %v4851_v40, %v6461_v25  ;;  %v4854_v8 = vadd.f32 %v4853_v62, %v4852_v9  ;;  %v4953_v5 = vpop.f32.mrb[183].mxu1 }
 0x263   :  { %v4151_v57 = vpack.c.bf16 %v3569_v42, %v3568_v53  ;;  %v4954_v3 = vadd.f32 %v4953_v5, %v4952_v61 }
 0x264   :  { %v3425_v60 = vadd.f32 %v4951_v38, %v3281_v43  ;;  %v3284_v44 = vadd.f32 %v4854_v8, %v6464_v20 }
 0x265   :  { %4204 = vst [vmem:[%s6595_s3 + $0x10] sm:$0xff] %v4151_v57  }
 0x266   :  { %v3543_v63 = vmul.f32 0.2, %v3425_v60  ;;  %v3428_v6 = vadd.f32 %v4954_v3, %v3284_v44  ;;  %v4855_v4 = vpop.f32.mrb[184].mxu0  ;;  %vm3516_vm6 = vcmp.gt.f32.partialorder %v3425_v60, 0.0 }
 0x267   :  { %v4955_v59 = vpop.f32.mrb[184].mxu1  ;;  %v4856_v14 = vpop.f32.mrb[185].mxu0 }
 0x268   :  { %vm3517_vm7 = vcmp.gt.f32.partialorder %v3428_v6, 0.0  ;;  %v3544_v19 = vmul.f32 0.2, %v3428_v6  ;;  %v4857_v25 = vadd.f32 %v4856_v14, %v4855_v4  ;;  %v4956_v45 = vpop.f32.mrb[185].mxu1  ;;  %v4858_v11 = vpop.f32.mrb[186].mxu0  ;;  %v3570_v47 = vsel %vm3516_vm6, %v3425_v60, %v3543_v63 }
 0x269   :  { %v4957_v30 = vadd.f32 %v4956_v45, %v4955_v59  ;;  %v4958_v7 = vpop.f32.mrb[186].mxu1  ;;  %v4859_v36 = vpop.f32.mrb[187].mxu0 }
 0x26a   :  { %v3571_v20 = vsel %vm3517_vm7, %v3428_v6, %v3544_v19  ;;  %v3289_v41 = vadd.f32 %v4857_v25, %v6467_v37  ;;  %v4860_v10 = vadd.f32 %v4859_v36, %v4858_v11  ;;  %v4959_v27 = vpop.f32.mrb[187].mxu1 }
 0x26b   :  { %v4156_v58 = vpack.c.bf16 %v3571_v20, %v3570_v47  ;;  %v4960_v21 = vadd.f32 %v4959_v27, %v4958_v7 }
 0x26c   :  { %v3433_v23 = vadd.f32 %v4957_v30, %v3289_v41  ;;  %v3292_v26 = vadd.f32 %v4860_v10, %v6470_v48 }
 0x26d   :  { %4205 = vst [vmem:[%s6595_s3 + $0x18] sm:$0xff] %v4156_v58  }
 0x26e   :  { %v3545_v28 = vmul.f32 0.2, %v3433_v23  ;;  %v3436_v35 = vadd.f32 %v4960_v21, %v3292_v26  ;;  %v4861_v32 = vpop.f32.mrb[188].mxu0  ;;  %vm3518_vm8 = vcmp.gt.f32.partialorder %v3433_v23, 0.0 }
 0x26f   :  { %v4961_v33 = vpop.f32.mrb[188].mxu1  ;;  %v4862_v51 = vpop.f32.mrb[189].mxu0 }
 0x270   :  { %vm3519_vm9 = vcmp.gt.f32.partialorder %v3436_v35, 0.0  ;;  %v3546_v12 = vmul.f32 0.2, %v3436_v35  ;;  %v4863_v37 = vadd.f32 %v4862_v51, %v4861_v32  ;;  %v4962_v49 = vpop.f32.mrb[189].mxu1  ;;  %v4864_v29 = vpop.f32.mrb[190].mxu0  ;;  %v3572_v9 = vsel %vm3518_vm8, %v3433_v23, %v3545_v28 }
 0x271   :  { %v4963_v31 = vadd.f32 %v4962_v49, %v4961_v33  ;;  %v4964_v40 = vpop.f32.mrb[190].mxu1  ;;  %v4865_v13 = vpop.f32.mrb[191].mxu0 }
 0x272   :  { %v3573_v48 = vsel %vm3519_vm9, %v3436_v35, %v3546_v12  ;;  %v3297_v38 = vadd.f32 %v4863_v37, %v6473_v39  ;;  %v4866_v61 = vadd.f32 %v4865_v13, %v4864_v29  ;;  %v4965_v62 = vpop.f32.mrb[191].mxu1 }
 0x273   :  { %v4161_v53 = vpack.c.bf16 %v3573_v48, %v3572_v9  ;;  %v4966_v42 = vadd.f32 %v4965_v62, %v4964_v40 }
 0x274   :  { %v3441_v43 = vadd.f32 %v4963_v31, %v3297_v38  ;;  %v3300_v8 = vadd.f32 %v4866_v61, %v6476_v1 }
 0x275   :  { %4206 = vst [vmem:[%s6595_s3 + $0x20] sm:$0xff] %v4161_v53  }
 0x276   :  { %v3547_v5 = vmul.f32 0.2, %v3441_v43  ;;  %v3444_v57 = vadd.f32 %v4966_v42, %v3300_v8  ;;  %v4867_v3 = vpop.f32.mrb[192].mxu0  ;;  %vm3520_vm10 = vcmp.gt.f32.partialorder %v3441_v43, 0.0 }
 0x277   :  { %v4967_v60 = vpop.f32.mrb[192].mxu1  ;;  %v4868_v44 = vpop.f32.mrb[193].mxu0 }
 0x278   :  { %vm3521_vm11 = vcmp.gt.f32.partialorder %v3444_v57, 0.0  ;;  %v3548_v63 = vmul.f32 0.2, %v3444_v57  ;;  %v4869_v39 = vadd.f32 %v4868_v44, %v4867_v3  ;;  %v4968_v6 = vpop.f32.mrb[193].mxu1  ;;  %v4870_v4 = vpop.f32.mrb[194].mxu0  ;;  %v3574_v25 = vsel %vm3520_vm10, %v3441_v43, %v3547_v5 }
 0x279   :  { %v4969_v59 = vadd.f32 %v4968_v6, %v4967_v60  ;;  %v4970_v14 = vpop.f32.mrb[194].mxu1  ;;  %v4871_v19 = vpop.f32.mrb[195].mxu0 }
 0x27a   :  { %v3575_v1 = vsel %vm3521_vm11, %v3444_v57, %v3548_v63  ;;  %v3305_v45 = vadd.f32 %v4869_v39, %v6479_v2  ;;  %v4872_v11 = vadd.f32 %v4871_v19, %v4870_v4  ;;  %v4971_v30 = vpop.f32.mrb[195].mxu1 }
 0x27b   :  { %v4166_v7 = vpack.c.bf16 %v3575_v1, %v3574_v25  ;;  %v4972_v36 = vadd.f32 %v4971_v30, %v4970_v14 }
 0x27c   :  { %v3449_v47 = vadd.f32 %v4969_v59, %v3305_v45  ;;  %v3308_v20 = vadd.f32 %v4872_v11, %v6482_v18 }
 0x27d   :  { %4207 = vst [vmem:[%s6595_s3 + $0x28] sm:$0xff] %v4166_v7  }
 0x27e   :  { %v3549_v41 = vmul.f32 0.2, %v3449_v47  ;;  %v3452_v10 = vadd.f32 %v4972_v36, %v3308_v20  ;;  %v4873_v27 = vpop.f32.mrb[196].mxu0  ;;  %vm3522_vm12 = vcmp.gt.f32.partialorder %v3449_v47, 0.0 }
 0x27f   :  { %v4973_v58 = vpop.f32.mrb[196].mxu1  ;;  %v4874_v21 = vpop.f32.mrb[197].mxu0 }
 0x280   :  { %vm3523_vm13 = vcmp.gt.f32.partialorder %v3452_v10, 0.0  ;;  %v3550_v23 = vmul.f32 0.2, %v3452_v10  ;;  %v4875_v2 = vadd.f32 %v4874_v21, %v4873_v27  ;;  %v4974_v26 = vpop.f32.mrb[197].mxu1  ;;  %v4876_v28 = vpop.f32.mrb[198].mxu0  ;;  %v3576_v51 = vsel %vm3522_vm12, %v3449_v47, %v3549_v41 }
 0x281   :  { %v4975_v35 = vadd.f32 %v4974_v26, %v4973_v58  ;;  %v4976_v32 = vpop.f32.mrb[198].mxu1  ;;  %v4877_v33 = vpop.f32.mrb[199].mxu0 }
 0x282   :  { %v3577_v18 = vsel %vm3523_vm13, %v3452_v10, %v3550_v23  ;;  %v3313_v12 = vadd.f32 %v4875_v2, %v6485_v56  ;;  %v4878_v37 = vadd.f32 %v4877_v33, %v4876_v28  ;;  %v4977_v49 = vpop.f32.mrb[199].mxu1 }
 0x283   :  { %v4171_v29 = vpack.c.bf16 %v3577_v18, %v3576_v51  ;;  %v4978_v31 = vadd.f32 %v4977_v49, %v4976_v32 }
 0x284   :  { %v3457_v40 = vadd.f32 %v4975_v35, %v3313_v12  ;;  %v3316_v13 = vadd.f32 %v4878_v37, %v6488_v46 }
 0x285   :  { %4208 = vst [vmem:[%s6595_s3 + $0x30] sm:$0xff] %v4171_v29  }
 0x286   :  { %v3551_v9 = vmul.f32 0.2, %v3457_v40  ;;  %v3460_v48 = vadd.f32 %v4978_v31, %v3316_v13  ;;  %v4879_v38 = vpop.f32.mrb[200].mxu0  ;;  %vm3524_vm14 = vcmp.gt.f32.partialorder %v3457_v40, 0.0 }
 0x287   :  { %v4979_v61 = vpop.f32.mrb[200].mxu1  ;;  %v4880_v62 = vpop.f32.mrb[201].mxu0 }
 0x288   :  { %vm3525_vm15 = vcmp.gt.f32.partialorder %v3460_v48, 0.0  ;;  %v3552_v53 = vmul.f32 0.2, %v3460_v48  ;;  %v4881_v56 = vadd.f32 %v4880_v62, %v4879_v38  ;;  %v4980_v42 = vpop.f32.mrb[201].mxu1  ;;  %v4882_v43 = vpop.f32.mrb[202].mxu0  ;;  %v3578_v3 = vsel %vm3524_vm14, %v3457_v40, %v3551_v9 }
 0x289   :  { %v4981_v8 = vadd.f32 %v4980_v42, %v4979_v61  ;;  %v4982_v5 = vpop.f32.mrb[202].mxu1  ;;  %v4883_v57 = vpop.f32.mrb[203].mxu0 }
 0x28a   :  { %v3579_v46 = vsel %vm3525_vm15, %v3460_v48, %v3552_v53  ;;  %v3321_v60 = vadd.f32 %v4881_v56, %v6491_v34  ;;  %v4884_v44 = vadd.f32 %v4883_v57, %v4882_v43  ;;  %v4983_v63 = vpop.f32.mrb[203].mxu1 }
 0x28b   :  { %v4176_v39 = vpack.c.bf16 %v3579_v46, %v3578_v3  ;;  %v4984_v6 = vadd.f32 %v4983_v63, %v4982_v5 }
 0x28c   :  { %v3465_v4 = vadd.f32 %v4981_v8, %v3321_v60  ;;  %v3324_v59 = vadd.f32 %v4884_v44, %v6494_v15 }
 0x28d   :  { %4209 = vst [vmem:[%s6595_s3 + $0x38] sm:$0xff] %v4176_v39  }
 0x28e   :  { %v3553_v14 = vmul.f32 0.2, %v3465_v4  ;;  %v3468_v19 = vadd.f32 %v4984_v6, %v3324_v59  ;;  %v4885_v25 = vpop.f32.mrb[204].mxu0  ;;  %vm3526_vm0 = vcmp.gt.f32.partialorder %v3465_v4, 0.0 }
 0x28f   :  { %v4985_v1 = vpop.f32.mrb[204].mxu1  ;;  %v4886_v45 = vpop.f32.mrb[205].mxu0 }
 0x290   :  { %vm3527_vm1 = vcmp.gt.f32.partialorder %v3468_v19, 0.0  ;;  %v3554_v11 = vmul.f32 0.2, %v3468_v19  ;;  %v4887_v34 = vadd.f32 %v4886_v45, %v4885_v25  ;;  %v4986_v30 = vpop.f32.mrb[205].mxu1  ;;  %v4888_v7 = vpop.f32.mrb[206].mxu0  ;;  %v3580_v41 = vsel %vm3526_vm0, %v3465_v4, %v3553_v14 }
 0x291   :  { %v4987_v36 = vadd.f32 %v4986_v30, %v4985_v1  ;;  %v4988_v47 = vpop.f32.mrb[206].mxu1  ;;  %v4889_v20 = vpop.f32.mrb[207].mxu0 }
 0x292   :  { %v3581_v15 = vsel %vm3527_vm1, %v3468_v19, %v3554_v11  ;;  %v3329_v10 = vadd.f32 %v4887_v34, %v6497_v0  ;;  %v4890_v27 = vadd.f32 %v4889_v20, %v4888_v7  ;;  %v4989_v58 = vpop.f32.mrb[207].mxu1 }
 0x293   :  { %v4181_v21 = vpack.c.bf16 %v3581_v15, %v3580_v41  ;;  %v4990_v23 = vadd.f32 %v4989_v58, %v4988_v47 }
 0x294   :  { %v3473_v2 = vadd.f32 %v4987_v36, %v3329_v10  ;;  %v3332_v26 = vadd.f32 %v4890_v27, %v6500_v50 }
 0x295   :  { %4210 = vst [vmem:[%s6595_s3 + $0x40] sm:$0xff] %v4181_v21  }
 0x296   :  { %v3555_v28 = vmul.f32 0.2, %v3473_v2  ;;  %v3476_v35 = vadd.f32 %v4990_v23, %v3332_v26  ;;  %v4891_v32 = vpop.f32.mrb[208].mxu0  ;;  %vm3528_vm2 = vcmp.gt.f32.partialorder %v3473_v2, 0.0 }
 0x297   :  { %v4991_v33 = vpop.f32.mrb[208].mxu1  ;;  %v4892_v51 = vpop.f32.mrb[209].mxu0 }
 0x298   :  { %vm3529_vm3 = vcmp.gt.f32.partialorder %v3476_v35, 0.0  ;;  %v3556_v18 = vmul.f32 0.2, %v3476_v35  ;;  %v4893_v0 = vadd.f32 %v4892_v51, %v4891_v32  ;;  %v4992_v12 = vpop.f32.mrb[209].mxu1  ;;  %v4894_v37 = vpop.f32.mrb[210].mxu0  ;;  %v3582_v40 = vsel %vm3528_vm2, %v3473_v2, %v3555_v28 }
 0x299   :  { %v4993_v49 = vadd.f32 %v4992_v12, %v4991_v33  ;;  %v4994_v29 = vpop.f32.mrb[210].mxu1  ;;  %v4895_v31 = vpop.f32.mrb[211].mxu0 }
 0x29a   :  { %v3583_v50 = vsel %vm3529_vm3, %v3476_v35, %v3556_v18  ;;  %v3337_v13 = vadd.f32 %v4893_v0, %v6503_v22  ;;  %v4896_v9 = vadd.f32 %v4895_v31, %v4894_v37  ;;  %v4995_v48 = vpop.f32.mrb[211].mxu1 }
 0x29b   :  { %v4186_v38 = vpack.c.bf16 %v3583_v50, %v3582_v40  ;;  %v4996_v61 = vadd.f32 %v4995_v48, %v4994_v29 }
 0x29c   :  { %v3481_v62 = vadd.f32 %v4993_v49, %v3337_v13  ;;  %v3340_v53 = vadd.f32 %v4896_v9, %v6506_v24 }
 0x29d   :  { %4211 = vst [vmem:[%s6595_s3 + $0x48] sm:$0xff] %v4186_v38  }
 0x29e   :  { %v3557_v56 = vmul.f32 0.2, %v3481_v62  ;;  %v3484_v42 = vadd.f32 %v4996_v61, %v3340_v53  ;;  %v4897_v43 = vpop.f32.mrb[212].mxu0  ;;  %vm3530_vm4 = vcmp.gt.f32.partialorder %v3481_v62, 0.0 }
 0x29f   :  { %v4997_v8 = vpop.f32.mrb[212].mxu1  ;;  %v4898_v5 = vpop.f32.mrb[213].mxu0 }
 0x2a0   :  { %vm3531_vm5 = vcmp.gt.f32.partialorder %v3484_v42, 0.0  ;;  %v3558_v57 = vmul.f32 0.2, %v3484_v42  ;;  %v4899_v22 = vadd.f32 %v4898_v5, %v4897_v43  ;;  %v4998_v3 = vpop.f32.mrb[213].mxu1  ;;  %v4900_v46 = vpop.f32.mrb[214].mxu0  ;;  %v3584_v39 = vsel %vm3530_vm4, %v3481_v62, %v3557_v56 }
 0x2a1   :  { %v4999_v60 = vadd.f32 %v4998_v3, %v4997_v8  ;;  %v5000_v44 = vpop.f32.mrb[214].mxu1  ;;  %v4901_v63 = vpop.f32.mrb[215].mxu0 }
 0x2a2   :  { %v3585_v24 = vsel %vm3531_vm5, %v3484_v42, %v3558_v57  ;;  %v3345_v6 = vadd.f32 %v4899_v22, %v6509_v17  ;;  %v4902_v4 = vadd.f32 %v4901_v63, %v4900_v46  ;;  %v5001_v59 = vpop.f32.mrb[215].mxu1 }
 0x2a3   :  { %v4191_v14 = vpack.c.bf16 %v3585_v24, %v3584_v39  ;;  %v5002_v19 = vadd.f32 %v5001_v59, %v5000_v44 }
 0x2a4   :  { %v3489_v25 = vadd.f32 %v4999_v60, %v3345_v6  ;;  %v3348_v1 = vadd.f32 %v4902_v4, %v6512_v52 }
 0x2a5   :  { %4212 = vst [vmem:[%s6595_s3 + $0x50] sm:$0xff] %v4191_v14  }
 0x2a6   :  { %v3559_v45 = vmul.f32 0.2, %v3489_v25  ;;  %v3492_v11 = vadd.f32 %v5002_v19, %v3348_v1  ;;  %v4903_v34 = vpop.f32.mrb[216].mxu0  ;;  %vm3532_vm6 = vcmp.gt.f32.partialorder %v3489_v25, 0.0 }
 0x2a7   :  { %v5003_v30 = vpop.f32.mrb[216].mxu1  ;;  %v4904_v7 = vpop.f32.mrb[217].mxu0 }
 0x2a8   :  { %vm3533_vm7 = vcmp.gt.f32.partialorder %v3492_v11, 0.0  ;;  %v3560_v36 = vmul.f32 0.2, %v3492_v11  ;;  %v4905_v17 = vadd.f32 %v4904_v7, %v4903_v34  ;;  %v5004_v47 = vpop.f32.mrb[217].mxu1  ;;  %v4906_v20 = vpop.f32.mrb[218].mxu0  ;;  %v3586_v27 = vsel %vm3532_vm6, %v3489_v25, %v3559_v45 }
 0x2a9   :  { %v5005_v41 = vadd.f32 %v5004_v47, %v5003_v30  ;;  %v5006_v15 = vpop.f32.mrb[218].mxu1  ;;  %v4907_v10 = vpop.f32.mrb[219].mxu0 }
 0x2aa   :  { %v3587_v52 = vsel %vm3533_vm7, %v3492_v11, %v3560_v36  ;;  %v3353_v58 = vadd.f32 %v4905_v17, %v6515_v54  ;;  %v4908_v21 = vadd.f32 %v4907_v10, %v4906_v20  ;;  %v5007_v23 = vpop.f32.mrb[219].mxu1 }
 0x2ab   :  { %v4196_v2 = vpack.c.bf16 %v3587_v52, %v3586_v27  ;;  %v5008_v26 = vadd.f32 %v5007_v23, %v5006_v15 }
 0x2ac   :  { %v3497_v28 = vadd.f32 %v5005_v41, %v3353_v58  ;;  %v3356_v35 = vadd.f32 %v4908_v21, %v6518_v16 }
 0x2ad   :  { %4213 = vst [vmem:[%s6595_s3 + $0x58] sm:$0xff] %v4196_v2  }
 0x2ae   :  { %v3561_v32 = vmul.f32 0.2, %v3497_v28  ;;  %v3500_v33 = vadd.f32 %v5008_v26, %v3356_v35  ;;  %v4909_v51 = vpop.f32.mrb[220].mxu0  ;;  %vm3534_vm8 = vcmp.gt.f32.partialorder %v3497_v28, 0.0 }
 0x2af   :  { %v5009_v18 = vpop.f32.mrb[220].mxu1  ;;  %v4910_v0 = vpop.f32.mrb[221].mxu0 }
 0x2b0   :  { %vm3535_vm9 = vcmp.gt.f32.partialorder %v3500_v33, 0.0  ;;  %v3562_v12 = vmul.f32 0.2, %v3500_v33  ;;  %v4911_v54 = vadd.f32 %v4910_v0, %v4909_v51  ;;  %v5010_v37 = vpop.f32.mrb[221].mxu1  ;;  %v4912_v49 = vpop.f32.mrb[222].mxu0  ;;  %v3588_v50 = vsel %vm3534_vm8, %v3497_v28, %v3561_v32 }
 0x2b1   :  { %v5011_v29 = vadd.f32 %v5010_v37, %v5009_v18  ;;  %v5012_v31 = vpop.f32.mrb[222].mxu1  ;;  %v4913_v40 = vpop.f32.mrb[223].mxu0 }
 0x2b2   :  { %v3589_v16 = vsel %vm3535_vm9, %v3500_v33, %v3562_v12  ;;  %v3361_v13 = vadd.f32 %v4911_v54, %v6521_v55  ;;  %v5013_v9 = vpop.f32.mrb[223].mxu1 }
 0x2b3   :  { %v4201_v48 = vpack.c.bf16 %v3589_v16, %v3588_v50 }
 0x2b4   :  { %v3505_v38 = vadd.f32 %v5011_v29, %v3361_v13 }
 0x2b5   :  { %4214 = vst [vmem:[%s6595_s3 + $0x60] sm:$0xff] %v4201_v48  }
 0x2b6   :  { %vm3536_vm10 = vcmp.gt.f32.partialorder %v3505_v38, 0.0  ;;  %v3563_v61 = vmul.f32 0.2, %v3505_v38 }
 0x2b8   :  { %v3590_v62 = vsel %vm3536_vm10, %v3505_v38, %v3563_v61 }
 0x2b9   :  { %v4137_v53 = vpack.c.bf16 %v3590_v62, %v3590_v62 }
 0x2bb   :  { %3726 = vst [vmem:[%s6595_s3 + $0x68] sm:$0xf] %v4137_v53 }

// kernel: forward.6
= control target key start
LH: loop header
LB: loop body
LE: loop exit
PB: predicated region body
PF: predicated region fallthrough
CT: control target
= control target key end

     0   :  { %s5449_s1 = inlined_call_operand.vmem [shape: bf16[2048,256], index: 1, kind: input, shape index: {}]   ;;  %s5450_s0 = inlined_call_operand.vmem [shape: bf16[110,2048], index: 0, kind: input, shape index: {}]   ;;  %s5451_s2 = inlined_call_operand.vmem [shape: f32[1,256], index: 2, kind: input, shape index: {}]   ;;  %s5452_s3 = inlined_call_operand.vmem [shape: bf16[110,256], index: 3, kind: output, shape index: {}]  }
   0x1   :  { %v3864_v0 = vld [vmem:[%s5449_s1 + $0x4] ss:$8 sps:$4 sm:$0xff]   ;;  %v3868_v2 = vld [vmem:[%s5449_s1] ss:$8 sps:$4 sm:$0xff]   ;;  %v3870_v4 = vld [vmem:[%s5449_s1 + $0x14] ss:$8 sps:$4 sm:$0xff]  }
   0x2   :  { %v3866_v1 = vld [vmem:[%s5449_s1 + $0x404] ss:$8 sps:$4 sm:$0xff]   ;;  %2234 = vmatprep.subr.bf16.mxu1 %v3864_v0  ;;  %v3869_v3 = vld [vmem:[%s5449_s1 + $0x400] ss:$8 sps:$4 sm:$0xff]   ;;  %v3872_v5 = vld [vmem:[%s5449_s1 + $0x414] ss:$8 sps:$4 sm:$0xff]  }
   0x3   :  { %2646 = vmatprep.subr.bf16.mxu0 %v3866_v1  ;;  %2235 = vmatpush1.bf16.msra.mxu1 %v3868_v2  ;;  %v3874_v6 = vld [vmem:[%s5449_s1 + $0x10] ss:$8 sps:$4 sm:$0xff]   ;;  %v3876_v8 = vld [vmem:[%s5449_s1 + $0x24] ss:$8 sps:$4 sm:$0xff]   ;;  %v3880_v10 = vld [vmem:[%s5449_s1 + $0x20] ss:$8 sps:$4 sm:$0xff]  }
   0x4   :  { %2647 = vmatpush1.bf16.msra.mxu0 %v3869_v3  ;;  %2236 = vmatprep.subr.bf16.mxu1 %v3870_v4  ;;  %v3875_v7 = vld [vmem:[%s5449_s1 + $0x410] ss:$8 sps:$4 sm:$0xff]   ;;  %v3878_v9 = vld [vmem:[%s5449_s1 + $0x424] ss:$8 sps:$4 sm:$0xff]   ;;  %v3881_v11 = vld [vmem:[%s5449_s1 + $0x420] ss:$8 sps:$4 sm:$0xff]  }
   0x5   :  { %2648 = vmatprep.subr.bf16.mxu0 %v3872_v5  ;;  %v3882_v12 = vld [vmem:[%s5449_s1 + $0x34] ss:$8 sps:$4 sm:$0xff]   ;;  %v3886_v14 = vld [vmem:[%s5449_s1 + $0x30] ss:$8 sps:$4 sm:$0xff]   ;;  %v3888_v16 = vld [vmem:[%s5449_s1 + $0x44] ss:$8 sps:$4 sm:$0xff]  }
   0x6   :  { %v3884_v13 = vld [vmem:[%s5449_s1 + $0x434] ss:$8 sps:$4 sm:$0xff]   ;;  %v3887_v15 = vld [vmem:[%s5449_s1 + $0x430] ss:$8 sps:$4 sm:$0xff]   ;;  %v3890_v17 = vld [vmem:[%s5449_s1 + $0x444] ss:$8 sps:$4 sm:$0xff]  }
   0x7   :  { %2237 = vmatpush1.bf16.msra.mxu1 %v3874_v6  ;;  %v3892_v18 = vld [vmem:[%s5449_s1 + $0x40] ss:$8 sps:$4 sm:$0xff]   ;;  %v3894_v20 = vld [vmem:[%s5449_s1 + $0x54] ss:$8 sps:$4 sm:$0xff]   ;;  %v3898_v22 = vld [vmem:[%s5449_s1 + $0x50] ss:$8 sps:$4 sm:$0xff]  }
   0x8   :  { %2649 = vmatpush1.bf16.msra.mxu0 %v3875_v7  ;;  %2238 = vmatprep.subr.bf16.mxu1 %v3876_v8  ;;  %v3893_v19 = vld [vmem:[%s5449_s1 + $0x440] ss:$8 sps:$4 sm:$0xff]   ;;  %v3896_v21 = vld [vmem:[%s5449_s1 + $0x454] ss:$8 sps:$4 sm:$0xff]   ;;  %v3899_v23 = vld [vmem:[%s5449_s1 + $0x450] ss:$8 sps:$4 sm:$0xff]  }
   0x9   :  { %2650 = vmatprep.subr.bf16.mxu0 %v3878_v9  ;;  %v3900_v24 = vld [vmem:[%s5449_s1 + $0x64] ss:$8 sps:$4 sm:$0xff]   ;;  %v3904_v26 = vld [vmem:[%s5449_s1 + $0x60] ss:$8 sps:$4 sm:$0xff]   ;;  %v3906_v28 = vld [vmem:[%s5449_s1 + $0x74] ss:$8 sps:$4 sm:$0xff]  }
   0xa   :  { %v3902_v25 = vld [vmem:[%s5449_s1 + $0x464] ss:$8 sps:$4 sm:$0xff]   ;;  %v3905_v27 = vld [vmem:[%s5449_s1 + $0x460] ss:$8 sps:$4 sm:$0xff]   ;;  %v3908_v29 = vld [vmem:[%s5449_s1 + $0x474] ss:$8 sps:$4 sm:$0xff]  }
   0xb   :  { %2239 = vmatpush1.bf16.msra.mxu1 %v3880_v10  ;;  %v3910_v30 = vld [vmem:[%s5449_s1 + $0x70] ss:$8 sps:$4 sm:$0xff]   ;;  %v3912_v32 = vld [vmem:[%s5449_s1 + $0x84] ss:$8 sps:$4 sm:$0xff]   ;;  %v3916_v34 = vld [vmem:[%s5449_s1 + $0x80] ss:$8 sps:$4 sm:$0xff]  }
   0xc   :  { %2651 = vmatpush1.bf16.msra.mxu0 %v3881_v11  ;;  %2240 = vmatprep.subr.bf16.mxu1 %v3882_v12  ;;  %v3911_v31 = vld [vmem:[%s5449_s1 + $0x470] ss:$8 sps:$4 sm:$0xff]   ;;  %v3914_v33 = vld [vmem:[%s5449_s1 + $0x484] ss:$8 sps:$4 sm:$0xff]   ;;  %v3917_v35 = vld [vmem:[%s5449_s1 + $0x480] ss:$8 sps:$4 sm:$0xff]  }
   0xd   :  { %2652 = vmatprep.subr.bf16.mxu0 %v3884_v13  ;;  %v3918_v36 = vld [vmem:[%s5449_s1 + $0x94] ss:$8 sps:$4 sm:$0xff]   ;;  %v3922_v38 = vld [vmem:[%s5449_s1 + $0x90] ss:$8 sps:$4 sm:$0xff]   ;;  %v3924_v40 = vld [vmem:[%s5449_s1 + $0xa4] ss:$8 sps:$4 sm:$0xff]  }
   0xe   :  { %v3920_v37 = vld [vmem:[%s5449_s1 + $0x494] ss:$8 sps:$4 sm:$0xff]   ;;  %v3923_v39 = vld [vmem:[%s5449_s1 + $0x490] ss:$8 sps:$4 sm:$0xff]   ;;  %v3926_v41 = vld [vmem:[%s5449_s1 + $0x4a4] ss:$8 sps:$4 sm:$0xff]  }
   0xf   :  { %2241 = vmatpush1.bf16.msra.mxu1 %v3886_v14  ;;  %v3928_v42 = vld [vmem:[%s5449_s1 + $0xa0] ss:$8 sps:$4 sm:$0xff]   ;;  %v3930_v44 = vld [vmem:[%s5449_s1 + $0xb4] ss:$8 sps:$4 sm:$0xff]   ;;  %v3934_v46 = vld [vmem:[%s5449_s1 + $0xb0] ss:$8 sps:$4 sm:$0xff]  }
  0x10   :  { %2653 = vmatpush1.bf16.msra.mxu0 %v3887_v15  ;;  %2242 = vmatprep.subr.bf16.mxu1 %v3888_v16  ;;  %v3929_v43 = vld [vmem:[%s5449_s1 + $0x4a0] ss:$8 sps:$4 sm:$0xff]   ;;  %v3932_v45 = vld [vmem:[%s5449_s1 + $0x4b4] ss:$8 sps:$4 sm:$0xff]   ;;  %v3935_v47 = vld [vmem:[%s5449_s1 + $0x4b0] ss:$8 sps:$4 sm:$0xff]  }
  0x11   :  { %2654 = vmatprep.subr.bf16.mxu0 %v3890_v17  ;;  %v14_v48 = vld [vmem:[%s5450_s0] sm:$0xff]  ;;  %v3942_v58 = vld [vmem:[%s5449_s1 + $0xd4] ss:$8 sps:$4 sm:$0xff]   ;;  %v3946_v60 = vld [vmem:[%s5449_s1 + $0xd0] ss:$8 sps:$4 sm:$0xff]  }
  0x12   :  { %v22_v49 = vld [vmem:[%s5450_s0 + $0x40] sm:$0xff]  ;;  %v3944_v59 = vld [vmem:[%s5449_s1 + $0x4d4] ss:$8 sps:$4 sm:$0xff]   ;;  %v3947_v61 = vld [vmem:[%s5449_s1 + $0x4d0] ss:$8 sps:$4 sm:$0xff]  }
  0x13   :  { %2243 = vmatpush1.bf16.msra.mxu1 %v3892_v18  ;;  %v3936_v50 = vld [vmem:[%s5449_s1 + $0xc4] ss:$8 sps:$4 sm:$0xff]   ;;  %v3245_v52 = vcombine.high %v14_v48, %v22_v49  ;;  %v3940_v56 = vld [vmem:[%s5449_s1 + $0xc0] ss:$8 sps:$4 sm:$0xff]   ;;  %v3954_v2 = vld [vmem:[%s5449_s1 + $0xf4] ss:$8 sps:$4 sm:$0xff]   ;;  %v3244_v11 = vcombine.low %v14_v48, %v22_v49 }
  0x14   :  { %2655 = vmatpush1.bf16.msra.mxu0 %v3893_v19  ;;  %2244 = vmatprep.subr.bf16.mxu1 %v3894_v20  ;;  %v3938_v51 = vld [vmem:[%s5449_s1 + $0x4c4] ss:$8 sps:$4 sm:$0xff]   ;;  %v3941_v57 = vld [vmem:[%s5449_s1 + $0x4c0] ss:$8 sps:$4 sm:$0xff]   ;;  %v3956_v3 = vld [vmem:[%s5449_s1 + $0x4f4] ss:$8 sps:$4 sm:$0xff]  }
  0x15   :  { %2656 = vmatprep.subr.bf16.mxu0 %v3896_v21  ;;  %v18_v53 = vld [vmem:[%s5450_s0 + $0x20] sm:$0xff]  ;;  %2266 = vmatprep.mubr.bf16.mxu1 %v3245_v52  ;;  %v3958_v4 = vld [vmem:[%s5449_s1 + $0xf0] ss:$8 sps:$4 sm:$0xff]   ;;  %v3968_v16 = vld [vmem:[%s5449_s1 + $0x114] ss:$8 sps:$4 sm:$0xff]  }
  0x16   :  { %v26_v54 = vld [vmem:[%s5450_s0 + $0x60] sm:$0xff]  ;;  %v3959_v5 = vld [vmem:[%s5449_s1 + $0x4f0] ss:$8 sps:$4 sm:$0xff]   ;;  %v3971_v17 = vld [vmem:[%s5449_s1 + $0x514] ss:$8 sps:$4 sm:$0xff]  }
  0x17   :  { %2245 = vmatpush1.bf16.msra.mxu1 %v3898_v22  ;;  %v3253_v55 = vcombine.high %v18_v53, %v26_v54  ;;  %v3948_v62 = vld [vmem:[%s5449_s1 + $0xe4] ss:$8 sps:$4 sm:$0xff]   ;;  %v3952_v0 = vld [vmem:[%s5449_s1 + $0xe0] ss:$8 sps:$4 sm:$0xff]   ;;  %v3252_v12 = vcombine.low %v18_v53, %v26_v54  ;;  %v3966_v20 = vld [vmem:[%s5449_s1 + $0x110] ss:$8 sps:$4 sm:$0xff]  }
  0x18   :  { %2657 = vmatpush1.bf16.msra.mxu0 %v3899_v23  ;;  %2246 = vmatprep.subr.bf16.mxu1 %v3900_v24  ;;  %v3950_v63 = vld [vmem:[%s5449_s1 + $0x4e4] ss:$8 sps:$4 sm:$0xff]   ;;  %v3953_v1 = vld [vmem:[%s5449_s1 + $0x4e0] ss:$8 sps:$4 sm:$0xff]   ;;  %v3969_v21 = vld [vmem:[%s5449_s1 + $0x510] ss:$8 sps:$4 sm:$0xff]  }
  0x19   :  { %2658 = vmatprep.subr.bf16.mxu0 %v3902_v25  ;;  %2678 = vmatprep.mubr.bf16.mxu0 %v3253_v55  ;;  %v3962_v6 = vld [vmem:[%s5449_s1 + $0x104] ss:$8 sps:$4 sm:$0xff]   ;;  %v3960_v8 = vld [vmem:[%s5449_s1 + $0x100] ss:$8 sps:$4 sm:$0xff]   ;;  %v3992_v48 = vld [vmem:[%s5449_s1 + $0x154] ss:$8 sps:$4 sm:$0xff]  }
  0x1a   :  { %v3965_v7 = vld [vmem:[%s5449_s1 + $0x504] ss:$8 sps:$4 sm:$0xff]   ;;  %v3963_v9 = vld [vmem:[%s5449_s1 + $0x500] ss:$8 sps:$4 sm:$0xff]   ;;  %v3995_v49 = vld [vmem:[%s5449_s1 + $0x554] ss:$8 sps:$4 sm:$0xff]  }
  0x1b   :  { %2247 = vmatpush1.bf16.msra.mxu1 %v3904_v26  ;;  %v30_v10 = vld [vmem:[%s5450_s0 + $0x80] sm:$0xff]  ;;  %v3990_v52 = vld [vmem:[%s5449_s1 + $0x150] ss:$8 sps:$4 sm:$0xff]  }
  0x1c   :  { %2659 = vmatpush1.bf16.msra.mxu0 %v3905_v27  ;;  %2248 = vmatprep.subr.bf16.mxu1 %v3906_v28  ;;  %v38_v13 = vld [vmem:[%s5450_s0 + $0xc0] sm:$0xff]  ;;  %v3993_v53 = vld [vmem:[%s5449_s1 + $0x550] ss:$8 sps:$4 sm:$0xff]  }
  0x1d   :  { %2660 = vmatprep.subr.bf16.mxu0 %v3908_v29  ;;  %v34_v14 = vld [vmem:[%s5450_s0 + $0xa0] sm:$0xff]  ;;  %v3261_v18 = vcombine.high %v30_v10, %v38_v13  ;;  %v3260_v28 = vcombine.low %v30_v10, %v38_v13 }
  0x1e   :  { %v42_v15 = vld [vmem:[%s5450_s0 + $0xe0] sm:$0xff] }
  0x1f   :  { %2249 = vmatpush1.bf16.msra.mxu1 %v3910_v30  ;;  %v3269_v19 = vcombine.high %v34_v14, %v42_v15  ;;  %v3974_v22 = vld [vmem:[%s5449_s1 + $0x124] ss:$8 sps:$4 sm:$0xff]   ;;  %v3972_v24 = vld [vmem:[%s5449_s1 + $0x120] ss:$8 sps:$4 sm:$0xff]   ;;  %v3268_v29 = vcombine.low %v34_v14, %v42_v15 }
  0x20   :  { %2661 = vmatpush1.bf16.msra.mxu0 %v3911_v31  ;;  %2250 = vmatprep.subr.bf16.mxu1 %v3912_v32  ;;  %v3977_v23 = vld [vmem:[%s5449_s1 + $0x524] ss:$8 sps:$4 sm:$0xff]   ;;  %v3975_v25 = vld [vmem:[%s5449_s1 + $0x520] ss:$8 sps:$4 sm:$0xff]   ;;  %v3980_v32 = vld [vmem:[%s5449_s1 + $0x134] ss:$8 sps:$4 sm:$0xff]  }
  0x21   :  { %2662 = vmatprep.subr.bf16.mxu0 %v3914_v33  ;;  %v46_v26 = vld [vmem:[%s5450_s0 + $0x100] sm:$0xff]  ;;  %v3983_v33 = vld [vmem:[%s5449_s1 + $0x534] ss:$8 sps:$4 sm:$0xff]  }
  0x22   :  { %v54_v27 = vld [vmem:[%s5450_s0 + $0x140] sm:$0xff] }
  0x23   :  { %2251 = vmatpush1.bf16.msra.mxu1 %v3916_v34  ;;  %v50_v30 = vld [vmem:[%s5450_s0 + $0x120] sm:$0xff]  ;;  %v3277_v34 = vcombine.high %v46_v26, %v54_v27 }
  0x24   :  { %2663 = vmatpush1.bf16.msra.mxu0 %v3917_v35  ;;  %2252 = vmatprep.subr.bf16.mxu1 %v3918_v36  ;;  %v58_v31 = vld [vmem:[%s5450_s0 + $0x160] sm:$0xff]  ;;  %v3978_v36 = vld [vmem:[%s5449_s1 + $0x130] ss:$8 sps:$4 sm:$0xff]  }
  0x25   :  { %2664 = vmatprep.subr.bf16.mxu0 %v3920_v37  ;;  %v3285_v35 = vcombine.high %v50_v30, %v58_v31  ;;  %v3981_v37 = vld [vmem:[%s5449_s1 + $0x530] ss:$8 sps:$4 sm:$0xff]   ;;  %v3998_v54 = vld [vmem:[%s5449_s1 + $0x164] ss:$8 sps:$4 sm:$0xff]   ;;  %v4008_v14 = vld [vmem:[%s5449_s1 + $0x180] ss:$8 sps:$4 sm:$0xff]  }
  0x26   :  { %v4001_v55 = vld [vmem:[%s5449_s1 + $0x564] ss:$8 sps:$4 sm:$0xff]   ;;  %v4011_v15 = vld [vmem:[%s5449_s1 + $0x580] ss:$8 sps:$4 sm:$0xff]  }
  0x27   :  { %2253 = vmatpush1.bf16.msra.mxu1 %v3922_v38  ;;  %v3986_v38 = vld [vmem:[%s5449_s1 + $0x144] ss:$8 sps:$4 sm:$0xff]  }
  0x28   :  { %2665 = vmatpush1.bf16.msra.mxu0 %v3923_v39  ;;  %2254 = vmatprep.subr.bf16.mxu1 %v3924_v40  ;;  %v3989_v39 = vld [vmem:[%s5449_s1 + $0x544] ss:$8 sps:$4 sm:$0xff]   ;;  %v3984_v40 = vld [vmem:[%s5449_s1 + $0x140] ss:$8 sps:$4 sm:$0xff]  }
  0x29   :  { %2666 = vmatprep.subr.bf16.mxu0 %v3926_v41  ;;  %v62_v41 = vld [vmem:[%s5450_s0 + $0x180] sm:$0xff] }
  0x2a   :  { %v98_v10 = vld [vmem:[%s5450_s0 + $0x2a0] sm:$0xff] }
  0x2b   :  { %2255 = vmatpush1.bf16.msra.mxu1 %v3928_v42  ;;  %v70_v42 = vld [vmem:[%s5450_s0 + $0x1c0] sm:$0xff] }
  0x2c   :  { %2667 = vmatpush1.bf16.msra.mxu0 %v3929_v43  ;;  %2256 = vmatprep.subr.bf16.mxu1 %v3930_v44  ;;  %v3276_v43 = vcombine.low %v46_v26, %v54_v27  ;;  %v3284_v44 = vcombine.low %v50_v30, %v58_v31  ;;  %v106_v13 = vld [vmem:[%s5450_s0 + $0x2e0] sm:$0xff] }
  0x2d   :  { %2668 = vmatprep.subr.bf16.mxu0 %v3932_v45  ;;  %v66_v45 = vld [vmem:[%s5450_s0 + $0x1a0] sm:$0xff] }
  0x2e   :  { %v110_v26 = vld [vmem:[%s5450_s0 + $0x300] sm:$0xff] }
  0x2f   :  { %2257 = vmatpush1.bf16.msra.mxu1 %v3934_v46  ;;  %v74_v46 = vld [vmem:[%s5450_s0 + $0x1e0] sm:$0xff] }
  0x30   :  { %2669 = vmatpush1.bf16.msra.mxu0 %v3935_v47  ;;  %2258 = vmatprep.subr.bf16.mxu1 %v3936_v50  ;;  %v3987_v47 = vld [vmem:[%s5449_s1 + $0x540] ss:$8 sps:$4 sm:$0xff]   ;;  %v3293_v50 = vcombine.high %v62_v41, %v70_v42 }
  0x31   :  { %2670 = vmatprep.subr.bf16.mxu0 %v3938_v51  ;;  %v3301_v51 = vcombine.high %v66_v45, %v74_v46  ;;  %v118_v27 = vld [vmem:[%s5450_s0 + $0x340] sm:$0x77] }
  0x32   :  { %v114_v30 = vld [vmem:[%s5450_s0 + $0x320] sm:$0xff] }
  0x33   :  { %2259 = vmatpush1.bf16.msra.mxu1 %v3940_v56  ;;  %v78_v56 = vld [vmem:[%s5450_s0 + $0x200] sm:$0xff] }
  0x34   :  { %2671 = vmatpush1.bf16.msra.mxu0 %v3941_v57  ;;  %2260 = vmatprep.subr.bf16.mxu1 %v3942_v58  ;;  %v86_v57 = vld [vmem:[%s5450_s0 + $0x240] sm:$0xff]  ;;  %v3292_v58 = vcombine.low %v62_v41, %v70_v42  ;;  %v15_v41 = vld [vmem:[%s5450_s0 + $0x8] sm:$0xff] }
  0x35   :  { %2672 = vmatprep.subr.bf16.mxu0 %v3944_v59  ;;  %v3300_v59 = vcombine.low %v66_v45, %v74_v46  ;;  %v122_v31 = vld [vmem:[%s5450_s0 + $0x360] sm:$0x77]  ;;  %v23_v42 = vld [vmem:[%s5450_s0 + $0x48] sm:$0xff] }
  0x36   :  { %v19_v45 = vld [vmem:[%s5450_s0 + $0x28] sm:$0xff] }
  0x37   :  { %2261 = vmatpush1.bf16.msra.mxu1 %v3946_v60  ;;  %v82_v60 = vld [vmem:[%s5450_s0 + $0x220] sm:$0xff]  ;;  %v27_v46 = vld [vmem:[%s5450_s0 + $0x68] sm:$0xff] }
  0x38   :  { %2673 = vmatpush1.bf16.msra.mxu0 %v3947_v61  ;;  %2262 = vmatprep.subr.bf16.mxu1 %v3948_v62  ;;  %v90_v61 = vld [vmem:[%s5450_s0 + $0x260] sm:$0xff] }
  0x39   :  { %2674 = vmatprep.subr.bf16.mxu0 %v3950_v63  ;;  %v3996_v62 = vld [vmem:[%s5449_s1 + $0x160] ss:$8 sps:$4 sm:$0xff]  }
  0x3a   :  { %v3999_v63 = vld [vmem:[%s5449_s1 + $0x560] ss:$8 sps:$4 sm:$0xff]  }
  0x3b   :  { %2263 = vmatpush1.bf16.msra.mxu1 %v3952_v0  ;;  %v4004_v0 = vld [vmem:[%s5449_s1 + $0x174] ss:$8 sps:$4 sm:$0xff]  }
  0x3c   :  { %2675 = vmatpush1.bf16.msra.mxu0 %v3953_v1  ;;  %2264 = vmatprep.subr.bf16.mxu1 %v3954_v2  ;;  %v4007_v1 = vld [vmem:[%s5449_s1 + $0x574] ss:$8 sps:$4 sm:$0xff]   ;;  %v3309_v2 = vcombine.high %v78_v56, %v86_v57 }
  0x3d   :  { %2676 = vmatprep.subr.bf16.mxu0 %v3956_v3  ;;  %v3317_v3 = vcombine.high %v82_v60, %v90_v61 }
  0x3f   :  { %2265 = vmatpush1.bf16.msra.mxu1 %v3958_v4  ;;  %v4002_v4 = vld [vmem:[%s5449_s1 + $0x170] ss:$8 sps:$4 sm:$0xff]  }
  0x40   :  { %2677 = vmatpush1.bf16.msra.mxu0 %v3959_v5  ;;  %2337 = vmatprep.subr.bf16.mxu1 %v3962_v6  ;;  %v4005_v5 = vld [vmem:[%s5449_s1 + $0x570] ss:$8 sps:$4 sm:$0xff]   ;;  %v4010_v6 = vld [vmem:[%s5449_s1 + $0x184] ss:$8 sps:$4 sm:$0xff]  }
  0x41   :  { %2749 = vmatprep.subr.bf16.mxu0 %v3965_v7  ;;  %v4013_v7 = vld [vmem:[%s5449_s1 + $0x584] ss:$8 sps:$4 sm:$0xff]  }
  0x42   :  { %2267 = vmatmul.mubr.bf16.vlgmr.msra.gmra.mrb[0].mxu1 %v3244_v11  ;;  %v3308_v11 = vcombine.low %v78_v56, %v86_v57  ;;  %v4044_v56 = vld [vmem:[%s5449_s1 + $0x1e0] ss:$8 sps:$4 sm:$0xff]  }
  0x43   :  { %2679 = vmatmul.mubr.bf16.vlgmr.msra.gmra.mrb[0].mxu0 %v3252_v12  ;;  %2338 = vmatpush1.bf16.msra.mxu1 %v3960_v8  ;;  %v94_v8 = vld [vmem:[%s5450_s0 + $0x280] sm:$0xff]  ;;  %v3316_v12 = vcombine.low %v82_v60, %v90_v61  ;;  %v4050_v60 = vld [vmem:[%s5449_s1 + $0x1f0] ss:$8 sps:$4 sm:$0xff]  }
  0x44   :  { %2750 = vmatpush1.bf16.msra.mxu0 %v3963_v9  ;;  %2339 = vmatprep.subr.bf16.mxu1 %v3968_v16  ;;  %v102_v9 = vld [vmem:[%s5450_s0 + $0x2c0] sm:$0xff]  ;;  %v4016_v16 = vld [vmem:[%s5449_s1 + $0x194] ss:$8 sps:$4 sm:$0xff]   ;;  %v4053_v61 = vld [vmem:[%s5449_s1 + $0x5f0] ss:$8 sps:$4 sm:$0xff]  }
  0x45   :  { %2751 = vmatprep.subr.bf16.mxu0 %v3971_v17  ;;  %2276 = vmatprep.mubr.bf16.mxu1 %v3261_v18  ;;  %v4019_v17 = vld [vmem:[%s5449_s1 + $0x594] ss:$8 sps:$4 sm:$0xff]   ;;  %v3325_v18 = vcombine.high %v94_v8, %v102_v9  ;;  %v4047_v57 = vld [vmem:[%s5449_s1 + $0x5e0] ss:$8 sps:$4 sm:$0xff]  }
  0x46   :  { %2688 = vmatprep.mubr.bf16.mxu0 %v3269_v19  ;;  %v3333_v19 = vcombine.high %v98_v10, %v106_v13 }
  0x47   :  { %2340 = vmatpush1.bf16.msra.mxu1 %v3966_v20  ;;  %v4014_v20 = vld [vmem:[%s5449_s1 + $0x190] ss:$8 sps:$4 sm:$0xff]  }
  0x48   :  { %2752 = vmatpush1.bf16.msra.mxu0 %v3969_v21  ;;  %2341 = vmatprep.subr.bf16.mxu1 %v3974_v22  ;;  %v4017_v21 = vld [vmem:[%s5449_s1 + $0x590] ss:$8 sps:$4 sm:$0xff]   ;;  %v4022_v22 = vld [vmem:[%s5449_s1 + $0x1a4] ss:$8 sps:$4 sm:$0xff]  }
  0x49   :  { %2753 = vmatprep.subr.bf16.mxu0 %v3977_v23  ;;  %v4025_v23 = vld [vmem:[%s5449_s1 + $0x5a4] ss:$8 sps:$4 sm:$0xff]  }
  0x4a   :  { %2277 = vmatmul.mubr.bf16.gmra.mrb[4].mxu1 %v3260_v28  ;;  %v3324_v28 = vcombine.low %v94_v8, %v102_v9  ;;  %v4064_v8 = vld [vmem:[%s5449_s1 + $0x214] ss:$8 sps:$4 sm:$0xff]  }
  0x4b   :  { %2689 = vmatmul.mubr.bf16.gmra.mrb[4].mxu0 %v3268_v29  ;;  %2342 = vmatpush1.bf16.msra.mxu1 %v3972_v24  ;;  %v4020_v24 = vld [vmem:[%s5449_s1 + $0x1a0] ss:$8 sps:$4 sm:$0xff]   ;;  %v3332_v29 = vcombine.low %v98_v10, %v106_v13  ;;  %v4067_v9 = vld [vmem:[%s5449_s1 + $0x614] ss:$8 sps:$4 sm:$0xff]   ;;  %v4065_v13 = vld [vmem:[%s5449_s1 + $0x610] ss:$8 sps:$4 sm:$0xff]  }
  0x4c   :  { %2754 = vmatpush1.bf16.msra.mxu0 %v3975_v25  ;;  %2343 = vmatprep.subr.bf16.mxu1 %v3980_v32  ;;  %v4023_v25 = vld [vmem:[%s5449_s1 + $0x5a0] ss:$8 sps:$4 sm:$0xff]   ;;  %v4028_v32 = vld [vmem:[%s5449_s1 + $0x1b4] ss:$8 sps:$4 sm:$0xff]  }
  0x4d   :  { %2755 = vmatprep.subr.bf16.mxu0 %v3983_v33  ;;  %2286 = vmatprep.mubr.bf16.mxu1 %v3277_v34  ;;  %v4031_v33 = vld [vmem:[%s5449_s1 + $0x5b4] ss:$8 sps:$4 sm:$0xff]   ;;  %v3341_v34 = vcombine.high %v110_v26, %v118_v27 }
  0x4e   :  { %2698 = vmatprep.mubr.bf16.mxu0 %v3285_v35  ;;  %v3349_v35 = vcombine.high %v114_v30, %v122_v31 }
  0x4f   :  { %2344 = vmatpush1.bf16.msra.mxu1 %v3978_v36  ;;  %v4026_v36 = vld [vmem:[%s5449_s1 + $0x1b0] ss:$8 sps:$4 sm:$0xff]  }
  0x50   :  { %2756 = vmatpush1.bf16.msra.mxu0 %v3981_v37  ;;  %2345 = vmatprep.subr.bf16.mxu1 %v3986_v38  ;;  %v4029_v37 = vld [vmem:[%s5449_s1 + $0x5b0] ss:$8 sps:$4 sm:$0xff]   ;;  %v4034_v38 = vld [vmem:[%s5449_s1 + $0x1c4] ss:$8 sps:$4 sm:$0xff]  }
  0x51   :  { %2757 = vmatprep.subr.bf16.mxu0 %v3989_v39  ;;  %v4037_v39 = vld [vmem:[%s5449_s1 + $0x5c4] ss:$8 sps:$4 sm:$0xff]  }
  0x52   :  { %2287 = vmatmul.mubr.bf16.gmra.mrb[8].mxu1 %v3276_v43  ;;  %v3340_v43 = vcombine.low %v110_v26, %v118_v27 }
  0x53   :  { %2699 = vmatmul.mubr.bf16.gmra.mrb[8].mxu0 %v3284_v44  ;;  %2346 = vmatpush1.bf16.msra.mxu1 %v3984_v40  ;;  %v4032_v40 = vld [vmem:[%s5449_s1 + $0x1c0] ss:$8 sps:$4 sm:$0xff]   ;;  %v3348_v44 = vcombine.low %v114_v30, %v122_v31  ;;  %v4082_v30 = vld [vmem:[%s5449_s1 + $0x244] ss:$8 sps:$4 sm:$0xff]  }
  0x54   :  { %2758 = vmatpush1.bf16.msra.mxu0 %v3987_v47  ;;  %2347 = vmatprep.subr.bf16.mxu1 %v3992_v48  ;;  %v4035_v47 = vld [vmem:[%s5449_s1 + $0x5c0] ss:$8 sps:$4 sm:$0xff]   ;;  %v4040_v48 = vld [vmem:[%s5449_s1 + $0x1d4] ss:$8 sps:$4 sm:$0xff]   ;;  %v4085_v31 = vld [vmem:[%s5449_s1 + $0x644] ss:$8 sps:$4 sm:$0xff]  }
  0x55   :  { %2759 = vmatprep.subr.bf16.mxu0 %v3995_v49  ;;  %2296 = vmatprep.mubr.bf16.mxu1 %v3293_v50  ;;  %v4043_v49 = vld [vmem:[%s5449_s1 + $0x5d4] ss:$8 sps:$4 sm:$0xff]   ;;  %v3247_v50 = vcombine.high %v15_v41, %v23_v42 }
  0x56   :  { %2708 = vmatprep.mubr.bf16.mxu0 %v3301_v51  ;;  %v3255_v51 = vcombine.high %v19_v45, %v27_v46 }
  0x57   :  { %2348 = vmatpush1.bf16.msra.mxu1 %v3990_v52  ;;  %v4038_v52 = vld [vmem:[%s5449_s1 + $0x1d0] ss:$8 sps:$4 sm:$0xff]  }
  0x58   :  { %2760 = vmatpush1.bf16.msra.mxu0 %v3993_v53  ;;  %2349 = vmatprep.subr.bf16.mxu1 %v3998_v54  ;;  %v4041_v53 = vld [vmem:[%s5449_s1 + $0x5d0] ss:$8 sps:$4 sm:$0xff]   ;;  %v4046_v54 = vld [vmem:[%s5449_s1 + $0x1e4] ss:$8 sps:$4 sm:$0xff]  }
  0x59   :  { %2761 = vmatprep.subr.bf16.mxu0 %v4001_v55  ;;  %v4049_v55 = vld [vmem:[%s5449_s1 + $0x5e4] ss:$8 sps:$4 sm:$0xff]  }
  0x5a   :  { %2297 = vmatmul.mubr.bf16.gmra.mrb[12].mxu1 %v3292_v58  ;;  %v4052_v58 = vld [vmem:[%s5449_s1 + $0x1f4] ss:$8 sps:$4 sm:$0xff]  }
  0x5b   :  { %2709 = vmatmul.mubr.bf16.gmra.mrb[12].mxu0 %v3300_v59  ;;  %2350 = vmatpush1.bf16.msra.mxu1 %v3996_v62  ;;  %v4055_v59 = vld [vmem:[%s5449_s1 + $0x5f4] ss:$8 sps:$4 sm:$0xff]   ;;  %v4058_v62 = vld [vmem:[%s5449_s1 + $0x204] ss:$8 sps:$4 sm:$0xff]  }
  0x5c   :  { %2762 = vmatpush1.bf16.msra.mxu0 %v3999_v63  ;;  %2351 = vmatprep.subr.bf16.mxu1 %v4004_v0  ;;  %v4061_v63 = vld [vmem:[%s5449_s1 + $0x604] ss:$8 sps:$4 sm:$0xff]  }
  0x5d   :  { %2763 = vmatprep.subr.bf16.mxu0 %v4007_v1  ;;  %2306 = vmatprep.mubr.bf16.mxu1 %v3309_v2  ;;  %v31_v0 = vld [vmem:[%s5450_s0 + $0x88] sm:$0xff] }
  0x5e   :  { %2718 = vmatprep.mubr.bf16.mxu0 %v3317_v3  ;;  %v39_v1 = vld [vmem:[%s5450_s0 + $0xc8] sm:$0xff]  ;;  %v3246_v3 = vcombine.low %v15_v41, %v23_v42  ;;  %v4091_v41 = vld [vmem:[%s5449_s1 + $0x654] ss:$8 sps:$4 sm:$0xff]  }
  0x5f   :  { %2352 = vmatpush1.bf16.msra.mxu1 %v4002_v4  ;;  %v35_v2 = vld [vmem:[%s5450_s0 + $0xa8] sm:$0xff]  ;;  %v3254_v4 = vcombine.low %v19_v45, %v27_v46  ;;  %v3263_v10 = vcombine.high %v31_v0, %v39_v1  ;;  %v4089_v45 = vld [vmem:[%s5449_s1 + $0x650] ss:$8 sps:$4 sm:$0xff]  }
  0x60   :  { %2764 = vmatpush1.bf16.msra.mxu0 %v4005_v5  ;;  %2353 = vmatprep.subr.bf16.mxu1 %v4010_v6  ;;  %v43_v5 = vld [vmem:[%s5450_s0 + $0xe8] sm:$0xff] }
  0x61   :  { %2765 = vmatprep.subr.bf16.mxu0 %v4013_v7  ;;  %v4056_v6 = vld [vmem:[%s5449_s1 + $0x200] ss:$8 sps:$4 sm:$0xff]   ;;  %v4094_v46 = vld [vmem:[%s5449_s1 + $0x264] ss:$8 sps:$4 sm:$0xff]  }
  0x62   :  { %2307 = vmatmul.mubr.bf16.gmra.mrb[16].mxu1 %v3308_v11  ;;  %v4059_v7 = vld [vmem:[%s5449_s1 + $0x600] ss:$8 sps:$4 sm:$0xff]   ;;  %v3271_v11 = vcombine.high %v35_v2, %v43_v5 }
  0x63   :  { %2719 = vmatmul.mubr.bf16.gmra.mrb[16].mxu0 %v3316_v12  ;;  %2354 = vmatpush1.bf16.msra.mxu1 %v4008_v14  ;;  %v4062_v12 = vld [vmem:[%s5449_s1 + $0x210] ss:$8 sps:$4 sm:$0xff]   ;;  %v4070_v14 = vld [vmem:[%s5449_s1 + $0x224] ss:$8 sps:$4 sm:$0xff]  }
  0x64   :  { %2766 = vmatpush1.bf16.msra.mxu0 %v4011_v15  ;;  %2355 = vmatprep.subr.bf16.mxu1 %v4016_v16  ;;  %v4073_v15 = vld [vmem:[%s5449_s1 + $0x624] ss:$8 sps:$4 sm:$0xff]   ;;  %v4068_v16 = vld [vmem:[%s5449_s1 + $0x220] ss:$8 sps:$4 sm:$0xff]  }
  0x65   :  { %2767 = vmatprep.subr.bf16.mxu0 %v4019_v17  ;;  %2316 = vmatprep.mubr.bf16.mxu1 %v3325_v18  ;;  %v4071_v17 = vld [vmem:[%s5449_s1 + $0x620] ss:$8 sps:$4 sm:$0xff]  }
  0x66   :  { %2728 = vmatprep.mubr.bf16.mxu0 %v3333_v19  ;;  %v47_v18 = vld [vmem:[%s5450_s0 + $0x108] sm:$0xff]  ;;  %v3262_v19 = vcombine.low %v31_v0, %v39_v1 }
  0x67   :  { %2356 = vmatpush1.bf16.msra.mxu1 %v4014_v20  ;;  %v3270_v20 = vcombine.low %v35_v2, %v43_v5  ;;  %v4104_v0 = vld [vmem:[%s5449_s1 + $0x280] ss:$8 sps:$4 sm:$0xff]  }
  0x68   :  { %2768 = vmatpush1.bf16.msra.mxu0 %v4017_v21  ;;  %2357 = vmatprep.subr.bf16.mxu1 %v4022_v22  ;;  %v55_v21 = vld [vmem:[%s5450_s0 + $0x148] sm:$0xff] }
  0x69   :  { %2769 = vmatprep.subr.bf16.mxu0 %v4025_v23  ;;  %v51_v22 = vld [vmem:[%s5450_s0 + $0x128] sm:$0xff]  ;;  %v3279_v26 = vcombine.high %v47_v18, %v55_v21 }
  0x6a   :  { %2317 = vmatmul.mubr.bf16.gmra.mrb[20].mxu1 %v3324_v28  ;;  %v59_v23 = vld [vmem:[%s5450_s0 + $0x168] sm:$0xff]  ;;  %v4074_v28 = vld [vmem:[%s5449_s1 + $0x230] ss:$8 sps:$4 sm:$0xff]  }
  0x6b   :  { %2729 = vmatmul.mubr.bf16.gmra.mrb[20].mxu0 %v3332_v29  ;;  %2358 = vmatpush1.bf16.msra.mxu1 %v4020_v24  ;;  %v4076_v24 = vld [vmem:[%s5449_s1 + $0x234] ss:$8 sps:$4 sm:$0xff]   ;;  %v3287_v27 = vcombine.high %v51_v22, %v59_v23  ;;  %v4077_v29 = vld [vmem:[%s5449_s1 + $0x630] ss:$8 sps:$4 sm:$0xff]   ;;  %v4107_v1 = vld [vmem:[%s5449_s1 + $0x680] ss:$8 sps:$4 sm:$0xff]  }
  0x6c   :  { %2770 = vmatpush1.bf16.msra.mxu0 %v4023_v25  ;;  %2359 = vmatprep.subr.bf16.mxu1 %v4028_v32  ;;  %v4079_v25 = vld [vmem:[%s5449_s1 + $0x634] ss:$8 sps:$4 sm:$0xff]   ;;  %v4080_v32 = vld [vmem:[%s5449_s1 + $0x240] ss:$8 sps:$4 sm:$0xff]  }
  0x6d   :  { %2771 = vmatprep.subr.bf16.mxu0 %v4031_v33  ;;  %2326 = vmatprep.mubr.bf16.mxu1 %v3341_v34  ;;  %v4083_v33 = vld [vmem:[%s5449_s1 + $0x640] ss:$8 sps:$4 sm:$0xff]  }
  0x6e   :  { %2738 = vmatprep.mubr.bf16.mxu0 %v3349_v35  ;;  %v63_v34 = vld [vmem:[%s5450_s0 + $0x188] sm:$0xff] }
  0x6f   :  { %2360 = vmatpush1.bf16.msra.mxu1 %v4026_v36  ;;  %v71_v35 = vld [vmem:[%s5450_s0 + $0x1c8] sm:$0xff]  ;;  %v3278_v36 = vcombine.low %v47_v18, %v55_v21 }
  0x70   :  { %2772 = vmatpush1.bf16.msra.mxu0 %v4029_v37  ;;  %2361 = vmatprep.subr.bf16.mxu1 %v4034_v38  ;;  %v3286_v37 = vcombine.low %v51_v22, %v59_v23  ;;  %v67_v38 = vld [vmem:[%s5450_s0 + $0x1a8] sm:$0xff]  ;;  %v3295_v42 = vcombine.high %v63_v34, %v71_v35 }
  0x71   :  { %2773 = vmatprep.subr.bf16.mxu0 %v4037_v39  ;;  %v75_v39 = vld [vmem:[%s5450_s0 + $0x1e8] sm:$0xff] }
  0x72   :  { %2327 = vmatmul.mubr.bf16.gmra.mrb[24].mxu1 %v3340_v43  ;;  %v3303_v43 = vcombine.high %v67_v38, %v75_v39  ;;  %v95_v2 = vld [vmem:[%s5450_s0 + $0x288] sm:$0xff] }
  0x73   :  { %2739 = vmatmul.mubr.bf16.gmra.mrb[24].mxu0 %v3348_v44  ;;  %2362 = vmatpush1.bf16.msra.mxu1 %v4032_v40  ;;  %v4088_v40 = vld [vmem:[%s5449_s1 + $0x254] ss:$8 sps:$4 sm:$0xff]   ;;  %v4086_v44 = vld [vmem:[%s5449_s1 + $0x250] ss:$8 sps:$4 sm:$0xff]   ;;  %v103_v5 = vld [vmem:[%s5450_s0 + $0x2c8] sm:$0xff] }
  0x74   :  { %2774 = vmatpush1.bf16.msra.mxu0 %v4035_v47  ;;  %2363 = vmatprep.subr.bf16.mxu1 %v4040_v48  ;;  %v4097_v47 = vld [vmem:[%s5449_s1 + $0x664] ss:$8 sps:$4 sm:$0xff]   ;;  %v4092_v48 = vld [vmem:[%s5449_s1 + $0x260] ss:$8 sps:$4 sm:$0xff]  }
  0x75   :  { %2775 = vmatprep.subr.bf16.mxu0 %v4043_v49  ;;  %2369 = vmatprep.mubr.bf16.mxu1 %v3247_v50  ;;  %v4095_v49 = vld [vmem:[%s5449_s1 + $0x660] ss:$8 sps:$4 sm:$0xff]  }
  0x76   :  { %2781 = vmatprep.mubr.bf16.mxu0 %v3255_v51  ;;  %v79_v50 = vld [vmem:[%s5450_s0 + $0x208] sm:$0xff] }
  0x77   :  { %2364 = vmatpush1.bf16.msra.mxu1 %v4038_v52  ;;  %v87_v51 = vld [vmem:[%s5450_s0 + $0x248] sm:$0xff]  ;;  %v3294_v52 = vcombine.low %v63_v34, %v71_v35  ;;  %v16_v34 = vld [vmem:[%s5450_s0 + $0x10] sm:$0xff] }
  0x78   :  { %2776 = vmatpush1.bf16.msra.mxu0 %v4041_v53  ;;  %2365 = vmatprep.subr.bf16.mxu1 %v4046_v54  ;;  %v3302_v53 = vcombine.low %v67_v38, %v75_v39  ;;  %v83_v54 = vld [vmem:[%s5450_s0 + $0x228] sm:$0xff]  ;;  %v24_v35 = vld [vmem:[%s5450_s0 + $0x50] sm:$0xff] }
  0x79   :  { %2777 = vmatprep.subr.bf16.mxu0 %v4049_v55  ;;  %v91_v55 = vld [vmem:[%s5450_s0 + $0x268] sm:$0xff]  ;;  %v20_v38 = vld [vmem:[%s5450_s0 + $0x30] sm:$0xff] }
  0x7a   :  { %v111_v18 = vld [vmem:[%s5450_s0 + $0x308] sm:$0xff]  ;;  %v28_v39 = vld [vmem:[%s5450_s0 + $0x70] sm:$0xff] }
  0x7b   :  { %2366 = vmatpush1.bf16.msra.mxu1 %v4044_v56  ;;  %v4100_v56 = vld [vmem:[%s5449_s1 + $0x274] ss:$8 sps:$4 sm:$0xff]   ;;  %v115_v22 = vld [vmem:[%s5450_s0 + $0x328] sm:$0xff] }
  0x7c   :  { %2778 = vmatpush1.bf16.msra.mxu0 %v4047_v57  ;;  %2367 = vmatprep.subr.bf16.mxu1 %v4052_v58  ;;  %v4103_v57 = vld [vmem:[%s5449_s1 + $0x674] ss:$8 sps:$4 sm:$0xff]   ;;  %v3311_v58 = vcombine.high %v79_v50, %v87_v51  ;;  %v123_v23 = vld [vmem:[%s5450_s0 + $0x368] sm:$0x77] }
  0x7d   :  { %2779 = vmatprep.subr.bf16.mxu0 %v4055_v59  ;;  %v3319_v59 = vcombine.high %v83_v54, %v91_v55 }
  0x7f   :  { %2368 = vmatpush1.bf16.msra.mxu1 %v4050_v60  ;;  %v4098_v60 = vld [vmem:[%s5449_s1 + $0x270] ss:$8 sps:$4 sm:$0xff]  }
  0x80   :  { %2780 = vmatpush1.bf16.msra.mxu0 %v4053_v61  ;;  %2440 = vmatprep.subr.bf16.mxu1 %v4058_v62  ;;  %v4101_v61 = vld [vmem:[%s5449_s1 + $0x670] ss:$8 sps:$4 sm:$0xff]   ;;  %v4106_v62 = vld [vmem:[%s5449_s1 + $0x284] ss:$8 sps:$4 sm:$0xff]  }
  0x81   :  { %2852 = vmatprep.subr.bf16.mxu0 %v4061_v63  ;;  %v4109_v63 = vld [vmem:[%s5449_s1 + $0x684] ss:$8 sps:$4 sm:$0xff]  }
  0x82   :  { %2370 = vmatmul.mubr.bf16.vlgmr.msra.gmra.mrb[0].mxu1 %v3246_v3  ;;  %v3310_v3 = vcombine.low %v79_v50, %v87_v51  ;;  %v4148_v50 = vld [vmem:[%s5449_s1 + $0x2f4] ss:$8 sps:$4 sm:$0xff]  }
  0x83   :  { %2782 = vmatmul.mubr.bf16.vlgmr.msra.gmra.mrb[0].mxu0 %v3254_v4  ;;  %2441 = vmatpush1.bf16.msra.mxu1 %v4056_v6  ;;  %v3318_v4 = vcombine.low %v83_v54, %v91_v55  ;;  %v99_v6 = vld [vmem:[%s5450_s0 + $0x2a8] sm:$0xff]  ;;  %v4151_v51 = vld [vmem:[%s5449_s1 + $0x6f4] ss:$8 sps:$4 sm:$0xff]  }
  0x84   :  { %2853 = vmatpush1.bf16.msra.mxu0 %v4059_v7  ;;  %2442 = vmatprep.subr.bf16.mxu1 %v4064_v8  ;;  %v107_v7 = vld [vmem:[%s5450_s0 + $0x2e8] sm:$0xff]  ;;  %v4112_v8 = vld [vmem:[%s5449_s1 + $0x294] ss:$8 sps:$4 sm:$0xff]  }
  0x85   :  { %2854 = vmatprep.subr.bf16.mxu0 %v4067_v9  ;;  %2379 = vmatprep.mubr.bf16.mxu1 %v3263_v10  ;;  %v4115_v9 = vld [vmem:[%s5449_s1 + $0x694] ss:$8 sps:$4 sm:$0xff]   ;;  %v3327_v10 = vcombine.high %v95_v2, %v103_v5  ;;  %v3334_v21 = vcombine.low %v99_v6, %v107_v7  ;;  %v4154_v54 = vld [vmem:[%s5449_s1 + $0x304] ss:$8 sps:$4 sm:$0xff]  }
  0x86   :  { %2791 = vmatprep.mubr.bf16.mxu0 %v3271_v11  ;;  %v3335_v11 = vcombine.high %v99_v6, %v107_v7  ;;  %v4157_v55 = vld [vmem:[%s5449_s1 + $0x704] ss:$8 sps:$4 sm:$0xff]  }
  0x87   :  { %2443 = vmatpush1.bf16.msra.mxu1 %v4062_v12  ;;  %v4110_v12 = vld [vmem:[%s5449_s1 + $0x290] ss:$8 sps:$4 sm:$0xff]   ;;  %v4166_v6 = vld [vmem:[%s5449_s1 + $0x324] ss:$8 sps:$4 sm:$0xff]  }
  0x88   :  { %2855 = vmatpush1.bf16.msra.mxu0 %v4065_v13  ;;  %2444 = vmatprep.subr.bf16.mxu1 %v4070_v14  ;;  %v4113_v13 = vld [vmem:[%s5449_s1 + $0x690] ss:$8 sps:$4 sm:$0xff]   ;;  %v4118_v14 = vld [vmem:[%s5449_s1 + $0x2a4] ss:$8 sps:$4 sm:$0xff]  }
  0x89   :  { %2856 = vmatprep.subr.bf16.mxu0 %v4073_v15  ;;  %v4121_v15 = vld [vmem:[%s5449_s1 + $0x6a4] ss:$8 sps:$4 sm:$0xff]  }
  0x8a   :  { %2380 = vmatmul.mubr.bf16.gmra.mrb[4].mxu1 %v3262_v19  ;;  %v119_v19 = vld [vmem:[%s5450_s0 + $0x348] sm:$0x77] }
  0x8b   :  { %2792 = vmatmul.mubr.bf16.gmra.mrb[4].mxu0 %v3270_v20  ;;  %2445 = vmatpush1.bf16.msra.mxu1 %v4068_v16  ;;  %v4116_v16 = vld [vmem:[%s5449_s1 + $0x2a0] ss:$8 sps:$4 sm:$0xff]   ;;  %v3326_v20 = vcombine.low %v95_v2, %v103_v5  ;;  %v4161_v5 = vld [vmem:[%s5449_s1 + $0x710] ss:$8 sps:$4 sm:$0xff]   ;;  %v4169_v7 = vld [vmem:[%s5449_s1 + $0x724] ss:$8 sps:$4 sm:$0xff]  }
  0x8c   :  { %2857 = vmatpush1.bf16.msra.mxu0 %v4071_v17  ;;  %2446 = vmatprep.subr.bf16.mxu1 %v4076_v24  ;;  %v4119_v17 = vld [vmem:[%s5449_s1 + $0x6a0] ss:$8 sps:$4 sm:$0xff]   ;;  %v4124_v24 = vld [vmem:[%s5449_s1 + $0x2b4] ss:$8 sps:$4 sm:$0xff]  }
  0x8d   :  { %2858 = vmatprep.subr.bf16.mxu0 %v4079_v25  ;;  %2389 = vmatprep.mubr.bf16.mxu1 %v3279_v26  ;;  %v4127_v25 = vld [vmem:[%s5449_s1 + $0x6b4] ss:$8 sps:$4 sm:$0xff]   ;;  %v3343_v26 = vcombine.high %v111_v18, %v119_v19 }
  0x8e   :  { %2801 = vmatprep.mubr.bf16.mxu0 %v3287_v27  ;;  %v3351_v27 = vcombine.high %v115_v22, %v123_v23 }
  0x8f   :  { %2447 = vmatpush1.bf16.msra.mxu1 %v4074_v28  ;;  %v4122_v28 = vld [vmem:[%s5449_s1 + $0x2b0] ss:$8 sps:$4 sm:$0xff]  }
  0x90   :  { %2859 = vmatpush1.bf16.msra.mxu0 %v4077_v29  ;;  %2448 = vmatprep.subr.bf16.mxu1 %v4082_v30  ;;  %v4125_v29 = vld [vmem:[%s5449_s1 + $0x6b0] ss:$8 sps:$4 sm:$0xff]   ;;  %v4130_v30 = vld [vmem:[%s5449_s1 + $0x2c4] ss:$8 sps:$4 sm:$0xff]  }
  0x91   :  { %2860 = vmatprep.subr.bf16.mxu0 %v4085_v31  ;;  %v4133_v31 = vld [vmem:[%s5449_s1 + $0x6c4] ss:$8 sps:$4 sm:$0xff]  }
  0x92   :  { %2390 = vmatmul.mubr.bf16.gmra.mrb[8].mxu1 %v3278_v36  ;;  %v3342_v36 = vcombine.low %v111_v18, %v119_v19 }
  0x93   :  { %2802 = vmatmul.mubr.bf16.gmra.mrb[8].mxu0 %v3286_v37  ;;  %2449 = vmatpush1.bf16.msra.mxu1 %v4080_v32  ;;  %v4128_v32 = vld [vmem:[%s5449_s1 + $0x2c0] ss:$8 sps:$4 sm:$0xff]   ;;  %v3350_v37 = vcombine.low %v115_v22, %v123_v23  ;;  %v4178_v22 = vld [vmem:[%s5449_s1 + $0x344] ss:$8 sps:$4 sm:$0xff]  }
  0x94   :  { %2861 = vmatpush1.bf16.msra.mxu0 %v4083_v33  ;;  %2450 = vmatprep.subr.bf16.mxu1 %v4088_v40  ;;  %v4131_v33 = vld [vmem:[%s5449_s1 + $0x6c0] ss:$8 sps:$4 sm:$0xff]   ;;  %v4136_v40 = vld [vmem:[%s5449_s1 + $0x2d4] ss:$8 sps:$4 sm:$0xff]   ;;  %v4181_v23 = vld [vmem:[%s5449_s1 + $0x744] ss:$8 sps:$4 sm:$0xff]  }
  0x95   :  { %2862 = vmatprep.subr.bf16.mxu0 %v4091_v41  ;;  %2399 = vmatprep.mubr.bf16.mxu1 %v3295_v42  ;;  %v4139_v41 = vld [vmem:[%s5449_s1 + $0x6d4] ss:$8 sps:$4 sm:$0xff]   ;;  %v3249_v42 = vcombine.high %v16_v34, %v24_v35 }
  0x96   :  { %2811 = vmatprep.mubr.bf16.mxu0 %v3303_v43  ;;  %v3257_v43 = vcombine.high %v20_v38, %v28_v39 }
  0x97   :  { %2451 = vmatpush1.bf16.msra.mxu1 %v4086_v44  ;;  %v4134_v44 = vld [vmem:[%s5449_s1 + $0x2d0] ss:$8 sps:$4 sm:$0xff]  }
  0x98   :  { %2863 = vmatpush1.bf16.msra.mxu0 %v4089_v45  ;;  %2452 = vmatprep.subr.bf16.mxu1 %v4094_v46  ;;  %v4137_v45 = vld [vmem:[%s5449_s1 + $0x6d0] ss:$8 sps:$4 sm:$0xff]   ;;  %v4142_v46 = vld [vmem:[%s5449_s1 + $0x2e4] ss:$8 sps:$4 sm:$0xff]  }
  0x99   :  { %2864 = vmatprep.subr.bf16.mxu0 %v4097_v47  ;;  %v4145_v47 = vld [vmem:[%s5449_s1 + $0x6e4] ss:$8 sps:$4 sm:$0xff]  }
  0x9a   :  { %2400 = vmatmul.mubr.bf16.gmra.mrb[12].mxu1 %v3294_v52  ;;  %v4146_v52 = vld [vmem:[%s5449_s1 + $0x2f0] ss:$8 sps:$4 sm:$0xff]  }
  0x9b   :  { %2812 = vmatmul.mubr.bf16.gmra.mrb[12].mxu0 %v3302_v53  ;;  %2453 = vmatpush1.bf16.msra.mxu1 %v4092_v48  ;;  %v4140_v48 = vld [vmem:[%s5449_s1 + $0x2e0] ss:$8 sps:$4 sm:$0xff]   ;;  %v4149_v53 = vld [vmem:[%s5449_s1 + $0x6f0] ss:$8 sps:$4 sm:$0xff]  }
  0x9c   :  { %2865 = vmatpush1.bf16.msra.mxu0 %v4095_v49  ;;  %2454 = vmatprep.subr.bf16.mxu1 %v4100_v56  ;;  %v4143_v49 = vld [vmem:[%s5449_s1 + $0x6e0] ss:$8 sps:$4 sm:$0xff]   ;;  %v32_v56 = vld [vmem:[%s5450_s0 + $0x90] sm:$0xff] }
  0x9d   :  { %2866 = vmatprep.subr.bf16.mxu0 %v4103_v57  ;;  %2409 = vmatprep.mubr.bf16.mxu1 %v3311_v58  ;;  %v40_v57 = vld [vmem:[%s5450_s0 + $0xd0] sm:$0xff]  ;;  %v3248_v58 = vcombine.low %v16_v34, %v24_v35 }
  0x9e   :  { %2821 = vmatprep.mubr.bf16.mxu0 %v3319_v59  ;;  %v3256_v59 = vcombine.low %v20_v38, %v28_v39  ;;  %v3265_v2 = vcombine.high %v32_v56, %v40_v57  ;;  %v4190_v38 = vld [vmem:[%s5449_s1 + $0x364] ss:$8 sps:$4 sm:$0xff]  }
  0x9f   :  { %2455 = vmatpush1.bf16.msra.mxu1 %v4098_v60  ;;  %v36_v60 = vld [vmem:[%s5450_s0 + $0xb0] sm:$0xff]  ;;  %v4193_v39 = vld [vmem:[%s5449_s1 + $0x764] ss:$8 sps:$4 sm:$0xff]  }
  0xa0   :  { %2867 = vmatpush1.bf16.msra.mxu0 %v4101_v61  ;;  %2456 = vmatprep.subr.bf16.mxu1 %v4106_v62  ;;  %v44_v61 = vld [vmem:[%s5450_s0 + $0xf0] sm:$0xff]  ;;  %v4152_v62 = vld [vmem:[%s5449_s1 + $0x300] ss:$8 sps:$4 sm:$0xff]  }
  0xa1   :  { %2868 = vmatprep.subr.bf16.mxu0 %v4109_v63  ;;  %v4155_v63 = vld [vmem:[%s5449_s1 + $0x700] ss:$8 sps:$4 sm:$0xff]  }
  0xa2   :  { %2410 = vmatmul.mubr.bf16.gmra.mrb[16].mxu1 %v3310_v3  ;;  %v3273_v3 = vcombine.high %v36_v60, %v44_v61 }
  0xa3   :  { %2822 = vmatmul.mubr.bf16.gmra.mrb[16].mxu0 %v3318_v4  ;;  %2457 = vmatpush1.bf16.msra.mxu1 %v4104_v0  ;;  %v4160_v0 = vld [vmem:[%s5449_s1 + $0x314] ss:$8 sps:$4 sm:$0xff]   ;;  %v4158_v4 = vld [vmem:[%s5449_s1 + $0x310] ss:$8 sps:$4 sm:$0xff]  }
  0xa4   :  { %2869 = vmatpush1.bf16.msra.mxu0 %v4107_v1  ;;  %2458 = vmatprep.subr.bf16.mxu1 %v4112_v8  ;;  %v4163_v1 = vld [vmem:[%s5449_s1 + $0x714] ss:$8 sps:$4 sm:$0xff]  }
  0xa5   :  { %2870 = vmatprep.subr.bf16.mxu0 %v4115_v9  ;;  %2419 = vmatprep.mubr.bf16.mxu1 %v3327_v10  ;;  %v48_v8 = vld [vmem:[%s5450_s0 + $0x110] sm:$0xff]  ;;  %v3264_v9 = vcombine.low %v32_v56, %v40_v57  ;;  %v3272_v10 = vcombine.low %v36_v60, %v44_v61 }
  0xa6   :  { %2831 = vmatprep.mubr.bf16.mxu0 %v3335_v11  ;;  %v56_v11 = vld [vmem:[%s5450_s0 + $0x150] sm:$0xff] }
  0xa7   :  { %2459 = vmatpush1.bf16.msra.mxu1 %v4110_v12  ;;  %v52_v12 = vld [vmem:[%s5450_s0 + $0x130] sm:$0xff]  ;;  %v3281_v18 = vcombine.high %v48_v8, %v56_v11 }
  0xa8   :  { %2871 = vmatpush1.bf16.msra.mxu0 %v4113_v13  ;;  %2460 = vmatprep.subr.bf16.mxu1 %v4118_v14  ;;  %v60_v13 = vld [vmem:[%s5450_s0 + $0x170] sm:$0xff]  ;;  %v4164_v14 = vld [vmem:[%s5449_s1 + $0x320] ss:$8 sps:$4 sm:$0xff]  }
  0xa9   :  { %2872 = vmatprep.subr.bf16.mxu0 %v4121_v15  ;;  %v4167_v15 = vld [vmem:[%s5449_s1 + $0x720] ss:$8 sps:$4 sm:$0xff]   ;;  %v3289_v19 = vcombine.high %v52_v12, %v60_v13  ;;  %v96_v56 = vld [vmem:[%s5450_s0 + $0x290] sm:$0xff] }
  0xaa   :  { %2420 = vmatmul.mubr.bf16.gmra.mrb[20].mxu1 %v3326_v20  ;;  %v4170_v20 = vld [vmem:[%s5449_s1 + $0x330] ss:$8 sps:$4 sm:$0xff]  }
  0xab   :  { %2832 = vmatmul.mubr.bf16.gmra.mrb[20].mxu0 %v3334_v21  ;;  %2461 = vmatpush1.bf16.msra.mxu1 %v4116_v16  ;;  %v4172_v16 = vld [vmem:[%s5449_s1 + $0x334] ss:$8 sps:$4 sm:$0xff]   ;;  %v4173_v21 = vld [vmem:[%s5449_s1 + $0x730] ss:$8 sps:$4 sm:$0xff]  }
  0xac   :  { %2873 = vmatpush1.bf16.msra.mxu0 %v4119_v17  ;;  %2462 = vmatprep.subr.bf16.mxu1 %v4124_v24  ;;  %v4175_v17 = vld [vmem:[%s5449_s1 + $0x734] ss:$8 sps:$4 sm:$0xff]  }
  0xad   :  { %2874 = vmatprep.subr.bf16.mxu0 %v4127_v25  ;;  %2429 = vmatprep.mubr.bf16.mxu1 %v3343_v26  ;;  %v64_v24 = vld [vmem:[%s5450_s0 + $0x190] sm:$0xff]  ;;  %v3280_v25 = vcombine.low %v48_v8, %v56_v11  ;;  %v3288_v26 = vcombine.low %v52_v12, %v60_v13 }
  0xae   :  { %2841 = vmatprep.mubr.bf16.mxu0 %v3351_v27  ;;  %v72_v27 = vld [vmem:[%s5450_s0 + $0x1d0] sm:$0xff] }
  0xaf   :  { %2463 = vmatpush1.bf16.msra.mxu1 %v4122_v28  ;;  %v68_v28 = vld [vmem:[%s5450_s0 + $0x1b0] sm:$0xff]  ;;  %v3297_v34 = vcombine.high %v64_v24, %v72_v27 }
  0xb0   :  { %2875 = vmatpush1.bf16.msra.mxu0 %v4125_v29  ;;  %2464 = vmatprep.subr.bf16.mxu1 %v4130_v30  ;;  %v76_v29 = vld [vmem:[%s5450_s0 + $0x1f0] sm:$0xff]  ;;  %v4176_v30 = vld [vmem:[%s5449_s1 + $0x340] ss:$8 sps:$4 sm:$0xff]  }
  0xb1   :  { %2876 = vmatprep.subr.bf16.mxu0 %v4133_v31  ;;  %v4179_v31 = vld [vmem:[%s5449_s1 + $0x740] ss:$8 sps:$4 sm:$0xff]   ;;  %v3305_v35 = vcombine.high %v68_v28, %v76_v29  ;;  %v100_v60 = vld [vmem:[%s5450_s0 + $0x2b0] sm:$0xff] }
  0xb2   :  { %2430 = vmatmul.mubr.bf16.gmra.mrb[24].mxu1 %v3342_v36  ;;  %v4182_v36 = vld [vmem:[%s5449_s1 + $0x350] ss:$8 sps:$4 sm:$0xff]  }
  0xb3   :  { %2842 = vmatmul.mubr.bf16.gmra.mrb[24].mxu0 %v3350_v37  ;;  %2465 = vmatpush1.bf16.msra.mxu1 %v4128_v32  ;;  %v4184_v32 = vld [vmem:[%s5449_s1 + $0x354] ss:$8 sps:$4 sm:$0xff]   ;;  %v4185_v37 = vld [vmem:[%s5449_s1 + $0x750] ss:$8 sps:$4 sm:$0xff]  }
  0xb4   :  { %2877 = vmatpush1.bf16.msra.mxu0 %v4131_v33  ;;  %2466 = vmatprep.subr.bf16.mxu1 %v4136_v40  ;;  %v4187_v33 = vld [vmem:[%s5449_s1 + $0x754] ss:$8 sps:$4 sm:$0xff]  }
  0xb5   :  { %2878 = vmatprep.subr.bf16.mxu0 %v4139_v41  ;;  %2472 = vmatprep.mubr.bf16.mxu1 %v3249_v42  ;;  %v80_v40 = vld [vmem:[%s5450_s0 + $0x210] sm:$0xff]  ;;  %v3296_v41 = vcombine.low %v64_v24, %v72_v27  ;;  %v3304_v42 = vcombine.low %v68_v28, %v76_v29  ;;  %v17_v24 = vld [vmem:[%s5450_s0 + $0x18] sm:$0xff] }
  0xb6   :  { %2884 = vmatprep.mubr.bf16.mxu0 %v3257_v43  ;;  %v88_v43 = vld [vmem:[%s5450_s0 + $0x250] sm:$0xff]  ;;  %v25_v27 = vld [vmem:[%s5450_s0 + $0x58] sm:$0xff] }
  0xb7   :  { %2467 = vmatpush1.bf16.msra.mxu1 %v4134_v44  ;;  %v84_v44 = vld [vmem:[%s5450_s0 + $0x230] sm:$0xff]  ;;  %v3312_v57 = vcombine.low %v80_v40, %v88_v43  ;;  %v21_v28 = vld [vmem:[%s5450_s0 + $0x38] sm:$0xff] }
  0xb8   :  { %2879 = vmatpush1.bf16.msra.mxu0 %v4137_v45  ;;  %2468 = vmatprep.subr.bf16.mxu1 %v4142_v46  ;;  %v92_v45 = vld [vmem:[%s5450_s0 + $0x270] sm:$0xff]  ;;  %v4188_v46 = vld [vmem:[%s5449_s1 + $0x360] ss:$8 sps:$4 sm:$0xff]   ;;  %v29_v29 = vld [vmem:[%s5450_s0 + $0x78] sm:$0xff] }
  0xb9   :  { %2880 = vmatprep.subr.bf16.mxu0 %v4145_v47  ;;  %v4191_v47 = vld [vmem:[%s5449_s1 + $0x760] ss:$8 sps:$4 sm:$0xff]   ;;  %v108_v61 = vld [vmem:[%s5450_s0 + $0x2f0] sm:$0xff] }
  0xba   :  { %v112_v8 = vld [vmem:[%s5450_s0 + $0x310] sm:$0xff] }
  0xbb   :  { %2469 = vmatpush1.bf16.msra.mxu1 %v4140_v48  ;;  %v4196_v48 = vld [vmem:[%s5449_s1 + $0x374] ss:$8 sps:$4 sm:$0xff]  }
  0xbc   :  { %2881 = vmatpush1.bf16.msra.mxu0 %v4143_v49  ;;  %2470 = vmatprep.subr.bf16.mxu1 %v4148_v50  ;;  %v4199_v49 = vld [vmem:[%s5449_s1 + $0x774] ss:$8 sps:$4 sm:$0xff]   ;;  %v3313_v50 = vcombine.high %v80_v40, %v88_v43  ;;  %v4236_v40 = vld [vmem:[%s5449_s1 + $0x3e0] ss:$8 sps:$4 sm:$0xff]  }
  0xbd   :  { %2882 = vmatprep.subr.bf16.mxu0 %v4151_v51  ;;  %v3321_v51 = vcombine.high %v84_v44, %v92_v45  ;;  %v120_v11 = vld [vmem:[%s5450_s0 + $0x350] sm:$0x77] }
  0xbe   :  { %v116_v12 = vld [vmem:[%s5450_s0 + $0x330] sm:$0xff] }
  0xbf   :  { %2471 = vmatpush1.bf16.msra.mxu1 %v4146_v52  ;;  %v4194_v52 = vld [vmem:[%s5449_s1 + $0x370] ss:$8 sps:$4 sm:$0xff]   ;;  %v4247_v43 = vld [vmem:[%s5449_s1 + $0x7f4] ss:$8 sps:$4 sm:$0xff]  }
  0xc0   :  { %2883 = vmatpush1.bf16.msra.mxu0 %v4149_v53  ;;  %2543 = vmatprep.subr.bf16.mxu1 %v4154_v54  ;;  %v4197_v53 = vld [vmem:[%s5449_s1 + $0x770] ss:$8 sps:$4 sm:$0xff]   ;;  %v4202_v54 = vld [vmem:[%s5449_s1 + $0x384] ss:$8 sps:$4 sm:$0xff]  }
  0xc1   :  { %2955 = vmatprep.subr.bf16.mxu0 %v4157_v55  ;;  %v4205_v55 = vld [vmem:[%s5449_s1 + $0x784] ss:$8 sps:$4 sm:$0xff]   ;;  %v124_v13 = vld [vmem:[%s5450_s0 + $0x370] sm:$0x77] }
  0xc2   :  { %2473 = vmatmul.mubr.bf16.vlgmr.msra.gmra.mrb[0].mxu1 %v3248_v58  ;;  %v3320_v58 = vcombine.low %v84_v44, %v92_v45  ;;  %v4242_v44 = vld [vmem:[%s5449_s1 + $0x3f0] ss:$8 sps:$4 sm:$0xff]  }
  0xc3   :  { %2885 = vmatmul.mubr.bf16.vlgmr.msra.gmra.mrb[0].mxu0 %v3256_v59  ;;  %2544 = vmatpush1.bf16.msra.mxu1 %v4152_v62  ;;  %v104_v59 = vld [vmem:[%s5450_s0 + $0x2d0] sm:$0xff]  ;;  %v4200_v62 = vld [vmem:[%s5449_s1 + $0x380] ss:$8 sps:$4 sm:$0xff]  }
  0xc4   :  { %2956 = vmatpush1.bf16.msra.mxu0 %v4155_v63  ;;  %2545 = vmatprep.subr.bf16.mxu1 %v4160_v0  ;;  %v4203_v63 = vld [vmem:[%s5449_s1 + $0x780] ss:$8 sps:$4 sm:$0xff]   ;;  %v4208_v0 = vld [vmem:[%s5449_s1 + $0x394] ss:$8 sps:$4 sm:$0xff]   ;;  %v4245_v45 = vld [vmem:[%s5449_s1 + $0x7f0] ss:$8 sps:$4 sm:$0xff]  }
  0xc5   :  { %2957 = vmatprep.subr.bf16.mxu0 %v4163_v1  ;;  %2482 = vmatprep.mubr.bf16.mxu1 %v3265_v2  ;;  %v4211_v1 = vld [vmem:[%s5449_s1 + $0x794] ss:$8 sps:$4 sm:$0xff]   ;;  %v3329_v2 = vcombine.high %v96_v56, %v104_v59 }
  0xc6   :  { %2894 = vmatprep.mubr.bf16.mxu0 %v3273_v3  ;;  %v3337_v3 = vcombine.high %v100_v60, %v108_v61 }
  0xc7   :  { %2546 = vmatpush1.bf16.msra.mxu1 %v4158_v4  ;;  %v4206_v4 = vld [vmem:[%s5449_s1 + $0x390] ss:$8 sps:$4 sm:$0xff]  }
  0xc8   :  { %2958 = vmatpush1.bf16.msra.mxu0 %v4161_v5  ;;  %2547 = vmatprep.subr.bf16.mxu1 %v4166_v6  ;;  %v4209_v5 = vld [vmem:[%s5449_s1 + $0x790] ss:$8 sps:$4 sm:$0xff]   ;;  %v4214_v6 = vld [vmem:[%s5449_s1 + $0x3a4] ss:$8 sps:$4 sm:$0xff]  }
  0xc9   :  { %2959 = vmatprep.subr.bf16.mxu0 %v4169_v7  ;;  %v4217_v7 = vld [vmem:[%s5449_s1 + $0x7a4] ss:$8 sps:$4 sm:$0xff]  }
  0xca   :  { %2483 = vmatmul.mubr.bf16.gmra.mrb[4].mxu1 %v3264_v9  ;;  %v3328_v9 = vcombine.low %v96_v56, %v104_v59  ;;  %v53_v56 = vld [vmem:[%s5450_s0 + $0x138] sm:$0xff] }
  0xcb   :  { %2895 = vmatmul.mubr.bf16.gmra.mrb[4].mxu0 %v3272_v10  ;;  %2548 = vmatpush1.bf16.msra.mxu1 %v4164_v14  ;;  %v3336_v10 = vcombine.low %v100_v60, %v108_v61  ;;  %v4212_v14 = vld [vmem:[%s5449_s1 + $0x3a0] ss:$8 sps:$4 sm:$0xff]  }
  0xcc   :  { %2960 = vmatpush1.bf16.msra.mxu0 %v4167_v15  ;;  %2549 = vmatprep.subr.bf16.mxu1 %v4172_v16  ;;  %v4215_v15 = vld [vmem:[%s5449_s1 + $0x7a0] ss:$8 sps:$4 sm:$0xff]   ;;  %v4220_v16 = vld [vmem:[%s5449_s1 + $0x3b4] ss:$8 sps:$4 sm:$0xff]  }
  0xcd   :  { %2961 = vmatprep.subr.bf16.mxu0 %v4175_v17  ;;  %2492 = vmatprep.mubr.bf16.mxu1 %v3281_v18  ;;  %v4223_v17 = vld [vmem:[%s5449_s1 + $0x7b4] ss:$8 sps:$4 sm:$0xff]   ;;  %v3345_v18 = vcombine.high %v112_v8, %v120_v11 }
  0xce   :  { %2904 = vmatprep.mubr.bf16.mxu0 %v3289_v19  ;;  %v3353_v19 = vcombine.high %v116_v12, %v124_v13 }
  0xcf   :  { %2550 = vmatpush1.bf16.msra.mxu1 %v4170_v20  ;;  %v4218_v20 = vld [vmem:[%s5449_s1 + $0x3b0] ss:$8 sps:$4 sm:$0xff]  }
  0xd0   :  { %2962 = vmatpush1.bf16.msra.mxu0 %v4173_v21  ;;  %2551 = vmatprep.subr.bf16.mxu1 %v4178_v22  ;;  %v4221_v21 = vld [vmem:[%s5449_s1 + $0x7b0] ss:$8 sps:$4 sm:$0xff]   ;;  %v4226_v22 = vld [vmem:[%s5449_s1 + $0x3c4] ss:$8 sps:$4 sm:$0xff]  }
  0xd1   :  { %2963 = vmatprep.subr.bf16.mxu0 %v4181_v23  ;;  %v4229_v23 = vld [vmem:[%s5449_s1 + $0x7c4] ss:$8 sps:$4 sm:$0xff]  }
  0xd2   :  { %2493 = vmatmul.mubr.bf16.gmra.mrb[8].mxu1 %v3280_v25  ;;  %v3344_v25 = vcombine.low %v112_v8, %v120_v11  ;;  %v85_v8 = vld [vmem:[%s5450_s0 + $0x238] sm:$0xff] }
  0xd3   :  { %2905 = vmatmul.mubr.bf16.gmra.mrb[8].mxu0 %v3288_v26  ;;  %2552 = vmatpush1.bf16.msra.mxu1 %v4176_v30  ;;  %v3352_v26 = vcombine.low %v116_v12, %v124_v13  ;;  %v4224_v30 = vld [vmem:[%s5449_s1 + $0x3c0] ss:$8 sps:$4 sm:$0xff]  }
  0xd4   :  { %2964 = vmatpush1.bf16.msra.mxu0 %v4179_v31  ;;  %2553 = vmatprep.subr.bf16.mxu1 %v4184_v32  ;;  %v4227_v31 = vld [vmem:[%s5449_s1 + $0x7c0] ss:$8 sps:$4 sm:$0xff]   ;;  %v4232_v32 = vld [vmem:[%s5449_s1 + $0x3d4] ss:$8 sps:$4 sm:$0xff]  }
  0xd5   :  { %2965 = vmatprep.subr.bf16.mxu0 %v4187_v33  ;;  %2502 = vmatprep.mubr.bf16.mxu1 %v3297_v34  ;;  %v4235_v33 = vld [vmem:[%s5449_s1 + $0x7d4] ss:$8 sps:$4 sm:$0xff]   ;;  %v3251_v34 = vcombine.high %v17_v24, %v25_v27 }
  0xd6   :  { %2914 = vmatprep.mubr.bf16.mxu0 %v3305_v35  ;;  %v3259_v35 = vcombine.high %v21_v28, %v29_v29 }
  0xd7   :  { %2554 = vmatpush1.bf16.msra.mxu1 %v4182_v36  ;;  %v4230_v36 = vld [vmem:[%s5449_s1 + $0x3d0] ss:$8 sps:$4 sm:$0xff]  }
  0xd8   :  { %2966 = vmatpush1.bf16.msra.mxu0 %v4185_v37  ;;  %2555 = vmatprep.subr.bf16.mxu1 %v4190_v38  ;;  %v4233_v37 = vld [vmem:[%s5449_s1 + $0x7d0] ss:$8 sps:$4 sm:$0xff]   ;;  %v4238_v38 = vld [vmem:[%s5449_s1 + $0x3e4] ss:$8 sps:$4 sm:$0xff]  }
  0xd9   :  { %2967 = vmatprep.subr.bf16.mxu0 %v4193_v39  ;;  %v4241_v39 = vld [vmem:[%s5449_s1 + $0x7e4] ss:$8 sps:$4 sm:$0xff]  }
  0xda   :  { %2503 = vmatmul.mubr.bf16.gmra.mrb[12].mxu1 %v3296_v41  ;;  %v4239_v41 = vld [vmem:[%s5449_s1 + $0x7e0] ss:$8 sps:$4 sm:$0xff]  }
  0xdb   :  { %2915 = vmatmul.mubr.bf16.gmra.mrb[12].mxu0 %v3304_v42  ;;  %2556 = vmatpush1.bf16.msra.mxu1 %v4188_v46  ;;  %v4244_v42 = vld [vmem:[%s5449_s1 + $0x3f4] ss:$8 sps:$4 sm:$0xff]  }
  0xdc   :  { %2968 = vmatpush1.bf16.msra.mxu0 %v4191_v47  ;;  %2557 = vmatprep.subr.bf16.mxu1 %v4196_v48  ;;  %v33_v46 = vld [vmem:[%s5450_s0 + $0x98] sm:$0xff] }
  0xdd   :  { %2969 = vmatprep.subr.bf16.mxu0 %v4199_v49  ;;  %2512 = vmatprep.mubr.bf16.mxu1 %v3313_v50  ;;  %v41_v47 = vld [vmem:[%s5450_s0 + $0xd8] sm:$0xff]  ;;  %v3250_v50 = vcombine.low %v17_v24, %v25_v27 }
  0xde   :  { %2924 = vmatprep.mubr.bf16.mxu0 %v3321_v51  ;;  %v37_v48 = vld [vmem:[%s5450_s0 + $0xb8] sm:$0xff]  ;;  %v3258_v51 = vcombine.low %v21_v28, %v29_v29 }
  0xdf   :  { %2558 = vmatpush1.bf16.msra.mxu1 %v4194_v52  ;;  %v45_v49 = vld [vmem:[%s5450_s0 + $0xf8] sm:$0xff]  ;;  %v3267_v52 = vcombine.high %v33_v46, %v41_v47 }
  0xe0   :  { %2970 = vmatpush1.bf16.msra.mxu0 %v4197_v53  ;;  %2559 = vmatprep.subr.bf16.mxu1 %v4202_v54  ;;  %v3275_v53 = vcombine.high %v37_v48, %v45_v49  ;;  %v49_v54 = vld [vmem:[%s5450_s0 + $0x118] sm:$0xff]  ;;  %v3274_v59 = vcombine.low %v37_v48, %v45_v49 }
  0xe1   :  { %2971 = vmatprep.subr.bf16.mxu0 %v4205_v55  ;;  %v57_v55 = vld [vmem:[%s5450_s0 + $0x158] sm:$0xff] }
  0xe2   :  { %2513 = vmatmul.mubr.bf16.gmra.mrb[16].mxu1 %v3312_v57  ;;  %v61_v57 = vld [vmem:[%s5450_s0 + $0x178] sm:$0xff]  ;;  %v3283_v60 = vcombine.high %v49_v54, %v57_v55 }
  0xe3   :  { %2925 = vmatmul.mubr.bf16.gmra.mrb[16].mxu0 %v3320_v58  ;;  %2560 = vmatpush1.bf16.msra.mxu1 %v4200_v62  ;;  %v3266_v58 = vcombine.low %v33_v46, %v41_v47  ;;  %v3291_v61 = vcombine.high %v53_v56, %v61_v57  ;;  %v65_v62 = vld [vmem:[%s5450_s0 + $0x198] sm:$0xff] }
  0xe4   :  { %2972 = vmatpush1.bf16.msra.mxu0 %v4203_v63  ;;  %2561 = vmatprep.subr.bf16.mxu1 %v4208_v0  ;;  %v73_v63 = vld [vmem:[%s5450_s0 + $0x1d8] sm:$0xff] }
  0xe5   :  { %2973 = vmatprep.subr.bf16.mxu0 %v4211_v1  ;;  %2522 = vmatprep.mubr.bf16.mxu1 %v3329_v2  ;;  %v69_v0 = vld [vmem:[%s5450_s0 + $0x1b8] sm:$0xff]  ;;  %v3282_v2 = vcombine.low %v49_v54, %v57_v55 }
  0xe6   :  { %2934 = vmatprep.mubr.bf16.mxu0 %v3337_v3  ;;  %v77_v1 = vld [vmem:[%s5450_s0 + $0x1f8] sm:$0xff]  ;;  %v3290_v3 = vcombine.low %v53_v56, %v61_v57 }
  0xe7   :  { %2562 = vmatpush1.bf16.msra.mxu1 %v4206_v4  ;;  %v3299_v4 = vcombine.high %v65_v62, %v73_v63  ;;  %v3306_v11 = vcombine.low %v69_v0, %v77_v1  ;;  %v117_v24 = vld [vmem:[%s5450_s0 + $0x338] sm:$0xff] }
  0xe8   :  { %2974 = vmatpush1.bf16.msra.mxu0 %v4209_v5  ;;  %2563 = vmatprep.subr.bf16.mxu1 %v4214_v6  ;;  %v3307_v5 = vcombine.high %v69_v0, %v77_v1  ;;  %v81_v6 = vld [vmem:[%s5450_s0 + $0x218] sm:$0xff] }
  0xe9   :  { %2975 = vmatprep.subr.bf16.mxu0 %v4217_v7  ;;  %v89_v7 = vld [vmem:[%s5450_s0 + $0x258] sm:$0xff] }
  0xea   :  { %2523 = vmatmul.mubr.bf16.gmra.mrb[20].mxu1 %v3328_v9  ;;  %v93_v9 = vld [vmem:[%s5450_s0 + $0x278] sm:$0xff]  ;;  %v3315_v12 = vcombine.high %v81_v6, %v89_v7 }
  0xeb   :  { %2935 = vmatmul.mubr.bf16.gmra.mrb[20].mxu0 %v3336_v10  ;;  %2564 = vmatpush1.bf16.msra.mxu1 %v4212_v14  ;;  %v3298_v10 = vcombine.low %v65_v62, %v73_v63  ;;  %v3323_v13 = vcombine.high %v85_v8, %v93_v9  ;;  %v97_v14 = vld [vmem:[%s5450_s0 + $0x298] sm:$0xff] }
  0xec   :  { %2976 = vmatpush1.bf16.msra.mxu0 %v4215_v15  ;;  %2565 = vmatprep.subr.bf16.mxu1 %v4220_v16  ;;  %v105_v15 = vld [vmem:[%s5450_s0 + $0x2d8] sm:$0xff] }
  0xed   :  { %2977 = vmatprep.subr.bf16.mxu0 %v4223_v17  ;;  %2532 = vmatprep.mubr.bf16.mxu1 %v3345_v18  ;;  %v101_v16 = vld [vmem:[%s5450_s0 + $0x2b8] sm:$0xff]  ;;  %v3314_v18 = vcombine.low %v81_v6, %v89_v7 }
  0xee   :  { %2944 = vmatprep.mubr.bf16.mxu0 %v3353_v19  ;;  %v109_v17 = vld [vmem:[%s5450_s0 + $0x2f8] sm:$0xff]  ;;  %v3322_v19 = vcombine.low %v85_v8, %v93_v9 }
  0xef   :  { %2566 = vmatpush1.bf16.msra.mxu1 %v4218_v20  ;;  %v3331_v20 = vcombine.high %v97_v14, %v105_v15  ;;  %v3338_v27 = vcombine.low %v101_v16, %v109_v17 }
  0xf0   :  { %2978 = vmatpush1.bf16.msra.mxu0 %v4221_v21  ;;  %2567 = vmatprep.subr.bf16.mxu1 %v4226_v22  ;;  %v3339_v21 = vcombine.high %v101_v16, %v109_v17  ;;  %v113_v22 = vld [vmem:[%s5450_s0 + $0x318] sm:$0xff] }
  0xf1   :  { %2979 = vmatprep.subr.bf16.mxu0 %v4229_v23  ;;  %v121_v23 = vld [vmem:[%s5450_s0 + $0x358] sm:$0x77] }
  0xf2   :  { %2533 = vmatmul.mubr.bf16.gmra.mrb[24].mxu1 %v3344_v25  ;;  %v125_v25 = vld [vmem:[%s5450_s0 + $0x378] sm:$0x77]  ;;  %v3347_v28 = vcombine.high %v113_v22, %v121_v23 }
  0xf3   :  { %2945 = vmatmul.mubr.bf16.gmra.mrb[24].mxu0 %v3352_v26  ;;  %2568 = vmatpush1.bf16.msra.mxu1 %v4224_v30  ;;  %v3330_v26 = vcombine.low %v97_v14, %v105_v15  ;;  %v3355_v29 = vcombine.high %v117_v24, %v125_v25  ;;  %v3346_v30 = vcombine.low %v113_v22, %v121_v23 }
  0xf4   :  { %2980 = vmatpush1.bf16.msra.mxu0 %v4227_v31  ;;  %2569 = vmatprep.subr.bf16.mxu1 %v4232_v32  ;;  %v3354_v31 = vcombine.low %v117_v24, %v125_v25  ;;  %v384_v32 = vlaneseq }
  0xf5   :  { %2981 = vmatprep.subr.bf16.mxu0 %v4235_v33  ;;  %2575 = vmatprep.mubr.bf16.mxu1 %v3251_v34 }
  0xf6   :  { %2987 = vmatprep.mubr.bf16.mxu0 %v3259_v35  ;;  %v385_v33 = vshrl.u32 %v384_v32, 7  ;;  %v382_v35 = vld [vmem:[%s5451_s2] sm:$0x3] }
  0xf7   :  { %2570 = vmatpush1.bf16.msra.mxu1 %v4230_v36 }
  0xf8   :  { %2982 = vmatpush1.bf16.msra.mxu0 %v4233_v37  ;;  %2571 = vmatprep.subr.bf16.mxu1 %v4238_v38  ;;  %v386_v34 = vsub.s32 0, %v385_v33  ;;  %v390_v36 = vsub.s32 1, %v385_v33 }
  0xf9   :  { %2983 = vmatprep.subr.bf16.mxu0 %v4241_v39 }
  0xfa   :  { %v5375_v37 = vrot.slane %v382_v35, %v386_v34  ;;  %v5377_v38 = vrot.slane %v382_v35, %v390_v36 }
  0xfb   :  { %2572 = vmatpush1.bf16.msra.mxu1 %v4236_v40 }
  0xfc   :  { %2984 = vmatpush1.bf16.msra.mxu0 %v4239_v41  ;;  %2573 = vmatprep.subr.bf16.mxu1 %v4244_v42 }
  0xfd   :  { %2985 = vmatprep.subr.bf16.mxu0 %v4247_v43 }
  0xff   :  { %2574 = vmatpush1.bf16.msra.mxu1 %v4242_v44 }
 0x100   :  { %2986 = vmatpush1.bf16.msra.mxu0 %v4245_v45 }
 0x102   :  { %2576 = vmatmul.mubr.bf16.vlgmr.msra.gmra.mrb[0].mxu1 %v3250_v50 }
 0x103   :  { %2988 = vmatmul.mubr.bf16.vlgmr.msra.gmra.mrb[0].mxu0 %v3258_v51  ;;  %2585 = vmatprep.mubr.bf16.mxu1 %v3267_v52 }
 0x104   :  { %2997 = vmatprep.mubr.bf16.mxu0 %v3275_v53 }
 0x10a   :  { %2586 = vmatmul.mubr.bf16.gmra.mrb[4].mxu1 %v3266_v58 }
 0x10b   :  { %2998 = vmatmul.mubr.bf16.gmra.mrb[4].mxu0 %v3274_v59  ;;  %2595 = vmatprep.mubr.bf16.mxu1 %v3283_v60 }
 0x10c   :  { %3007 = vmatprep.mubr.bf16.mxu0 %v3291_v61 }
 0x112   :  { %2596 = vmatmul.mubr.bf16.gmra.mrb[8].mxu1 %v3282_v2 }
 0x113   :  { %3008 = vmatmul.mubr.bf16.gmra.mrb[8].mxu0 %v3290_v3  ;;  %2605 = vmatprep.mubr.bf16.mxu1 %v3299_v4 }
 0x114   :  { %3017 = vmatprep.mubr.bf16.mxu0 %v3307_v5 }
 0x11a   :  { %2606 = vmatmul.mubr.bf16.gmra.mrb[12].mxu1 %v3298_v10 }
 0x11b   :  { %3018 = vmatmul.mubr.bf16.gmra.mrb[12].mxu0 %v3306_v11  ;;  %2615 = vmatprep.mubr.bf16.mxu1 %v3315_v12 }
 0x11c   :  { %3027 = vmatprep.mubr.bf16.mxu0 %v3323_v13 }
 0x122   :  { %2616 = vmatmul.mubr.bf16.gmra.mrb[16].mxu1 %v3314_v18 }
 0x123   :  { %3028 = vmatmul.mubr.bf16.gmra.mrb[16].mxu0 %v3322_v19  ;;  %2625 = vmatprep.mubr.bf16.mxu1 %v3331_v20 }
 0x124   :  { %3037 = vmatprep.mubr.bf16.mxu0 %v3339_v21 }
 0x12a   :  { %2626 = vmatmul.mubr.bf16.gmra.mrb[20].mxu1 %v3330_v26 }
 0x12b   :  { %3038 = vmatmul.mubr.bf16.gmra.mrb[20].mxu0 %v3338_v27  ;;  %2635 = vmatprep.mubr.bf16.mxu1 %v3347_v28 }
 0x12c   :  { %3047 = vmatprep.mubr.bf16.mxu0 %v3355_v29 }
 0x132   :  { %2636 = vmatmul.mubr.bf16.gmra.mrb[24].mxu1 %v3346_v30 }
 0x133   :  { %3048 = vmatmul.mubr.bf16.gmra.mrb[24].mxu0 %v3354_v31 }
 0x1d5   :  { %v2577_v39 = vpop.f32.mrb[0].mxu1 }
 0x1d6   :  { %v2989_v40 = vpop.f32.mrb[0].mxu0  ;;  %v3640_v41 = vadd.f32 %v2577_v39, %v5375_v37  ;;  %v2579_v42 = vpop.f32.mrb[1].mxu1 }
 0x1d7   :  { %v2991_v43 = vpop.f32.mrb[1].mxu0  ;;  %v3642_v44 = vadd.f32 %v2579_v42, %v5377_v38  ;;  %v2581_v45 = vpop.f32.mrb[2].mxu1 }
 0x1d8   :  { %v2993_v46 = vpop.f32.mrb[2].mxu0  ;;  %v3641_v47 = vadd.f32 %v3640_v41, %v2989_v40  ;;  %v3644_v48 = vadd.f32 %v2581_v45, %v5375_v37  ;;  %v2583_v49 = vpop.f32.mrb[3].mxu1 }
 0x1d9   :  { %v2995_v50 = vpop.f32.mrb[3].mxu0  ;;  %v3643_v51 = vadd.f32 %v3642_v44, %v2991_v43  ;;  %v3646_v52 = vadd.f32 %v2583_v49, %v5377_v38 }
 0x1da   :  { %vm3058_vm0 = vcmp.gt.f32.partialorder %v3641_v47, 0.0  ;;  %v3086_v53 = vmul.f32 0.2, %v3641_v47  ;;  %v3645_v54 = vadd.f32 %v3644_v48, %v2993_v46 }
 0x1db   :  { %vm3059_vm1 = vcmp.gt.f32.partialorder %v3643_v51, 0.0  ;;  %v3087_v55 = vmul.f32 0.2, %v3643_v51  ;;  %v3647_v56 = vadd.f32 %v3646_v52, %v2995_v50 }
 0x1dc   :  { %v3114_v57 = vsel %vm3058_vm0, %v3641_v47, %v3086_v53  ;;  %vm3060_vm2 = vcmp.gt.f32.partialorder %v3645_v54, 0.0  ;;  %v3088_v58 = vmul.f32 0.2, %v3645_v54 }
 0x1dd   :  { %v3115_v59 = vsel %vm3059_vm1, %v3643_v51, %v3087_v55  ;;  %vm3061_vm3 = vcmp.gt.f32.partialorder %v3647_v56, 0.0  ;;  %v3089_v60 = vmul.f32 0.2, %v3647_v56  ;;  %v2587_v61 = vpop.f32.mrb[4].mxu1 }
 0x1de   :  { %v2999_v62 = vpop.f32.mrb[4].mxu0  ;;  %v3626_v63 = vpack.c.bf16 %v3115_v59, %v3114_v57  ;;  %v3116_v0 = vsel %vm3060_vm2, %v3645_v54, %v3088_v58  ;;  %v3648_v1 = vadd.f32 %v2587_v61, %v5375_v37  ;;  %v2589_v2 = vpop.f32.mrb[5].mxu1 }
 0x1df   :  { %v3001_v3 = vpop.f32.mrb[5].mxu0  ;;  %v3117_v4 = vsel %vm3061_vm3, %v3647_v56, %v3089_v60  ;;  %v3650_v5 = vadd.f32 %v2589_v2, %v5377_v38  ;;  %v2591_v6 = vpop.f32.mrb[6].mxu1 }
 0x1e0   :  { %v3003_v7 = vpop.f32.mrb[6].mxu0  ;;  %3226 = vst [vmem:[%s5452_s3] sm:$0xff] %v3626_v63  ;;  %v3627_v8 = vpack.c.bf16 %v3117_v4, %v3116_v0  ;;  %v3649_v9 = vadd.f32 %v3648_v1, %v2999_v62  ;;  %v3652_v10 = vadd.f32 %v2591_v6, %v5375_v37  ;;  %v2593_v11 = vpop.f32.mrb[7].mxu1 }
 0x1e1   :  { %v3005_v12 = vpop.f32.mrb[7].mxu0  ;;  %v3651_v13 = vadd.f32 %v3650_v5, %v3001_v3  ;;  %v3654_v14 = vadd.f32 %v2593_v11, %v5377_v38 }
 0x1e2   :  { %3227 = vst [vmem:[%s5452_s3 + $0x8] sm:$0xff] %v3627_v8  ;;  %vm3062_vm4 = vcmp.gt.f32.partialorder %v3649_v9, 0.0  ;;  %v3090_v15 = vmul.f32 0.2, %v3649_v9  ;;  %v3653_v16 = vadd.f32 %v3652_v10, %v3003_v7 }
 0x1e3   :  { %vm3063_vm5 = vcmp.gt.f32.partialorder %v3651_v13, 0.0  ;;  %v3091_v17 = vmul.f32 0.2, %v3651_v13  ;;  %v3655_v18 = vadd.f32 %v3654_v14, %v3005_v12 }
 0x1e4   :  { %v3118_v19 = vsel %vm3062_vm4, %v3649_v9, %v3090_v15  ;;  %vm3064_vm6 = vcmp.gt.f32.partialorder %v3653_v16, 0.0  ;;  %v3092_v20 = vmul.f32 0.2, %v3653_v16 }
 0x1e5   :  { %v3119_v21 = vsel %vm3063_vm5, %v3651_v13, %v3091_v17  ;;  %vm3065_vm7 = vcmp.gt.f32.partialorder %v3655_v18, 0.0  ;;  %v3093_v22 = vmul.f32 0.2, %v3655_v18  ;;  %v2597_v23 = vpop.f32.mrb[8].mxu1 }
 0x1e6   :  { %v3009_v24 = vpop.f32.mrb[8].mxu0  ;;  %v3628_v25 = vpack.c.bf16 %v3119_v21, %v3118_v19  ;;  %v3120_v26 = vsel %vm3064_vm6, %v3653_v16, %v3092_v20  ;;  %v3656_v27 = vadd.f32 %v2597_v23, %v5375_v37  ;;  %v2599_v28 = vpop.f32.mrb[9].mxu1 }
 0x1e7   :  { %v3011_v29 = vpop.f32.mrb[9].mxu0  ;;  %v3121_v30 = vsel %vm3065_vm7, %v3655_v18, %v3093_v22  ;;  %v3658_v31 = vadd.f32 %v2599_v28, %v5377_v38  ;;  %v2601_v32 = vpop.f32.mrb[10].mxu1 }
 0x1e8   :  { %v3013_v33 = vpop.f32.mrb[10].mxu0  ;;  %3228 = vst [vmem:[%s5452_s3 + $0x10] sm:$0xff] %v3628_v25  ;;  %v3629_v34 = vpack.c.bf16 %v3121_v30, %v3120_v26  ;;  %v3657_v35 = vadd.f32 %v3656_v27, %v3009_v24  ;;  %v3660_v36 = vadd.f32 %v2601_v32, %v5375_v37  ;;  %v2603_v39 = vpop.f32.mrb[11].mxu1 }
 0x1e9   :  { %v3015_v40 = vpop.f32.mrb[11].mxu0  ;;  %v3659_v41 = vadd.f32 %v3658_v31, %v3011_v29  ;;  %v3662_v42 = vadd.f32 %v2603_v39, %v5377_v38 }
 0x1ea   :  { %3229 = vst [vmem:[%s5452_s3 + $0x18] sm:$0xff] %v3629_v34  ;;  %vm3066_vm8 = vcmp.gt.f32.partialorder %v3657_v35, 0.0  ;;  %v3094_v43 = vmul.f32 0.2, %v3657_v35  ;;  %v3661_v44 = vadd.f32 %v3660_v36, %v3013_v33 }
 0x1eb   :  { %vm3067_vm9 = vcmp.gt.f32.partialorder %v3659_v41, 0.0  ;;  %v3095_v45 = vmul.f32 0.2, %v3659_v41  ;;  %v3663_v46 = vadd.f32 %v3662_v42, %v3015_v40 }
 0x1ec   :  { %v3122_v47 = vsel %vm3066_vm8, %v3657_v35, %v3094_v43  ;;  %vm3068_vm10 = vcmp.gt.f32.partialorder %v3661_v44, 0.0  ;;  %v3096_v48 = vmul.f32 0.2, %v3661_v44 }
 0x1ed   :  { %v3123_v49 = vsel %vm3067_vm9, %v3659_v41, %v3095_v45  ;;  %vm3069_vm11 = vcmp.gt.f32.partialorder %v3663_v46, 0.0  ;;  %v3097_v50 = vmul.f32 0.2, %v3663_v46  ;;  %v2607_v51 = vpop.f32.mrb[12].mxu1 }
 0x1ee   :  { %v3019_v52 = vpop.f32.mrb[12].mxu0  ;;  %v3630_v53 = vpack.c.bf16 %v3123_v49, %v3122_v47  ;;  %v3124_v54 = vsel %vm3068_vm10, %v3661_v44, %v3096_v48  ;;  %v3664_v55 = vadd.f32 %v2607_v51, %v5375_v37  ;;  %v2609_v56 = vpop.f32.mrb[13].mxu1 }
 0x1ef   :  { %v3021_v57 = vpop.f32.mrb[13].mxu0  ;;  %v3125_v58 = vsel %vm3069_vm11, %v3663_v46, %v3097_v50  ;;  %v3666_v59 = vadd.f32 %v2609_v56, %v5377_v38  ;;  %v2611_v60 = vpop.f32.mrb[14].mxu1 }
 0x1f0   :  { %v3023_v61 = vpop.f32.mrb[14].mxu0  ;;  %3230 = vst [vmem:[%s5452_s3 + $0x20] sm:$0xff] %v3630_v53  ;;  %v3631_v62 = vpack.c.bf16 %v3125_v58, %v3124_v54  ;;  %v3665_v63 = vadd.f32 %v3664_v55, %v3019_v52  ;;  %v3668_v0 = vadd.f32 %v2611_v60, %v5375_v37  ;;  %v2613_v1 = vpop.f32.mrb[15].mxu1 }
 0x1f1   :  { %v3025_v2 = vpop.f32.mrb[15].mxu0  ;;  %v3667_v3 = vadd.f32 %v3666_v59, %v3021_v57  ;;  %v3670_v4 = vadd.f32 %v2613_v1, %v5377_v38 }
 0x1f2   :  { %3231 = vst [vmem:[%s5452_s3 + $0x28] sm:$0xff] %v3631_v62  ;;  %vm3070_vm12 = vcmp.gt.f32.partialorder %v3665_v63, 0.0  ;;  %v3098_v5 = vmul.f32 0.2, %v3665_v63  ;;  %v3669_v6 = vadd.f32 %v3668_v0, %v3023_v61 }
 0x1f3   :  { %vm3071_vm13 = vcmp.gt.f32.partialorder %v3667_v3, 0.0  ;;  %v3099_v7 = vmul.f32 0.2, %v3667_v3  ;;  %v3671_v8 = vadd.f32 %v3670_v4, %v3025_v2 }
 0x1f4   :  { %v3126_v9 = vsel %vm3070_vm12, %v3665_v63, %v3098_v5  ;;  %vm3072_vm14 = vcmp.gt.f32.partialorder %v3669_v6, 0.0  ;;  %v3100_v10 = vmul.f32 0.2, %v3669_v6 }
 0x1f5   :  { %v3127_v11 = vsel %vm3071_vm13, %v3667_v3, %v3099_v7  ;;  %vm3073_vm15 = vcmp.gt.f32.partialorder %v3671_v8, 0.0  ;;  %v3101_v12 = vmul.f32 0.2, %v3671_v8  ;;  %v2617_v13 = vpop.f32.mrb[16].mxu1 }
 0x1f6   :  { %v3029_v14 = vpop.f32.mrb[16].mxu0  ;;  %v3632_v15 = vpack.c.bf16 %v3127_v11, %v3126_v9  ;;  %v3128_v16 = vsel %vm3072_vm14, %v3669_v6, %v3100_v10  ;;  %v3672_v17 = vadd.f32 %v2617_v13, %v5375_v37  ;;  %v2619_v18 = vpop.f32.mrb[17].mxu1 }
 0x1f7   :  { %v3031_v19 = vpop.f32.mrb[17].mxu0  ;;  %v3129_v20 = vsel %vm3073_vm15, %v3671_v8, %v3101_v12  ;;  %v3674_v21 = vadd.f32 %v2619_v18, %v5377_v38  ;;  %v2621_v22 = vpop.f32.mrb[18].mxu1 }
 0x1f8   :  { %v3033_v23 = vpop.f32.mrb[18].mxu0  ;;  %3232 = vst [vmem:[%s5452_s3 + $0x30] sm:$0xff] %v3632_v15  ;;  %v3633_v24 = vpack.c.bf16 %v3129_v20, %v3128_v16  ;;  %v3673_v25 = vadd.f32 %v3672_v17, %v3029_v14  ;;  %v3676_v26 = vadd.f32 %v2621_v22, %v5375_v37  ;;  %v2623_v27 = vpop.f32.mrb[19].mxu1 }
 0x1f9   :  { %v3035_v28 = vpop.f32.mrb[19].mxu0  ;;  %v3675_v29 = vadd.f32 %v3674_v21, %v3031_v19  ;;  %v3678_v30 = vadd.f32 %v2623_v27, %v5377_v38 }
 0x1fa   :  { %3233 = vst [vmem:[%s5452_s3 + $0x38] sm:$0xff] %v3633_v24  ;;  %vm3074_vm0 = vcmp.gt.f32.partialorder %v3673_v25, 0.0  ;;  %v3102_v31 = vmul.f32 0.2, %v3673_v25  ;;  %v3677_v32 = vadd.f32 %v3676_v26, %v3033_v23 }
 0x1fb   :  { %vm3075_vm1 = vcmp.gt.f32.partialorder %v3675_v29, 0.0  ;;  %v3103_v33 = vmul.f32 0.2, %v3675_v29  ;;  %v3679_v34 = vadd.f32 %v3678_v30, %v3035_v28 }
 0x1fc   :  { %v3130_v35 = vsel %vm3074_vm0, %v3673_v25, %v3102_v31  ;;  %vm3076_vm2 = vcmp.gt.f32.partialorder %v3677_v32, 0.0  ;;  %v3104_v36 = vmul.f32 0.2, %v3677_v32 }
 0x1fd   :  { %v3131_v39 = vsel %vm3075_vm1, %v3675_v29, %v3103_v33  ;;  %vm3077_vm3 = vcmp.gt.f32.partialorder %v3679_v34, 0.0  ;;  %v3105_v40 = vmul.f32 0.2, %v3679_v34  ;;  %v2627_v41 = vpop.f32.mrb[20].mxu1 }
 0x1fe   :  { %v3039_v42 = vpop.f32.mrb[20].mxu0  ;;  %v3634_v43 = vpack.c.bf16 %v3131_v39, %v3130_v35  ;;  %v3132_v44 = vsel %vm3076_vm2, %v3677_v32, %v3104_v36  ;;  %v3680_v45 = vadd.f32 %v2627_v41, %v5375_v37  ;;  %v2629_v46 = vpop.f32.mrb[21].mxu1 }
 0x1ff   :  { %v3041_v47 = vpop.f32.mrb[21].mxu0  ;;  %v3133_v48 = vsel %vm3077_vm3, %v3679_v34, %v3105_v40  ;;  %v3682_v49 = vadd.f32 %v2629_v46, %v5377_v38  ;;  %v2631_v50 = vpop.f32.mrb[22].mxu1 }
 0x200   :  { %v3043_v51 = vpop.f32.mrb[22].mxu0  ;;  %3234 = vst [vmem:[%s5452_s3 + $0x40] sm:$0xff] %v3634_v43  ;;  %v3635_v52 = vpack.c.bf16 %v3133_v48, %v3132_v44  ;;  %v3681_v53 = vadd.f32 %v3680_v45, %v3039_v42  ;;  %v3684_v54 = vadd.f32 %v2631_v50, %v5375_v37  ;;  %v2633_v55 = vpop.f32.mrb[23].mxu1 }
 0x201   :  { %v3045_v56 = vpop.f32.mrb[23].mxu0  ;;  %v3683_v57 = vadd.f32 %v3682_v49, %v3041_v47  ;;  %v3686_v58 = vadd.f32 %v2633_v55, %v5377_v38 }
 0x202   :  { %3235 = vst [vmem:[%s5452_s3 + $0x48] sm:$0xff] %v3635_v52  ;;  %vm3078_vm4 = vcmp.gt.f32.partialorder %v3681_v53, 0.0  ;;  %v3106_v59 = vmul.f32 0.2, %v3681_v53  ;;  %v3685_v60 = vadd.f32 %v3684_v54, %v3043_v51 }
 0x203   :  { %vm3079_vm5 = vcmp.gt.f32.partialorder %v3683_v57, 0.0  ;;  %v3107_v61 = vmul.f32 0.2, %v3683_v57  ;;  %v3687_v62 = vadd.f32 %v3686_v58, %v3045_v56 }
 0x204   :  { %v3134_v63 = vsel %vm3078_vm4, %v3681_v53, %v3106_v59  ;;  %vm3080_vm6 = vcmp.gt.f32.partialorder %v3685_v60, 0.0  ;;  %v3108_v0 = vmul.f32 0.2, %v3685_v60 }
 0x205   :  { %v3135_v1 = vsel %vm3079_vm5, %v3683_v57, %v3107_v61  ;;  %vm3081_vm7 = vcmp.gt.f32.partialorder %v3687_v62, 0.0  ;;  %v3109_v2 = vmul.f32 0.2, %v3687_v62  ;;  %v2637_v3 = vpop.f32.mrb[24].mxu1 }
 0x206   :  { %v3049_v4 = vpop.f32.mrb[24].mxu0  ;;  %v3636_v5 = vpack.c.bf16 %v3135_v1, %v3134_v63  ;;  %v3136_v6 = vsel %vm3080_vm6, %v3685_v60, %v3108_v0  ;;  %v3688_v7 = vadd.f32 %v2637_v3, %v5375_v37  ;;  %v2639_v8 = vpop.f32.mrb[25].mxu1 }
 0x207   :  { %v3051_v9 = vpop.f32.mrb[25].mxu0  ;;  %v3137_v10 = vsel %vm3081_vm7, %v3687_v62, %v3109_v2  ;;  %v3690_v11 = vadd.f32 %v2639_v8, %v5377_v38  ;;  %v2641_v12 = vpop.f32.mrb[26].mxu1 }
 0x208   :  { %v3053_v13 = vpop.f32.mrb[26].mxu0  ;;  %3236 = vst [vmem:[%s5452_s3 + $0x50] sm:$0xff] %v3636_v5  ;;  %v3637_v14 = vpack.c.bf16 %v3137_v10, %v3136_v6  ;;  %v3689_v15 = vadd.f32 %v3688_v7, %v3049_v4  ;;  %v3692_v16 = vadd.f32 %v2641_v12, %v5375_v37  ;;  %v2643_v17 = vpop.f32.mrb[27].mxu1 }
 0x209   :  { %v3055_v18 = vpop.f32.mrb[27].mxu0  ;;  %v3691_v19 = vadd.f32 %v3690_v11, %v3051_v9  ;;  %v3694_v20 = vadd.f32 %v2643_v17, %v5377_v38 }
 0x20a   :  { %3237 = vst [vmem:[%s5452_s3 + $0x58] sm:$0xff] %v3637_v14  ;;  %vm3082_vm8 = vcmp.gt.f32.partialorder %v3689_v15, 0.0  ;;  %v3110_v21 = vmul.f32 0.2, %v3689_v15  ;;  %v3693_v22 = vadd.f32 %v3692_v16, %v3053_v13 }
 0x20b   :  { %vm3083_vm9 = vcmp.gt.f32.partialorder %v3691_v19, 0.0  ;;  %v3111_v23 = vmul.f32 0.2, %v3691_v19  ;;  %v3695_v24 = vadd.f32 %v3694_v20, %v3055_v18 }
 0x20c   :  { %v3138_v25 = vsel %vm3082_vm8, %v3689_v15, %v3110_v21  ;;  %vm3084_vm10 = vcmp.gt.f32.partialorder %v3693_v22, 0.0  ;;  %v3112_v26 = vmul.f32 0.2, %v3693_v22 }
 0x20d   :  { %v3139_v27 = vsel %vm3083_vm9, %v3691_v19, %v3111_v23  ;;  %vm3085_vm11 = vcmp.gt.f32.partialorder %v3695_v24, 0.0  ;;  %v3113_v37 = vmul.f32 0.2, %v3695_v24 }
 0x20e   :  { %v3638_v28 = vpack.c.bf16 %v3139_v27, %v3138_v25  ;;  %v3140_v29 = vsel %vm3084_vm10, %v3693_v22, %v3112_v26 }
 0x20f   :  { %v3141_v30 = vsel %vm3085_vm11, %v3695_v24, %v3113_v37 }
 0x210   :  { %3238 = vst [vmem:[%s5452_s3 + $0x60] sm:$0xff] %v3638_v28  ;;  %v3639_v38 = vpack.c.bf16 %v3141_v30, %v3140_v29 }
 0x212   :  { %3239 = vst [vmem:[%s5452_s3 + $0x68] sm:$0x77] %v3639_v38 }

// kernel: forward.7
= control target key start
LH: loop header
LB: loop body
LE: loop exit
PB: predicated region body
PF: predicated region fallthrough
CT: control target
= control target key end

     0   :  { %s14515_s1 = inlined_call_operand.vmem [shape: bf16[4096,512], index: 1, kind: input, shape index: {}]   ;;  %s14516_s0 = inlined_call_operand.vmem [shape: bf16[20,4096], index: 0, kind: input, shape index: {}]   ;;  %s14517_s2 = inlined_call_operand.vmem [shape: f32[1,512], index: 2, kind: input, shape index: {}]   ;;  %s14518_s3 = inlined_call_operand.vmem [shape: bf16[20,512], index: 3, kind: output, shape index: {}]  }
   0x1   :  { %v9570_v0 = vld [vmem:[%s14515_s1 + $0x4] ss:$16 sps:$4 sm:$0xff]   ;;  %v9572_v1 = vld [vmem:[%s14515_s1 + $0xc] ss:$16 sps:$4 sm:$0xff]   ;;  %v9574_v2 = vld [vmem:[%s14515_s1] ss:$16 sps:$4 sm:$0xff]  }
   0x2   :  { %6500 = vmatprep.subr.bf16.mxu0 %v9570_v0  ;;  %v9575_v3 = vld [vmem:[%s14515_s1 + $0x8] ss:$16 sps:$4 sm:$0xff]   ;;  %7316 = vmatprep.subr.bf16.mxu1 %v9572_v1  ;;  %v9576_v4 = vld [vmem:[%s14515_s1 + $0x24] ss:$16 sps:$4 sm:$0xff]   ;;  %v9578_v5 = vld [vmem:[%s14515_s1 + $0x2c] ss:$16 sps:$4 sm:$0xff]  }
   0x3   :  { %6501 = vmatpush1.bf16.msra.mxu0 %v9574_v2  ;;  %7317 = vmatpush1.bf16.msra.mxu1 %v9575_v3  ;;  %v9580_v6 = vld [vmem:[%s14515_s1 + $0x20] ss:$16 sps:$4 sm:$0xff]   ;;  %v9581_v7 = vld [vmem:[%s14515_s1 + $0x28] ss:$16 sps:$4 sm:$0xff]   ;;  %v9582_v8 = vld [vmem:[%s14515_s1 + $0x44] ss:$16 sps:$4 sm:$0xff]  }
   0x4   :  { %6502 = vmatprep.subr.bf16.mxu0 %v9576_v4  ;;  %7318 = vmatprep.subr.bf16.mxu1 %v9578_v5  ;;  %v9584_v9 = vld [vmem:[%s14515_s1 + $0x4c] ss:$16 sps:$4 sm:$0xff]   ;;  %v9586_v10 = vld [vmem:[%s14515_s1 + $0x40] ss:$16 sps:$4 sm:$0xff]   ;;  %v9587_v11 = vld [vmem:[%s14515_s1 + $0x48] ss:$16 sps:$4 sm:$0xff]  }
   0x5   :  { %v9588_v12 = vld [vmem:[%s14515_s1 + $0x64] ss:$16 sps:$4 sm:$0xff]   ;;  %v9590_v13 = vld [vmem:[%s14515_s1 + $0x6c] ss:$16 sps:$4 sm:$0xff]   ;;  %v9592_v14 = vld [vmem:[%s14515_s1 + $0x60] ss:$16 sps:$4 sm:$0xff]  }
   0x6   :  { %v9593_v15 = vld [vmem:[%s14515_s1 + $0x68] ss:$16 sps:$4 sm:$0xff]   ;;  %v9594_v16 = vld [vmem:[%s14515_s1 + $0x84] ss:$16 sps:$4 sm:$0xff]   ;;  %v9596_v17 = vld [vmem:[%s14515_s1 + $0x8c] ss:$16 sps:$4 sm:$0xff]  }
   0x7   :  { %6503 = vmatpush1.bf16.msra.mxu0 %v9580_v6  ;;  %7319 = vmatpush1.bf16.msra.mxu1 %v9581_v7  ;;  %v9598_v18 = vld [vmem:[%s14515_s1 + $0x80] ss:$16 sps:$4 sm:$0xff]   ;;  %v9599_v19 = vld [vmem:[%s14515_s1 + $0x88] ss:$16 sps:$4 sm:$0xff]   ;;  %v9600_v20 = vld [vmem:[%s14515_s1 + $0xa4] ss:$16 sps:$4 sm:$0xff]  }
   0x8   :  { %6504 = vmatprep.subr.bf16.mxu0 %v9582_v8  ;;  %7320 = vmatprep.subr.bf16.mxu1 %v9584_v9  ;;  %v9602_v21 = vld [vmem:[%s14515_s1 + $0xac] ss:$16 sps:$4 sm:$0xff]   ;;  %v9604_v22 = vld [vmem:[%s14515_s1 + $0xa0] ss:$16 sps:$4 sm:$0xff]   ;;  %v9605_v23 = vld [vmem:[%s14515_s1 + $0xa8] ss:$16 sps:$4 sm:$0xff]  }
   0x9   :  { %v9606_v24 = vld [vmem:[%s14515_s1 + $0xc4] ss:$16 sps:$4 sm:$0xff]   ;;  %v9608_v25 = vld [vmem:[%s14515_s1 + $0xcc] ss:$16 sps:$4 sm:$0xff]   ;;  %v9610_v26 = vld [vmem:[%s14515_s1 + $0xc0] ss:$16 sps:$4 sm:$0xff]  }
   0xa   :  { %v9611_v27 = vld [vmem:[%s14515_s1 + $0xc8] ss:$16 sps:$4 sm:$0xff]   ;;  %v9612_v28 = vld [vmem:[%s14515_s1 + $0xe4] ss:$16 sps:$4 sm:$0xff]   ;;  %v9614_v29 = vld [vmem:[%s14515_s1 + $0xec] ss:$16 sps:$4 sm:$0xff]  }
   0xb   :  { %6505 = vmatpush1.bf16.msra.mxu0 %v9586_v10  ;;  %7321 = vmatpush1.bf16.msra.mxu1 %v9587_v11  ;;  %v9616_v30 = vld [vmem:[%s14515_s1 + $0xe0] ss:$16 sps:$4 sm:$0xff]   ;;  %v9617_v31 = vld [vmem:[%s14515_s1 + $0xe8] ss:$16 sps:$4 sm:$0xff]   ;;  %v9618_v32 = vld [vmem:[%s14515_s1 + $0x104] ss:$16 sps:$4 sm:$0xff]  }
   0xc   :  { %6506 = vmatprep.subr.bf16.mxu0 %v9588_v12  ;;  %7322 = vmatprep.subr.bf16.mxu1 %v9590_v13  ;;  %v9620_v33 = vld [vmem:[%s14515_s1 + $0x10c] ss:$16 sps:$4 sm:$0xff]   ;;  %v9622_v34 = vld [vmem:[%s14515_s1 + $0x100] ss:$16 sps:$4 sm:$0xff]   ;;  %v9623_v35 = vld [vmem:[%s14515_s1 + $0x108] ss:$16 sps:$4 sm:$0xff]  }
   0xd   :  { %v9624_v36 = vld [vmem:[%s14515_s1 + $0x124] ss:$16 sps:$4 sm:$0xff]   ;;  %v9626_v37 = vld [vmem:[%s14515_s1 + $0x12c] ss:$16 sps:$4 sm:$0xff]   ;;  %v9628_v38 = vld [vmem:[%s14515_s1 + $0x120] ss:$16 sps:$4 sm:$0xff]  }
   0xe   :  { %v9629_v39 = vld [vmem:[%s14515_s1 + $0x128] ss:$16 sps:$4 sm:$0xff]   ;;  %v9630_v40 = vld [vmem:[%s14515_s1 + $0x144] ss:$16 sps:$4 sm:$0xff]   ;;  %v9632_v41 = vld [vmem:[%s14515_s1 + $0x14c] ss:$16 sps:$4 sm:$0xff]  }
   0xf   :  { %6507 = vmatpush1.bf16.msra.mxu0 %v9592_v14  ;;  %7323 = vmatpush1.bf16.msra.mxu1 %v9593_v15  ;;  %v9634_v42 = vld [vmem:[%s14515_s1 + $0x140] ss:$16 sps:$4 sm:$0xff]   ;;  %v9635_v43 = vld [vmem:[%s14515_s1 + $0x148] ss:$16 sps:$4 sm:$0xff]   ;;  %v9636_v44 = vld [vmem:[%s14515_s1 + $0x164] ss:$16 sps:$4 sm:$0xff]  }
  0x10   :  { %6508 = vmatprep.subr.bf16.mxu0 %v9594_v16  ;;  %7324 = vmatprep.subr.bf16.mxu1 %v9596_v17  ;;  %v9638_v45 = vld [vmem:[%s14515_s1 + $0x16c] ss:$16 sps:$4 sm:$0xff]   ;;  %v14_v46 = vld [vmem:[%s14516_s0] sm:$0xff]  ;;  %v9641_v49 = vld [vmem:[%s14515_s1 + $0x168] ss:$16 sps:$4 sm:$0xff]  }
  0x11   :  { %v30_v47 = vld [vmem:[%s14516_s0 + $0x80] sm:$0xff]  ;;  %v9644_v52 = vld [vmem:[%s14515_s1 + $0x18c] ss:$16 sps:$4 sm:$0xff]   ;;  %v9647_v54 = vld [vmem:[%s14515_s1 + $0x188] ss:$16 sps:$4 sm:$0xff]  }
  0x12   :  { %v9640_v48 = vld [vmem:[%s14515_s1 + $0x160] ss:$16 sps:$4 sm:$0xff]   ;;  %v8219_v50 = vcombine.high %v14_v46, %v30_v47  ;;  %v9642_v51 = vld [vmem:[%s14515_s1 + $0x184] ss:$16 sps:$4 sm:$0xff]   ;;  %v9650_v56 = vld [vmem:[%s14515_s1 + $0x1ac] ss:$16 sps:$4 sm:$0xff]   ;;  %v8218_v5 = vcombine.low %v14_v46, %v30_v47 }
  0x13   :  { %6509 = vmatpush1.bf16.msra.mxu0 %v9598_v18  ;;  %7325 = vmatpush1.bf16.msra.mxu1 %v9599_v19  ;;  %v9646_v53 = vld [vmem:[%s14515_s1 + $0x180] ss:$16 sps:$4 sm:$0xff]   ;;  %v9648_v55 = vld [vmem:[%s14515_s1 + $0x1a4] ss:$16 sps:$4 sm:$0xff]   ;;  %v9653_v58 = vld [vmem:[%s14515_s1 + $0x1a8] ss:$16 sps:$4 sm:$0xff]  }
  0x14   :  { %6510 = vmatprep.subr.bf16.mxu0 %v9600_v20  ;;  %7326 = vmatprep.subr.bf16.mxu1 %v9602_v21  ;;  %v9652_v57 = vld [vmem:[%s14515_s1 + $0x1a0] ss:$16 sps:$4 sm:$0xff]   ;;  %v9654_v59 = vld [vmem:[%s14515_s1 + $0x1c4] ss:$16 sps:$4 sm:$0xff]   ;;  %v9656_v60 = vld [vmem:[%s14515_s1 + $0x1cc] ss:$16 sps:$4 sm:$0xff]  }
  0x15   :  { %6532 = vmatprep.mubr.bf16.mxu0 %v8219_v50  ;;  %7348 = vmatprep.mubr.bf16.mxu1 %v8219_v50  ;;  %v9658_v61 = vld [vmem:[%s14515_s1 + $0x1c0] ss:$16 sps:$4 sm:$0xff]   ;;  %v9659_v62 = vld [vmem:[%s14515_s1 + $0x1c8] ss:$16 sps:$4 sm:$0xff]   ;;  %v9660_v63 = vld [vmem:[%s14515_s1 + $0x1e4] ss:$16 sps:$4 sm:$0xff]  }
  0x16   :  { %v9662_v0 = vld [vmem:[%s14515_s1 + $0x1ec] ss:$16 sps:$4 sm:$0xff]   ;;  %v9664_v1 = vld [vmem:[%s14515_s1 + $0x1e0] ss:$16 sps:$4 sm:$0xff]   ;;  %v9665_v2 = vld [vmem:[%s14515_s1 + $0x1e8] ss:$16 sps:$4 sm:$0xff]  }
  0x17   :  { %6511 = vmatpush1.bf16.msra.mxu0 %v9604_v22  ;;  %7327 = vmatpush1.bf16.msra.mxu1 %v9605_v23  ;;  %v9668_v3 = vld [vmem:[%s14515_s1 + $0x204] ss:$16 sps:$4 sm:$0xff]   ;;  %v9671_v4 = vld [vmem:[%s14515_s1 + $0x20c] ss:$16 sps:$4 sm:$0xff]   ;;  %v9666_v6 = vld [vmem:[%s14515_s1 + $0x200] ss:$16 sps:$4 sm:$0xff]  }
  0x18   :  { %6512 = vmatprep.subr.bf16.mxu0 %v9606_v24  ;;  %7328 = vmatprep.subr.bf16.mxu1 %v9608_v25  ;;  %v9669_v7 = vld [vmem:[%s14515_s1 + $0x208] ss:$16 sps:$4 sm:$0xff]   ;;  %v9674_v8 = vld [vmem:[%s14515_s1 + $0x224] ss:$16 sps:$4 sm:$0xff]   ;;  %v9677_v9 = vld [vmem:[%s14515_s1 + $0x22c] ss:$16 sps:$4 sm:$0xff]  }
  0x19   :  { %v9672_v10 = vld [vmem:[%s14515_s1 + $0x220] ss:$16 sps:$4 sm:$0xff]   ;;  %v9675_v11 = vld [vmem:[%s14515_s1 + $0x228] ss:$16 sps:$4 sm:$0xff]   ;;  %v9680_v12 = vld [vmem:[%s14515_s1 + $0x244] ss:$16 sps:$4 sm:$0xff]  }
  0x1a   :  { %v9683_v13 = vld [vmem:[%s14515_s1 + $0x24c] ss:$16 sps:$4 sm:$0xff]   ;;  %v9678_v14 = vld [vmem:[%s14515_s1 + $0x240] ss:$16 sps:$4 sm:$0xff]   ;;  %v9681_v15 = vld [vmem:[%s14515_s1 + $0x248] ss:$16 sps:$4 sm:$0xff]  }
  0x1b   :  { %6513 = vmatpush1.bf16.msra.mxu0 %v9610_v26  ;;  %7329 = vmatpush1.bf16.msra.mxu1 %v9611_v27  ;;  %v9686_v16 = vld [vmem:[%s14515_s1 + $0x264] ss:$16 sps:$4 sm:$0xff]   ;;  %v9689_v17 = vld [vmem:[%s14515_s1 + $0x26c] ss:$16 sps:$4 sm:$0xff]   ;;  %v9684_v18 = vld [vmem:[%s14515_s1 + $0x260] ss:$16 sps:$4 sm:$0xff]  }
  0x1c   :  { %6514 = vmatprep.subr.bf16.mxu0 %v9612_v28  ;;  %7330 = vmatprep.subr.bf16.mxu1 %v9614_v29  ;;  %v9687_v19 = vld [vmem:[%s14515_s1 + $0x268] ss:$16 sps:$4 sm:$0xff]   ;;  %v9692_v20 = vld [vmem:[%s14515_s1 + $0x284] ss:$16 sps:$4 sm:$0xff]   ;;  %v9695_v21 = vld [vmem:[%s14515_s1 + $0x28c] ss:$16 sps:$4 sm:$0xff]  }
  0x1d   :  { %v9690_v22 = vld [vmem:[%s14515_s1 + $0x280] ss:$16 sps:$4 sm:$0xff]   ;;  %v9693_v23 = vld [vmem:[%s14515_s1 + $0x288] ss:$16 sps:$4 sm:$0xff]   ;;  %v9698_v24 = vld [vmem:[%s14515_s1 + $0x2a4] ss:$16 sps:$4 sm:$0xff]  }
  0x1e   :  { %v46_v25 = vld [vmem:[%s14516_s0 + $0x100] sm:$0x33]  ;;  %v9701_v26 = vld [vmem:[%s14515_s1 + $0x2ac] ss:$16 sps:$4 sm:$0xff]  }
  0x1f   :  { %6515 = vmatpush1.bf16.msra.mxu0 %v9616_v30  ;;  %7331 = vmatpush1.bf16.msra.mxu1 %v9617_v31  ;;  %v8251_v27 = vcombine.high %v46_v25, %v46_v25  ;;  %v8250_v28 = vcombine.low %v46_v25, %v46_v25  ;;  %v9696_v29 = vld [vmem:[%s14515_s1 + $0x2a0] ss:$16 sps:$4 sm:$0xff]   ;;  %v9699_v30 = vld [vmem:[%s14515_s1 + $0x2a8] ss:$16 sps:$4 sm:$0xff]   ;;  %v9704_v31 = vld [vmem:[%s14515_s1 + $0x2c4] ss:$16 sps:$4 sm:$0xff]  }
  0x20   :  { %6516 = vmatprep.subr.bf16.mxu0 %v9618_v32  ;;  %7332 = vmatprep.subr.bf16.mxu1 %v9620_v33  ;;  %v9707_v32 = vld [vmem:[%s14515_s1 + $0x2cc] ss:$16 sps:$4 sm:$0xff]   ;;  %v9722_v46 = vld [vmem:[%s14515_s1 + $0x324] ss:$16 sps:$4 sm:$0xff]  }
  0x21   :  { %v11440_v33 = vld [vmem:[%s14516_s0 + $0x8] sm:$0xff]  ;;  %v9728_v50 = vld [vmem:[%s14515_s1 + $0x344] ss:$16 sps:$4 sm:$0xff]  }
  0x22   :  { %v9725_v47 = vld [vmem:[%s14515_s1 + $0x32c] ss:$16 sps:$4 sm:$0xff]  }
  0x23   :  { %6517 = vmatpush1.bf16.msra.mxu0 %v9622_v34  ;;  %7333 = vmatpush1.bf16.msra.mxu1 %v9623_v35  ;;  %v11445_v34 = vld [vmem:[%s14516_s0 + $0x88] sm:$0xff]  ;;  %v9702_v35 = vld [vmem:[%s14515_s1 + $0x2c0] ss:$16 sps:$4 sm:$0xff]  }
  0x24   :  { %6518 = vmatprep.subr.bf16.mxu0 %v9624_v36  ;;  %7334 = vmatprep.subr.bf16.mxu1 %v9626_v37  ;;  %v8221_v36 = vcombine.high %v11440_v33, %v11445_v34  ;;  %v9705_v37 = vld [vmem:[%s14515_s1 + $0x2c8] ss:$16 sps:$4 sm:$0xff]  }
  0x27   :  { %6519 = vmatpush1.bf16.msra.mxu0 %v9628_v38  ;;  %7335 = vmatpush1.bf16.msra.mxu1 %v9629_v39  ;;  %v9710_v38 = vld [vmem:[%s14515_s1 + $0x2e4] ss:$16 sps:$4 sm:$0xff]   ;;  %v9713_v39 = vld [vmem:[%s14515_s1 + $0x2ec] ss:$16 sps:$4 sm:$0xff]  }
  0x28   :  { %6520 = vmatprep.subr.bf16.mxu0 %v9630_v40  ;;  %7336 = vmatprep.subr.bf16.mxu1 %v9632_v41  ;;  %v9708_v40 = vld [vmem:[%s14515_s1 + $0x2e0] ss:$16 sps:$4 sm:$0xff]   ;;  %v9711_v41 = vld [vmem:[%s14515_s1 + $0x2e8] ss:$16 sps:$4 sm:$0xff]  }
  0x2b   :  { %6521 = vmatpush1.bf16.msra.mxu0 %v9634_v42  ;;  %7337 = vmatpush1.bf16.msra.mxu1 %v9635_v43  ;;  %v9716_v42 = vld [vmem:[%s14515_s1 + $0x304] ss:$16 sps:$4 sm:$0xff]   ;;  %v9719_v43 = vld [vmem:[%s14515_s1 + $0x30c] ss:$16 sps:$4 sm:$0xff]  }
  0x2c   :  { %6522 = vmatprep.subr.bf16.mxu0 %v9636_v44  ;;  %7338 = vmatprep.subr.bf16.mxu1 %v9638_v45  ;;  %v9714_v44 = vld [vmem:[%s14515_s1 + $0x300] ss:$16 sps:$4 sm:$0xff]   ;;  %v9717_v45 = vld [vmem:[%s14515_s1 + $0x308] ss:$16 sps:$4 sm:$0xff]  }
  0x2f   :  { %6523 = vmatpush1.bf16.msra.mxu0 %v9640_v48  ;;  %7339 = vmatpush1.bf16.msra.mxu1 %v9641_v49  ;;  %v9720_v48 = vld [vmem:[%s14515_s1 + $0x320] ss:$16 sps:$4 sm:$0xff]   ;;  %v9723_v49 = vld [vmem:[%s14515_s1 + $0x328] ss:$16 sps:$4 sm:$0xff]  }
  0x30   :  { %6524 = vmatprep.subr.bf16.mxu0 %v9642_v51  ;;  %7340 = vmatprep.subr.bf16.mxu1 %v9644_v52  ;;  %v9731_v51 = vld [vmem:[%s14515_s1 + $0x34c] ss:$16 sps:$4 sm:$0xff]   ;;  %v9726_v52 = vld [vmem:[%s14515_s1 + $0x340] ss:$16 sps:$4 sm:$0xff]  }
  0x33   :  { %6525 = vmatpush1.bf16.msra.mxu0 %v9646_v53  ;;  %7341 = vmatpush1.bf16.msra.mxu1 %v9647_v54  ;;  %v9729_v53 = vld [vmem:[%s14515_s1 + $0x348] ss:$16 sps:$4 sm:$0xff]   ;;  %v9734_v54 = vld [vmem:[%s14515_s1 + $0x364] ss:$16 sps:$4 sm:$0xff]  }
  0x34   :  { %6526 = vmatprep.subr.bf16.mxu0 %v9648_v55  ;;  %7342 = vmatprep.subr.bf16.mxu1 %v9650_v56  ;;  %v9737_v55 = vld [vmem:[%s14515_s1 + $0x36c] ss:$16 sps:$4 sm:$0xff]   ;;  %v9732_v56 = vld [vmem:[%s14515_s1 + $0x360] ss:$16 sps:$4 sm:$0xff]  }
  0x37   :  { %6527 = vmatpush1.bf16.msra.mxu0 %v9652_v57  ;;  %7343 = vmatpush1.bf16.msra.mxu1 %v9653_v58  ;;  %v9735_v57 = vld [vmem:[%s14515_s1 + $0x368] ss:$16 sps:$4 sm:$0xff]   ;;  %v9740_v58 = vld [vmem:[%s14515_s1 + $0x384] ss:$16 sps:$4 sm:$0xff]  }
  0x38   :  { %6528 = vmatprep.subr.bf16.mxu0 %v9654_v59  ;;  %7344 = vmatprep.subr.bf16.mxu1 %v9656_v60  ;;  %v9743_v59 = vld [vmem:[%s14515_s1 + $0x38c] ss:$16 sps:$4 sm:$0xff]   ;;  %v9738_v60 = vld [vmem:[%s14515_s1 + $0x380] ss:$16 sps:$4 sm:$0xff]  }
  0x3b   :  { %6529 = vmatpush1.bf16.msra.mxu0 %v9658_v61  ;;  %7345 = vmatpush1.bf16.msra.mxu1 %v9659_v62  ;;  %v9741_v61 = vld [vmem:[%s14515_s1 + $0x388] ss:$16 sps:$4 sm:$0xff]   ;;  %v9746_v62 = vld [vmem:[%s14515_s1 + $0x3a4] ss:$16 sps:$4 sm:$0xff]  }
  0x3c   :  { %6530 = vmatprep.subr.bf16.mxu0 %v9660_v63  ;;  %7346 = vmatprep.subr.bf16.mxu1 %v9662_v0  ;;  %v9749_v63 = vld [vmem:[%s14515_s1 + $0x3ac] ss:$16 sps:$4 sm:$0xff]   ;;  %v9744_v0 = vld [vmem:[%s14515_s1 + $0x3a0] ss:$16 sps:$4 sm:$0xff]  }
  0x3f   :  { %6531 = vmatpush1.bf16.msra.mxu0 %v9664_v1  ;;  %7347 = vmatpush1.bf16.msra.mxu1 %v9665_v2  ;;  %v9747_v1 = vld [vmem:[%s14515_s1 + $0x3a8] ss:$16 sps:$4 sm:$0xff]   ;;  %v9753_v2 = vld [vmem:[%s14515_s1 + $0x3c4] ss:$16 sps:$4 sm:$0xff]  }
  0x40   :  { %6551 = vmatprep.subr.bf16.mxu0 %v9668_v3  ;;  %7367 = vmatprep.subr.bf16.mxu1 %v9671_v4  ;;  %v9756_v3 = vld [vmem:[%s14515_s1 + $0x3cc] ss:$16 sps:$4 sm:$0xff]   ;;  %v9751_v4 = vld [vmem:[%s14515_s1 + $0x3c0] ss:$16 sps:$4 sm:$0xff]  }
  0x42   :  { %6533 = vmatmul.mubr.bf16.vlgmr.msra.gmra.mrb[0].mxu0 %v8218_v5  ;;  %7349 = vmatmul.mubr.bf16.vlgmr.msra.gmra.mrb[0].mxu1 %v8218_v5  ;;  %v9754_v5 = vld [vmem:[%s14515_s1 + $0x3c8] ss:$16 sps:$4 sm:$0xff]  }
  0x43   :  { %6552 = vmatpush1.bf16.msra.mxu0 %v9666_v6  ;;  %7368 = vmatpush1.bf16.msra.mxu1 %v9669_v7  ;;  %v9760_v6 = vld [vmem:[%s14515_s1 + $0x3e4] ss:$16 sps:$4 sm:$0xff]   ;;  %v9763_v7 = vld [vmem:[%s14515_s1 + $0x3ec] ss:$16 sps:$4 sm:$0xff]  }
  0x44   :  { %6553 = vmatprep.subr.bf16.mxu0 %v9674_v8  ;;  %7369 = vmatprep.subr.bf16.mxu1 %v9677_v9  ;;  %v9758_v8 = vld [vmem:[%s14515_s1 + $0x3e0] ss:$16 sps:$4 sm:$0xff]   ;;  %v9761_v9 = vld [vmem:[%s14515_s1 + $0x3e8] ss:$16 sps:$4 sm:$0xff]  }
  0x45   :  { %6542 = vmatprep.mubr.bf16.mxu0 %v8251_v27  ;;  %7358 = vmatprep.mubr.bf16.mxu1 %v8251_v27  ;;  %v11612_v27 = vld [vmem:[%s14516_s0 + $0x90] sm:$0xff] }
  0x47   :  { %6554 = vmatpush1.bf16.msra.mxu0 %v9672_v10  ;;  %7370 = vmatpush1.bf16.msra.mxu1 %v9675_v11  ;;  %v9766_v10 = vld [vmem:[%s14515_s1 + $0x404] ss:$16 sps:$4 sm:$0xff]   ;;  %v9769_v11 = vld [vmem:[%s14515_s1 + $0x40c] ss:$16 sps:$4 sm:$0xff]  }
  0x48   :  { %6555 = vmatprep.subr.bf16.mxu0 %v9680_v12  ;;  %7371 = vmatprep.subr.bf16.mxu1 %v9683_v13  ;;  %v8220_v12 = vcombine.low %v11440_v33, %v11445_v34  ;;  %v47_v13 = vld [vmem:[%s14516_s0 + $0x108] sm:$0x33]  ;;  %v9790_v33 = vld [vmem:[%s14515_s1 + $0x484] ss:$16 sps:$4 sm:$0xff]  }
  0x49   :  { %v8252_v25 = vcombine.low %v47_v13, %v47_v13  ;;  %v9793_v34 = vld [vmem:[%s14515_s1 + $0x48c] ss:$16 sps:$4 sm:$0xff]  }
  0x4a   :  { %6543 = vmatmul.mubr.bf16.gmra.mrb[4].mxu0 %v8250_v28  ;;  %7359 = vmatmul.mubr.bf16.gmra.mrb[4].mxu1 %v8250_v28  ;;  %v9784_v28 = vld [vmem:[%s14515_s1 + $0x464] ss:$16 sps:$4 sm:$0xff]  }
  0x4b   :  { %6556 = vmatpush1.bf16.msra.mxu0 %v9678_v14  ;;  %7372 = vmatpush1.bf16.msra.mxu1 %v9681_v15  ;;  %v9764_v14 = vld [vmem:[%s14515_s1 + $0x400] ss:$16 sps:$4 sm:$0xff]   ;;  %v9767_v15 = vld [vmem:[%s14515_s1 + $0x408] ss:$16 sps:$4 sm:$0xff]  }
  0x4c   :  { %6557 = vmatprep.subr.bf16.mxu0 %v9686_v16  ;;  %7373 = vmatprep.subr.bf16.mxu1 %v9689_v17  ;;  %v9772_v16 = vld [vmem:[%s14515_s1 + $0x424] ss:$16 sps:$4 sm:$0xff]   ;;  %v9775_v17 = vld [vmem:[%s14515_s1 + $0x42c] ss:$16 sps:$4 sm:$0xff]  }
  0x4d   :  { %6583 = vmatprep.mubr.bf16.mxu0 %v8221_v36  ;;  %7399 = vmatprep.mubr.bf16.mxu1 %v8221_v36  ;;  %v9791_v36 = vld [vmem:[%s14515_s1 + $0x488] ss:$16 sps:$4 sm:$0xff]  }
  0x4f   :  { %6558 = vmatpush1.bf16.msra.mxu0 %v9684_v18  ;;  %7374 = vmatpush1.bf16.msra.mxu1 %v9687_v19  ;;  %v8253_v18 = vcombine.high %v47_v13, %v47_v13  ;;  %v9770_v19 = vld [vmem:[%s14515_s1 + $0x420] ss:$16 sps:$4 sm:$0xff]   ;;  %v9858_v13 = vld [vmem:[%s14515_s1 + $0x5e4] ss:$16 sps:$4 sm:$0xff]  }
  0x50   :  { %6559 = vmatprep.subr.bf16.mxu0 %v9692_v20  ;;  %7375 = vmatprep.subr.bf16.mxu1 %v9695_v21  ;;  %v9773_v20 = vld [vmem:[%s14515_s1 + $0x428] ss:$16 sps:$4 sm:$0xff]   ;;  %v9778_v21 = vld [vmem:[%s14515_s1 + $0x444] ss:$16 sps:$4 sm:$0xff]  }
  0x53   :  { %6560 = vmatpush1.bf16.msra.mxu0 %v9690_v22  ;;  %7376 = vmatpush1.bf16.msra.mxu1 %v9693_v23  ;;  %v9781_v22 = vld [vmem:[%s14515_s1 + $0x44c] ss:$16 sps:$4 sm:$0xff]   ;;  %v9776_v23 = vld [vmem:[%s14515_s1 + $0x440] ss:$16 sps:$4 sm:$0xff]  }
  0x54   :  { %6561 = vmatprep.subr.bf16.mxu0 %v9698_v24  ;;  %7377 = vmatprep.subr.bf16.mxu1 %v9701_v26  ;;  %v9779_v24 = vld [vmem:[%s14515_s1 + $0x448] ss:$16 sps:$4 sm:$0xff]   ;;  %v11607_v26 = vld [vmem:[%s14516_s0 + $0x10] sm:$0xff] }
  0x57   :  { %6562 = vmatpush1.bf16.msra.mxu0 %v9696_v29  ;;  %7378 = vmatpush1.bf16.msra.mxu1 %v9699_v30  ;;  %v9787_v29 = vld [vmem:[%s14515_s1 + $0x46c] ss:$16 sps:$4 sm:$0xff]   ;;  %v8223_v30 = vcombine.high %v11607_v26, %v11612_v27 }
  0x58   :  { %6563 = vmatprep.subr.bf16.mxu0 %v9704_v31  ;;  %7379 = vmatprep.subr.bf16.mxu1 %v9707_v32  ;;  %v9782_v31 = vld [vmem:[%s14515_s1 + $0x460] ss:$16 sps:$4 sm:$0xff]   ;;  %v9785_v32 = vld [vmem:[%s14515_s1 + $0x468] ss:$16 sps:$4 sm:$0xff]  }
  0x5b   :  { %6564 = vmatpush1.bf16.msra.mxu0 %v9702_v35  ;;  %7380 = vmatpush1.bf16.msra.mxu1 %v9705_v37  ;;  %v9788_v35 = vld [vmem:[%s14515_s1 + $0x480] ss:$16 sps:$4 sm:$0xff]   ;;  %v9796_v37 = vld [vmem:[%s14515_s1 + $0x4a4] ss:$16 sps:$4 sm:$0xff]  }
  0x5c   :  { %6565 = vmatprep.subr.bf16.mxu0 %v9710_v38  ;;  %7381 = vmatprep.subr.bf16.mxu1 %v9713_v39  ;;  %v9799_v38 = vld [vmem:[%s14515_s1 + $0x4ac] ss:$16 sps:$4 sm:$0xff]   ;;  %v9794_v39 = vld [vmem:[%s14515_s1 + $0x4a0] ss:$16 sps:$4 sm:$0xff]  }
  0x5f   :  { %6566 = vmatpush1.bf16.msra.mxu0 %v9708_v40  ;;  %7382 = vmatpush1.bf16.msra.mxu1 %v9711_v41  ;;  %v9797_v40 = vld [vmem:[%s14515_s1 + $0x4a8] ss:$16 sps:$4 sm:$0xff]   ;;  %v9802_v41 = vld [vmem:[%s14515_s1 + $0x4c4] ss:$16 sps:$4 sm:$0xff]  }
  0x60   :  { %6567 = vmatprep.subr.bf16.mxu0 %v9716_v42  ;;  %7383 = vmatprep.subr.bf16.mxu1 %v9719_v43  ;;  %v9805_v42 = vld [vmem:[%s14515_s1 + $0x4cc] ss:$16 sps:$4 sm:$0xff]   ;;  %v9800_v43 = vld [vmem:[%s14515_s1 + $0x4c0] ss:$16 sps:$4 sm:$0xff]  }
  0x63   :  { %6568 = vmatpush1.bf16.msra.mxu0 %v9714_v44  ;;  %7384 = vmatpush1.bf16.msra.mxu1 %v9717_v45  ;;  %v9803_v44 = vld [vmem:[%s14515_s1 + $0x4c8] ss:$16 sps:$4 sm:$0xff]   ;;  %v9808_v45 = vld [vmem:[%s14515_s1 + $0x4e4] ss:$16 sps:$4 sm:$0xff]  }
  0x64   :  { %6569 = vmatprep.subr.bf16.mxu0 %v9722_v46  ;;  %7385 = vmatprep.subr.bf16.mxu1 %v9725_v47  ;;  %v9811_v46 = vld [vmem:[%s14515_s1 + $0x4ec] ss:$16 sps:$4 sm:$0xff]   ;;  %v9806_v47 = vld [vmem:[%s14515_s1 + $0x4e0] ss:$16 sps:$4 sm:$0xff]  }
  0x67   :  { %6570 = vmatpush1.bf16.msra.mxu0 %v9720_v48  ;;  %7386 = vmatpush1.bf16.msra.mxu1 %v9723_v49  ;;  %v9809_v48 = vld [vmem:[%s14515_s1 + $0x4e8] ss:$16 sps:$4 sm:$0xff]   ;;  %v9814_v49 = vld [vmem:[%s14515_s1 + $0x504] ss:$16 sps:$4 sm:$0xff]  }
  0x68   :  { %6571 = vmatprep.subr.bf16.mxu0 %v9728_v50  ;;  %7387 = vmatprep.subr.bf16.mxu1 %v9731_v51  ;;  %v9817_v50 = vld [vmem:[%s14515_s1 + $0x50c] ss:$16 sps:$4 sm:$0xff]   ;;  %v9812_v51 = vld [vmem:[%s14515_s1 + $0x500] ss:$16 sps:$4 sm:$0xff]  }
  0x6b   :  { %6572 = vmatpush1.bf16.msra.mxu0 %v9726_v52  ;;  %7388 = vmatpush1.bf16.msra.mxu1 %v9729_v53  ;;  %v9815_v52 = vld [vmem:[%s14515_s1 + $0x508] ss:$16 sps:$4 sm:$0xff]   ;;  %v9820_v53 = vld [vmem:[%s14515_s1 + $0x524] ss:$16 sps:$4 sm:$0xff]  }
  0x6c   :  { %6573 = vmatprep.subr.bf16.mxu0 %v9734_v54  ;;  %7389 = vmatprep.subr.bf16.mxu1 %v9737_v55  ;;  %v9823_v54 = vld [vmem:[%s14515_s1 + $0x52c] ss:$16 sps:$4 sm:$0xff]   ;;  %v9818_v55 = vld [vmem:[%s14515_s1 + $0x520] ss:$16 sps:$4 sm:$0xff]  }
  0x6f   :  { %6574 = vmatpush1.bf16.msra.mxu0 %v9732_v56  ;;  %7390 = vmatpush1.bf16.msra.mxu1 %v9735_v57  ;;  %v9821_v56 = vld [vmem:[%s14515_s1 + $0x528] ss:$16 sps:$4 sm:$0xff]   ;;  %v9826_v57 = vld [vmem:[%s14515_s1 + $0x544] ss:$16 sps:$4 sm:$0xff]  }
  0x70   :  { %6575 = vmatprep.subr.bf16.mxu0 %v9740_v58  ;;  %7391 = vmatprep.subr.bf16.mxu1 %v9743_v59  ;;  %v9829_v58 = vld [vmem:[%s14515_s1 + $0x54c] ss:$16 sps:$4 sm:$0xff]   ;;  %v9824_v59 = vld [vmem:[%s14515_s1 + $0x540] ss:$16 sps:$4 sm:$0xff]  }
  0x73   :  { %6576 = vmatpush1.bf16.msra.mxu0 %v9738_v60  ;;  %7392 = vmatpush1.bf16.msra.mxu1 %v9741_v61  ;;  %v9827_v60 = vld [vmem:[%s14515_s1 + $0x548] ss:$16 sps:$4 sm:$0xff]   ;;  %v9832_v61 = vld [vmem:[%s14515_s1 + $0x564] ss:$16 sps:$4 sm:$0xff]  }
  0x74   :  { %6577 = vmatprep.subr.bf16.mxu0 %v9746_v62  ;;  %7393 = vmatprep.subr.bf16.mxu1 %v9749_v63  ;;  %v9835_v62 = vld [vmem:[%s14515_s1 + $0x56c] ss:$16 sps:$4 sm:$0xff]   ;;  %v9830_v63 = vld [vmem:[%s14515_s1 + $0x560] ss:$16 sps:$4 sm:$0xff]  }
  0x77   :  { %6578 = vmatpush1.bf16.msra.mxu0 %v9744_v0  ;;  %7394 = vmatpush1.bf16.msra.mxu1 %v9747_v1  ;;  %v9833_v0 = vld [vmem:[%s14515_s1 + $0x568] ss:$16 sps:$4 sm:$0xff]   ;;  %v9838_v1 = vld [vmem:[%s14515_s1 + $0x584] ss:$16 sps:$4 sm:$0xff]  }
  0x78   :  { %6579 = vmatprep.subr.bf16.mxu0 %v9753_v2  ;;  %7395 = vmatprep.subr.bf16.mxu1 %v9756_v3  ;;  %v9841_v2 = vld [vmem:[%s14515_s1 + $0x58c] ss:$16 sps:$4 sm:$0xff]   ;;  %v9836_v3 = vld [vmem:[%s14515_s1 + $0x580] ss:$16 sps:$4 sm:$0xff]  }
  0x7b   :  { %6580 = vmatpush1.bf16.msra.mxu0 %v9751_v4  ;;  %7396 = vmatpush1.bf16.msra.mxu1 %v9754_v5  ;;  %v9839_v4 = vld [vmem:[%s14515_s1 + $0x588] ss:$16 sps:$4 sm:$0xff]   ;;  %v9844_v5 = vld [vmem:[%s14515_s1 + $0x5a4] ss:$16 sps:$4 sm:$0xff]  }
  0x7c   :  { %6581 = vmatprep.subr.bf16.mxu0 %v9760_v6  ;;  %7397 = vmatprep.subr.bf16.mxu1 %v9763_v7  ;;  %v9847_v6 = vld [vmem:[%s14515_s1 + $0x5ac] ss:$16 sps:$4 sm:$0xff]   ;;  %v9842_v7 = vld [vmem:[%s14515_s1 + $0x5a0] ss:$16 sps:$4 sm:$0xff]  }
  0x7f   :  { %6582 = vmatpush1.bf16.msra.mxu0 %v9758_v8  ;;  %7398 = vmatpush1.bf16.msra.mxu1 %v9761_v9  ;;  %v9845_v8 = vld [vmem:[%s14515_s1 + $0x5a8] ss:$16 sps:$4 sm:$0xff]   ;;  %v9851_v9 = vld [vmem:[%s14515_s1 + $0x5c4] ss:$16 sps:$4 sm:$0xff]  }
  0x80   :  { %6602 = vmatprep.subr.bf16.mxu0 %v9766_v10  ;;  %7418 = vmatprep.subr.bf16.mxu1 %v9769_v11  ;;  %v9854_v10 = vld [vmem:[%s14515_s1 + $0x5cc] ss:$16 sps:$4 sm:$0xff]   ;;  %v9849_v11 = vld [vmem:[%s14515_s1 + $0x5c0] ss:$16 sps:$4 sm:$0xff]  }
  0x82   :  { %6584 = vmatmul.mubr.bf16.vlgmr.msra.gmra.mrb[0].mxu0 %v8220_v12  ;;  %7400 = vmatmul.mubr.bf16.vlgmr.msra.gmra.mrb[0].mxu1 %v8220_v12  ;;  %v9852_v12 = vld [vmem:[%s14515_s1 + $0x5c8] ss:$16 sps:$4 sm:$0xff]  }
  0x83   :  { %6603 = vmatpush1.bf16.msra.mxu0 %v9764_v14  ;;  %7419 = vmatpush1.bf16.msra.mxu1 %v9767_v15  ;;  %v9861_v14 = vld [vmem:[%s14515_s1 + $0x5ec] ss:$16 sps:$4 sm:$0xff]   ;;  %v9856_v15 = vld [vmem:[%s14515_s1 + $0x5e0] ss:$16 sps:$4 sm:$0xff]  }
  0x84   :  { %6604 = vmatprep.subr.bf16.mxu0 %v9772_v16  ;;  %7420 = vmatprep.subr.bf16.mxu1 %v9775_v17  ;;  %v9859_v16 = vld [vmem:[%s14515_s1 + $0x5e8] ss:$16 sps:$4 sm:$0xff]   ;;  %v9864_v17 = vld [vmem:[%s14515_s1 + $0x604] ss:$16 sps:$4 sm:$0xff]  }
  0x85   :  { %6593 = vmatprep.mubr.bf16.mxu0 %v8253_v18  ;;  %7409 = vmatprep.mubr.bf16.mxu1 %v8253_v18  ;;  %v9867_v18 = vld [vmem:[%s14515_s1 + $0x60c] ss:$16 sps:$4 sm:$0xff]  }
  0x87   :  { %6605 = vmatpush1.bf16.msra.mxu0 %v9770_v19  ;;  %7421 = vmatpush1.bf16.msra.mxu1 %v9773_v20  ;;  %v8222_v19 = vcombine.low %v11607_v26, %v11612_v27  ;;  %v9862_v20 = vld [vmem:[%s14515_s1 + $0x600] ss:$16 sps:$4 sm:$0xff]   ;;  %v9871_v27 = vld [vmem:[%s14515_s1 + $0x628] ss:$16 sps:$4 sm:$0xff]  }
  0x88   :  { %6606 = vmatprep.subr.bf16.mxu0 %v9778_v21  ;;  %7422 = vmatprep.subr.bf16.mxu1 %v9781_v22  ;;  %v48_v21 = vld [vmem:[%s14516_s0 + $0x110] sm:$0x33]  ;;  %v9865_v22 = vld [vmem:[%s14515_s1 + $0x608] ss:$16 sps:$4 sm:$0xff]  }
  0x89   :  { %v9868_v26 = vld [vmem:[%s14515_s1 + $0x620] ss:$16 sps:$4 sm:$0xff]  }
  0x8a   :  { %6594 = vmatmul.mubr.bf16.gmra.mrb[4].mxu0 %v8252_v25  ;;  %7410 = vmatmul.mubr.bf16.gmra.mrb[4].mxu1 %v8252_v25  ;;  %v8255_v25 = vcombine.high %v48_v21, %v48_v21 }
  0x8b   :  { %6607 = vmatpush1.bf16.msra.mxu0 %v9776_v23  ;;  %7423 = vmatpush1.bf16.msra.mxu1 %v9779_v24  ;;  %v9870_v23 = vld [vmem:[%s14515_s1 + $0x624] ss:$16 sps:$4 sm:$0xff]   ;;  %v9873_v24 = vld [vmem:[%s14515_s1 + $0x62c] ss:$16 sps:$4 sm:$0xff]  }
  0x8c   :  { %6608 = vmatprep.subr.bf16.mxu0 %v9784_v28  ;;  %7424 = vmatprep.subr.bf16.mxu1 %v9787_v29  ;;  %v9876_v28 = vld [vmem:[%s14515_s1 + $0x644] ss:$16 sps:$4 sm:$0xff]   ;;  %v9879_v29 = vld [vmem:[%s14515_s1 + $0x64c] ss:$16 sps:$4 sm:$0xff]  }
  0x8d   :  { %6634 = vmatprep.mubr.bf16.mxu0 %v8223_v30  ;;  %7450 = vmatprep.mubr.bf16.mxu1 %v8223_v30  ;;  %v9874_v30 = vld [vmem:[%s14515_s1 + $0x640] ss:$16 sps:$4 sm:$0xff]  }
  0x8f   :  { %6609 = vmatpush1.bf16.msra.mxu0 %v9782_v31  ;;  %7425 = vmatpush1.bf16.msra.mxu1 %v9785_v32  ;;  %v8254_v31 = vcombine.low %v48_v21, %v48_v21  ;;  %v11813_v32 = vld [vmem:[%s14516_s0 + $0x18] sm:$0xff] }
  0x90   :  { %6610 = vmatprep.subr.bf16.mxu0 %v9790_v33  ;;  %7426 = vmatprep.subr.bf16.mxu1 %v9793_v34  ;;  %v11818_v33 = vld [vmem:[%s14516_s0 + $0x98] sm:$0xff] }
  0x91   :  { %v9877_v34 = vld [vmem:[%s14515_s1 + $0x648] ss:$16 sps:$4 sm:$0xff]   ;;  %v9959_v21 = vld [vmem:[%s14515_s1 + $0x7ec] ss:$16 sps:$4 sm:$0xff]  }
  0x93   :  { %6611 = vmatpush1.bf16.msra.mxu0 %v9788_v35  ;;  %7427 = vmatpush1.bf16.msra.mxu1 %v9791_v36  ;;  %v9882_v35 = vld [vmem:[%s14515_s1 + $0x664] ss:$16 sps:$4 sm:$0xff]   ;;  %v9885_v36 = vld [vmem:[%s14515_s1 + $0x66c] ss:$16 sps:$4 sm:$0xff]  }
  0x94   :  { %6612 = vmatprep.subr.bf16.mxu0 %v9796_v37  ;;  %7428 = vmatprep.subr.bf16.mxu1 %v9799_v38  ;;  %v8225_v37 = vcombine.high %v11813_v32, %v11818_v33  ;;  %v9880_v38 = vld [vmem:[%s14515_s1 + $0x660] ss:$16 sps:$4 sm:$0xff]  }
  0x97   :  { %6613 = vmatpush1.bf16.msra.mxu0 %v9794_v39  ;;  %7429 = vmatpush1.bf16.msra.mxu1 %v9797_v40  ;;  %v9883_v39 = vld [vmem:[%s14515_s1 + $0x668] ss:$16 sps:$4 sm:$0xff]   ;;  %v9888_v40 = vld [vmem:[%s14515_s1 + $0x684] ss:$16 sps:$4 sm:$0xff]  }
  0x98   :  { %6614 = vmatprep.subr.bf16.mxu0 %v9802_v41  ;;  %7430 = vmatprep.subr.bf16.mxu1 %v9805_v42  ;;  %v9891_v41 = vld [vmem:[%s14515_s1 + $0x68c] ss:$16 sps:$4 sm:$0xff]   ;;  %v9886_v42 = vld [vmem:[%s14515_s1 + $0x680] ss:$16 sps:$4 sm:$0xff]  }
  0x9b   :  { %6615 = vmatpush1.bf16.msra.mxu0 %v9800_v43  ;;  %7431 = vmatpush1.bf16.msra.mxu1 %v9803_v44  ;;  %v9889_v43 = vld [vmem:[%s14515_s1 + $0x688] ss:$16 sps:$4 sm:$0xff]   ;;  %v9894_v44 = vld [vmem:[%s14515_s1 + $0x6a4] ss:$16 sps:$4 sm:$0xff]  }
  0x9c   :  { %6616 = vmatprep.subr.bf16.mxu0 %v9808_v45  ;;  %7432 = vmatprep.subr.bf16.mxu1 %v9811_v46  ;;  %v9897_v45 = vld [vmem:[%s14515_s1 + $0x6ac] ss:$16 sps:$4 sm:$0xff]   ;;  %v9892_v46 = vld [vmem:[%s14515_s1 + $0x6a0] ss:$16 sps:$4 sm:$0xff]  }
  0x9f   :  { %6617 = vmatpush1.bf16.msra.mxu0 %v9806_v47  ;;  %7433 = vmatpush1.bf16.msra.mxu1 %v9809_v48  ;;  %v9895_v47 = vld [vmem:[%s14515_s1 + $0x6a8] ss:$16 sps:$4 sm:$0xff]   ;;  %v9900_v48 = vld [vmem:[%s14515_s1 + $0x6c4] ss:$16 sps:$4 sm:$0xff]  }
  0xa0   :  { %6618 = vmatprep.subr.bf16.mxu0 %v9814_v49  ;;  %7434 = vmatprep.subr.bf16.mxu1 %v9817_v50  ;;  %v9903_v49 = vld [vmem:[%s14515_s1 + $0x6cc] ss:$16 sps:$4 sm:$0xff]   ;;  %v9898_v50 = vld [vmem:[%s14515_s1 + $0x6c0] ss:$16 sps:$4 sm:$0xff]  }
  0xa3   :  { %6619 = vmatpush1.bf16.msra.mxu0 %v9812_v51  ;;  %7435 = vmatpush1.bf16.msra.mxu1 %v9815_v52  ;;  %v9901_v51 = vld [vmem:[%s14515_s1 + $0x6c8] ss:$16 sps:$4 sm:$0xff]   ;;  %v9906_v52 = vld [vmem:[%s14515_s1 + $0x6e4] ss:$16 sps:$4 sm:$0xff]  }
  0xa4   :  { %6620 = vmatprep.subr.bf16.mxu0 %v9820_v53  ;;  %7436 = vmatprep.subr.bf16.mxu1 %v9823_v54  ;;  %v9909_v53 = vld [vmem:[%s14515_s1 + $0x6ec] ss:$16 sps:$4 sm:$0xff]   ;;  %v9904_v54 = vld [vmem:[%s14515_s1 + $0x6e0] ss:$16 sps:$4 sm:$0xff]  }
  0xa7   :  { %6621 = vmatpush1.bf16.msra.mxu0 %v9818_v55  ;;  %7437 = vmatpush1.bf16.msra.mxu1 %v9821_v56  ;;  %v9907_v55 = vld [vmem:[%s14515_s1 + $0x6e8] ss:$16 sps:$4 sm:$0xff]   ;;  %v9912_v56 = vld [vmem:[%s14515_s1 + $0x704] ss:$16 sps:$4 sm:$0xff]  }
  0xa8   :  { %6622 = vmatprep.subr.bf16.mxu0 %v9826_v57  ;;  %7438 = vmatprep.subr.bf16.mxu1 %v9829_v58  ;;  %v9915_v57 = vld [vmem:[%s14515_s1 + $0x70c] ss:$16 sps:$4 sm:$0xff]   ;;  %v9910_v58 = vld [vmem:[%s14515_s1 + $0x700] ss:$16 sps:$4 sm:$0xff]  }
  0xab   :  { %6623 = vmatpush1.bf16.msra.mxu0 %v9824_v59  ;;  %7439 = vmatpush1.bf16.msra.mxu1 %v9827_v60  ;;  %v9913_v59 = vld [vmem:[%s14515_s1 + $0x708] ss:$16 sps:$4 sm:$0xff]   ;;  %v9918_v60 = vld [vmem:[%s14515_s1 + $0x724] ss:$16 sps:$4 sm:$0xff]  }
  0xac   :  { %6624 = vmatprep.subr.bf16.mxu0 %v9832_v61  ;;  %7440 = vmatprep.subr.bf16.mxu1 %v9835_v62  ;;  %v9921_v61 = vld [vmem:[%s14515_s1 + $0x72c] ss:$16 sps:$4 sm:$0xff]   ;;  %v9916_v62 = vld [vmem:[%s14515_s1 + $0x720] ss:$16 sps:$4 sm:$0xff]  }
  0xaf   :  { %6625 = vmatpush1.bf16.msra.mxu0 %v9830_v63  ;;  %7441 = vmatpush1.bf16.msra.mxu1 %v9833_v0  ;;  %v9919_v63 = vld [vmem:[%s14515_s1 + $0x728] ss:$16 sps:$4 sm:$0xff]   ;;  %v9924_v0 = vld [vmem:[%s14515_s1 + $0x744] ss:$16 sps:$4 sm:$0xff]  }
  0xb0   :  { %6626 = vmatprep.subr.bf16.mxu0 %v9838_v1  ;;  %7442 = vmatprep.subr.bf16.mxu1 %v9841_v2  ;;  %v9927_v1 = vld [vmem:[%s14515_s1 + $0x74c] ss:$16 sps:$4 sm:$0xff]   ;;  %v9922_v2 = vld [vmem:[%s14515_s1 + $0x740] ss:$16 sps:$4 sm:$0xff]  }
  0xb3   :  { %6627 = vmatpush1.bf16.msra.mxu0 %v9836_v3  ;;  %7443 = vmatpush1.bf16.msra.mxu1 %v9839_v4  ;;  %v9925_v3 = vld [vmem:[%s14515_s1 + $0x748] ss:$16 sps:$4 sm:$0xff]   ;;  %v9930_v4 = vld [vmem:[%s14515_s1 + $0x764] ss:$16 sps:$4 sm:$0xff]  }
  0xb4   :  { %6628 = vmatprep.subr.bf16.mxu0 %v9844_v5  ;;  %7444 = vmatprep.subr.bf16.mxu1 %v9847_v6  ;;  %v9933_v5 = vld [vmem:[%s14515_s1 + $0x76c] ss:$16 sps:$4 sm:$0xff]   ;;  %v9928_v6 = vld [vmem:[%s14515_s1 + $0x760] ss:$16 sps:$4 sm:$0xff]  }
  0xb7   :  { %6629 = vmatpush1.bf16.msra.mxu0 %v9842_v7  ;;  %7445 = vmatpush1.bf16.msra.mxu1 %v9845_v8  ;;  %v9931_v7 = vld [vmem:[%s14515_s1 + $0x768] ss:$16 sps:$4 sm:$0xff]   ;;  %v9936_v8 = vld [vmem:[%s14515_s1 + $0x784] ss:$16 sps:$4 sm:$0xff]  }
  0xb8   :  { %6630 = vmatprep.subr.bf16.mxu0 %v9851_v9  ;;  %7446 = vmatprep.subr.bf16.mxu1 %v9854_v10  ;;  %v9939_v9 = vld [vmem:[%s14515_s1 + $0x78c] ss:$16 sps:$4 sm:$0xff]   ;;  %v9934_v10 = vld [vmem:[%s14515_s1 + $0x780] ss:$16 sps:$4 sm:$0xff]  }
  0xbb   :  { %6631 = vmatpush1.bf16.msra.mxu0 %v9849_v11  ;;  %7447 = vmatpush1.bf16.msra.mxu1 %v9852_v12  ;;  %v9937_v11 = vld [vmem:[%s14515_s1 + $0x788] ss:$16 sps:$4 sm:$0xff]   ;;  %v9942_v12 = vld [vmem:[%s14515_s1 + $0x7a4] ss:$16 sps:$4 sm:$0xff]  }
  0xbc   :  { %6632 = vmatprep.subr.bf16.mxu0 %v9858_v13  ;;  %7448 = vmatprep.subr.bf16.mxu1 %v9861_v14  ;;  %v9945_v13 = vld [vmem:[%s14515_s1 + $0x7ac] ss:$16 sps:$4 sm:$0xff]   ;;  %v9940_v14 = vld [vmem:[%s14515_s1 + $0x7a0] ss:$16 sps:$4 sm:$0xff]  }
  0xbf   :  { %6633 = vmatpush1.bf16.msra.mxu0 %v9856_v15  ;;  %7449 = vmatpush1.bf16.msra.mxu1 %v9859_v16  ;;  %v9943_v15 = vld [vmem:[%s14515_s1 + $0x7a8] ss:$16 sps:$4 sm:$0xff]   ;;  %v9949_v16 = vld [vmem:[%s14515_s1 + $0x7c4] ss:$16 sps:$4 sm:$0xff]  }
  0xc0   :  { %6653 = vmatprep.subr.bf16.mxu0 %v9864_v17  ;;  %7469 = vmatprep.subr.bf16.mxu1 %v9867_v18  ;;  %v9952_v17 = vld [vmem:[%s14515_s1 + $0x7cc] ss:$16 sps:$4 sm:$0xff]   ;;  %v9947_v18 = vld [vmem:[%s14515_s1 + $0x7c0] ss:$16 sps:$4 sm:$0xff]  }
  0xc2   :  { %6635 = vmatmul.mubr.bf16.vlgmr.msra.gmra.mrb[0].mxu0 %v8222_v19  ;;  %7451 = vmatmul.mubr.bf16.vlgmr.msra.gmra.mrb[0].mxu1 %v8222_v19  ;;  %v9950_v19 = vld [vmem:[%s14515_s1 + $0x7c8] ss:$16 sps:$4 sm:$0xff]  }
  0xc3   :  { %6654 = vmatpush1.bf16.msra.mxu0 %v9862_v20  ;;  %7470 = vmatpush1.bf16.msra.mxu1 %v9865_v22  ;;  %v9956_v20 = vld [vmem:[%s14515_s1 + $0x7e4] ss:$16 sps:$4 sm:$0xff]   ;;  %v9954_v22 = vld [vmem:[%s14515_s1 + $0x7e0] ss:$16 sps:$4 sm:$0xff]  }
  0xc4   :  { %6655 = vmatprep.subr.bf16.mxu0 %v9870_v23  ;;  %7471 = vmatprep.subr.bf16.mxu1 %v9873_v24  ;;  %v9957_v23 = vld [vmem:[%s14515_s1 + $0x7e8] ss:$16 sps:$4 sm:$0xff]   ;;  %v9962_v24 = vld [vmem:[%s14515_s1 + $0x804] ss:$16 sps:$4 sm:$0xff]  }
  0xc5   :  { %6644 = vmatprep.mubr.bf16.mxu0 %v8255_v25  ;;  %7460 = vmatprep.mubr.bf16.mxu1 %v8255_v25  ;;  %v9965_v25 = vld [vmem:[%s14515_s1 + $0x80c] ss:$16 sps:$4 sm:$0xff]  }
  0xc7   :  { %6656 = vmatpush1.bf16.msra.mxu0 %v9868_v26  ;;  %7472 = vmatpush1.bf16.msra.mxu1 %v9871_v27  ;;  %v8224_v26 = vcombine.low %v11813_v32, %v11818_v33  ;;  %v9960_v27 = vld [vmem:[%s14515_s1 + $0x800] ss:$16 sps:$4 sm:$0xff]  }
  0xc8   :  { %6657 = vmatprep.subr.bf16.mxu0 %v9876_v28  ;;  %7473 = vmatprep.subr.bf16.mxu1 %v9879_v29  ;;  %v49_v28 = vld [vmem:[%s14516_s0 + $0x118] sm:$0x33]  ;;  %v9966_v33 = vld [vmem:[%s14515_s1 + $0x820] ss:$16 sps:$4 sm:$0xff]  }
  0xc9   :  { %v9963_v29 = vld [vmem:[%s14515_s1 + $0x808] ss:$16 sps:$4 sm:$0xff]   ;;  %v8257_v32 = vcombine.high %v49_v28, %v49_v28 }
  0xca   :  { %6645 = vmatmul.mubr.bf16.gmra.mrb[4].mxu0 %v8254_v31  ;;  %7461 = vmatmul.mubr.bf16.gmra.mrb[4].mxu1 %v8254_v31  ;;  %v9971_v31 = vld [vmem:[%s14515_s1 + $0x82c] ss:$16 sps:$4 sm:$0xff]  }
  0xcb   :  { %6658 = vmatpush1.bf16.msra.mxu0 %v9874_v30  ;;  %7474 = vmatpush1.bf16.msra.mxu1 %v9877_v34  ;;  %v9968_v30 = vld [vmem:[%s14515_s1 + $0x824] ss:$16 sps:$4 sm:$0xff]   ;;  %v9969_v34 = vld [vmem:[%s14515_s1 + $0x828] ss:$16 sps:$4 sm:$0xff]  }
  0xcc   :  { %6659 = vmatprep.subr.bf16.mxu0 %v9882_v35  ;;  %7475 = vmatprep.subr.bf16.mxu1 %v9885_v36  ;;  %v9974_v35 = vld [vmem:[%s14515_s1 + $0x844] ss:$16 sps:$4 sm:$0xff]   ;;  %v9977_v36 = vld [vmem:[%s14515_s1 + $0x84c] ss:$16 sps:$4 sm:$0xff]  }
  0xcd   :  { %6685 = vmatprep.mubr.bf16.mxu0 %v8225_v37  ;;  %7501 = vmatprep.mubr.bf16.mxu1 %v8225_v37  ;;  %v9972_v37 = vld [vmem:[%s14515_s1 + $0x840] ss:$16 sps:$4 sm:$0xff]  }
  0xcf   :  { %6660 = vmatpush1.bf16.msra.mxu0 %v9880_v38  ;;  %7476 = vmatpush1.bf16.msra.mxu1 %v9883_v39  ;;  %v12022_v38 = vld [vmem:[%s14516_s0 + $0x20] sm:$0xff]  ;;  %v8256_v39 = vcombine.low %v49_v28, %v49_v28  ;;  %v10057_v28 = vld [vmem:[%s14515_s1 + $0x9ec] ss:$16 sps:$4 sm:$0xff]  }
  0xd0   :  { %6661 = vmatprep.subr.bf16.mxu0 %v9888_v40  ;;  %7477 = vmatprep.subr.bf16.mxu1 %v9891_v41  ;;  %v12027_v40 = vld [vmem:[%s14516_s0 + $0xa0] sm:$0xff]  ;;  %v9975_v41 = vld [vmem:[%s14515_s1 + $0x848] ss:$16 sps:$4 sm:$0xff]  }
  0xd3   :  { %6662 = vmatpush1.bf16.msra.mxu0 %v9886_v42  ;;  %7478 = vmatpush1.bf16.msra.mxu1 %v9889_v43  ;;  %v9980_v42 = vld [vmem:[%s14515_s1 + $0x864] ss:$16 sps:$4 sm:$0xff]   ;;  %v9983_v43 = vld [vmem:[%s14515_s1 + $0x86c] ss:$16 sps:$4 sm:$0xff]  }
  0xd4   :  { %6663 = vmatprep.subr.bf16.mxu0 %v9894_v44  ;;  %7479 = vmatprep.subr.bf16.mxu1 %v9897_v45  ;;  %v8227_v44 = vcombine.high %v12022_v38, %v12027_v40  ;;  %v9978_v45 = vld [vmem:[%s14515_s1 + $0x860] ss:$16 sps:$4 sm:$0xff]  }
  0xd7   :  { %6664 = vmatpush1.bf16.msra.mxu0 %v9892_v46  ;;  %7480 = vmatpush1.bf16.msra.mxu1 %v9895_v47  ;;  %v9981_v46 = vld [vmem:[%s14515_s1 + $0x868] ss:$16 sps:$4 sm:$0xff]   ;;  %v9986_v47 = vld [vmem:[%s14515_s1 + $0x884] ss:$16 sps:$4 sm:$0xff]  }
  0xd8   :  { %6665 = vmatprep.subr.bf16.mxu0 %v9900_v48  ;;  %7481 = vmatprep.subr.bf16.mxu1 %v9903_v49  ;;  %v9989_v48 = vld [vmem:[%s14515_s1 + $0x88c] ss:$16 sps:$4 sm:$0xff]   ;;  %v9984_v49 = vld [vmem:[%s14515_s1 + $0x880] ss:$16 sps:$4 sm:$0xff]  }
  0xdb   :  { %6666 = vmatpush1.bf16.msra.mxu0 %v9898_v50  ;;  %7482 = vmatpush1.bf16.msra.mxu1 %v9901_v51  ;;  %v9987_v50 = vld [vmem:[%s14515_s1 + $0x888] ss:$16 sps:$4 sm:$0xff]   ;;  %v9992_v51 = vld [vmem:[%s14515_s1 + $0x8a4] ss:$16 sps:$4 sm:$0xff]  }
  0xdc   :  { %6667 = vmatprep.subr.bf16.mxu0 %v9906_v52  ;;  %7483 = vmatprep.subr.bf16.mxu1 %v9909_v53  ;;  %v9995_v52 = vld [vmem:[%s14515_s1 + $0x8ac] ss:$16 sps:$4 sm:$0xff]   ;;  %v9990_v53 = vld [vmem:[%s14515_s1 + $0x8a0] ss:$16 sps:$4 sm:$0xff]  }
  0xdf   :  { %6668 = vmatpush1.bf16.msra.mxu0 %v9904_v54  ;;  %7484 = vmatpush1.bf16.msra.mxu1 %v9907_v55  ;;  %v9993_v54 = vld [vmem:[%s14515_s1 + $0x8a8] ss:$16 sps:$4 sm:$0xff]   ;;  %v9998_v55 = vld [vmem:[%s14515_s1 + $0x8c4] ss:$16 sps:$4 sm:$0xff]  }
  0xe0   :  { %6669 = vmatprep.subr.bf16.mxu0 %v9912_v56  ;;  %7485 = vmatprep.subr.bf16.mxu1 %v9915_v57  ;;  %v10001_v56 = vld [vmem:[%s14515_s1 + $0x8cc] ss:$16 sps:$4 sm:$0xff]   ;;  %v9996_v57 = vld [vmem:[%s14515_s1 + $0x8c0] ss:$16 sps:$4 sm:$0xff]  }
  0xe3   :  { %6670 = vmatpush1.bf16.msra.mxu0 %v9910_v58  ;;  %7486 = vmatpush1.bf16.msra.mxu1 %v9913_v59  ;;  %v9999_v58 = vld [vmem:[%s14515_s1 + $0x8c8] ss:$16 sps:$4 sm:$0xff]   ;;  %v10004_v59 = vld [vmem:[%s14515_s1 + $0x8e4] ss:$16 sps:$4 sm:$0xff]  }
  0xe4   :  { %6671 = vmatprep.subr.bf16.mxu0 %v9918_v60  ;;  %7487 = vmatprep.subr.bf16.mxu1 %v9921_v61  ;;  %v10007_v60 = vld [vmem:[%s14515_s1 + $0x8ec] ss:$16 sps:$4 sm:$0xff]   ;;  %v10002_v61 = vld [vmem:[%s14515_s1 + $0x8e0] ss:$16 sps:$4 sm:$0xff]  }
  0xe7   :  { %6672 = vmatpush1.bf16.msra.mxu0 %v9916_v62  ;;  %7488 = vmatpush1.bf16.msra.mxu1 %v9919_v63  ;;  %v10005_v62 = vld [vmem:[%s14515_s1 + $0x8e8] ss:$16 sps:$4 sm:$0xff]   ;;  %v10010_v63 = vld [vmem:[%s14515_s1 + $0x904] ss:$16 sps:$4 sm:$0xff]  }
  0xe8   :  { %6673 = vmatprep.subr.bf16.mxu0 %v9924_v0  ;;  %7489 = vmatprep.subr.bf16.mxu1 %v9927_v1  ;;  %v10013_v0 = vld [vmem:[%s14515_s1 + $0x90c] ss:$16 sps:$4 sm:$0xff]   ;;  %v10008_v1 = vld [vmem:[%s14515_s1 + $0x900] ss:$16 sps:$4 sm:$0xff]  }
  0xeb   :  { %6674 = vmatpush1.bf16.msra.mxu0 %v9922_v2  ;;  %7490 = vmatpush1.bf16.msra.mxu1 %v9925_v3  ;;  %v10011_v2 = vld [vmem:[%s14515_s1 + $0x908] ss:$16 sps:$4 sm:$0xff]   ;;  %v10016_v3 = vld [vmem:[%s14515_s1 + $0x924] ss:$16 sps:$4 sm:$0xff]  }
  0xec   :  { %6675 = vmatprep.subr.bf16.mxu0 %v9930_v4  ;;  %7491 = vmatprep.subr.bf16.mxu1 %v9933_v5  ;;  %v10019_v4 = vld [vmem:[%s14515_s1 + $0x92c] ss:$16 sps:$4 sm:$0xff]   ;;  %v10014_v5 = vld [vmem:[%s14515_s1 + $0x920] ss:$16 sps:$4 sm:$0xff]  }
  0xef   :  { %6676 = vmatpush1.bf16.msra.mxu0 %v9928_v6  ;;  %7492 = vmatpush1.bf16.msra.mxu1 %v9931_v7  ;;  %v10017_v6 = vld [vmem:[%s14515_s1 + $0x928] ss:$16 sps:$4 sm:$0xff]   ;;  %v10022_v7 = vld [vmem:[%s14515_s1 + $0x944] ss:$16 sps:$4 sm:$0xff]  }
  0xf0   :  { %6677 = vmatprep.subr.bf16.mxu0 %v9936_v8  ;;  %7493 = vmatprep.subr.bf16.mxu1 %v9939_v9  ;;  %v10025_v8 = vld [vmem:[%s14515_s1 + $0x94c] ss:$16 sps:$4 sm:$0xff]   ;;  %v10020_v9 = vld [vmem:[%s14515_s1 + $0x940] ss:$16 sps:$4 sm:$0xff]  }
  0xf3   :  { %6678 = vmatpush1.bf16.msra.mxu0 %v9934_v10  ;;  %7494 = vmatpush1.bf16.msra.mxu1 %v9937_v11  ;;  %v10023_v10 = vld [vmem:[%s14515_s1 + $0x948] ss:$16 sps:$4 sm:$0xff]   ;;  %v10028_v11 = vld [vmem:[%s14515_s1 + $0x964] ss:$16 sps:$4 sm:$0xff]  }
  0xf4   :  { %6679 = vmatprep.subr.bf16.mxu0 %v9942_v12  ;;  %7495 = vmatprep.subr.bf16.mxu1 %v9945_v13  ;;  %v10031_v12 = vld [vmem:[%s14515_s1 + $0x96c] ss:$16 sps:$4 sm:$0xff]   ;;  %v10026_v13 = vld [vmem:[%s14515_s1 + $0x960] ss:$16 sps:$4 sm:$0xff]  }
  0xf7   :  { %6680 = vmatpush1.bf16.msra.mxu0 %v9940_v14  ;;  %7496 = vmatpush1.bf16.msra.mxu1 %v9943_v15  ;;  %v10029_v14 = vld [vmem:[%s14515_s1 + $0x968] ss:$16 sps:$4 sm:$0xff]   ;;  %v10034_v15 = vld [vmem:[%s14515_s1 + $0x984] ss:$16 sps:$4 sm:$0xff]  }
  0xf8   :  { %6681 = vmatprep.subr.bf16.mxu0 %v9949_v16  ;;  %7497 = vmatprep.subr.bf16.mxu1 %v9952_v17  ;;  %v10037_v16 = vld [vmem:[%s14515_s1 + $0x98c] ss:$16 sps:$4 sm:$0xff]   ;;  %v10032_v17 = vld [vmem:[%s14515_s1 + $0x980] ss:$16 sps:$4 sm:$0xff]  }
  0xfb   :  { %6682 = vmatpush1.bf16.msra.mxu0 %v9947_v18  ;;  %7498 = vmatpush1.bf16.msra.mxu1 %v9950_v19  ;;  %v10035_v18 = vld [vmem:[%s14515_s1 + $0x988] ss:$16 sps:$4 sm:$0xff]   ;;  %v10040_v19 = vld [vmem:[%s14515_s1 + $0x9a4] ss:$16 sps:$4 sm:$0xff]  }
  0xfc   :  { %6683 = vmatprep.subr.bf16.mxu0 %v9956_v20  ;;  %7499 = vmatprep.subr.bf16.mxu1 %v9959_v21  ;;  %v10043_v20 = vld [vmem:[%s14515_s1 + $0x9ac] ss:$16 sps:$4 sm:$0xff]   ;;  %v10038_v21 = vld [vmem:[%s14515_s1 + $0x9a0] ss:$16 sps:$4 sm:$0xff]  }
  0xff   :  { %6684 = vmatpush1.bf16.msra.mxu0 %v9954_v22  ;;  %7500 = vmatpush1.bf16.msra.mxu1 %v9957_v23  ;;  %v10041_v22 = vld [vmem:[%s14515_s1 + $0x9a8] ss:$16 sps:$4 sm:$0xff]   ;;  %v10047_v23 = vld [vmem:[%s14515_s1 + $0x9c4] ss:$16 sps:$4 sm:$0xff]  }
 0x100   :  { %6704 = vmatprep.subr.bf16.mxu0 %v9962_v24  ;;  %7520 = vmatprep.subr.bf16.mxu1 %v9965_v25  ;;  %v10050_v24 = vld [vmem:[%s14515_s1 + $0x9cc] ss:$16 sps:$4 sm:$0xff]   ;;  %v10045_v25 = vld [vmem:[%s14515_s1 + $0x9c0] ss:$16 sps:$4 sm:$0xff]  }
 0x102   :  { %6686 = vmatmul.mubr.bf16.vlgmr.msra.gmra.mrb[0].mxu0 %v8224_v26  ;;  %7502 = vmatmul.mubr.bf16.vlgmr.msra.gmra.mrb[0].mxu1 %v8224_v26  ;;  %v10048_v26 = vld [vmem:[%s14515_s1 + $0x9c8] ss:$16 sps:$4 sm:$0xff]  }
 0x103   :  { %6705 = vmatpush1.bf16.msra.mxu0 %v9960_v27  ;;  %7521 = vmatpush1.bf16.msra.mxu1 %v9963_v29  ;;  %v10054_v27 = vld [vmem:[%s14515_s1 + $0x9e4] ss:$16 sps:$4 sm:$0xff]   ;;  %v10052_v29 = vld [vmem:[%s14515_s1 + $0x9e0] ss:$16 sps:$4 sm:$0xff]  }
 0x104   :  { %6706 = vmatprep.subr.bf16.mxu0 %v9968_v30  ;;  %7522 = vmatprep.subr.bf16.mxu1 %v9971_v31  ;;  %v10055_v30 = vld [vmem:[%s14515_s1 + $0x9e8] ss:$16 sps:$4 sm:$0xff]   ;;  %v10060_v31 = vld [vmem:[%s14515_s1 + $0xa04] ss:$16 sps:$4 sm:$0xff]  }
 0x105   :  { %6695 = vmatprep.mubr.bf16.mxu0 %v8257_v32  ;;  %7511 = vmatprep.mubr.bf16.mxu1 %v8257_v32  ;;  %v10063_v32 = vld [vmem:[%s14515_s1 + $0xa0c] ss:$16 sps:$4 sm:$0xff]  }
 0x107   :  { %6707 = vmatpush1.bf16.msra.mxu0 %v9966_v33  ;;  %7523 = vmatpush1.bf16.msra.mxu1 %v9969_v34  ;;  %v50_v33 = vld [vmem:[%s14516_s0 + $0x120] sm:$0x33]  ;;  %v8226_v34 = vcombine.low %v12022_v38, %v12027_v40  ;;  %v10069_v38 = vld [vmem:[%s14515_s1 + $0xa2c] ss:$16 sps:$4 sm:$0xff]   ;;  %v10067_v40 = vld [vmem:[%s14515_s1 + $0xa28] ss:$16 sps:$4 sm:$0xff]  }
 0x108   :  { %6708 = vmatprep.subr.bf16.mxu0 %v9974_v35  ;;  %7524 = vmatprep.subr.bf16.mxu1 %v9977_v36  ;;  %v10058_v35 = vld [vmem:[%s14515_s1 + $0xa00] ss:$16 sps:$4 sm:$0xff]   ;;  %v10061_v36 = vld [vmem:[%s14515_s1 + $0xa08] ss:$16 sps:$4 sm:$0xff]  }
 0x10a   :  { %6696 = vmatmul.mubr.bf16.gmra.mrb[4].mxu0 %v8256_v39  ;;  %7512 = vmatmul.mubr.bf16.gmra.mrb[4].mxu1 %v8256_v39  ;;  %v10064_v39 = vld [vmem:[%s14515_s1 + $0xa20] ss:$16 sps:$4 sm:$0xff]  }
 0x10b   :  { %6709 = vmatpush1.bf16.msra.mxu0 %v9972_v37  ;;  %7525 = vmatpush1.bf16.msra.mxu1 %v9975_v41  ;;  %v10066_v37 = vld [vmem:[%s14515_s1 + $0xa24] ss:$16 sps:$4 sm:$0xff]   ;;  %v8259_v41 = vcombine.high %v50_v33, %v50_v33 }
 0x10c   :  { %6710 = vmatprep.subr.bf16.mxu0 %v9980_v42  ;;  %7526 = vmatprep.subr.bf16.mxu1 %v9983_v43  ;;  %v10072_v42 = vld [vmem:[%s14515_s1 + $0xa44] ss:$16 sps:$4 sm:$0xff]   ;;  %v10075_v43 = vld [vmem:[%s14515_s1 + $0xa4c] ss:$16 sps:$4 sm:$0xff]  }
 0x10d   :  { %6736 = vmatprep.mubr.bf16.mxu0 %v8227_v44  ;;  %7552 = vmatprep.mubr.bf16.mxu1 %v8227_v44  ;;  %v12228_v44 = vld [vmem:[%s14516_s0 + $0x28] sm:$0xff] }
 0x10f   :  { %6711 = vmatpush1.bf16.msra.mxu0 %v9978_v45  ;;  %7527 = vmatpush1.bf16.msra.mxu1 %v9981_v46  ;;  %v12233_v45 = vld [vmem:[%s14516_s0 + $0xa8] sm:$0xff]  ;;  %v8258_v46 = vcombine.low %v50_v33, %v50_v33 }
 0x110   :  { %6712 = vmatprep.subr.bf16.mxu0 %v9986_v47  ;;  %7528 = vmatprep.subr.bf16.mxu1 %v9989_v48  ;;  %v10070_v47 = vld [vmem:[%s14515_s1 + $0xa40] ss:$16 sps:$4 sm:$0xff]   ;;  %v10073_v48 = vld [vmem:[%s14515_s1 + $0xa48] ss:$16 sps:$4 sm:$0xff]  }
 0x111   :  { %v10146_v33 = vld [vmem:[%s14515_s1 + $0xbc8] ss:$16 sps:$4 sm:$0xff]  }
 0x113   :  { %6713 = vmatpush1.bf16.msra.mxu0 %v9984_v49  ;;  %7529 = vmatpush1.bf16.msra.mxu1 %v9987_v50  ;;  %v10078_v49 = vld [vmem:[%s14515_s1 + $0xa64] ss:$16 sps:$4 sm:$0xff]   ;;  %v10081_v50 = vld [vmem:[%s14515_s1 + $0xa6c] ss:$16 sps:$4 sm:$0xff]  }
 0x114   :  { %6714 = vmatprep.subr.bf16.mxu0 %v9992_v51  ;;  %7530 = vmatprep.subr.bf16.mxu1 %v9995_v52  ;;  %v8229_v51 = vcombine.high %v12228_v44, %v12233_v45  ;;  %v10076_v52 = vld [vmem:[%s14515_s1 + $0xa60] ss:$16 sps:$4 sm:$0xff]  }
 0x117   :  { %6715 = vmatpush1.bf16.msra.mxu0 %v9990_v53  ;;  %7531 = vmatpush1.bf16.msra.mxu1 %v9993_v54  ;;  %v10079_v53 = vld [vmem:[%s14515_s1 + $0xa68] ss:$16 sps:$4 sm:$0xff]   ;;  %v10084_v54 = vld [vmem:[%s14515_s1 + $0xa84] ss:$16 sps:$4 sm:$0xff]  }
 0x118   :  { %6716 = vmatprep.subr.bf16.mxu0 %v9998_v55  ;;  %7532 = vmatprep.subr.bf16.mxu1 %v10001_v56  ;;  %v10087_v55 = vld [vmem:[%s14515_s1 + $0xa8c] ss:$16 sps:$4 sm:$0xff]   ;;  %v10082_v56 = vld [vmem:[%s14515_s1 + $0xa80] ss:$16 sps:$4 sm:$0xff]  }
 0x11b   :  { %6717 = vmatpush1.bf16.msra.mxu0 %v9996_v57  ;;  %7533 = vmatpush1.bf16.msra.mxu1 %v9999_v58  ;;  %v10085_v57 = vld [vmem:[%s14515_s1 + $0xa88] ss:$16 sps:$4 sm:$0xff]   ;;  %v10090_v58 = vld [vmem:[%s14515_s1 + $0xaa4] ss:$16 sps:$4 sm:$0xff]  }
 0x11c   :  { %6718 = vmatprep.subr.bf16.mxu0 %v10004_v59  ;;  %7534 = vmatprep.subr.bf16.mxu1 %v10007_v60  ;;  %v10093_v59 = vld [vmem:[%s14515_s1 + $0xaac] ss:$16 sps:$4 sm:$0xff]   ;;  %v10088_v60 = vld [vmem:[%s14515_s1 + $0xaa0] ss:$16 sps:$4 sm:$0xff]  }
 0x11f   :  { %6719 = vmatpush1.bf16.msra.mxu0 %v10002_v61  ;;  %7535 = vmatpush1.bf16.msra.mxu1 %v10005_v62  ;;  %v10091_v61 = vld [vmem:[%s14515_s1 + $0xaa8] ss:$16 sps:$4 sm:$0xff]   ;;  %v10096_v62 = vld [vmem:[%s14515_s1 + $0xac4] ss:$16 sps:$4 sm:$0xff]  }
 0x120   :  { %6720 = vmatprep.subr.bf16.mxu0 %v10010_v63  ;;  %7536 = vmatprep.subr.bf16.mxu1 %v10013_v0  ;;  %v10099_v63 = vld [vmem:[%s14515_s1 + $0xacc] ss:$16 sps:$4 sm:$0xff]   ;;  %v10094_v0 = vld [vmem:[%s14515_s1 + $0xac0] ss:$16 sps:$4 sm:$0xff]  }
 0x123   :  { %6721 = vmatpush1.bf16.msra.mxu0 %v10008_v1  ;;  %7537 = vmatpush1.bf16.msra.mxu1 %v10011_v2  ;;  %v10097_v1 = vld [vmem:[%s14515_s1 + $0xac8] ss:$16 sps:$4 sm:$0xff]   ;;  %v10102_v2 = vld [vmem:[%s14515_s1 + $0xae4] ss:$16 sps:$4 sm:$0xff]  }
 0x124   :  { %6722 = vmatprep.subr.bf16.mxu0 %v10016_v3  ;;  %7538 = vmatprep.subr.bf16.mxu1 %v10019_v4  ;;  %v10105_v3 = vld [vmem:[%s14515_s1 + $0xaec] ss:$16 sps:$4 sm:$0xff]   ;;  %v10100_v4 = vld [vmem:[%s14515_s1 + $0xae0] ss:$16 sps:$4 sm:$0xff]  }
 0x127   :  { %6723 = vmatpush1.bf16.msra.mxu0 %v10014_v5  ;;  %7539 = vmatpush1.bf16.msra.mxu1 %v10017_v6  ;;  %v10103_v5 = vld [vmem:[%s14515_s1 + $0xae8] ss:$16 sps:$4 sm:$0xff]   ;;  %v10108_v6 = vld [vmem:[%s14515_s1 + $0xb04] ss:$16 sps:$4 sm:$0xff]  }
 0x128   :  { %6724 = vmatprep.subr.bf16.mxu0 %v10022_v7  ;;  %7540 = vmatprep.subr.bf16.mxu1 %v10025_v8  ;;  %v10111_v7 = vld [vmem:[%s14515_s1 + $0xb0c] ss:$16 sps:$4 sm:$0xff]   ;;  %v10106_v8 = vld [vmem:[%s14515_s1 + $0xb00] ss:$16 sps:$4 sm:$0xff]  }
 0x12b   :  { %6725 = vmatpush1.bf16.msra.mxu0 %v10020_v9  ;;  %7541 = vmatpush1.bf16.msra.mxu1 %v10023_v10  ;;  %v10109_v9 = vld [vmem:[%s14515_s1 + $0xb08] ss:$16 sps:$4 sm:$0xff]   ;;  %v10114_v10 = vld [vmem:[%s14515_s1 + $0xb24] ss:$16 sps:$4 sm:$0xff]  }
 0x12c   :  { %6726 = vmatprep.subr.bf16.mxu0 %v10028_v11  ;;  %7542 = vmatprep.subr.bf16.mxu1 %v10031_v12  ;;  %v10117_v11 = vld [vmem:[%s14515_s1 + $0xb2c] ss:$16 sps:$4 sm:$0xff]   ;;  %v10112_v12 = vld [vmem:[%s14515_s1 + $0xb20] ss:$16 sps:$4 sm:$0xff]  }
 0x12f   :  { %6727 = vmatpush1.bf16.msra.mxu0 %v10026_v13  ;;  %7543 = vmatpush1.bf16.msra.mxu1 %v10029_v14  ;;  %v10115_v13 = vld [vmem:[%s14515_s1 + $0xb28] ss:$16 sps:$4 sm:$0xff]   ;;  %v10120_v14 = vld [vmem:[%s14515_s1 + $0xb44] ss:$16 sps:$4 sm:$0xff]  }
 0x130   :  { %6728 = vmatprep.subr.bf16.mxu0 %v10034_v15  ;;  %7544 = vmatprep.subr.bf16.mxu1 %v10037_v16  ;;  %v10123_v15 = vld [vmem:[%s14515_s1 + $0xb4c] ss:$16 sps:$4 sm:$0xff]   ;;  %v10118_v16 = vld [vmem:[%s14515_s1 + $0xb40] ss:$16 sps:$4 sm:$0xff]  }
 0x133   :  { %6729 = vmatpush1.bf16.msra.mxu0 %v10032_v17  ;;  %7545 = vmatpush1.bf16.msra.mxu1 %v10035_v18  ;;  %v10121_v17 = vld [vmem:[%s14515_s1 + $0xb48] ss:$16 sps:$4 sm:$0xff]   ;;  %v10126_v18 = vld [vmem:[%s14515_s1 + $0xb64] ss:$16 sps:$4 sm:$0xff]  }
 0x134   :  { %6730 = vmatprep.subr.bf16.mxu0 %v10040_v19  ;;  %7546 = vmatprep.subr.bf16.mxu1 %v10043_v20  ;;  %v10129_v19 = vld [vmem:[%s14515_s1 + $0xb6c] ss:$16 sps:$4 sm:$0xff]   ;;  %v10124_v20 = vld [vmem:[%s14515_s1 + $0xb60] ss:$16 sps:$4 sm:$0xff]  }
 0x137   :  { %6731 = vmatpush1.bf16.msra.mxu0 %v10038_v21  ;;  %7547 = vmatpush1.bf16.msra.mxu1 %v10041_v22  ;;  %v10127_v21 = vld [vmem:[%s14515_s1 + $0xb68] ss:$16 sps:$4 sm:$0xff]   ;;  %v10132_v22 = vld [vmem:[%s14515_s1 + $0xb84] ss:$16 sps:$4 sm:$0xff]  }
 0x138   :  { %6732 = vmatprep.subr.bf16.mxu0 %v10047_v23  ;;  %7548 = vmatprep.subr.bf16.mxu1 %v10050_v24  ;;  %v10135_v23 = vld [vmem:[%s14515_s1 + $0xb8c] ss:$16 sps:$4 sm:$0xff]   ;;  %v10130_v24 = vld [vmem:[%s14515_s1 + $0xb80] ss:$16 sps:$4 sm:$0xff]  }
 0x13b   :  { %6733 = vmatpush1.bf16.msra.mxu0 %v10045_v25  ;;  %7549 = vmatpush1.bf16.msra.mxu1 %v10048_v26  ;;  %v10133_v25 = vld [vmem:[%s14515_s1 + $0xb88] ss:$16 sps:$4 sm:$0xff]   ;;  %v10138_v26 = vld [vmem:[%s14515_s1 + $0xba4] ss:$16 sps:$4 sm:$0xff]  }
 0x13c   :  { %6734 = vmatprep.subr.bf16.mxu0 %v10054_v27  ;;  %7550 = vmatprep.subr.bf16.mxu1 %v10057_v28  ;;  %v10141_v27 = vld [vmem:[%s14515_s1 + $0xbac] ss:$16 sps:$4 sm:$0xff]   ;;  %v10136_v28 = vld [vmem:[%s14515_s1 + $0xba0] ss:$16 sps:$4 sm:$0xff]  }
 0x13f   :  { %6735 = vmatpush1.bf16.msra.mxu0 %v10052_v29  ;;  %7551 = vmatpush1.bf16.msra.mxu1 %v10055_v30  ;;  %v10139_v29 = vld [vmem:[%s14515_s1 + $0xba8] ss:$16 sps:$4 sm:$0xff]   ;;  %v10145_v30 = vld [vmem:[%s14515_s1 + $0xbc4] ss:$16 sps:$4 sm:$0xff]  }
 0x140   :  { %6755 = vmatprep.subr.bf16.mxu0 %v10060_v31  ;;  %7571 = vmatprep.subr.bf16.mxu1 %v10063_v32  ;;  %v10148_v31 = vld [vmem:[%s14515_s1 + $0xbcc] ss:$16 sps:$4 sm:$0xff]   ;;  %v10143_v32 = vld [vmem:[%s14515_s1 + $0xbc0] ss:$16 sps:$4 sm:$0xff]  }
 0x142   :  { %6737 = vmatmul.mubr.bf16.vlgmr.msra.gmra.mrb[0].mxu0 %v8226_v34  ;;  %7553 = vmatmul.mubr.bf16.vlgmr.msra.gmra.mrb[0].mxu1 %v8226_v34  ;;  %v10152_v34 = vld [vmem:[%s14515_s1 + $0xbe4] ss:$16 sps:$4 sm:$0xff]  }
 0x143   :  { %6756 = vmatpush1.bf16.msra.mxu0 %v10058_v35  ;;  %7572 = vmatpush1.bf16.msra.mxu1 %v10061_v36  ;;  %v10155_v35 = vld [vmem:[%s14515_s1 + $0xbec] ss:$16 sps:$4 sm:$0xff]   ;;  %v10150_v36 = vld [vmem:[%s14515_s1 + $0xbe0] ss:$16 sps:$4 sm:$0xff]  }
 0x144   :  { %6757 = vmatprep.subr.bf16.mxu0 %v10066_v37  ;;  %7573 = vmatprep.subr.bf16.mxu1 %v10069_v38  ;;  %v10153_v37 = vld [vmem:[%s14515_s1 + $0xbe8] ss:$16 sps:$4 sm:$0xff]   ;;  %v10158_v38 = vld [vmem:[%s14515_s1 + $0xc04] ss:$16 sps:$4 sm:$0xff]  }
 0x145   :  { %6746 = vmatprep.mubr.bf16.mxu0 %v8259_v41  ;;  %7562 = vmatprep.mubr.bf16.mxu1 %v8259_v41  ;;  %v8228_v41 = vcombine.low %v12228_v44, %v12233_v45  ;;  %v10167_v44 = vld [vmem:[%s14515_s1 + $0xc2c] ss:$16 sps:$4 sm:$0xff]   ;;  %v10162_v45 = vld [vmem:[%s14515_s1 + $0xc20] ss:$16 sps:$4 sm:$0xff]  }
 0x147   :  { %6758 = vmatpush1.bf16.msra.mxu0 %v10064_v39  ;;  %7574 = vmatpush1.bf16.msra.mxu1 %v10067_v40  ;;  %v10161_v39 = vld [vmem:[%s14515_s1 + $0xc0c] ss:$16 sps:$4 sm:$0xff]  }
 0x148   :  { %6759 = vmatprep.subr.bf16.mxu0 %v10072_v42  ;;  %7575 = vmatprep.subr.bf16.mxu1 %v10075_v43  ;;  %v51_v40 = vld [vmem:[%s14516_s0 + $0x128] sm:$0x33]  ;;  %v10156_v42 = vld [vmem:[%s14515_s1 + $0xc00] ss:$16 sps:$4 sm:$0xff]  }
 0x149   :  { %v10159_v43 = vld [vmem:[%s14515_s1 + $0xc08] ss:$16 sps:$4 sm:$0xff]  }
 0x14a   :  { %6747 = vmatmul.mubr.bf16.gmra.mrb[4].mxu0 %v8258_v46  ;;  %7563 = vmatmul.mubr.bf16.gmra.mrb[4].mxu1 %v8258_v46  ;;  %v10164_v46 = vld [vmem:[%s14515_s1 + $0xc24] ss:$16 sps:$4 sm:$0xff]  }
 0x14b   :  { %6760 = vmatpush1.bf16.msra.mxu0 %v10070_v47  ;;  %7576 = vmatpush1.bf16.msra.mxu1 %v10073_v48  ;;  %v10165_v47 = vld [vmem:[%s14515_s1 + $0xc28] ss:$16 sps:$4 sm:$0xff]   ;;  %v8261_v48 = vcombine.high %v51_v40, %v51_v40 }
 0x14c   :  { %6761 = vmatprep.subr.bf16.mxu0 %v10078_v49  ;;  %7577 = vmatprep.subr.bf16.mxu1 %v10081_v50  ;;  %v10170_v49 = vld [vmem:[%s14515_s1 + $0xc44] ss:$16 sps:$4 sm:$0xff]   ;;  %v10173_v50 = vld [vmem:[%s14515_s1 + $0xc4c] ss:$16 sps:$4 sm:$0xff]  }
 0x14d   :  { %6787 = vmatprep.mubr.bf16.mxu0 %v8229_v51  ;;  %7603 = vmatprep.mubr.bf16.mxu1 %v8229_v51  ;;  %v12437_v51 = vld [vmem:[%s14516_s0 + $0x30] sm:$0xff] }
 0x14f   :  { %6762 = vmatpush1.bf16.msra.mxu0 %v10076_v52  ;;  %7578 = vmatpush1.bf16.msra.mxu1 %v10079_v53  ;;  %v12442_v52 = vld [vmem:[%s14516_s0 + $0xb0] sm:$0xff]  ;;  %v8260_v53 = vcombine.low %v51_v40, %v51_v40  ;;  %v10244_v40 = vld [vmem:[%s14515_s1 + $0xdc8] ss:$16 sps:$4 sm:$0xff]  }
 0x150   :  { %6763 = vmatprep.subr.bf16.mxu0 %v10084_v54  ;;  %7579 = vmatprep.subr.bf16.mxu1 %v10087_v55  ;;  %v10168_v54 = vld [vmem:[%s14515_s1 + $0xc40] ss:$16 sps:$4 sm:$0xff]   ;;  %v10171_v55 = vld [vmem:[%s14515_s1 + $0xc48] ss:$16 sps:$4 sm:$0xff]  }
 0x153   :  { %6764 = vmatpush1.bf16.msra.mxu0 %v10082_v56  ;;  %7580 = vmatpush1.bf16.msra.mxu1 %v10085_v57  ;;  %v10176_v56 = vld [vmem:[%s14515_s1 + $0xc64] ss:$16 sps:$4 sm:$0xff]   ;;  %v10179_v57 = vld [vmem:[%s14515_s1 + $0xc6c] ss:$16 sps:$4 sm:$0xff]  }
 0x154   :  { %6765 = vmatprep.subr.bf16.mxu0 %v10090_v58  ;;  %7581 = vmatprep.subr.bf16.mxu1 %v10093_v59  ;;  %v8231_v58 = vcombine.high %v12437_v51, %v12442_v52  ;;  %v10174_v59 = vld [vmem:[%s14515_s1 + $0xc60] ss:$16 sps:$4 sm:$0xff]  }
 0x157   :  { %6766 = vmatpush1.bf16.msra.mxu0 %v10088_v60  ;;  %7582 = vmatpush1.bf16.msra.mxu1 %v10091_v61  ;;  %v10177_v60 = vld [vmem:[%s14515_s1 + $0xc68] ss:$16 sps:$4 sm:$0xff]   ;;  %v10182_v61 = vld [vmem:[%s14515_s1 + $0xc84] ss:$16 sps:$4 sm:$0xff]  }
 0x158   :  { %6767 = vmatprep.subr.bf16.mxu0 %v10096_v62  ;;  %7583 = vmatprep.subr.bf16.mxu1 %v10099_v63  ;;  %v10185_v62 = vld [vmem:[%s14515_s1 + $0xc8c] ss:$16 sps:$4 sm:$0xff]   ;;  %v10180_v63 = vld [vmem:[%s14515_s1 + $0xc80] ss:$16 sps:$4 sm:$0xff]  }
 0x15b   :  { %6768 = vmatpush1.bf16.msra.mxu0 %v10094_v0  ;;  %7584 = vmatpush1.bf16.msra.mxu1 %v10097_v1  ;;  %v10183_v0 = vld [vmem:[%s14515_s1 + $0xc88] ss:$16 sps:$4 sm:$0xff]   ;;  %v10188_v1 = vld [vmem:[%s14515_s1 + $0xca4] ss:$16 sps:$4 sm:$0xff]  }
 0x15c   :  { %6769 = vmatprep.subr.bf16.mxu0 %v10102_v2  ;;  %7585 = vmatprep.subr.bf16.mxu1 %v10105_v3  ;;  %v10191_v2 = vld [vmem:[%s14515_s1 + $0xcac] ss:$16 sps:$4 sm:$0xff]   ;;  %v10186_v3 = vld [vmem:[%s14515_s1 + $0xca0] ss:$16 sps:$4 sm:$0xff]  }
 0x15f   :  { %6770 = vmatpush1.bf16.msra.mxu0 %v10100_v4  ;;  %7586 = vmatpush1.bf16.msra.mxu1 %v10103_v5  ;;  %v10189_v4 = vld [vmem:[%s14515_s1 + $0xca8] ss:$16 sps:$4 sm:$0xff]   ;;  %v10194_v5 = vld [vmem:[%s14515_s1 + $0xcc4] ss:$16 sps:$4 sm:$0xff]  }
 0x160   :  { %6771 = vmatprep.subr.bf16.mxu0 %v10108_v6  ;;  %7587 = vmatprep.subr.bf16.mxu1 %v10111_v7  ;;  %v10197_v6 = vld [vmem:[%s14515_s1 + $0xccc] ss:$16 sps:$4 sm:$0xff]   ;;  %v10192_v7 = vld [vmem:[%s14515_s1 + $0xcc0] ss:$16 sps:$4 sm:$0xff]  }
 0x163   :  { %6772 = vmatpush1.bf16.msra.mxu0 %v10106_v8  ;;  %7588 = vmatpush1.bf16.msra.mxu1 %v10109_v9  ;;  %v10195_v8 = vld [vmem:[%s14515_s1 + $0xcc8] ss:$16 sps:$4 sm:$0xff]   ;;  %v10200_v9 = vld [vmem:[%s14515_s1 + $0xce4] ss:$16 sps:$4 sm:$0xff]  }
 0x164   :  { %6773 = vmatprep.subr.bf16.mxu0 %v10114_v10  ;;  %7589 = vmatprep.subr.bf16.mxu1 %v10117_v11  ;;  %v10203_v10 = vld [vmem:[%s14515_s1 + $0xcec] ss:$16 sps:$4 sm:$0xff]   ;;  %v10198_v11 = vld [vmem:[%s14515_s1 + $0xce0] ss:$16 sps:$4 sm:$0xff]  }
 0x167   :  { %6774 = vmatpush1.bf16.msra.mxu0 %v10112_v12  ;;  %7590 = vmatpush1.bf16.msra.mxu1 %v10115_v13  ;;  %v10201_v12 = vld [vmem:[%s14515_s1 + $0xce8] ss:$16 sps:$4 sm:$0xff]   ;;  %v10206_v13 = vld [vmem:[%s14515_s1 + $0xd04] ss:$16 sps:$4 sm:$0xff]  }
 0x168   :  { %6775 = vmatprep.subr.bf16.mxu0 %v10120_v14  ;;  %7591 = vmatprep.subr.bf16.mxu1 %v10123_v15  ;;  %v10209_v14 = vld [vmem:[%s14515_s1 + $0xd0c] ss:$16 sps:$4 sm:$0xff]   ;;  %v10204_v15 = vld [vmem:[%s14515_s1 + $0xd00] ss:$16 sps:$4 sm:$0xff]  }
 0x16b   :  { %6776 = vmatpush1.bf16.msra.mxu0 %v10118_v16  ;;  %7592 = vmatpush1.bf16.msra.mxu1 %v10121_v17  ;;  %v10207_v16 = vld [vmem:[%s14515_s1 + $0xd08] ss:$16 sps:$4 sm:$0xff]   ;;  %v10212_v17 = vld [vmem:[%s14515_s1 + $0xd24] ss:$16 sps:$4 sm:$0xff]  }
 0x16c   :  { %6777 = vmatprep.subr.bf16.mxu0 %v10126_v18  ;;  %7593 = vmatprep.subr.bf16.mxu1 %v10129_v19  ;;  %v10215_v18 = vld [vmem:[%s14515_s1 + $0xd2c] ss:$16 sps:$4 sm:$0xff]   ;;  %v10210_v19 = vld [vmem:[%s14515_s1 + $0xd20] ss:$16 sps:$4 sm:$0xff]  }
 0x16f   :  { %6778 = vmatpush1.bf16.msra.mxu0 %v10124_v20  ;;  %7594 = vmatpush1.bf16.msra.mxu1 %v10127_v21  ;;  %v10213_v20 = vld [vmem:[%s14515_s1 + $0xd28] ss:$16 sps:$4 sm:$0xff]   ;;  %v10218_v21 = vld [vmem:[%s14515_s1 + $0xd44] ss:$16 sps:$4 sm:$0xff]  }
 0x170   :  { %6779 = vmatprep.subr.bf16.mxu0 %v10132_v22  ;;  %7595 = vmatprep.subr.bf16.mxu1 %v10135_v23  ;;  %v10221_v22 = vld [vmem:[%s14515_s1 + $0xd4c] ss:$16 sps:$4 sm:$0xff]   ;;  %v10216_v23 = vld [vmem:[%s14515_s1 + $0xd40] ss:$16 sps:$4 sm:$0xff]  }
 0x173   :  { %6780 = vmatpush1.bf16.msra.mxu0 %v10130_v24  ;;  %7596 = vmatpush1.bf16.msra.mxu1 %v10133_v25  ;;  %v10219_v24 = vld [vmem:[%s14515_s1 + $0xd48] ss:$16 sps:$4 sm:$0xff]   ;;  %v10224_v25 = vld [vmem:[%s14515_s1 + $0xd64] ss:$16 sps:$4 sm:$0xff]  }
 0x174   :  { %6781 = vmatprep.subr.bf16.mxu0 %v10138_v26  ;;  %7597 = vmatprep.subr.bf16.mxu1 %v10141_v27  ;;  %v10227_v26 = vld [vmem:[%s14515_s1 + $0xd6c] ss:$16 sps:$4 sm:$0xff]   ;;  %v10222_v27 = vld [vmem:[%s14515_s1 + $0xd60] ss:$16 sps:$4 sm:$0xff]  }
 0x177   :  { %6782 = vmatpush1.bf16.msra.mxu0 %v10136_v28  ;;  %7598 = vmatpush1.bf16.msra.mxu1 %v10139_v29  ;;  %v10225_v28 = vld [vmem:[%s14515_s1 + $0xd68] ss:$16 sps:$4 sm:$0xff]   ;;  %v10230_v29 = vld [vmem:[%s14515_s1 + $0xd84] ss:$16 sps:$4 sm:$0xff]  }
 0x178   :  { %6783 = vmatprep.subr.bf16.mxu0 %v10145_v30  ;;  %7599 = vmatprep.subr.bf16.mxu1 %v10148_v31  ;;  %v10233_v30 = vld [vmem:[%s14515_s1 + $0xd8c] ss:$16 sps:$4 sm:$0xff]   ;;  %v10228_v31 = vld [vmem:[%s14515_s1 + $0xd80] ss:$16 sps:$4 sm:$0xff]  }
 0x17b   :  { %6784 = vmatpush1.bf16.msra.mxu0 %v10143_v32  ;;  %7600 = vmatpush1.bf16.msra.mxu1 %v10146_v33  ;;  %v10231_v32 = vld [vmem:[%s14515_s1 + $0xd88] ss:$16 sps:$4 sm:$0xff]   ;;  %v10236_v33 = vld [vmem:[%s14515_s1 + $0xda4] ss:$16 sps:$4 sm:$0xff]  }
 0x17c   :  { %6785 = vmatprep.subr.bf16.mxu0 %v10152_v34  ;;  %7601 = vmatprep.subr.bf16.mxu1 %v10155_v35  ;;  %v10239_v34 = vld [vmem:[%s14515_s1 + $0xdac] ss:$16 sps:$4 sm:$0xff]   ;;  %v10234_v35 = vld [vmem:[%s14515_s1 + $0xda0] ss:$16 sps:$4 sm:$0xff]  }
 0x17f   :  { %6786 = vmatpush1.bf16.msra.mxu0 %v10150_v36  ;;  %7602 = vmatpush1.bf16.msra.mxu1 %v10153_v37  ;;  %v10237_v36 = vld [vmem:[%s14515_s1 + $0xda8] ss:$16 sps:$4 sm:$0xff]   ;;  %v10243_v37 = vld [vmem:[%s14515_s1 + $0xdc4] ss:$16 sps:$4 sm:$0xff]  }
 0x180   :  { %6806 = vmatprep.subr.bf16.mxu0 %v10158_v38  ;;  %7622 = vmatprep.subr.bf16.mxu1 %v10161_v39  ;;  %v10246_v38 = vld [vmem:[%s14515_s1 + $0xdcc] ss:$16 sps:$4 sm:$0xff]   ;;  %v10241_v39 = vld [vmem:[%s14515_s1 + $0xdc0] ss:$16 sps:$4 sm:$0xff]  }
 0x182   :  { %6788 = vmatmul.mubr.bf16.vlgmr.msra.gmra.mrb[0].mxu0 %v8228_v41  ;;  %7604 = vmatmul.mubr.bf16.vlgmr.msra.gmra.mrb[0].mxu1 %v8228_v41  ;;  %v10250_v41 = vld [vmem:[%s14515_s1 + $0xde4] ss:$16 sps:$4 sm:$0xff]  }
 0x183   :  { %6807 = vmatpush1.bf16.msra.mxu0 %v10156_v42  ;;  %7623 = vmatpush1.bf16.msra.mxu1 %v10159_v43  ;;  %v10253_v42 = vld [vmem:[%s14515_s1 + $0xdec] ss:$16 sps:$4 sm:$0xff]   ;;  %v10248_v43 = vld [vmem:[%s14515_s1 + $0xde0] ss:$16 sps:$4 sm:$0xff]  }
 0x184   :  { %6808 = vmatprep.subr.bf16.mxu0 %v10164_v46  ;;  %7624 = vmatprep.subr.bf16.mxu1 %v10167_v44  ;;  %v10251_v46 = vld [vmem:[%s14515_s1 + $0xde8] ss:$16 sps:$4 sm:$0xff]   ;;  %v10256_v44 = vld [vmem:[%s14515_s1 + $0xe04] ss:$16 sps:$4 sm:$0xff]  }
 0x185   :  { %6797 = vmatprep.mubr.bf16.mxu0 %v8261_v48  ;;  %7613 = vmatprep.mubr.bf16.mxu1 %v8261_v48  ;;  %v8230_v48 = vcombine.low %v12437_v51, %v12442_v52  ;;  %v10265_v51 = vld [vmem:[%s14515_s1 + $0xe2c] ss:$16 sps:$4 sm:$0xff]   ;;  %v10260_v52 = vld [vmem:[%s14515_s1 + $0xe20] ss:$16 sps:$4 sm:$0xff]  }
 0x187   :  { %6809 = vmatpush1.bf16.msra.mxu0 %v10162_v45  ;;  %7625 = vmatpush1.bf16.msra.mxu1 %v10165_v47  ;;  %v10259_v45 = vld [vmem:[%s14515_s1 + $0xe0c] ss:$16 sps:$4 sm:$0xff]   ;;  %v52_v47 = vld [vmem:[%s14516_s0 + $0x130] sm:$0x33] }
 0x188   :  { %6810 = vmatprep.subr.bf16.mxu0 %v10170_v49  ;;  %7626 = vmatprep.subr.bf16.mxu1 %v10173_v50  ;;  %v10254_v49 = vld [vmem:[%s14515_s1 + $0xe00] ss:$16 sps:$4 sm:$0xff]   ;;  %v10257_v50 = vld [vmem:[%s14515_s1 + $0xe08] ss:$16 sps:$4 sm:$0xff]  }
 0x18a   :  { %6798 = vmatmul.mubr.bf16.gmra.mrb[4].mxu0 %v8260_v53  ;;  %7614 = vmatmul.mubr.bf16.gmra.mrb[4].mxu1 %v8260_v53  ;;  %v10262_v53 = vld [vmem:[%s14515_s1 + $0xe24] ss:$16 sps:$4 sm:$0xff]  }
 0x18b   :  { %6811 = vmatpush1.bf16.msra.mxu0 %v10168_v54  ;;  %7627 = vmatpush1.bf16.msra.mxu1 %v10171_v55  ;;  %v10263_v54 = vld [vmem:[%s14515_s1 + $0xe28] ss:$16 sps:$4 sm:$0xff]   ;;  %v8263_v55 = vcombine.high %v52_v47, %v52_v47 }
 0x18c   :  { %6812 = vmatprep.subr.bf16.mxu0 %v10176_v56  ;;  %7628 = vmatprep.subr.bf16.mxu1 %v10179_v57  ;;  %v10268_v56 = vld [vmem:[%s14515_s1 + $0xe44] ss:$16 sps:$4 sm:$0xff]   ;;  %v10271_v57 = vld [vmem:[%s14515_s1 + $0xe4c] ss:$16 sps:$4 sm:$0xff]  }
 0x18d   :  { %6838 = vmatprep.mubr.bf16.mxu0 %v8231_v58  ;;  %7654 = vmatprep.mubr.bf16.mxu1 %v8231_v58  ;;  %v12646_v58 = vld [vmem:[%s14516_s0 + $0x38] sm:$0xff] }
 0x18f   :  { %6813 = vmatpush1.bf16.msra.mxu0 %v10174_v59  ;;  %7629 = vmatpush1.bf16.msra.mxu1 %v10177_v60  ;;  %v12651_v59 = vld [vmem:[%s14516_s0 + $0xb8] sm:$0xff]  ;;  %v8262_v60 = vcombine.low %v52_v47, %v52_v47 }
 0x190   :  { %6814 = vmatprep.subr.bf16.mxu0 %v10182_v61  ;;  %7630 = vmatprep.subr.bf16.mxu1 %v10185_v62  ;;  %v10266_v61 = vld [vmem:[%s14515_s1 + $0xe40] ss:$16 sps:$4 sm:$0xff]   ;;  %v10269_v62 = vld [vmem:[%s14515_s1 + $0xe48] ss:$16 sps:$4 sm:$0xff]  }
 0x191   :  { %v10342_v47 = vld [vmem:[%s14515_s1 + $0xfc8] ss:$16 sps:$4 sm:$0xff]  }
 0x193   :  { %6815 = vmatpush1.bf16.msra.mxu0 %v10180_v63  ;;  %7631 = vmatpush1.bf16.msra.mxu1 %v10183_v0  ;;  %v10274_v63 = vld [vmem:[%s14515_s1 + $0xe64] ss:$16 sps:$4 sm:$0xff]   ;;  %v10277_v0 = vld [vmem:[%s14515_s1 + $0xe6c] ss:$16 sps:$4 sm:$0xff]  }
 0x194   :  { %6816 = vmatprep.subr.bf16.mxu0 %v10188_v1  ;;  %7632 = vmatprep.subr.bf16.mxu1 %v10191_v2  ;;  %v8233_v1 = vcombine.high %v12646_v58, %v12651_v59  ;;  %v10272_v2 = vld [vmem:[%s14515_s1 + $0xe60] ss:$16 sps:$4 sm:$0xff]  }
 0x197   :  { %6817 = vmatpush1.bf16.msra.mxu0 %v10186_v3  ;;  %7633 = vmatpush1.bf16.msra.mxu1 %v10189_v4  ;;  %v10275_v3 = vld [vmem:[%s14515_s1 + $0xe68] ss:$16 sps:$4 sm:$0xff]   ;;  %v10280_v4 = vld [vmem:[%s14515_s1 + $0xe84] ss:$16 sps:$4 sm:$0xff]  }
 0x198   :  { %6818 = vmatprep.subr.bf16.mxu0 %v10194_v5  ;;  %7634 = vmatprep.subr.bf16.mxu1 %v10197_v6  ;;  %v10283_v5 = vld [vmem:[%s14515_s1 + $0xe8c] ss:$16 sps:$4 sm:$0xff]   ;;  %v10278_v6 = vld [vmem:[%s14515_s1 + $0xe80] ss:$16 sps:$4 sm:$0xff]  }
 0x19b   :  { %6819 = vmatpush1.bf16.msra.mxu0 %v10192_v7  ;;  %7635 = vmatpush1.bf16.msra.mxu1 %v10195_v8  ;;  %v10281_v7 = vld [vmem:[%s14515_s1 + $0xe88] ss:$16 sps:$4 sm:$0xff]   ;;  %v10286_v8 = vld [vmem:[%s14515_s1 + $0xea4] ss:$16 sps:$4 sm:$0xff]  }
 0x19c   :  { %6820 = vmatprep.subr.bf16.mxu0 %v10200_v9  ;;  %7636 = vmatprep.subr.bf16.mxu1 %v10203_v10  ;;  %v10289_v9 = vld [vmem:[%s14515_s1 + $0xeac] ss:$16 sps:$4 sm:$0xff]   ;;  %v10284_v10 = vld [vmem:[%s14515_s1 + $0xea0] ss:$16 sps:$4 sm:$0xff]  }
 0x19f   :  { %6821 = vmatpush1.bf16.msra.mxu0 %v10198_v11  ;;  %7637 = vmatpush1.bf16.msra.mxu1 %v10201_v12  ;;  %v10287_v11 = vld [vmem:[%s14515_s1 + $0xea8] ss:$16 sps:$4 sm:$0xff]   ;;  %v10292_v12 = vld [vmem:[%s14515_s1 + $0xec4] ss:$16 sps:$4 sm:$0xff]  }
 0x1a0   :  { %6822 = vmatprep.subr.bf16.mxu0 %v10206_v13  ;;  %7638 = vmatprep.subr.bf16.mxu1 %v10209_v14  ;;  %v10295_v13 = vld [vmem:[%s14515_s1 + $0xecc] ss:$16 sps:$4 sm:$0xff]   ;;  %v10290_v14 = vld [vmem:[%s14515_s1 + $0xec0] ss:$16 sps:$4 sm:$0xff]  }
 0x1a3   :  { %6823 = vmatpush1.bf16.msra.mxu0 %v10204_v15  ;;  %7639 = vmatpush1.bf16.msra.mxu1 %v10207_v16  ;;  %v10293_v15 = vld [vmem:[%s14515_s1 + $0xec8] ss:$16 sps:$4 sm:$0xff]   ;;  %v10298_v16 = vld [vmem:[%s14515_s1 + $0xee4] ss:$16 sps:$4 sm:$0xff]  }
 0x1a4   :  { %6824 = vmatprep.subr.bf16.mxu0 %v10212_v17  ;;  %7640 = vmatprep.subr.bf16.mxu1 %v10215_v18  ;;  %v10301_v17 = vld [vmem:[%s14515_s1 + $0xeec] ss:$16 sps:$4 sm:$0xff]   ;;  %v10296_v18 = vld [vmem:[%s14515_s1 + $0xee0] ss:$16 sps:$4 sm:$0xff]  }
 0x1a7   :  { %6825 = vmatpush1.bf16.msra.mxu0 %v10210_v19  ;;  %7641 = vmatpush1.bf16.msra.mxu1 %v10213_v20  ;;  %v10299_v19 = vld [vmem:[%s14515_s1 + $0xee8] ss:$16 sps:$4 sm:$0xff]   ;;  %v10304_v20 = vld [vmem:[%s14515_s1 + $0xf04] ss:$16 sps:$4 sm:$0xff]  }
 0x1a8   :  { %6826 = vmatprep.subr.bf16.mxu0 %v10218_v21  ;;  %7642 = vmatprep.subr.bf16.mxu1 %v10221_v22  ;;  %v10307_v21 = vld [vmem:[%s14515_s1 + $0xf0c] ss:$16 sps:$4 sm:$0xff]   ;;  %v10302_v22 = vld [vmem:[%s14515_s1 + $0xf00] ss:$16 sps:$4 sm:$0xff]  }
 0x1ab   :  { %6827 = vmatpush1.bf16.msra.mxu0 %v10216_v23  ;;  %7643 = vmatpush1.bf16.msra.mxu1 %v10219_v24  ;;  %v10305_v23 = vld [vmem:[%s14515_s1 + $0xf08] ss:$16 sps:$4 sm:$0xff]   ;;  %v10310_v24 = vld [vmem:[%s14515_s1 + $0xf24] ss:$16 sps:$4 sm:$0xff]  }
 0x1ac   :  { %6828 = vmatprep.subr.bf16.mxu0 %v10224_v25  ;;  %7644 = vmatprep.subr.bf16.mxu1 %v10227_v26  ;;  %v10313_v25 = vld [vmem:[%s14515_s1 + $0xf2c] ss:$16 sps:$4 sm:$0xff]   ;;  %v10308_v26 = vld [vmem:[%s14515_s1 + $0xf20] ss:$16 sps:$4 sm:$0xff]  }
 0x1af   :  { %6829 = vmatpush1.bf16.msra.mxu0 %v10222_v27  ;;  %7645 = vmatpush1.bf16.msra.mxu1 %v10225_v28  ;;  %v10311_v27 = vld [vmem:[%s14515_s1 + $0xf28] ss:$16 sps:$4 sm:$0xff]   ;;  %v10316_v28 = vld [vmem:[%s14515_s1 + $0xf44] ss:$16 sps:$4 sm:$0xff]  }
 0x1b0   :  { %6830 = vmatprep.subr.bf16.mxu0 %v10230_v29  ;;  %7646 = vmatprep.subr.bf16.mxu1 %v10233_v30  ;;  %v10319_v29 = vld [vmem:[%s14515_s1 + $0xf4c] ss:$16 sps:$4 sm:$0xff]   ;;  %v10314_v30 = vld [vmem:[%s14515_s1 + $0xf40] ss:$16 sps:$4 sm:$0xff]  }
 0x1b3   :  { %6831 = vmatpush1.bf16.msra.mxu0 %v10228_v31  ;;  %7647 = vmatpush1.bf16.msra.mxu1 %v10231_v32  ;;  %v10317_v31 = vld [vmem:[%s14515_s1 + $0xf48] ss:$16 sps:$4 sm:$0xff]   ;;  %v10322_v32 = vld [vmem:[%s14515_s1 + $0xf64] ss:$16 sps:$4 sm:$0xff]  }
 0x1b4   :  { %6832 = vmatprep.subr.bf16.mxu0 %v10236_v33  ;;  %7648 = vmatprep.subr.bf16.mxu1 %v10239_v34  ;;  %v10325_v33 = vld [vmem:[%s14515_s1 + $0xf6c] ss:$16 sps:$4 sm:$0xff]   ;;  %v10320_v34 = vld [vmem:[%s14515_s1 + $0xf60] ss:$16 sps:$4 sm:$0xff]  }
 0x1b7   :  { %6833 = vmatpush1.bf16.msra.mxu0 %v10234_v35  ;;  %7649 = vmatpush1.bf16.msra.mxu1 %v10237_v36  ;;  %v10323_v35 = vld [vmem:[%s14515_s1 + $0xf68] ss:$16 sps:$4 sm:$0xff]   ;;  %v10328_v36 = vld [vmem:[%s14515_s1 + $0xf84] ss:$16 sps:$4 sm:$0xff]  }
 0x1b8   :  { %6834 = vmatprep.subr.bf16.mxu0 %v10243_v37  ;;  %7650 = vmatprep.subr.bf16.mxu1 %v10246_v38  ;;  %v10331_v37 = vld [vmem:[%s14515_s1 + $0xf8c] ss:$16 sps:$4 sm:$0xff]   ;;  %v10326_v38 = vld [vmem:[%s14515_s1 + $0xf80] ss:$16 sps:$4 sm:$0xff]  }
 0x1bb   :  { %6835 = vmatpush1.bf16.msra.mxu0 %v10241_v39  ;;  %7651 = vmatpush1.bf16.msra.mxu1 %v10244_v40  ;;  %v10329_v39 = vld [vmem:[%s14515_s1 + $0xf88] ss:$16 sps:$4 sm:$0xff]   ;;  %v10334_v40 = vld [vmem:[%s14515_s1 + $0xfa4] ss:$16 sps:$4 sm:$0xff]  }
 0x1bc   :  { %6836 = vmatprep.subr.bf16.mxu0 %v10250_v41  ;;  %7652 = vmatprep.subr.bf16.mxu1 %v10253_v42  ;;  %v10337_v41 = vld [vmem:[%s14515_s1 + $0xfac] ss:$16 sps:$4 sm:$0xff]   ;;  %v10332_v42 = vld [vmem:[%s14515_s1 + $0xfa0] ss:$16 sps:$4 sm:$0xff]  }
 0x1bf   :  { %6837 = vmatpush1.bf16.msra.mxu0 %v10248_v43  ;;  %7653 = vmatpush1.bf16.msra.mxu1 %v10251_v46  ;;  %v10335_v43 = vld [vmem:[%s14515_s1 + $0xfa8] ss:$16 sps:$4 sm:$0xff]   ;;  %v10341_v46 = vld [vmem:[%s14515_s1 + $0xfc4] ss:$16 sps:$4 sm:$0xff]  }
 0x1c0   :  { %6857 = vmatprep.subr.bf16.mxu0 %v10256_v44  ;;  %7673 = vmatprep.subr.bf16.mxu1 %v10259_v45  ;;  %v10344_v44 = vld [vmem:[%s14515_s1 + $0xfcc] ss:$16 sps:$4 sm:$0xff]   ;;  %v10339_v45 = vld [vmem:[%s14515_s1 + $0xfc0] ss:$16 sps:$4 sm:$0xff]  }
 0x1c2   :  { %6839 = vmatmul.mubr.bf16.vlgmr.msra.gmra.mrb[0].mxu0 %v8230_v48  ;;  %7655 = vmatmul.mubr.bf16.vlgmr.msra.gmra.mrb[0].mxu1 %v8230_v48  ;;  %v10348_v48 = vld [vmem:[%s14515_s1 + $0xfe4] ss:$16 sps:$4 sm:$0xff]  }
 0x1c3   :  { %6858 = vmatpush1.bf16.msra.mxu0 %v10254_v49  ;;  %7674 = vmatpush1.bf16.msra.mxu1 %v10257_v50  ;;  %v10351_v49 = vld [vmem:[%s14515_s1 + $0xfec] ss:$16 sps:$4 sm:$0xff]   ;;  %v10346_v50 = vld [vmem:[%s14515_s1 + $0xfe0] ss:$16 sps:$4 sm:$0xff]  }
 0x1c4   :  { %6859 = vmatprep.subr.bf16.mxu0 %v10262_v53  ;;  %7675 = vmatprep.subr.bf16.mxu1 %v10265_v51  ;;  %v10349_v53 = vld [vmem:[%s14515_s1 + $0xfe8] ss:$16 sps:$4 sm:$0xff]   ;;  %v10354_v51 = vld [vmem:[%s14515_s1 + $0x1004] ss:$16 sps:$4 sm:$0xff]  }
 0x1c5   :  { %6848 = vmatprep.mubr.bf16.mxu0 %v8263_v55  ;;  %7664 = vmatprep.mubr.bf16.mxu1 %v8263_v55  ;;  %v8232_v55 = vcombine.low %v12646_v58, %v12651_v59  ;;  %v10363_v58 = vld [vmem:[%s14515_s1 + $0x102c] ss:$16 sps:$4 sm:$0xff]   ;;  %v10358_v59 = vld [vmem:[%s14515_s1 + $0x1020] ss:$16 sps:$4 sm:$0xff]  }
 0x1c7   :  { %6860 = vmatpush1.bf16.msra.mxu0 %v10260_v52  ;;  %7676 = vmatpush1.bf16.msra.mxu1 %v10263_v54  ;;  %v10357_v52 = vld [vmem:[%s14515_s1 + $0x100c] ss:$16 sps:$4 sm:$0xff]  }
 0x1c8   :  { %6861 = vmatprep.subr.bf16.mxu0 %v10268_v56  ;;  %7677 = vmatprep.subr.bf16.mxu1 %v10271_v57  ;;  %v53_v54 = vld [vmem:[%s14516_s0 + $0x138] sm:$0x33]  ;;  %v10352_v56 = vld [vmem:[%s14515_s1 + $0x1000] ss:$16 sps:$4 sm:$0xff]  }
 0x1c9   :  { %v10355_v57 = vld [vmem:[%s14515_s1 + $0x1008] ss:$16 sps:$4 sm:$0xff]  }
 0x1ca   :  { %6849 = vmatmul.mubr.bf16.gmra.mrb[4].mxu0 %v8262_v60  ;;  %7665 = vmatmul.mubr.bf16.gmra.mrb[4].mxu1 %v8262_v60  ;;  %v10360_v60 = vld [vmem:[%s14515_s1 + $0x1024] ss:$16 sps:$4 sm:$0xff]  }
 0x1cb   :  { %6862 = vmatpush1.bf16.msra.mxu0 %v10266_v61  ;;  %7678 = vmatpush1.bf16.msra.mxu1 %v10269_v62  ;;  %v10361_v61 = vld [vmem:[%s14515_s1 + $0x1028] ss:$16 sps:$4 sm:$0xff]   ;;  %v8265_v62 = vcombine.high %v53_v54, %v53_v54 }
 0x1cc   :  { %6863 = vmatprep.subr.bf16.mxu0 %v10274_v63  ;;  %7679 = vmatprep.subr.bf16.mxu1 %v10277_v0  ;;  %v10366_v63 = vld [vmem:[%s14515_s1 + $0x1044] ss:$16 sps:$4 sm:$0xff]   ;;  %v10369_v0 = vld [vmem:[%s14515_s1 + $0x104c] ss:$16 sps:$4 sm:$0xff]  }
 0x1cd   :  { %6889 = vmatprep.mubr.bf16.mxu0 %v8233_v1  ;;  %7705 = vmatprep.mubr.bf16.mxu1 %v8233_v1  ;;  %v12855_v1 = vld [vmem:[%s14516_s0 + $0x40] sm:$0xff] }
 0x1cf   :  { %6864 = vmatpush1.bf16.msra.mxu0 %v10272_v2  ;;  %7680 = vmatpush1.bf16.msra.mxu1 %v10275_v3  ;;  %v12860_v2 = vld [vmem:[%s14516_s0 + $0xc0] sm:$0xff]  ;;  %v8264_v3 = vcombine.low %v53_v54, %v53_v54  ;;  %v10440_v54 = vld [vmem:[%s14515_s1 + $0x11c8] ss:$16 sps:$4 sm:$0xff]  }
 0x1d0   :  { %6865 = vmatprep.subr.bf16.mxu0 %v10280_v4  ;;  %7681 = vmatprep.subr.bf16.mxu1 %v10283_v5  ;;  %v10364_v4 = vld [vmem:[%s14515_s1 + $0x1040] ss:$16 sps:$4 sm:$0xff]   ;;  %v10367_v5 = vld [vmem:[%s14515_s1 + $0x1048] ss:$16 sps:$4 sm:$0xff]  }
 0x1d3   :  { %6866 = vmatpush1.bf16.msra.mxu0 %v10278_v6  ;;  %7682 = vmatpush1.bf16.msra.mxu1 %v10281_v7  ;;  %v10372_v6 = vld [vmem:[%s14515_s1 + $0x1064] ss:$16 sps:$4 sm:$0xff]   ;;  %v10375_v7 = vld [vmem:[%s14515_s1 + $0x106c] ss:$16 sps:$4 sm:$0xff]  }
 0x1d4   :  { %6867 = vmatprep.subr.bf16.mxu0 %v10286_v8  ;;  %7683 = vmatprep.subr.bf16.mxu1 %v10289_v9  ;;  %v8235_v8 = vcombine.high %v12855_v1, %v12860_v2  ;;  %v10370_v9 = vld [vmem:[%s14515_s1 + $0x1060] ss:$16 sps:$4 sm:$0xff]  }
 0x1d7   :  { %6868 = vmatpush1.bf16.msra.mxu0 %v10284_v10  ;;  %7684 = vmatpush1.bf16.msra.mxu1 %v10287_v11  ;;  %v10373_v10 = vld [vmem:[%s14515_s1 + $0x1068] ss:$16 sps:$4 sm:$0xff]   ;;  %v10378_v11 = vld [vmem:[%s14515_s1 + $0x1084] ss:$16 sps:$4 sm:$0xff]  }
 0x1d8   :  { %6869 = vmatprep.subr.bf16.mxu0 %v10292_v12  ;;  %7685 = vmatprep.subr.bf16.mxu1 %v10295_v13  ;;  %v10381_v12 = vld [vmem:[%s14515_s1 + $0x108c] ss:$16 sps:$4 sm:$0xff]   ;;  %v10376_v13 = vld [vmem:[%s14515_s1 + $0x1080] ss:$16 sps:$4 sm:$0xff]  }
 0x1db   :  { %6870 = vmatpush1.bf16.msra.mxu0 %v10290_v14  ;;  %7686 = vmatpush1.bf16.msra.mxu1 %v10293_v15  ;;  %v10379_v14 = vld [vmem:[%s14515_s1 + $0x1088] ss:$16 sps:$4 sm:$0xff]   ;;  %v10384_v15 = vld [vmem:[%s14515_s1 + $0x10a4] ss:$16 sps:$4 sm:$0xff]  }
 0x1dc   :  { %6871 = vmatprep.subr.bf16.mxu0 %v10298_v16  ;;  %7687 = vmatprep.subr.bf16.mxu1 %v10301_v17  ;;  %v10387_v16 = vld [vmem:[%s14515_s1 + $0x10ac] ss:$16 sps:$4 sm:$0xff]   ;;  %v10382_v17 = vld [vmem:[%s14515_s1 + $0x10a0] ss:$16 sps:$4 sm:$0xff]  }
 0x1df   :  { %6872 = vmatpush1.bf16.msra.mxu0 %v10296_v18  ;;  %7688 = vmatpush1.bf16.msra.mxu1 %v10299_v19  ;;  %v10385_v18 = vld [vmem:[%s14515_s1 + $0x10a8] ss:$16 sps:$4 sm:$0xff]   ;;  %v10390_v19 = vld [vmem:[%s14515_s1 + $0x10c4] ss:$16 sps:$4 sm:$0xff]  }
 0x1e0   :  { %6873 = vmatprep.subr.bf16.mxu0 %v10304_v20  ;;  %7689 = vmatprep.subr.bf16.mxu1 %v10307_v21  ;;  %v10393_v20 = vld [vmem:[%s14515_s1 + $0x10cc] ss:$16 sps:$4 sm:$0xff]   ;;  %v10388_v21 = vld [vmem:[%s14515_s1 + $0x10c0] ss:$16 sps:$4 sm:$0xff]  }
 0x1e3   :  { %6874 = vmatpush1.bf16.msra.mxu0 %v10302_v22  ;;  %7690 = vmatpush1.bf16.msra.mxu1 %v10305_v23  ;;  %v10391_v22 = vld [vmem:[%s14515_s1 + $0x10c8] ss:$16 sps:$4 sm:$0xff]   ;;  %v10396_v23 = vld [vmem:[%s14515_s1 + $0x10e4] ss:$16 sps:$4 sm:$0xff]  }
 0x1e4   :  { %6875 = vmatprep.subr.bf16.mxu0 %v10310_v24  ;;  %7691 = vmatprep.subr.bf16.mxu1 %v10313_v25  ;;  %v10399_v24 = vld [vmem:[%s14515_s1 + $0x10ec] ss:$16 sps:$4 sm:$0xff]   ;;  %v10394_v25 = vld [vmem:[%s14515_s1 + $0x10e0] ss:$16 sps:$4 sm:$0xff]  }
 0x1e7   :  { %6876 = vmatpush1.bf16.msra.mxu0 %v10308_v26  ;;  %7692 = vmatpush1.bf16.msra.mxu1 %v10311_v27  ;;  %v10397_v26 = vld [vmem:[%s14515_s1 + $0x10e8] ss:$16 sps:$4 sm:$0xff]   ;;  %v10402_v27 = vld [vmem:[%s14515_s1 + $0x1104] ss:$16 sps:$4 sm:$0xff]  }
 0x1e8   :  { %6877 = vmatprep.subr.bf16.mxu0 %v10316_v28  ;;  %7693 = vmatprep.subr.bf16.mxu1 %v10319_v29  ;;  %v10405_v28 = vld [vmem:[%s14515_s1 + $0x110c] ss:$16 sps:$4 sm:$0xff]   ;;  %v10400_v29 = vld [vmem:[%s14515_s1 + $0x1100] ss:$16 sps:$4 sm:$0xff]  }
 0x1eb   :  { %6878 = vmatpush1.bf16.msra.mxu0 %v10314_v30  ;;  %7694 = vmatpush1.bf16.msra.mxu1 %v10317_v31  ;;  %v10403_v30 = vld [vmem:[%s14515_s1 + $0x1108] ss:$16 sps:$4 sm:$0xff]   ;;  %v10408_v31 = vld [vmem:[%s14515_s1 + $0x1124] ss:$16 sps:$4 sm:$0xff]  }
 0x1ec   :  { %6879 = vmatprep.subr.bf16.mxu0 %v10322_v32  ;;  %7695 = vmatprep.subr.bf16.mxu1 %v10325_v33  ;;  %v10411_v32 = vld [vmem:[%s14515_s1 + $0x112c] ss:$16 sps:$4 sm:$0xff]   ;;  %v10406_v33 = vld [vmem:[%s14515_s1 + $0x1120] ss:$16 sps:$4 sm:$0xff]  }
 0x1ef   :  { %6880 = vmatpush1.bf16.msra.mxu0 %v10320_v34  ;;  %7696 = vmatpush1.bf16.msra.mxu1 %v10323_v35  ;;  %v10409_v34 = vld [vmem:[%s14515_s1 + $0x1128] ss:$16 sps:$4 sm:$0xff]   ;;  %v10414_v35 = vld [vmem:[%s14515_s1 + $0x1144] ss:$16 sps:$4 sm:$0xff]  }
 0x1f0   :  { %6881 = vmatprep.subr.bf16.mxu0 %v10328_v36  ;;  %7697 = vmatprep.subr.bf16.mxu1 %v10331_v37  ;;  %v10417_v36 = vld [vmem:[%s14515_s1 + $0x114c] ss:$16 sps:$4 sm:$0xff]   ;;  %v10412_v37 = vld [vmem:[%s14515_s1 + $0x1140] ss:$16 sps:$4 sm:$0xff]  }
 0x1f3   :  { %6882 = vmatpush1.bf16.msra.mxu0 %v10326_v38  ;;  %7698 = vmatpush1.bf16.msra.mxu1 %v10329_v39  ;;  %v10415_v38 = vld [vmem:[%s14515_s1 + $0x1148] ss:$16 sps:$4 sm:$0xff]   ;;  %v10420_v39 = vld [vmem:[%s14515_s1 + $0x1164] ss:$16 sps:$4 sm:$0xff]  }
 0x1f4   :  { %6883 = vmatprep.subr.bf16.mxu0 %v10334_v40  ;;  %7699 = vmatprep.subr.bf16.mxu1 %v10337_v41  ;;  %v10423_v40 = vld [vmem:[%s14515_s1 + $0x116c] ss:$16 sps:$4 sm:$0xff]   ;;  %v10418_v41 = vld [vmem:[%s14515_s1 + $0x1160] ss:$16 sps:$4 sm:$0xff]  }
 0x1f7   :  { %6884 = vmatpush1.bf16.msra.mxu0 %v10332_v42  ;;  %7700 = vmatpush1.bf16.msra.mxu1 %v10335_v43  ;;  %v10421_v42 = vld [vmem:[%s14515_s1 + $0x1168] ss:$16 sps:$4 sm:$0xff]   ;;  %v10426_v43 = vld [vmem:[%s14515_s1 + $0x1184] ss:$16 sps:$4 sm:$0xff]  }
 0x1f8   :  { %6885 = vmatprep.subr.bf16.mxu0 %v10341_v46  ;;  %7701 = vmatprep.subr.bf16.mxu1 %v10344_v44  ;;  %v10429_v46 = vld [vmem:[%s14515_s1 + $0x118c] ss:$16 sps:$4 sm:$0xff]   ;;  %v10424_v44 = vld [vmem:[%s14515_s1 + $0x1180] ss:$16 sps:$4 sm:$0xff]  }
 0x1fb   :  { %6886 = vmatpush1.bf16.msra.mxu0 %v10339_v45  ;;  %7702 = vmatpush1.bf16.msra.mxu1 %v10342_v47  ;;  %v10427_v45 = vld [vmem:[%s14515_s1 + $0x1188] ss:$16 sps:$4 sm:$0xff]   ;;  %v10432_v47 = vld [vmem:[%s14515_s1 + $0x11a4] ss:$16 sps:$4 sm:$0xff]  }
 0x1fc   :  { %6887 = vmatprep.subr.bf16.mxu0 %v10348_v48  ;;  %7703 = vmatprep.subr.bf16.mxu1 %v10351_v49  ;;  %v10435_v48 = vld [vmem:[%s14515_s1 + $0x11ac] ss:$16 sps:$4 sm:$0xff]   ;;  %v10430_v49 = vld [vmem:[%s14515_s1 + $0x11a0] ss:$16 sps:$4 sm:$0xff]  }
 0x1ff   :  { %6888 = vmatpush1.bf16.msra.mxu0 %v10346_v50  ;;  %7704 = vmatpush1.bf16.msra.mxu1 %v10349_v53  ;;  %v10433_v50 = vld [vmem:[%s14515_s1 + $0x11a8] ss:$16 sps:$4 sm:$0xff]   ;;  %v10439_v53 = vld [vmem:[%s14515_s1 + $0x11c4] ss:$16 sps:$4 sm:$0xff]  }
 0x200   :  { %6908 = vmatprep.subr.bf16.mxu0 %v10354_v51  ;;  %7724 = vmatprep.subr.bf16.mxu1 %v10357_v52  ;;  %v10442_v51 = vld [vmem:[%s14515_s1 + $0x11cc] ss:$16 sps:$4 sm:$0xff]   ;;  %v10437_v52 = vld [vmem:[%s14515_s1 + $0x11c0] ss:$16 sps:$4 sm:$0xff]  }
 0x202   :  { %6890 = vmatmul.mubr.bf16.vlgmr.msra.gmra.mrb[0].mxu0 %v8232_v55  ;;  %7706 = vmatmul.mubr.bf16.vlgmr.msra.gmra.mrb[0].mxu1 %v8232_v55  ;;  %v10446_v55 = vld [vmem:[%s14515_s1 + $0x11e4] ss:$16 sps:$4 sm:$0xff]  }
 0x203   :  { %6909 = vmatpush1.bf16.msra.mxu0 %v10352_v56  ;;  %7725 = vmatpush1.bf16.msra.mxu1 %v10355_v57  ;;  %v10449_v56 = vld [vmem:[%s14515_s1 + $0x11ec] ss:$16 sps:$4 sm:$0xff]   ;;  %v10444_v57 = vld [vmem:[%s14515_s1 + $0x11e0] ss:$16 sps:$4 sm:$0xff]  }
 0x204   :  { %6910 = vmatprep.subr.bf16.mxu0 %v10360_v60  ;;  %7726 = vmatprep.subr.bf16.mxu1 %v10363_v58  ;;  %v10447_v60 = vld [vmem:[%s14515_s1 + $0x11e8] ss:$16 sps:$4 sm:$0xff]   ;;  %v10452_v58 = vld [vmem:[%s14515_s1 + $0x1204] ss:$16 sps:$4 sm:$0xff]  }
 0x205   :  { %6899 = vmatprep.mubr.bf16.mxu0 %v8265_v62  ;;  %7715 = vmatprep.mubr.bf16.mxu1 %v8265_v62  ;;  %v8234_v62 = vcombine.low %v12855_v1, %v12860_v2  ;;  %v10461_v1 = vld [vmem:[%s14515_s1 + $0x122c] ss:$16 sps:$4 sm:$0xff]   ;;  %v10456_v2 = vld [vmem:[%s14515_s1 + $0x1220] ss:$16 sps:$4 sm:$0xff]  }
 0x207   :  { %6911 = vmatpush1.bf16.msra.mxu0 %v10358_v59  ;;  %7727 = vmatpush1.bf16.msra.mxu1 %v10361_v61  ;;  %v10455_v59 = vld [vmem:[%s14515_s1 + $0x120c] ss:$16 sps:$4 sm:$0xff]   ;;  %v54_v61 = vld [vmem:[%s14516_s0 + $0x140] sm:$0x33] }
 0x208   :  { %6912 = vmatprep.subr.bf16.mxu0 %v10366_v63  ;;  %7728 = vmatprep.subr.bf16.mxu1 %v10369_v0  ;;  %v10450_v63 = vld [vmem:[%s14515_s1 + $0x1200] ss:$16 sps:$4 sm:$0xff]   ;;  %v10453_v0 = vld [vmem:[%s14515_s1 + $0x1208] ss:$16 sps:$4 sm:$0xff]  }
 0x20a   :  { %6900 = vmatmul.mubr.bf16.gmra.mrb[4].mxu0 %v8264_v3  ;;  %7716 = vmatmul.mubr.bf16.gmra.mrb[4].mxu1 %v8264_v3  ;;  %v10458_v3 = vld [vmem:[%s14515_s1 + $0x1224] ss:$16 sps:$4 sm:$0xff]  }
 0x20b   :  { %6913 = vmatpush1.bf16.msra.mxu0 %v10364_v4  ;;  %7729 = vmatpush1.bf16.msra.mxu1 %v10367_v5  ;;  %v10459_v4 = vld [vmem:[%s14515_s1 + $0x1228] ss:$16 sps:$4 sm:$0xff]   ;;  %v8267_v5 = vcombine.high %v54_v61, %v54_v61 }
 0x20c   :  { %6914 = vmatprep.subr.bf16.mxu0 %v10372_v6  ;;  %7730 = vmatprep.subr.bf16.mxu1 %v10375_v7  ;;  %v10464_v6 = vld [vmem:[%s14515_s1 + $0x1244] ss:$16 sps:$4 sm:$0xff]   ;;  %v10467_v7 = vld [vmem:[%s14515_s1 + $0x124c] ss:$16 sps:$4 sm:$0xff]  }
 0x20d   :  { %6940 = vmatprep.mubr.bf16.mxu0 %v8235_v8  ;;  %7756 = vmatprep.mubr.bf16.mxu1 %v8235_v8  ;;  %v13064_v8 = vld [vmem:[%s14516_s0 + $0x48] sm:$0xff] }
 0x20f   :  { %6915 = vmatpush1.bf16.msra.mxu0 %v10370_v9  ;;  %7731 = vmatpush1.bf16.msra.mxu1 %v10373_v10  ;;  %v13069_v9 = vld [vmem:[%s14516_s0 + $0xc8] sm:$0xff]  ;;  %v8266_v10 = vcombine.low %v54_v61, %v54_v61 }
 0x210   :  { %6916 = vmatprep.subr.bf16.mxu0 %v10378_v11  ;;  %7732 = vmatprep.subr.bf16.mxu1 %v10381_v12  ;;  %v10462_v11 = vld [vmem:[%s14515_s1 + $0x1240] ss:$16 sps:$4 sm:$0xff]   ;;  %v10465_v12 = vld [vmem:[%s14515_s1 + $0x1248] ss:$16 sps:$4 sm:$0xff]  }
 0x211   :  { %v10538_v61 = vld [vmem:[%s14515_s1 + $0x13c8] ss:$16 sps:$4 sm:$0xff]  }
 0x213   :  { %6917 = vmatpush1.bf16.msra.mxu0 %v10376_v13  ;;  %7733 = vmatpush1.bf16.msra.mxu1 %v10379_v14  ;;  %v10470_v13 = vld [vmem:[%s14515_s1 + $0x1264] ss:$16 sps:$4 sm:$0xff]   ;;  %v10473_v14 = vld [vmem:[%s14515_s1 + $0x126c] ss:$16 sps:$4 sm:$0xff]  }
 0x214   :  { %6918 = vmatprep.subr.bf16.mxu0 %v10384_v15  ;;  %7734 = vmatprep.subr.bf16.mxu1 %v10387_v16  ;;  %v8237_v15 = vcombine.high %v13064_v8, %v13069_v9  ;;  %v10468_v16 = vld [vmem:[%s14515_s1 + $0x1260] ss:$16 sps:$4 sm:$0xff]  }
 0x217   :  { %6919 = vmatpush1.bf16.msra.mxu0 %v10382_v17  ;;  %7735 = vmatpush1.bf16.msra.mxu1 %v10385_v18  ;;  %v10471_v17 = vld [vmem:[%s14515_s1 + $0x1268] ss:$16 sps:$4 sm:$0xff]   ;;  %v10476_v18 = vld [vmem:[%s14515_s1 + $0x1284] ss:$16 sps:$4 sm:$0xff]  }
 0x218   :  { %6920 = vmatprep.subr.bf16.mxu0 %v10390_v19  ;;  %7736 = vmatprep.subr.bf16.mxu1 %v10393_v20  ;;  %v10479_v19 = vld [vmem:[%s14515_s1 + $0x128c] ss:$16 sps:$4 sm:$0xff]   ;;  %v10474_v20 = vld [vmem:[%s14515_s1 + $0x1280] ss:$16 sps:$4 sm:$0xff]  }
 0x21b   :  { %6921 = vmatpush1.bf16.msra.mxu0 %v10388_v21  ;;  %7737 = vmatpush1.bf16.msra.mxu1 %v10391_v22  ;;  %v10477_v21 = vld [vmem:[%s14515_s1 + $0x1288] ss:$16 sps:$4 sm:$0xff]   ;;  %v10482_v22 = vld [vmem:[%s14515_s1 + $0x12a4] ss:$16 sps:$4 sm:$0xff]  }
 0x21c   :  { %6922 = vmatprep.subr.bf16.mxu0 %v10396_v23  ;;  %7738 = vmatprep.subr.bf16.mxu1 %v10399_v24  ;;  %v10485_v23 = vld [vmem:[%s14515_s1 + $0x12ac] ss:$16 sps:$4 sm:$0xff]   ;;  %v10480_v24 = vld [vmem:[%s14515_s1 + $0x12a0] ss:$16 sps:$4 sm:$0xff]  }
 0x21f   :  { %6923 = vmatpush1.bf16.msra.mxu0 %v10394_v25  ;;  %7739 = vmatpush1.bf16.msra.mxu1 %v10397_v26  ;;  %v10483_v25 = vld [vmem:[%s14515_s1 + $0x12a8] ss:$16 sps:$4 sm:$0xff]   ;;  %v10488_v26 = vld [vmem:[%s14515_s1 + $0x12c4] ss:$16 sps:$4 sm:$0xff]  }
 0x220   :  { %6924 = vmatprep.subr.bf16.mxu0 %v10402_v27  ;;  %7740 = vmatprep.subr.bf16.mxu1 %v10405_v28  ;;  %v10491_v27 = vld [vmem:[%s14515_s1 + $0x12cc] ss:$16 sps:$4 sm:$0xff]   ;;  %v10486_v28 = vld [vmem:[%s14515_s1 + $0x12c0] ss:$16 sps:$4 sm:$0xff]  }
 0x223   :  { %6925 = vmatpush1.bf16.msra.mxu0 %v10400_v29  ;;  %7741 = vmatpush1.bf16.msra.mxu1 %v10403_v30  ;;  %v10489_v29 = vld [vmem:[%s14515_s1 + $0x12c8] ss:$16 sps:$4 sm:$0xff]   ;;  %v10494_v30 = vld [vmem:[%s14515_s1 + $0x12e4] ss:$16 sps:$4 sm:$0xff]  }
 0x224   :  { %6926 = vmatprep.subr.bf16.mxu0 %v10408_v31  ;;  %7742 = vmatprep.subr.bf16.mxu1 %v10411_v32  ;;  %v10497_v31 = vld [vmem:[%s14515_s1 + $0x12ec] ss:$16 sps:$4 sm:$0xff]   ;;  %v10492_v32 = vld [vmem:[%s14515_s1 + $0x12e0] ss:$16 sps:$4 sm:$0xff]  }
 0x227   :  { %6927 = vmatpush1.bf16.msra.mxu0 %v10406_v33  ;;  %7743 = vmatpush1.bf16.msra.mxu1 %v10409_v34  ;;  %v10495_v33 = vld [vmem:[%s14515_s1 + $0x12e8] ss:$16 sps:$4 sm:$0xff]   ;;  %v10500_v34 = vld [vmem:[%s14515_s1 + $0x1304] ss:$16 sps:$4 sm:$0xff]  }
 0x228   :  { %6928 = vmatprep.subr.bf16.mxu0 %v10414_v35  ;;  %7744 = vmatprep.subr.bf16.mxu1 %v10417_v36  ;;  %v10503_v35 = vld [vmem:[%s14515_s1 + $0x130c] ss:$16 sps:$4 sm:$0xff]   ;;  %v10498_v36 = vld [vmem:[%s14515_s1 + $0x1300] ss:$16 sps:$4 sm:$0xff]  }
 0x22b   :  { %6929 = vmatpush1.bf16.msra.mxu0 %v10412_v37  ;;  %7745 = vmatpush1.bf16.msra.mxu1 %v10415_v38  ;;  %v10501_v37 = vld [vmem:[%s14515_s1 + $0x1308] ss:$16 sps:$4 sm:$0xff]   ;;  %v10506_v38 = vld [vmem:[%s14515_s1 + $0x1324] ss:$16 sps:$4 sm:$0xff]  }
 0x22c   :  { %6930 = vmatprep.subr.bf16.mxu0 %v10420_v39  ;;  %7746 = vmatprep.subr.bf16.mxu1 %v10423_v40  ;;  %v10509_v39 = vld [vmem:[%s14515_s1 + $0x132c] ss:$16 sps:$4 sm:$0xff]   ;;  %v10504_v40 = vld [vmem:[%s14515_s1 + $0x1320] ss:$16 sps:$4 sm:$0xff]  }
 0x22f   :  { %6931 = vmatpush1.bf16.msra.mxu0 %v10418_v41  ;;  %7747 = vmatpush1.bf16.msra.mxu1 %v10421_v42  ;;  %v10507_v41 = vld [vmem:[%s14515_s1 + $0x1328] ss:$16 sps:$4 sm:$0xff]   ;;  %v10512_v42 = vld [vmem:[%s14515_s1 + $0x1344] ss:$16 sps:$4 sm:$0xff]  }
 0x230   :  { %6932 = vmatprep.subr.bf16.mxu0 %v10426_v43  ;;  %7748 = vmatprep.subr.bf16.mxu1 %v10429_v46  ;;  %v10515_v43 = vld [vmem:[%s14515_s1 + $0x134c] ss:$16 sps:$4 sm:$0xff]   ;;  %v10510_v46 = vld [vmem:[%s14515_s1 + $0x1340] ss:$16 sps:$4 sm:$0xff]  }
 0x233   :  { %6933 = vmatpush1.bf16.msra.mxu0 %v10424_v44  ;;  %7749 = vmatpush1.bf16.msra.mxu1 %v10427_v45  ;;  %v10513_v44 = vld [vmem:[%s14515_s1 + $0x1348] ss:$16 sps:$4 sm:$0xff]   ;;  %v10518_v45 = vld [vmem:[%s14515_s1 + $0x1364] ss:$16 sps:$4 sm:$0xff]  }
 0x234   :  { %6934 = vmatprep.subr.bf16.mxu0 %v10432_v47  ;;  %7750 = vmatprep.subr.bf16.mxu1 %v10435_v48  ;;  %v10521_v47 = vld [vmem:[%s14515_s1 + $0x136c] ss:$16 sps:$4 sm:$0xff]   ;;  %v10516_v48 = vld [vmem:[%s14515_s1 + $0x1360] ss:$16 sps:$4 sm:$0xff]  }
 0x237   :  { %6935 = vmatpush1.bf16.msra.mxu0 %v10430_v49  ;;  %7751 = vmatpush1.bf16.msra.mxu1 %v10433_v50  ;;  %v10519_v49 = vld [vmem:[%s14515_s1 + $0x1368] ss:$16 sps:$4 sm:$0xff]   ;;  %v10524_v50 = vld [vmem:[%s14515_s1 + $0x1384] ss:$16 sps:$4 sm:$0xff]  }
 0x238   :  { %6936 = vmatprep.subr.bf16.mxu0 %v10439_v53  ;;  %7752 = vmatprep.subr.bf16.mxu1 %v10442_v51  ;;  %v10527_v53 = vld [vmem:[%s14515_s1 + $0x138c] ss:$16 sps:$4 sm:$0xff]   ;;  %v10522_v51 = vld [vmem:[%s14515_s1 + $0x1380] ss:$16 sps:$4 sm:$0xff]  }
 0x23b   :  { %6937 = vmatpush1.bf16.msra.mxu0 %v10437_v52  ;;  %7753 = vmatpush1.bf16.msra.mxu1 %v10440_v54  ;;  %v10525_v52 = vld [vmem:[%s14515_s1 + $0x1388] ss:$16 sps:$4 sm:$0xff]   ;;  %v10530_v54 = vld [vmem:[%s14515_s1 + $0x13a4] ss:$16 sps:$4 sm:$0xff]  }
 0x23c   :  { %6938 = vmatprep.subr.bf16.mxu0 %v10446_v55  ;;  %7754 = vmatprep.subr.bf16.mxu1 %v10449_v56  ;;  %v10533_v55 = vld [vmem:[%s14515_s1 + $0x13ac] ss:$16 sps:$4 sm:$0xff]   ;;  %v10528_v56 = vld [vmem:[%s14515_s1 + $0x13a0] ss:$16 sps:$4 sm:$0xff]  }
 0x23f   :  { %6939 = vmatpush1.bf16.msra.mxu0 %v10444_v57  ;;  %7755 = vmatpush1.bf16.msra.mxu1 %v10447_v60  ;;  %v10531_v57 = vld [vmem:[%s14515_s1 + $0x13a8] ss:$16 sps:$4 sm:$0xff]   ;;  %v10537_v60 = vld [vmem:[%s14515_s1 + $0x13c4] ss:$16 sps:$4 sm:$0xff]  }
 0x240   :  { %6959 = vmatprep.subr.bf16.mxu0 %v10452_v58  ;;  %7775 = vmatprep.subr.bf16.mxu1 %v10455_v59  ;;  %v10540_v58 = vld [vmem:[%s14515_s1 + $0x13cc] ss:$16 sps:$4 sm:$0xff]   ;;  %v10535_v59 = vld [vmem:[%s14515_s1 + $0x13c0] ss:$16 sps:$4 sm:$0xff]  }
 0x242   :  { %6941 = vmatmul.mubr.bf16.vlgmr.msra.gmra.mrb[0].mxu0 %v8234_v62  ;;  %7757 = vmatmul.mubr.bf16.vlgmr.msra.gmra.mrb[0].mxu1 %v8234_v62  ;;  %v10544_v62 = vld [vmem:[%s14515_s1 + $0x13e4] ss:$16 sps:$4 sm:$0xff]  }
 0x243   :  { %6960 = vmatpush1.bf16.msra.mxu0 %v10450_v63  ;;  %7776 = vmatpush1.bf16.msra.mxu1 %v10453_v0  ;;  %v10547_v63 = vld [vmem:[%s14515_s1 + $0x13ec] ss:$16 sps:$4 sm:$0xff]   ;;  %v10542_v0 = vld [vmem:[%s14515_s1 + $0x13e0] ss:$16 sps:$4 sm:$0xff]  }
 0x244   :  { %6961 = vmatprep.subr.bf16.mxu0 %v10458_v3  ;;  %7777 = vmatprep.subr.bf16.mxu1 %v10461_v1  ;;  %v10545_v3 = vld [vmem:[%s14515_s1 + $0x13e8] ss:$16 sps:$4 sm:$0xff]   ;;  %v10550_v1 = vld [vmem:[%s14515_s1 + $0x1404] ss:$16 sps:$4 sm:$0xff]  }
 0x245   :  { %6950 = vmatprep.mubr.bf16.mxu0 %v8267_v5  ;;  %7766 = vmatprep.mubr.bf16.mxu1 %v8267_v5  ;;  %v55_v5 = vld [vmem:[%s14516_s0 + $0x148] sm:$0x33] }
 0x247   :  { %6962 = vmatpush1.bf16.msra.mxu0 %v10456_v2  ;;  %7778 = vmatpush1.bf16.msra.mxu1 %v10459_v4  ;;  %v10553_v2 = vld [vmem:[%s14515_s1 + $0x140c] ss:$16 sps:$4 sm:$0xff]   ;;  %v8236_v4 = vcombine.low %v13064_v8, %v13069_v9  ;;  %v10556_v8 = vld [vmem:[%s14515_s1 + $0x1424] ss:$16 sps:$4 sm:$0xff]  }
 0x248   :  { %6963 = vmatprep.subr.bf16.mxu0 %v10464_v6  ;;  %7779 = vmatprep.subr.bf16.mxu1 %v10467_v7  ;;  %v10548_v6 = vld [vmem:[%s14515_s1 + $0x1400] ss:$16 sps:$4 sm:$0xff]   ;;  %v10551_v7 = vld [vmem:[%s14515_s1 + $0x1408] ss:$16 sps:$4 sm:$0xff]   ;;  %v10559_v9 = vld [vmem:[%s14515_s1 + $0x142c] ss:$16 sps:$4 sm:$0xff]  }
 0x24a   :  { %6951 = vmatmul.mubr.bf16.gmra.mrb[4].mxu0 %v8266_v10  ;;  %7767 = vmatmul.mubr.bf16.gmra.mrb[4].mxu1 %v8266_v10  ;;  %v8269_v10 = vcombine.high %v55_v5, %v55_v5 }
 0x24b   :  { %6964 = vmatpush1.bf16.msra.mxu0 %v10462_v11  ;;  %7780 = vmatpush1.bf16.msra.mxu1 %v10465_v12  ;;  %v10554_v11 = vld [vmem:[%s14515_s1 + $0x1420] ss:$16 sps:$4 sm:$0xff]   ;;  %v10557_v12 = vld [vmem:[%s14515_s1 + $0x1428] ss:$16 sps:$4 sm:$0xff]  }
 0x24c   :  { %6965 = vmatprep.subr.bf16.mxu0 %v10470_v13  ;;  %7781 = vmatprep.subr.bf16.mxu1 %v10473_v14  ;;  %v10562_v13 = vld [vmem:[%s14515_s1 + $0x1444] ss:$16 sps:$4 sm:$0xff]   ;;  %v10565_v14 = vld [vmem:[%s14515_s1 + $0x144c] ss:$16 sps:$4 sm:$0xff]  }
 0x24d   :  { %6991 = vmatprep.mubr.bf16.mxu0 %v8237_v15  ;;  %7807 = vmatprep.mubr.bf16.mxu1 %v8237_v15  ;;  %v8268_v15 = vcombine.low %v55_v5, %v55_v5  ;;  %v10642_v5 = vld [vmem:[%s14515_s1 + $0x15e4] ss:$16 sps:$4 sm:$0xff]  }
 0x24f   :  { %6966 = vmatpush1.bf16.msra.mxu0 %v10468_v16  ;;  %7782 = vmatpush1.bf16.msra.mxu1 %v10471_v17  ;;  %v13273_v16 = vld [vmem:[%s14516_s0 + $0x50] sm:$0xff] }
 0x250   :  { %6967 = vmatprep.subr.bf16.mxu0 %v10476_v18  ;;  %7783 = vmatprep.subr.bf16.mxu1 %v10479_v19  ;;  %v13278_v17 = vld [vmem:[%s14516_s0 + $0xd0] sm:$0xff]  ;;  %v10563_v19 = vld [vmem:[%s14515_s1 + $0x1448] ss:$16 sps:$4 sm:$0xff]  }
 0x251   :  { %v10560_v18 = vld [vmem:[%s14515_s1 + $0x1440] ss:$16 sps:$4 sm:$0xff]  }
 0x253   :  { %6968 = vmatpush1.bf16.msra.mxu0 %v10474_v20  ;;  %7784 = vmatpush1.bf16.msra.mxu1 %v10477_v21  ;;  %v10568_v20 = vld [vmem:[%s14515_s1 + $0x1464] ss:$16 sps:$4 sm:$0xff]   ;;  %v10571_v21 = vld [vmem:[%s14515_s1 + $0x146c] ss:$16 sps:$4 sm:$0xff]  }
 0x254   :  { %6969 = vmatprep.subr.bf16.mxu0 %v10482_v22  ;;  %7785 = vmatprep.subr.bf16.mxu1 %v10485_v23  ;;  %v8239_v22 = vcombine.high %v13273_v16, %v13278_v17  ;;  %v10566_v23 = vld [vmem:[%s14515_s1 + $0x1460] ss:$16 sps:$4 sm:$0xff]  }
 0x257   :  { %6970 = vmatpush1.bf16.msra.mxu0 %v10480_v24  ;;  %7786 = vmatpush1.bf16.msra.mxu1 %v10483_v25  ;;  %v10569_v24 = vld [vmem:[%s14515_s1 + $0x1468] ss:$16 sps:$4 sm:$0xff]   ;;  %v10574_v25 = vld [vmem:[%s14515_s1 + $0x1484] ss:$16 sps:$4 sm:$0xff]  }
 0x258   :  { %6971 = vmatprep.subr.bf16.mxu0 %v10488_v26  ;;  %7787 = vmatprep.subr.bf16.mxu1 %v10491_v27  ;;  %v10577_v26 = vld [vmem:[%s14515_s1 + $0x148c] ss:$16 sps:$4 sm:$0xff]   ;;  %v10572_v27 = vld [vmem:[%s14515_s1 + $0x1480] ss:$16 sps:$4 sm:$0xff]  }
 0x25b   :  { %6972 = vmatpush1.bf16.msra.mxu0 %v10486_v28  ;;  %7788 = vmatpush1.bf16.msra.mxu1 %v10489_v29  ;;  %v10575_v28 = vld [vmem:[%s14515_s1 + $0x1488] ss:$16 sps:$4 sm:$0xff]   ;;  %v10580_v29 = vld [vmem:[%s14515_s1 + $0x14a4] ss:$16 sps:$4 sm:$0xff]  }
 0x25c   :  { %6973 = vmatprep.subr.bf16.mxu0 %v10494_v30  ;;  %7789 = vmatprep.subr.bf16.mxu1 %v10497_v31  ;;  %v10583_v30 = vld [vmem:[%s14515_s1 + $0x14ac] ss:$16 sps:$4 sm:$0xff]   ;;  %v10578_v31 = vld [vmem:[%s14515_s1 + $0x14a0] ss:$16 sps:$4 sm:$0xff]  }
 0x25f   :  { %6974 = vmatpush1.bf16.msra.mxu0 %v10492_v32  ;;  %7790 = vmatpush1.bf16.msra.mxu1 %v10495_v33  ;;  %v10581_v32 = vld [vmem:[%s14515_s1 + $0x14a8] ss:$16 sps:$4 sm:$0xff]   ;;  %v10586_v33 = vld [vmem:[%s14515_s1 + $0x14c4] ss:$16 sps:$4 sm:$0xff]  }
 0x260   :  { %6975 = vmatprep.subr.bf16.mxu0 %v10500_v34  ;;  %7791 = vmatprep.subr.bf16.mxu1 %v10503_v35  ;;  %v10589_v34 = vld [vmem:[%s14515_s1 + $0x14cc] ss:$16 sps:$4 sm:$0xff]   ;;  %v10584_v35 = vld [vmem:[%s14515_s1 + $0x14c0] ss:$16 sps:$4 sm:$0xff]  }
 0x263   :  { %6976 = vmatpush1.bf16.msra.mxu0 %v10498_v36  ;;  %7792 = vmatpush1.bf16.msra.mxu1 %v10501_v37  ;;  %v10587_v36 = vld [vmem:[%s14515_s1 + $0x14c8] ss:$16 sps:$4 sm:$0xff]   ;;  %v10592_v37 = vld [vmem:[%s14515_s1 + $0x14e4] ss:$16 sps:$4 sm:$0xff]  }
 0x264   :  { %6977 = vmatprep.subr.bf16.mxu0 %v10506_v38  ;;  %7793 = vmatprep.subr.bf16.mxu1 %v10509_v39  ;;  %v10595_v38 = vld [vmem:[%s14515_s1 + $0x14ec] ss:$16 sps:$4 sm:$0xff]   ;;  %v10590_v39 = vld [vmem:[%s14515_s1 + $0x14e0] ss:$16 sps:$4 sm:$0xff]  }
 0x267   :  { %6978 = vmatpush1.bf16.msra.mxu0 %v10504_v40  ;;  %7794 = vmatpush1.bf16.msra.mxu1 %v10507_v41  ;;  %v10593_v40 = vld [vmem:[%s14515_s1 + $0x14e8] ss:$16 sps:$4 sm:$0xff]   ;;  %v10598_v41 = vld [vmem:[%s14515_s1 + $0x1504] ss:$16 sps:$4 sm:$0xff]  }
 0x268   :  { %6979 = vmatprep.subr.bf16.mxu0 %v10512_v42  ;;  %7795 = vmatprep.subr.bf16.mxu1 %v10515_v43  ;;  %v10601_v42 = vld [vmem:[%s14515_s1 + $0x150c] ss:$16 sps:$4 sm:$0xff]   ;;  %v10596_v43 = vld [vmem:[%s14515_s1 + $0x1500] ss:$16 sps:$4 sm:$0xff]  }
 0x26b   :  { %6980 = vmatpush1.bf16.msra.mxu0 %v10510_v46  ;;  %7796 = vmatpush1.bf16.msra.mxu1 %v10513_v44  ;;  %v10599_v46 = vld [vmem:[%s14515_s1 + $0x1508] ss:$16 sps:$4 sm:$0xff]   ;;  %v10604_v44 = vld [vmem:[%s14515_s1 + $0x1524] ss:$16 sps:$4 sm:$0xff]  }
 0x26c   :  { %6981 = vmatprep.subr.bf16.mxu0 %v10518_v45  ;;  %7797 = vmatprep.subr.bf16.mxu1 %v10521_v47  ;;  %v10607_v45 = vld [vmem:[%s14515_s1 + $0x152c] ss:$16 sps:$4 sm:$0xff]   ;;  %v10602_v47 = vld [vmem:[%s14515_s1 + $0x1520] ss:$16 sps:$4 sm:$0xff]  }
 0x26f   :  { %6982 = vmatpush1.bf16.msra.mxu0 %v10516_v48  ;;  %7798 = vmatpush1.bf16.msra.mxu1 %v10519_v49  ;;  %v10605_v48 = vld [vmem:[%s14515_s1 + $0x1528] ss:$16 sps:$4 sm:$0xff]   ;;  %v10610_v49 = vld [vmem:[%s14515_s1 + $0x1544] ss:$16 sps:$4 sm:$0xff]  }
 0x270   :  { %6983 = vmatprep.subr.bf16.mxu0 %v10524_v50  ;;  %7799 = vmatprep.subr.bf16.mxu1 %v10527_v53  ;;  %v10613_v50 = vld [vmem:[%s14515_s1 + $0x154c] ss:$16 sps:$4 sm:$0xff]   ;;  %v10608_v53 = vld [vmem:[%s14515_s1 + $0x1540] ss:$16 sps:$4 sm:$0xff]  }
 0x273   :  { %6984 = vmatpush1.bf16.msra.mxu0 %v10522_v51  ;;  %7800 = vmatpush1.bf16.msra.mxu1 %v10525_v52  ;;  %v10611_v51 = vld [vmem:[%s14515_s1 + $0x1548] ss:$16 sps:$4 sm:$0xff]   ;;  %v10616_v52 = vld [vmem:[%s14515_s1 + $0x1564] ss:$16 sps:$4 sm:$0xff]  }
 0x274   :  { %6985 = vmatprep.subr.bf16.mxu0 %v10530_v54  ;;  %7801 = vmatprep.subr.bf16.mxu1 %v10533_v55  ;;  %v10619_v54 = vld [vmem:[%s14515_s1 + $0x156c] ss:$16 sps:$4 sm:$0xff]   ;;  %v10614_v55 = vld [vmem:[%s14515_s1 + $0x1560] ss:$16 sps:$4 sm:$0xff]  }
 0x277   :  { %6986 = vmatpush1.bf16.msra.mxu0 %v10528_v56  ;;  %7802 = vmatpush1.bf16.msra.mxu1 %v10531_v57  ;;  %v10617_v56 = vld [vmem:[%s14515_s1 + $0x1568] ss:$16 sps:$4 sm:$0xff]   ;;  %v10622_v57 = vld [vmem:[%s14515_s1 + $0x1584] ss:$16 sps:$4 sm:$0xff]  }
 0x278   :  { %6987 = vmatprep.subr.bf16.mxu0 %v10537_v60  ;;  %7803 = vmatprep.subr.bf16.mxu1 %v10540_v58  ;;  %v10625_v60 = vld [vmem:[%s14515_s1 + $0x158c] ss:$16 sps:$4 sm:$0xff]   ;;  %v10620_v58 = vld [vmem:[%s14515_s1 + $0x1580] ss:$16 sps:$4 sm:$0xff]  }
 0x27b   :  { %6988 = vmatpush1.bf16.msra.mxu0 %v10535_v59  ;;  %7804 = vmatpush1.bf16.msra.mxu1 %v10538_v61  ;;  %v10623_v59 = vld [vmem:[%s14515_s1 + $0x1588] ss:$16 sps:$4 sm:$0xff]   ;;  %v10628_v61 = vld [vmem:[%s14515_s1 + $0x15a4] ss:$16 sps:$4 sm:$0xff]  }
 0x27c   :  { %6989 = vmatprep.subr.bf16.mxu0 %v10544_v62  ;;  %7805 = vmatprep.subr.bf16.mxu1 %v10547_v63  ;;  %v10631_v62 = vld [vmem:[%s14515_s1 + $0x15ac] ss:$16 sps:$4 sm:$0xff]   ;;  %v10626_v63 = vld [vmem:[%s14515_s1 + $0x15a0] ss:$16 sps:$4 sm:$0xff]  }
 0x27f   :  { %6990 = vmatpush1.bf16.msra.mxu0 %v10542_v0  ;;  %7806 = vmatpush1.bf16.msra.mxu1 %v10545_v3  ;;  %v10629_v0 = vld [vmem:[%s14515_s1 + $0x15a8] ss:$16 sps:$4 sm:$0xff]   ;;  %v10635_v3 = vld [vmem:[%s14515_s1 + $0x15c4] ss:$16 sps:$4 sm:$0xff]  }
 0x280   :  { %7010 = vmatprep.subr.bf16.mxu0 %v10550_v1  ;;  %7826 = vmatprep.subr.bf16.mxu1 %v10553_v2  ;;  %v10638_v1 = vld [vmem:[%s14515_s1 + $0x15cc] ss:$16 sps:$4 sm:$0xff]   ;;  %v10633_v2 = vld [vmem:[%s14515_s1 + $0x15c0] ss:$16 sps:$4 sm:$0xff]  }
 0x282   :  { %6992 = vmatmul.mubr.bf16.vlgmr.msra.gmra.mrb[0].mxu0 %v8236_v4  ;;  %7808 = vmatmul.mubr.bf16.vlgmr.msra.gmra.mrb[0].mxu1 %v8236_v4  ;;  %v10636_v4 = vld [vmem:[%s14515_s1 + $0x15c8] ss:$16 sps:$4 sm:$0xff]  }
 0x283   :  { %7011 = vmatpush1.bf16.msra.mxu0 %v10548_v6  ;;  %7827 = vmatpush1.bf16.msra.mxu1 %v10551_v7  ;;  %v10645_v6 = vld [vmem:[%s14515_s1 + $0x15ec] ss:$16 sps:$4 sm:$0xff]   ;;  %v10640_v7 = vld [vmem:[%s14515_s1 + $0x15e0] ss:$16 sps:$4 sm:$0xff]  }
 0x284   :  { %7012 = vmatprep.subr.bf16.mxu0 %v10556_v8  ;;  %7828 = vmatprep.subr.bf16.mxu1 %v10559_v9  ;;  %v10643_v8 = vld [vmem:[%s14515_s1 + $0x15e8] ss:$16 sps:$4 sm:$0xff]   ;;  %v10648_v9 = vld [vmem:[%s14515_s1 + $0x1604] ss:$16 sps:$4 sm:$0xff]  }
 0x285   :  { %7001 = vmatprep.mubr.bf16.mxu0 %v8269_v10  ;;  %7817 = vmatprep.mubr.bf16.mxu1 %v8269_v10  ;;  %v10651_v10 = vld [vmem:[%s14515_s1 + $0x160c] ss:$16 sps:$4 sm:$0xff]  }
 0x287   :  { %7013 = vmatpush1.bf16.msra.mxu0 %v10554_v11  ;;  %7829 = vmatpush1.bf16.msra.mxu1 %v10557_v12  ;;  %v8238_v11 = vcombine.low %v13273_v16, %v13278_v17  ;;  %v56_v12 = vld [vmem:[%s14516_s0 + $0x150] sm:$0x33]  ;;  %v10657_v16 = vld [vmem:[%s14515_s1 + $0x162c] ss:$16 sps:$4 sm:$0xff]  }
 0x288   :  { %7014 = vmatprep.subr.bf16.mxu0 %v10562_v13  ;;  %7830 = vmatprep.subr.bf16.mxu1 %v10565_v14  ;;  %v10646_v13 = vld [vmem:[%s14515_s1 + $0x1600] ss:$16 sps:$4 sm:$0xff]   ;;  %v10649_v14 = vld [vmem:[%s14515_s1 + $0x1608] ss:$16 sps:$4 sm:$0xff]   ;;  %v8271_v17 = vcombine.high %v56_v12, %v56_v12 }
 0x28a   :  { %7002 = vmatmul.mubr.bf16.gmra.mrb[4].mxu0 %v8268_v15  ;;  %7818 = vmatmul.mubr.bf16.gmra.mrb[4].mxu1 %v8268_v15  ;;  %v10654_v15 = vld [vmem:[%s14515_s1 + $0x1624] ss:$16 sps:$4 sm:$0xff]  }
 0x28b   :  { %7015 = vmatpush1.bf16.msra.mxu0 %v10560_v18  ;;  %7831 = vmatpush1.bf16.msra.mxu1 %v10563_v19  ;;  %v10652_v18 = vld [vmem:[%s14515_s1 + $0x1620] ss:$16 sps:$4 sm:$0xff]   ;;  %v10655_v19 = vld [vmem:[%s14515_s1 + $0x1628] ss:$16 sps:$4 sm:$0xff]  }
 0x28c   :  { %7016 = vmatprep.subr.bf16.mxu0 %v10568_v20  ;;  %7832 = vmatprep.subr.bf16.mxu1 %v10571_v21  ;;  %v10660_v20 = vld [vmem:[%s14515_s1 + $0x1644] ss:$16 sps:$4 sm:$0xff]   ;;  %v10663_v21 = vld [vmem:[%s14515_s1 + $0x164c] ss:$16 sps:$4 sm:$0xff]  }
 0x28d   :  { %7042 = vmatprep.mubr.bf16.mxu0 %v8239_v22  ;;  %7858 = vmatprep.mubr.bf16.mxu1 %v8239_v22  ;;  %v8270_v22 = vcombine.low %v56_v12, %v56_v12  ;;  %v10740_v12 = vld [vmem:[%s14515_s1 + $0x17e4] ss:$16 sps:$4 sm:$0xff]  }
 0x28f   :  { %7017 = vmatpush1.bf16.msra.mxu0 %v10566_v23  ;;  %7833 = vmatpush1.bf16.msra.mxu1 %v10569_v24  ;;  %v13482_v23 = vld [vmem:[%s14516_s0 + $0x58] sm:$0xff] }
 0x290   :  { %7018 = vmatprep.subr.bf16.mxu0 %v10574_v25  ;;  %7834 = vmatprep.subr.bf16.mxu1 %v10577_v26  ;;  %v13487_v24 = vld [vmem:[%s14516_s0 + $0xd8] sm:$0xff]  ;;  %v10658_v25 = vld [vmem:[%s14515_s1 + $0x1640] ss:$16 sps:$4 sm:$0xff]  }
 0x291   :  { %v10661_v26 = vld [vmem:[%s14515_s1 + $0x1648] ss:$16 sps:$4 sm:$0xff]  }
 0x293   :  { %7019 = vmatpush1.bf16.msra.mxu0 %v10572_v27  ;;  %7835 = vmatpush1.bf16.msra.mxu1 %v10575_v28  ;;  %v10666_v27 = vld [vmem:[%s14515_s1 + $0x1664] ss:$16 sps:$4 sm:$0xff]   ;;  %v10669_v28 = vld [vmem:[%s14515_s1 + $0x166c] ss:$16 sps:$4 sm:$0xff]  }
 0x294   :  { %7020 = vmatprep.subr.bf16.mxu0 %v10580_v29  ;;  %7836 = vmatprep.subr.bf16.mxu1 %v10583_v30  ;;  %v8241_v29 = vcombine.high %v13482_v23, %v13487_v24  ;;  %v10664_v30 = vld [vmem:[%s14515_s1 + $0x1660] ss:$16 sps:$4 sm:$0xff]  }
 0x297   :  { %7021 = vmatpush1.bf16.msra.mxu0 %v10578_v31  ;;  %7837 = vmatpush1.bf16.msra.mxu1 %v10581_v32  ;;  %v10667_v31 = vld [vmem:[%s14515_s1 + $0x1668] ss:$16 sps:$4 sm:$0xff]   ;;  %v10672_v32 = vld [vmem:[%s14515_s1 + $0x1684] ss:$16 sps:$4 sm:$0xff]  }
 0x298   :  { %7022 = vmatprep.subr.bf16.mxu0 %v10586_v33  ;;  %7838 = vmatprep.subr.bf16.mxu1 %v10589_v34  ;;  %v10675_v33 = vld [vmem:[%s14515_s1 + $0x168c] ss:$16 sps:$4 sm:$0xff]   ;;  %v10670_v34 = vld [vmem:[%s14515_s1 + $0x1680] ss:$16 sps:$4 sm:$0xff]  }
 0x29b   :  { %7023 = vmatpush1.bf16.msra.mxu0 %v10584_v35  ;;  %7839 = vmatpush1.bf16.msra.mxu1 %v10587_v36  ;;  %v10673_v35 = vld [vmem:[%s14515_s1 + $0x1688] ss:$16 sps:$4 sm:$0xff]   ;;  %v10678_v36 = vld [vmem:[%s14515_s1 + $0x16a4] ss:$16 sps:$4 sm:$0xff]  }
 0x29c   :  { %7024 = vmatprep.subr.bf16.mxu0 %v10592_v37  ;;  %7840 = vmatprep.subr.bf16.mxu1 %v10595_v38  ;;  %v10681_v37 = vld [vmem:[%s14515_s1 + $0x16ac] ss:$16 sps:$4 sm:$0xff]   ;;  %v10676_v38 = vld [vmem:[%s14515_s1 + $0x16a0] ss:$16 sps:$4 sm:$0xff]  }
 0x29f   :  { %7025 = vmatpush1.bf16.msra.mxu0 %v10590_v39  ;;  %7841 = vmatpush1.bf16.msra.mxu1 %v10593_v40  ;;  %v10679_v39 = vld [vmem:[%s14515_s1 + $0x16a8] ss:$16 sps:$4 sm:$0xff]   ;;  %v10684_v40 = vld [vmem:[%s14515_s1 + $0x16c4] ss:$16 sps:$4 sm:$0xff]  }
 0x2a0   :  { %7026 = vmatprep.subr.bf16.mxu0 %v10598_v41  ;;  %7842 = vmatprep.subr.bf16.mxu1 %v10601_v42  ;;  %v10687_v41 = vld [vmem:[%s14515_s1 + $0x16cc] ss:$16 sps:$4 sm:$0xff]   ;;  %v10682_v42 = vld [vmem:[%s14515_s1 + $0x16c0] ss:$16 sps:$4 sm:$0xff]  }
 0x2a3   :  { %7027 = vmatpush1.bf16.msra.mxu0 %v10596_v43  ;;  %7843 = vmatpush1.bf16.msra.mxu1 %v10599_v46  ;;  %v10685_v43 = vld [vmem:[%s14515_s1 + $0x16c8] ss:$16 sps:$4 sm:$0xff]   ;;  %v10690_v46 = vld [vmem:[%s14515_s1 + $0x16e4] ss:$16 sps:$4 sm:$0xff]  }
 0x2a4   :  { %7028 = vmatprep.subr.bf16.mxu0 %v10604_v44  ;;  %7844 = vmatprep.subr.bf16.mxu1 %v10607_v45  ;;  %v10693_v44 = vld [vmem:[%s14515_s1 + $0x16ec] ss:$16 sps:$4 sm:$0xff]   ;;  %v10688_v45 = vld [vmem:[%s14515_s1 + $0x16e0] ss:$16 sps:$4 sm:$0xff]  }
 0x2a7   :  { %7029 = vmatpush1.bf16.msra.mxu0 %v10602_v47  ;;  %7845 = vmatpush1.bf16.msra.mxu1 %v10605_v48  ;;  %v10691_v47 = vld [vmem:[%s14515_s1 + $0x16e8] ss:$16 sps:$4 sm:$0xff]   ;;  %v10696_v48 = vld [vmem:[%s14515_s1 + $0x1704] ss:$16 sps:$4 sm:$0xff]  }
 0x2a8   :  { %7030 = vmatprep.subr.bf16.mxu0 %v10610_v49  ;;  %7846 = vmatprep.subr.bf16.mxu1 %v10613_v50  ;;  %v10699_v49 = vld [vmem:[%s14515_s1 + $0x170c] ss:$16 sps:$4 sm:$0xff]   ;;  %v10694_v50 = vld [vmem:[%s14515_s1 + $0x1700] ss:$16 sps:$4 sm:$0xff]  }
 0x2ab   :  { %7031 = vmatpush1.bf16.msra.mxu0 %v10608_v53  ;;  %7847 = vmatpush1.bf16.msra.mxu1 %v10611_v51  ;;  %v10697_v53 = vld [vmem:[%s14515_s1 + $0x1708] ss:$16 sps:$4 sm:$0xff]   ;;  %v10702_v51 = vld [vmem:[%s14515_s1 + $0x1724] ss:$16 sps:$4 sm:$0xff]  }
 0x2ac   :  { %7032 = vmatprep.subr.bf16.mxu0 %v10616_v52  ;;  %7848 = vmatprep.subr.bf16.mxu1 %v10619_v54  ;;  %v10705_v52 = vld [vmem:[%s14515_s1 + $0x172c] ss:$16 sps:$4 sm:$0xff]   ;;  %v10700_v54 = vld [vmem:[%s14515_s1 + $0x1720] ss:$16 sps:$4 sm:$0xff]  }
 0x2af   :  { %7033 = vmatpush1.bf16.msra.mxu0 %v10614_v55  ;;  %7849 = vmatpush1.bf16.msra.mxu1 %v10617_v56  ;;  %v10703_v55 = vld [vmem:[%s14515_s1 + $0x1728] ss:$16 sps:$4 sm:$0xff]   ;;  %v10708_v56 = vld [vmem:[%s14515_s1 + $0x1744] ss:$16 sps:$4 sm:$0xff]  }
 0x2b0   :  { %7034 = vmatprep.subr.bf16.mxu0 %v10622_v57  ;;  %7850 = vmatprep.subr.bf16.mxu1 %v10625_v60  ;;  %v10711_v57 = vld [vmem:[%s14515_s1 + $0x174c] ss:$16 sps:$4 sm:$0xff]   ;;  %v10706_v60 = vld [vmem:[%s14515_s1 + $0x1740] ss:$16 sps:$4 sm:$0xff]  }
 0x2b3   :  { %7035 = vmatpush1.bf16.msra.mxu0 %v10620_v58  ;;  %7851 = vmatpush1.bf16.msra.mxu1 %v10623_v59  ;;  %v10709_v58 = vld [vmem:[%s14515_s1 + $0x1748] ss:$16 sps:$4 sm:$0xff]   ;;  %v10714_v59 = vld [vmem:[%s14515_s1 + $0x1764] ss:$16 sps:$4 sm:$0xff]  }
 0x2b4   :  { %7036 = vmatprep.subr.bf16.mxu0 %v10628_v61  ;;  %7852 = vmatprep.subr.bf16.mxu1 %v10631_v62  ;;  %v10717_v61 = vld [vmem:[%s14515_s1 + $0x176c] ss:$16 sps:$4 sm:$0xff]   ;;  %v10712_v62 = vld [vmem:[%s14515_s1 + $0x1760] ss:$16 sps:$4 sm:$0xff]  }
 0x2b7   :  { %7037 = vmatpush1.bf16.msra.mxu0 %v10626_v63  ;;  %7853 = vmatpush1.bf16.msra.mxu1 %v10629_v0  ;;  %v10715_v63 = vld [vmem:[%s14515_s1 + $0x1768] ss:$16 sps:$4 sm:$0xff]   ;;  %v10720_v0 = vld [vmem:[%s14515_s1 + $0x1784] ss:$16 sps:$4 sm:$0xff]  }
 0x2b8   :  { %7038 = vmatprep.subr.bf16.mxu0 %v10635_v3  ;;  %7854 = vmatprep.subr.bf16.mxu1 %v10638_v1  ;;  %v10723_v3 = vld [vmem:[%s14515_s1 + $0x178c] ss:$16 sps:$4 sm:$0xff]   ;;  %v10718_v1 = vld [vmem:[%s14515_s1 + $0x1780] ss:$16 sps:$4 sm:$0xff]  }
 0x2bb   :  { %7039 = vmatpush1.bf16.msra.mxu0 %v10633_v2  ;;  %7855 = vmatpush1.bf16.msra.mxu1 %v10636_v4  ;;  %v10721_v2 = vld [vmem:[%s14515_s1 + $0x1788] ss:$16 sps:$4 sm:$0xff]   ;;  %v10726_v4 = vld [vmem:[%s14515_s1 + $0x17a4] ss:$16 sps:$4 sm:$0xff]  }
 0x2bc   :  { %7040 = vmatprep.subr.bf16.mxu0 %v10642_v5  ;;  %7856 = vmatprep.subr.bf16.mxu1 %v10645_v6  ;;  %v10729_v5 = vld [vmem:[%s14515_s1 + $0x17ac] ss:$16 sps:$4 sm:$0xff]   ;;  %v10724_v6 = vld [vmem:[%s14515_s1 + $0x17a0] ss:$16 sps:$4 sm:$0xff]  }
 0x2bf   :  { %7041 = vmatpush1.bf16.msra.mxu0 %v10640_v7  ;;  %7857 = vmatpush1.bf16.msra.mxu1 %v10643_v8  ;;  %v10727_v7 = vld [vmem:[%s14515_s1 + $0x17a8] ss:$16 sps:$4 sm:$0xff]   ;;  %v10733_v8 = vld [vmem:[%s14515_s1 + $0x17c4] ss:$16 sps:$4 sm:$0xff]  }
 0x2c0   :  { %7061 = vmatprep.subr.bf16.mxu0 %v10648_v9  ;;  %7877 = vmatprep.subr.bf16.mxu1 %v10651_v10  ;;  %v10736_v9 = vld [vmem:[%s14515_s1 + $0x17cc] ss:$16 sps:$4 sm:$0xff]   ;;  %v10731_v10 = vld [vmem:[%s14515_s1 + $0x17c0] ss:$16 sps:$4 sm:$0xff]  }
 0x2c2   :  { %7043 = vmatmul.mubr.bf16.vlgmr.msra.gmra.mrb[0].mxu0 %v8238_v11  ;;  %7859 = vmatmul.mubr.bf16.vlgmr.msra.gmra.mrb[0].mxu1 %v8238_v11  ;;  %v10734_v11 = vld [vmem:[%s14515_s1 + $0x17c8] ss:$16 sps:$4 sm:$0xff]  }
 0x2c3   :  { %7062 = vmatpush1.bf16.msra.mxu0 %v10646_v13  ;;  %7878 = vmatpush1.bf16.msra.mxu1 %v10649_v14  ;;  %v10743_v13 = vld [vmem:[%s14515_s1 + $0x17ec] ss:$16 sps:$4 sm:$0xff]   ;;  %v10738_v14 = vld [vmem:[%s14515_s1 + $0x17e0] ss:$16 sps:$4 sm:$0xff]  }
 0x2c4   :  { %7063 = vmatprep.subr.bf16.mxu0 %v10654_v15  ;;  %7879 = vmatprep.subr.bf16.mxu1 %v10657_v16  ;;  %v10741_v15 = vld [vmem:[%s14515_s1 + $0x17e8] ss:$16 sps:$4 sm:$0xff]   ;;  %v10746_v16 = vld [vmem:[%s14515_s1 + $0x1804] ss:$16 sps:$4 sm:$0xff]  }
 0x2c5   :  { %7052 = vmatprep.mubr.bf16.mxu0 %v8271_v17  ;;  %7868 = vmatprep.mubr.bf16.mxu1 %v8271_v17  ;;  %v10749_v17 = vld [vmem:[%s14515_s1 + $0x180c] ss:$16 sps:$4 sm:$0xff]  }
 0x2c7   :  { %7064 = vmatpush1.bf16.msra.mxu0 %v10652_v18  ;;  %7880 = vmatpush1.bf16.msra.mxu1 %v10655_v19  ;;  %v8240_v18 = vcombine.low %v13482_v23, %v13487_v24  ;;  %v57_v19 = vld [vmem:[%s14516_s0 + $0x158] sm:$0x33] }
 0x2c8   :  { %7065 = vmatprep.subr.bf16.mxu0 %v10660_v20  ;;  %7881 = vmatprep.subr.bf16.mxu1 %v10663_v21  ;;  %v10744_v20 = vld [vmem:[%s14515_s1 + $0x1800] ss:$16 sps:$4 sm:$0xff]   ;;  %v10747_v21 = vld [vmem:[%s14515_s1 + $0x1808] ss:$16 sps:$4 sm:$0xff]   ;;  %v10755_v23 = vld [vmem:[%s14515_s1 + $0x182c] ss:$16 sps:$4 sm:$0xff]   ;;  %v8273_v24 = vcombine.high %v57_v19, %v57_v19 }
 0x2ca   :  { %7053 = vmatmul.mubr.bf16.gmra.mrb[4].mxu0 %v8270_v22  ;;  %7869 = vmatmul.mubr.bf16.gmra.mrb[4].mxu1 %v8270_v22  ;;  %v10752_v22 = vld [vmem:[%s14515_s1 + $0x1824] ss:$16 sps:$4 sm:$0xff]  }
 0x2cb   :  { %7066 = vmatpush1.bf16.msra.mxu0 %v10658_v25  ;;  %7882 = vmatpush1.bf16.msra.mxu1 %v10661_v26  ;;  %v10750_v25 = vld [vmem:[%s14515_s1 + $0x1820] ss:$16 sps:$4 sm:$0xff]   ;;  %v10753_v26 = vld [vmem:[%s14515_s1 + $0x1828] ss:$16 sps:$4 sm:$0xff]  }
 0x2cc   :  { %7067 = vmatprep.subr.bf16.mxu0 %v10666_v27  ;;  %7883 = vmatprep.subr.bf16.mxu1 %v10669_v28  ;;  %v10758_v27 = vld [vmem:[%s14515_s1 + $0x1844] ss:$16 sps:$4 sm:$0xff]   ;;  %v10761_v28 = vld [vmem:[%s14515_s1 + $0x184c] ss:$16 sps:$4 sm:$0xff]  }
 0x2cd   :  { %7093 = vmatprep.mubr.bf16.mxu0 %v8241_v29  ;;  %7909 = vmatprep.mubr.bf16.mxu1 %v8241_v29  ;;  %v8272_v29 = vcombine.low %v57_v19, %v57_v19  ;;  %v10838_v19 = vld [vmem:[%s14515_s1 + $0x19e4] ss:$16 sps:$4 sm:$0xff]  }
 0x2cf   :  { %7068 = vmatpush1.bf16.msra.mxu0 %v10664_v30  ;;  %7884 = vmatpush1.bf16.msra.mxu1 %v10667_v31  ;;  %v13691_v30 = vld [vmem:[%s14516_s0 + $0x60] sm:$0xff] }
 0x2d0   :  { %7069 = vmatprep.subr.bf16.mxu0 %v10672_v32  ;;  %7885 = vmatprep.subr.bf16.mxu1 %v10675_v33  ;;  %v13696_v31 = vld [vmem:[%s14516_s0 + $0xe0] sm:$0xff]  ;;  %v10759_v33 = vld [vmem:[%s14515_s1 + $0x1848] ss:$16 sps:$4 sm:$0xff]  }
 0x2d1   :  { %v10756_v32 = vld [vmem:[%s14515_s1 + $0x1840] ss:$16 sps:$4 sm:$0xff]  }
 0x2d3   :  { %7070 = vmatpush1.bf16.msra.mxu0 %v10670_v34  ;;  %7886 = vmatpush1.bf16.msra.mxu1 %v10673_v35  ;;  %v10764_v34 = vld [vmem:[%s14515_s1 + $0x1864] ss:$16 sps:$4 sm:$0xff]   ;;  %v10767_v35 = vld [vmem:[%s14515_s1 + $0x186c] ss:$16 sps:$4 sm:$0xff]  }
 0x2d4   :  { %7071 = vmatprep.subr.bf16.mxu0 %v10678_v36  ;;  %7887 = vmatprep.subr.bf16.mxu1 %v10681_v37  ;;  %v8243_v36 = vcombine.high %v13691_v30, %v13696_v31  ;;  %v10762_v37 = vld [vmem:[%s14515_s1 + $0x1860] ss:$16 sps:$4 sm:$0xff]  }
 0x2d7   :  { %7072 = vmatpush1.bf16.msra.mxu0 %v10676_v38  ;;  %7888 = vmatpush1.bf16.msra.mxu1 %v10679_v39  ;;  %v10765_v38 = vld [vmem:[%s14515_s1 + $0x1868] ss:$16 sps:$4 sm:$0xff]   ;;  %v10770_v39 = vld [vmem:[%s14515_s1 + $0x1884] ss:$16 sps:$4 sm:$0xff]  }
 0x2d8   :  { %7073 = vmatprep.subr.bf16.mxu0 %v10684_v40  ;;  %7889 = vmatprep.subr.bf16.mxu1 %v10687_v41  ;;  %v10773_v40 = vld [vmem:[%s14515_s1 + $0x188c] ss:$16 sps:$4 sm:$0xff]   ;;  %v10768_v41 = vld [vmem:[%s14515_s1 + $0x1880] ss:$16 sps:$4 sm:$0xff]  }
 0x2db   :  { %7074 = vmatpush1.bf16.msra.mxu0 %v10682_v42  ;;  %7890 = vmatpush1.bf16.msra.mxu1 %v10685_v43  ;;  %v10771_v42 = vld [vmem:[%s14515_s1 + $0x1888] ss:$16 sps:$4 sm:$0xff]   ;;  %v10776_v43 = vld [vmem:[%s14515_s1 + $0x18a4] ss:$16 sps:$4 sm:$0xff]  }
 0x2dc   :  { %7075 = vmatprep.subr.bf16.mxu0 %v10690_v46  ;;  %7891 = vmatprep.subr.bf16.mxu1 %v10693_v44  ;;  %v10779_v46 = vld [vmem:[%s14515_s1 + $0x18ac] ss:$16 sps:$4 sm:$0xff]   ;;  %v10774_v44 = vld [vmem:[%s14515_s1 + $0x18a0] ss:$16 sps:$4 sm:$0xff]  }
 0x2df   :  { %7076 = vmatpush1.bf16.msra.mxu0 %v10688_v45  ;;  %7892 = vmatpush1.bf16.msra.mxu1 %v10691_v47  ;;  %v10777_v45 = vld [vmem:[%s14515_s1 + $0x18a8] ss:$16 sps:$4 sm:$0xff]   ;;  %v10782_v47 = vld [vmem:[%s14515_s1 + $0x18c4] ss:$16 sps:$4 sm:$0xff]  }
 0x2e0   :  { %7077 = vmatprep.subr.bf16.mxu0 %v10696_v48  ;;  %7893 = vmatprep.subr.bf16.mxu1 %v10699_v49  ;;  %v10785_v48 = vld [vmem:[%s14515_s1 + $0x18cc] ss:$16 sps:$4 sm:$0xff]   ;;  %v10780_v49 = vld [vmem:[%s14515_s1 + $0x18c0] ss:$16 sps:$4 sm:$0xff]  }
 0x2e3   :  { %7078 = vmatpush1.bf16.msra.mxu0 %v10694_v50  ;;  %7894 = vmatpush1.bf16.msra.mxu1 %v10697_v53  ;;  %v10783_v50 = vld [vmem:[%s14515_s1 + $0x18c8] ss:$16 sps:$4 sm:$0xff]   ;;  %v10788_v53 = vld [vmem:[%s14515_s1 + $0x18e4] ss:$16 sps:$4 sm:$0xff]  }
 0x2e4   :  { %7079 = vmatprep.subr.bf16.mxu0 %v10702_v51  ;;  %7895 = vmatprep.subr.bf16.mxu1 %v10705_v52  ;;  %v10791_v51 = vld [vmem:[%s14515_s1 + $0x18ec] ss:$16 sps:$4 sm:$0xff]   ;;  %v10786_v52 = vld [vmem:[%s14515_s1 + $0x18e0] ss:$16 sps:$4 sm:$0xff]  }
 0x2e7   :  { %7080 = vmatpush1.bf16.msra.mxu0 %v10700_v54  ;;  %7896 = vmatpush1.bf16.msra.mxu1 %v10703_v55  ;;  %v10789_v54 = vld [vmem:[%s14515_s1 + $0x18e8] ss:$16 sps:$4 sm:$0xff]   ;;  %v10794_v55 = vld [vmem:[%s14515_s1 + $0x1904] ss:$16 sps:$4 sm:$0xff]  }
 0x2e8   :  { %7081 = vmatprep.subr.bf16.mxu0 %v10708_v56  ;;  %7897 = vmatprep.subr.bf16.mxu1 %v10711_v57  ;;  %v10797_v56 = vld [vmem:[%s14515_s1 + $0x190c] ss:$16 sps:$4 sm:$0xff]   ;;  %v10792_v57 = vld [vmem:[%s14515_s1 + $0x1900] ss:$16 sps:$4 sm:$0xff]  }
 0x2eb   :  { %7082 = vmatpush1.bf16.msra.mxu0 %v10706_v60  ;;  %7898 = vmatpush1.bf16.msra.mxu1 %v10709_v58  ;;  %v10795_v60 = vld [vmem:[%s14515_s1 + $0x1908] ss:$16 sps:$4 sm:$0xff]   ;;  %v10800_v58 = vld [vmem:[%s14515_s1 + $0x1924] ss:$16 sps:$4 sm:$0xff]  }
 0x2ec   :  { %7083 = vmatprep.subr.bf16.mxu0 %v10714_v59  ;;  %7899 = vmatprep.subr.bf16.mxu1 %v10717_v61  ;;  %v10803_v59 = vld [vmem:[%s14515_s1 + $0x192c] ss:$16 sps:$4 sm:$0xff]   ;;  %v10798_v61 = vld [vmem:[%s14515_s1 + $0x1920] ss:$16 sps:$4 sm:$0xff]  }
 0x2ef   :  { %7084 = vmatpush1.bf16.msra.mxu0 %v10712_v62  ;;  %7900 = vmatpush1.bf16.msra.mxu1 %v10715_v63  ;;  %v10801_v62 = vld [vmem:[%s14515_s1 + $0x1928] ss:$16 sps:$4 sm:$0xff]   ;;  %v10806_v63 = vld [vmem:[%s14515_s1 + $0x1944] ss:$16 sps:$4 sm:$0xff]  }
 0x2f0   :  { %7085 = vmatprep.subr.bf16.mxu0 %v10720_v0  ;;  %7901 = vmatprep.subr.bf16.mxu1 %v10723_v3  ;;  %v10809_v0 = vld [vmem:[%s14515_s1 + $0x194c] ss:$16 sps:$4 sm:$0xff]   ;;  %v10804_v3 = vld [vmem:[%s14515_s1 + $0x1940] ss:$16 sps:$4 sm:$0xff]  }
 0x2f3   :  { %7086 = vmatpush1.bf16.msra.mxu0 %v10718_v1  ;;  %7902 = vmatpush1.bf16.msra.mxu1 %v10721_v2  ;;  %v10807_v1 = vld [vmem:[%s14515_s1 + $0x1948] ss:$16 sps:$4 sm:$0xff]   ;;  %v10812_v2 = vld [vmem:[%s14515_s1 + $0x1964] ss:$16 sps:$4 sm:$0xff]  }
 0x2f4   :  { %7087 = vmatprep.subr.bf16.mxu0 %v10726_v4  ;;  %7903 = vmatprep.subr.bf16.mxu1 %v10729_v5  ;;  %v10815_v4 = vld [vmem:[%s14515_s1 + $0x196c] ss:$16 sps:$4 sm:$0xff]   ;;  %v10810_v5 = vld [vmem:[%s14515_s1 + $0x1960] ss:$16 sps:$4 sm:$0xff]  }
 0x2f7   :  { %7088 = vmatpush1.bf16.msra.mxu0 %v10724_v6  ;;  %7904 = vmatpush1.bf16.msra.mxu1 %v10727_v7  ;;  %v10813_v6 = vld [vmem:[%s14515_s1 + $0x1968] ss:$16 sps:$4 sm:$0xff]   ;;  %v10818_v7 = vld [vmem:[%s14515_s1 + $0x1984] ss:$16 sps:$4 sm:$0xff]  }
 0x2f8   :  { %7089 = vmatprep.subr.bf16.mxu0 %v10733_v8  ;;  %7905 = vmatprep.subr.bf16.mxu1 %v10736_v9  ;;  %v10821_v8 = vld [vmem:[%s14515_s1 + $0x198c] ss:$16 sps:$4 sm:$0xff]   ;;  %v10816_v9 = vld [vmem:[%s14515_s1 + $0x1980] ss:$16 sps:$4 sm:$0xff]  }
 0x2fb   :  { %7090 = vmatpush1.bf16.msra.mxu0 %v10731_v10  ;;  %7906 = vmatpush1.bf16.msra.mxu1 %v10734_v11  ;;  %v10819_v10 = vld [vmem:[%s14515_s1 + $0x1988] ss:$16 sps:$4 sm:$0xff]   ;;  %v10824_v11 = vld [vmem:[%s14515_s1 + $0x19a4] ss:$16 sps:$4 sm:$0xff]  }
 0x2fc   :  { %7091 = vmatprep.subr.bf16.mxu0 %v10740_v12  ;;  %7907 = vmatprep.subr.bf16.mxu1 %v10743_v13  ;;  %v10827_v12 = vld [vmem:[%s14515_s1 + $0x19ac] ss:$16 sps:$4 sm:$0xff]   ;;  %v10822_v13 = vld [vmem:[%s14515_s1 + $0x19a0] ss:$16 sps:$4 sm:$0xff]  }
 0x2ff   :  { %7092 = vmatpush1.bf16.msra.mxu0 %v10738_v14  ;;  %7908 = vmatpush1.bf16.msra.mxu1 %v10741_v15  ;;  %v10825_v14 = vld [vmem:[%s14515_s1 + $0x19a8] ss:$16 sps:$4 sm:$0xff]   ;;  %v10831_v15 = vld [vmem:[%s14515_s1 + $0x19c4] ss:$16 sps:$4 sm:$0xff]  }
 0x300   :  { %7112 = vmatprep.subr.bf16.mxu0 %v10746_v16  ;;  %7928 = vmatprep.subr.bf16.mxu1 %v10749_v17  ;;  %v10834_v16 = vld [vmem:[%s14515_s1 + $0x19cc] ss:$16 sps:$4 sm:$0xff]   ;;  %v10829_v17 = vld [vmem:[%s14515_s1 + $0x19c0] ss:$16 sps:$4 sm:$0xff]  }
 0x302   :  { %7094 = vmatmul.mubr.bf16.vlgmr.msra.gmra.mrb[0].mxu0 %v8240_v18  ;;  %7910 = vmatmul.mubr.bf16.vlgmr.msra.gmra.mrb[0].mxu1 %v8240_v18  ;;  %v10832_v18 = vld [vmem:[%s14515_s1 + $0x19c8] ss:$16 sps:$4 sm:$0xff]  }
 0x303   :  { %7113 = vmatpush1.bf16.msra.mxu0 %v10744_v20  ;;  %7929 = vmatpush1.bf16.msra.mxu1 %v10747_v21  ;;  %v10841_v20 = vld [vmem:[%s14515_s1 + $0x19ec] ss:$16 sps:$4 sm:$0xff]   ;;  %v10836_v21 = vld [vmem:[%s14515_s1 + $0x19e0] ss:$16 sps:$4 sm:$0xff]  }
 0x304   :  { %7114 = vmatprep.subr.bf16.mxu0 %v10752_v22  ;;  %7930 = vmatprep.subr.bf16.mxu1 %v10755_v23  ;;  %v10839_v22 = vld [vmem:[%s14515_s1 + $0x19e8] ss:$16 sps:$4 sm:$0xff]   ;;  %v10844_v23 = vld [vmem:[%s14515_s1 + $0x1a04] ss:$16 sps:$4 sm:$0xff]  }
 0x305   :  { %7103 = vmatprep.mubr.bf16.mxu0 %v8273_v24  ;;  %7919 = vmatprep.mubr.bf16.mxu1 %v8273_v24  ;;  %v10847_v24 = vld [vmem:[%s14515_s1 + $0x1a0c] ss:$16 sps:$4 sm:$0xff]  }
 0x307   :  { %7115 = vmatpush1.bf16.msra.mxu0 %v10750_v25  ;;  %7931 = vmatpush1.bf16.msra.mxu1 %v10753_v26  ;;  %v8242_v25 = vcombine.low %v13691_v30, %v13696_v31  ;;  %v58_v26 = vld [vmem:[%s14516_s0 + $0x160] sm:$0x33]  ;;  %v10853_v30 = vld [vmem:[%s14515_s1 + $0x1a2c] ss:$16 sps:$4 sm:$0xff]  }
 0x308   :  { %7116 = vmatprep.subr.bf16.mxu0 %v10758_v27  ;;  %7932 = vmatprep.subr.bf16.mxu1 %v10761_v28  ;;  %v10842_v27 = vld [vmem:[%s14515_s1 + $0x1a00] ss:$16 sps:$4 sm:$0xff]   ;;  %v10845_v28 = vld [vmem:[%s14515_s1 + $0x1a08] ss:$16 sps:$4 sm:$0xff]   ;;  %v8275_v31 = vcombine.high %v58_v26, %v58_v26 }
 0x30a   :  { %7104 = vmatmul.mubr.bf16.gmra.mrb[4].mxu0 %v8272_v29  ;;  %7920 = vmatmul.mubr.bf16.gmra.mrb[4].mxu1 %v8272_v29  ;;  %v10850_v29 = vld [vmem:[%s14515_s1 + $0x1a24] ss:$16 sps:$4 sm:$0xff]  }
 0x30b   :  { %7117 = vmatpush1.bf16.msra.mxu0 %v10756_v32  ;;  %7933 = vmatpush1.bf16.msra.mxu1 %v10759_v33  ;;  %v10848_v32 = vld [vmem:[%s14515_s1 + $0x1a20] ss:$16 sps:$4 sm:$0xff]   ;;  %v10851_v33 = vld [vmem:[%s14515_s1 + $0x1a28] ss:$16 sps:$4 sm:$0xff]  }
 0x30c   :  { %7118 = vmatprep.subr.bf16.mxu0 %v10764_v34  ;;  %7934 = vmatprep.subr.bf16.mxu1 %v10767_v35  ;;  %v10856_v34 = vld [vmem:[%s14515_s1 + $0x1a44] ss:$16 sps:$4 sm:$0xff]   ;;  %v10859_v35 = vld [vmem:[%s14515_s1 + $0x1a4c] ss:$16 sps:$4 sm:$0xff]  }
 0x30d   :  { %7144 = vmatprep.mubr.bf16.mxu0 %v8243_v36  ;;  %7960 = vmatprep.mubr.bf16.mxu1 %v8243_v36  ;;  %v8274_v36 = vcombine.low %v58_v26, %v58_v26  ;;  %v10936_v26 = vld [vmem:[%s14515_s1 + $0x1be4] ss:$16 sps:$4 sm:$0xff]  }
 0x30f   :  { %7119 = vmatpush1.bf16.msra.mxu0 %v10762_v37  ;;  %7935 = vmatpush1.bf16.msra.mxu1 %v10765_v38  ;;  %v13900_v37 = vld [vmem:[%s14516_s0 + $0x68] sm:$0xff] }
 0x310   :  { %7120 = vmatprep.subr.bf16.mxu0 %v10770_v39  ;;  %7936 = vmatprep.subr.bf16.mxu1 %v10773_v40  ;;  %v13905_v38 = vld [vmem:[%s14516_s0 + $0xe8] sm:$0xff]  ;;  %v10854_v39 = vld [vmem:[%s14515_s1 + $0x1a40] ss:$16 sps:$4 sm:$0xff]  }
 0x311   :  { %v10857_v40 = vld [vmem:[%s14515_s1 + $0x1a48] ss:$16 sps:$4 sm:$0xff]  }
 0x313   :  { %7121 = vmatpush1.bf16.msra.mxu0 %v10768_v41  ;;  %7937 = vmatpush1.bf16.msra.mxu1 %v10771_v42  ;;  %v10862_v41 = vld [vmem:[%s14515_s1 + $0x1a64] ss:$16 sps:$4 sm:$0xff]   ;;  %v10865_v42 = vld [vmem:[%s14515_s1 + $0x1a6c] ss:$16 sps:$4 sm:$0xff]  }
 0x314   :  { %7122 = vmatprep.subr.bf16.mxu0 %v10776_v43  ;;  %7938 = vmatprep.subr.bf16.mxu1 %v10779_v46  ;;  %v8245_v43 = vcombine.high %v13900_v37, %v13905_v38  ;;  %v10860_v46 = vld [vmem:[%s14515_s1 + $0x1a60] ss:$16 sps:$4 sm:$0xff]  }
 0x317   :  { %7123 = vmatpush1.bf16.msra.mxu0 %v10774_v44  ;;  %7939 = vmatpush1.bf16.msra.mxu1 %v10777_v45  ;;  %v10863_v44 = vld [vmem:[%s14515_s1 + $0x1a68] ss:$16 sps:$4 sm:$0xff]   ;;  %v10868_v45 = vld [vmem:[%s14515_s1 + $0x1a84] ss:$16 sps:$4 sm:$0xff]  }
 0x318   :  { %7124 = vmatprep.subr.bf16.mxu0 %v10782_v47  ;;  %7940 = vmatprep.subr.bf16.mxu1 %v10785_v48  ;;  %v10871_v47 = vld [vmem:[%s14515_s1 + $0x1a8c] ss:$16 sps:$4 sm:$0xff]   ;;  %v10866_v48 = vld [vmem:[%s14515_s1 + $0x1a80] ss:$16 sps:$4 sm:$0xff]  }
 0x31b   :  { %7125 = vmatpush1.bf16.msra.mxu0 %v10780_v49  ;;  %7941 = vmatpush1.bf16.msra.mxu1 %v10783_v50  ;;  %v10869_v49 = vld [vmem:[%s14515_s1 + $0x1a88] ss:$16 sps:$4 sm:$0xff]   ;;  %v10874_v50 = vld [vmem:[%s14515_s1 + $0x1aa4] ss:$16 sps:$4 sm:$0xff]  }
 0x31c   :  { %7126 = vmatprep.subr.bf16.mxu0 %v10788_v53  ;;  %7942 = vmatprep.subr.bf16.mxu1 %v10791_v51  ;;  %v10877_v53 = vld [vmem:[%s14515_s1 + $0x1aac] ss:$16 sps:$4 sm:$0xff]   ;;  %v10872_v51 = vld [vmem:[%s14515_s1 + $0x1aa0] ss:$16 sps:$4 sm:$0xff]  }
 0x31f   :  { %7127 = vmatpush1.bf16.msra.mxu0 %v10786_v52  ;;  %7943 = vmatpush1.bf16.msra.mxu1 %v10789_v54  ;;  %v10875_v52 = vld [vmem:[%s14515_s1 + $0x1aa8] ss:$16 sps:$4 sm:$0xff]   ;;  %v10880_v54 = vld [vmem:[%s14515_s1 + $0x1ac4] ss:$16 sps:$4 sm:$0xff]  }
 0x320   :  { %7128 = vmatprep.subr.bf16.mxu0 %v10794_v55  ;;  %7944 = vmatprep.subr.bf16.mxu1 %v10797_v56  ;;  %v10883_v55 = vld [vmem:[%s14515_s1 + $0x1acc] ss:$16 sps:$4 sm:$0xff]   ;;  %v10878_v56 = vld [vmem:[%s14515_s1 + $0x1ac0] ss:$16 sps:$4 sm:$0xff]  }
 0x323   :  { %7129 = vmatpush1.bf16.msra.mxu0 %v10792_v57  ;;  %7945 = vmatpush1.bf16.msra.mxu1 %v10795_v60  ;;  %v10881_v57 = vld [vmem:[%s14515_s1 + $0x1ac8] ss:$16 sps:$4 sm:$0xff]   ;;  %v10886_v60 = vld [vmem:[%s14515_s1 + $0x1ae4] ss:$16 sps:$4 sm:$0xff]  }
 0x324   :  { %7130 = vmatprep.subr.bf16.mxu0 %v10800_v58  ;;  %7946 = vmatprep.subr.bf16.mxu1 %v10803_v59  ;;  %v10889_v58 = vld [vmem:[%s14515_s1 + $0x1aec] ss:$16 sps:$4 sm:$0xff]   ;;  %v10884_v59 = vld [vmem:[%s14515_s1 + $0x1ae0] ss:$16 sps:$4 sm:$0xff]  }
 0x327   :  { %7131 = vmatpush1.bf16.msra.mxu0 %v10798_v61  ;;  %7947 = vmatpush1.bf16.msra.mxu1 %v10801_v62  ;;  %v10887_v61 = vld [vmem:[%s14515_s1 + $0x1ae8] ss:$16 sps:$4 sm:$0xff]   ;;  %v10892_v62 = vld [vmem:[%s14515_s1 + $0x1b04] ss:$16 sps:$4 sm:$0xff]  }
 0x328   :  { %7132 = vmatprep.subr.bf16.mxu0 %v10806_v63  ;;  %7948 = vmatprep.subr.bf16.mxu1 %v10809_v0  ;;  %v10895_v63 = vld [vmem:[%s14515_s1 + $0x1b0c] ss:$16 sps:$4 sm:$0xff]   ;;  %v10890_v0 = vld [vmem:[%s14515_s1 + $0x1b00] ss:$16 sps:$4 sm:$0xff]  }
 0x32b   :  { %7133 = vmatpush1.bf16.msra.mxu0 %v10804_v3  ;;  %7949 = vmatpush1.bf16.msra.mxu1 %v10807_v1  ;;  %v10893_v3 = vld [vmem:[%s14515_s1 + $0x1b08] ss:$16 sps:$4 sm:$0xff]   ;;  %v10898_v1 = vld [vmem:[%s14515_s1 + $0x1b24] ss:$16 sps:$4 sm:$0xff]  }
 0x32c   :  { %7134 = vmatprep.subr.bf16.mxu0 %v10812_v2  ;;  %7950 = vmatprep.subr.bf16.mxu1 %v10815_v4  ;;  %v10901_v2 = vld [vmem:[%s14515_s1 + $0x1b2c] ss:$16 sps:$4 sm:$0xff]   ;;  %v10896_v4 = vld [vmem:[%s14515_s1 + $0x1b20] ss:$16 sps:$4 sm:$0xff]  }
 0x32f   :  { %7135 = vmatpush1.bf16.msra.mxu0 %v10810_v5  ;;  %7951 = vmatpush1.bf16.msra.mxu1 %v10813_v6  ;;  %v10899_v5 = vld [vmem:[%s14515_s1 + $0x1b28] ss:$16 sps:$4 sm:$0xff]   ;;  %v10904_v6 = vld [vmem:[%s14515_s1 + $0x1b44] ss:$16 sps:$4 sm:$0xff]  }
 0x330   :  { %7136 = vmatprep.subr.bf16.mxu0 %v10818_v7  ;;  %7952 = vmatprep.subr.bf16.mxu1 %v10821_v8  ;;  %v10907_v7 = vld [vmem:[%s14515_s1 + $0x1b4c] ss:$16 sps:$4 sm:$0xff]   ;;  %v10902_v8 = vld [vmem:[%s14515_s1 + $0x1b40] ss:$16 sps:$4 sm:$0xff]  }
 0x333   :  { %7137 = vmatpush1.bf16.msra.mxu0 %v10816_v9  ;;  %7953 = vmatpush1.bf16.msra.mxu1 %v10819_v10  ;;  %v10905_v9 = vld [vmem:[%s14515_s1 + $0x1b48] ss:$16 sps:$4 sm:$0xff]   ;;  %v10910_v10 = vld [vmem:[%s14515_s1 + $0x1b64] ss:$16 sps:$4 sm:$0xff]  }
 0x334   :  { %7138 = vmatprep.subr.bf16.mxu0 %v10824_v11  ;;  %7954 = vmatprep.subr.bf16.mxu1 %v10827_v12  ;;  %v10913_v11 = vld [vmem:[%s14515_s1 + $0x1b6c] ss:$16 sps:$4 sm:$0xff]   ;;  %v10908_v12 = vld [vmem:[%s14515_s1 + $0x1b60] ss:$16 sps:$4 sm:$0xff]  }
 0x337   :  { %7139 = vmatpush1.bf16.msra.mxu0 %v10822_v13  ;;  %7955 = vmatpush1.bf16.msra.mxu1 %v10825_v14  ;;  %v10911_v13 = vld [vmem:[%s14515_s1 + $0x1b68] ss:$16 sps:$4 sm:$0xff]   ;;  %v10916_v14 = vld [vmem:[%s14515_s1 + $0x1b84] ss:$16 sps:$4 sm:$0xff]  }
 0x338   :  { %7140 = vmatprep.subr.bf16.mxu0 %v10831_v15  ;;  %7956 = vmatprep.subr.bf16.mxu1 %v10834_v16  ;;  %v10919_v15 = vld [vmem:[%s14515_s1 + $0x1b8c] ss:$16 sps:$4 sm:$0xff]   ;;  %v10914_v16 = vld [vmem:[%s14515_s1 + $0x1b80] ss:$16 sps:$4 sm:$0xff]  }
 0x33b   :  { %7141 = vmatpush1.bf16.msra.mxu0 %v10829_v17  ;;  %7957 = vmatpush1.bf16.msra.mxu1 %v10832_v18  ;;  %v10917_v17 = vld [vmem:[%s14515_s1 + $0x1b88] ss:$16 sps:$4 sm:$0xff]   ;;  %v10922_v18 = vld [vmem:[%s14515_s1 + $0x1ba4] ss:$16 sps:$4 sm:$0xff]  }
 0x33c   :  { %7142 = vmatprep.subr.bf16.mxu0 %v10838_v19  ;;  %7958 = vmatprep.subr.bf16.mxu1 %v10841_v20  ;;  %v10925_v19 = vld [vmem:[%s14515_s1 + $0x1bac] ss:$16 sps:$4 sm:$0xff]   ;;  %v10920_v20 = vld [vmem:[%s14515_s1 + $0x1ba0] ss:$16 sps:$4 sm:$0xff]  }
 0x33f   :  { %7143 = vmatpush1.bf16.msra.mxu0 %v10836_v21  ;;  %7959 = vmatpush1.bf16.msra.mxu1 %v10839_v22  ;;  %v10923_v21 = vld [vmem:[%s14515_s1 + $0x1ba8] ss:$16 sps:$4 sm:$0xff]   ;;  %v10929_v22 = vld [vmem:[%s14515_s1 + $0x1bc4] ss:$16 sps:$4 sm:$0xff]  }
 0x340   :  { %7163 = vmatprep.subr.bf16.mxu0 %v10844_v23  ;;  %7979 = vmatprep.subr.bf16.mxu1 %v10847_v24  ;;  %v10932_v23 = vld [vmem:[%s14515_s1 + $0x1bcc] ss:$16 sps:$4 sm:$0xff]   ;;  %v10927_v24 = vld [vmem:[%s14515_s1 + $0x1bc0] ss:$16 sps:$4 sm:$0xff]  }
 0x342   :  { %7145 = vmatmul.mubr.bf16.vlgmr.msra.gmra.mrb[0].mxu0 %v8242_v25  ;;  %7961 = vmatmul.mubr.bf16.vlgmr.msra.gmra.mrb[0].mxu1 %v8242_v25  ;;  %v10930_v25 = vld [vmem:[%s14515_s1 + $0x1bc8] ss:$16 sps:$4 sm:$0xff]  }
 0x343   :  { %7164 = vmatpush1.bf16.msra.mxu0 %v10842_v27  ;;  %7980 = vmatpush1.bf16.msra.mxu1 %v10845_v28  ;;  %v10939_v27 = vld [vmem:[%s14515_s1 + $0x1bec] ss:$16 sps:$4 sm:$0xff]   ;;  %v10934_v28 = vld [vmem:[%s14515_s1 + $0x1be0] ss:$16 sps:$4 sm:$0xff]  }
 0x344   :  { %7165 = vmatprep.subr.bf16.mxu0 %v10850_v29  ;;  %7981 = vmatprep.subr.bf16.mxu1 %v10853_v30  ;;  %v10937_v29 = vld [vmem:[%s14515_s1 + $0x1be8] ss:$16 sps:$4 sm:$0xff]   ;;  %v10942_v30 = vld [vmem:[%s14515_s1 + $0x1c04] ss:$16 sps:$4 sm:$0xff]  }
 0x345   :  { %7154 = vmatprep.mubr.bf16.mxu0 %v8275_v31  ;;  %7970 = vmatprep.mubr.bf16.mxu1 %v8275_v31  ;;  %v10945_v31 = vld [vmem:[%s14515_s1 + $0x1c0c] ss:$16 sps:$4 sm:$0xff]  }
 0x347   :  { %7166 = vmatpush1.bf16.msra.mxu0 %v10848_v32  ;;  %7982 = vmatpush1.bf16.msra.mxu1 %v10851_v33  ;;  %v8244_v32 = vcombine.low %v13900_v37, %v13905_v38  ;;  %v59_v33 = vld [vmem:[%s14516_s0 + $0x168] sm:$0x33] }
 0x348   :  { %7167 = vmatprep.subr.bf16.mxu0 %v10856_v34  ;;  %7983 = vmatprep.subr.bf16.mxu1 %v10859_v35  ;;  %v10940_v34 = vld [vmem:[%s14515_s1 + $0x1c00] ss:$16 sps:$4 sm:$0xff]   ;;  %v10943_v35 = vld [vmem:[%s14515_s1 + $0x1c08] ss:$16 sps:$4 sm:$0xff]   ;;  %v10951_v37 = vld [vmem:[%s14515_s1 + $0x1c2c] ss:$16 sps:$4 sm:$0xff]   ;;  %v8277_v38 = vcombine.high %v59_v33, %v59_v33 }
 0x34a   :  { %7155 = vmatmul.mubr.bf16.gmra.mrb[4].mxu0 %v8274_v36  ;;  %7971 = vmatmul.mubr.bf16.gmra.mrb[4].mxu1 %v8274_v36  ;;  %v10948_v36 = vld [vmem:[%s14515_s1 + $0x1c24] ss:$16 sps:$4 sm:$0xff]  }
 0x34b   :  { %7168 = vmatpush1.bf16.msra.mxu0 %v10854_v39  ;;  %7984 = vmatpush1.bf16.msra.mxu1 %v10857_v40  ;;  %v10946_v39 = vld [vmem:[%s14515_s1 + $0x1c20] ss:$16 sps:$4 sm:$0xff]   ;;  %v10949_v40 = vld [vmem:[%s14515_s1 + $0x1c28] ss:$16 sps:$4 sm:$0xff]  }
 0x34c   :  { %7169 = vmatprep.subr.bf16.mxu0 %v10862_v41  ;;  %7985 = vmatprep.subr.bf16.mxu1 %v10865_v42  ;;  %v10954_v41 = vld [vmem:[%s14515_s1 + $0x1c44] ss:$16 sps:$4 sm:$0xff]   ;;  %v10957_v42 = vld [vmem:[%s14515_s1 + $0x1c4c] ss:$16 sps:$4 sm:$0xff]  }
 0x34d   :  { %7195 = vmatprep.mubr.bf16.mxu0 %v8245_v43  ;;  %8011 = vmatprep.mubr.bf16.mxu1 %v8245_v43  ;;  %v8276_v43 = vcombine.low %v59_v33, %v59_v33  ;;  %v11034_v33 = vld [vmem:[%s14515_s1 + $0x1de4] ss:$16 sps:$4 sm:$0xff]  }
 0x34f   :  { %7170 = vmatpush1.bf16.msra.mxu0 %v10860_v46  ;;  %7986 = vmatpush1.bf16.msra.mxu1 %v10863_v44  ;;  %v14109_v46 = vld [vmem:[%s14516_s0 + $0x70] sm:$0xff] }
 0x350   :  { %7171 = vmatprep.subr.bf16.mxu0 %v10868_v45  ;;  %7987 = vmatprep.subr.bf16.mxu1 %v10871_v47  ;;  %v14114_v44 = vld [vmem:[%s14516_s0 + $0xf0] sm:$0xff]  ;;  %v10955_v47 = vld [vmem:[%s14515_s1 + $0x1c48] ss:$16 sps:$4 sm:$0xff]  }
 0x351   :  { %v10952_v45 = vld [vmem:[%s14515_s1 + $0x1c40] ss:$16 sps:$4 sm:$0xff]  }
 0x353   :  { %7172 = vmatpush1.bf16.msra.mxu0 %v10866_v48  ;;  %7988 = vmatpush1.bf16.msra.mxu1 %v10869_v49  ;;  %v10960_v48 = vld [vmem:[%s14515_s1 + $0x1c64] ss:$16 sps:$4 sm:$0xff]   ;;  %v10963_v49 = vld [vmem:[%s14515_s1 + $0x1c6c] ss:$16 sps:$4 sm:$0xff]  }
 0x354   :  { %7173 = vmatprep.subr.bf16.mxu0 %v10874_v50  ;;  %7989 = vmatprep.subr.bf16.mxu1 %v10877_v53  ;;  %v8247_v50 = vcombine.high %v14109_v46, %v14114_v44  ;;  %v10958_v53 = vld [vmem:[%s14515_s1 + $0x1c60] ss:$16 sps:$4 sm:$0xff]  }
 0x357   :  { %7174 = vmatpush1.bf16.msra.mxu0 %v10872_v51  ;;  %7990 = vmatpush1.bf16.msra.mxu1 %v10875_v52  ;;  %v10961_v51 = vld [vmem:[%s14515_s1 + $0x1c68] ss:$16 sps:$4 sm:$0xff]   ;;  %v10966_v52 = vld [vmem:[%s14515_s1 + $0x1c84] ss:$16 sps:$4 sm:$0xff]  }
 0x358   :  { %7175 = vmatprep.subr.bf16.mxu0 %v10880_v54  ;;  %7991 = vmatprep.subr.bf16.mxu1 %v10883_v55  ;;  %v10969_v54 = vld [vmem:[%s14515_s1 + $0x1c8c] ss:$16 sps:$4 sm:$0xff]   ;;  %v10964_v55 = vld [vmem:[%s14515_s1 + $0x1c80] ss:$16 sps:$4 sm:$0xff]  }
 0x35b   :  { %7176 = vmatpush1.bf16.msra.mxu0 %v10878_v56  ;;  %7992 = vmatpush1.bf16.msra.mxu1 %v10881_v57  ;;  %v10967_v56 = vld [vmem:[%s14515_s1 + $0x1c88] ss:$16 sps:$4 sm:$0xff]   ;;  %v10972_v57 = vld [vmem:[%s14515_s1 + $0x1ca4] ss:$16 sps:$4 sm:$0xff]  }
 0x35c   :  { %7177 = vmatprep.subr.bf16.mxu0 %v10886_v60  ;;  %7993 = vmatprep.subr.bf16.mxu1 %v10889_v58  ;;  %v10975_v60 = vld [vmem:[%s14515_s1 + $0x1cac] ss:$16 sps:$4 sm:$0xff]   ;;  %v10970_v58 = vld [vmem:[%s14515_s1 + $0x1ca0] ss:$16 sps:$4 sm:$0xff]  }
 0x35f   :  { %7178 = vmatpush1.bf16.msra.mxu0 %v10884_v59  ;;  %7994 = vmatpush1.bf16.msra.mxu1 %v10887_v61  ;;  %v10973_v59 = vld [vmem:[%s14515_s1 + $0x1ca8] ss:$16 sps:$4 sm:$0xff]   ;;  %v10978_v61 = vld [vmem:[%s14515_s1 + $0x1cc4] ss:$16 sps:$4 sm:$0xff]  }
 0x360   :  { %7179 = vmatprep.subr.bf16.mxu0 %v10892_v62  ;;  %7995 = vmatprep.subr.bf16.mxu1 %v10895_v63  ;;  %v10981_v62 = vld [vmem:[%s14515_s1 + $0x1ccc] ss:$16 sps:$4 sm:$0xff]   ;;  %v10976_v63 = vld [vmem:[%s14515_s1 + $0x1cc0] ss:$16 sps:$4 sm:$0xff]  }
 0x363   :  { %7180 = vmatpush1.bf16.msra.mxu0 %v10890_v0  ;;  %7996 = vmatpush1.bf16.msra.mxu1 %v10893_v3  ;;  %v10979_v0 = vld [vmem:[%s14515_s1 + $0x1cc8] ss:$16 sps:$4 sm:$0xff]   ;;  %v10984_v3 = vld [vmem:[%s14515_s1 + $0x1ce4] ss:$16 sps:$4 sm:$0xff]  }
 0x364   :  { %7181 = vmatprep.subr.bf16.mxu0 %v10898_v1  ;;  %7997 = vmatprep.subr.bf16.mxu1 %v10901_v2  ;;  %v10987_v1 = vld [vmem:[%s14515_s1 + $0x1cec] ss:$16 sps:$4 sm:$0xff]   ;;  %v10982_v2 = vld [vmem:[%s14515_s1 + $0x1ce0] ss:$16 sps:$4 sm:$0xff]  }
 0x367   :  { %7182 = vmatpush1.bf16.msra.mxu0 %v10896_v4  ;;  %7998 = vmatpush1.bf16.msra.mxu1 %v10899_v5  ;;  %v10985_v4 = vld [vmem:[%s14515_s1 + $0x1ce8] ss:$16 sps:$4 sm:$0xff]   ;;  %v10990_v5 = vld [vmem:[%s14515_s1 + $0x1d04] ss:$16 sps:$4 sm:$0xff]  }
 0x368   :  { %7183 = vmatprep.subr.bf16.mxu0 %v10904_v6  ;;  %7999 = vmatprep.subr.bf16.mxu1 %v10907_v7  ;;  %v10993_v6 = vld [vmem:[%s14515_s1 + $0x1d0c] ss:$16 sps:$4 sm:$0xff]   ;;  %v10988_v7 = vld [vmem:[%s14515_s1 + $0x1d00] ss:$16 sps:$4 sm:$0xff]  }
 0x36b   :  { %7184 = vmatpush1.bf16.msra.mxu0 %v10902_v8  ;;  %8000 = vmatpush1.bf16.msra.mxu1 %v10905_v9  ;;  %v10991_v8 = vld [vmem:[%s14515_s1 + $0x1d08] ss:$16 sps:$4 sm:$0xff]   ;;  %v10996_v9 = vld [vmem:[%s14515_s1 + $0x1d24] ss:$16 sps:$4 sm:$0xff]  }
 0x36c   :  { %7185 = vmatprep.subr.bf16.mxu0 %v10910_v10  ;;  %8001 = vmatprep.subr.bf16.mxu1 %v10913_v11  ;;  %v10999_v10 = vld [vmem:[%s14515_s1 + $0x1d2c] ss:$16 sps:$4 sm:$0xff]   ;;  %v10994_v11 = vld [vmem:[%s14515_s1 + $0x1d20] ss:$16 sps:$4 sm:$0xff]  }
 0x36f   :  { %7186 = vmatpush1.bf16.msra.mxu0 %v10908_v12  ;;  %8002 = vmatpush1.bf16.msra.mxu1 %v10911_v13  ;;  %v10997_v12 = vld [vmem:[%s14515_s1 + $0x1d28] ss:$16 sps:$4 sm:$0xff]   ;;  %v11002_v13 = vld [vmem:[%s14515_s1 + $0x1d44] ss:$16 sps:$4 sm:$0xff]  }
 0x370   :  { %7187 = vmatprep.subr.bf16.mxu0 %v10916_v14  ;;  %8003 = vmatprep.subr.bf16.mxu1 %v10919_v15  ;;  %v11005_v14 = vld [vmem:[%s14515_s1 + $0x1d4c] ss:$16 sps:$4 sm:$0xff]   ;;  %v11000_v15 = vld [vmem:[%s14515_s1 + $0x1d40] ss:$16 sps:$4 sm:$0xff]  }
 0x373   :  { %7188 = vmatpush1.bf16.msra.mxu0 %v10914_v16  ;;  %8004 = vmatpush1.bf16.msra.mxu1 %v10917_v17  ;;  %v11003_v16 = vld [vmem:[%s14515_s1 + $0x1d48] ss:$16 sps:$4 sm:$0xff]   ;;  %v11008_v17 = vld [vmem:[%s14515_s1 + $0x1d64] ss:$16 sps:$4 sm:$0xff]  }
 0x374   :  { %7189 = vmatprep.subr.bf16.mxu0 %v10922_v18  ;;  %8005 = vmatprep.subr.bf16.mxu1 %v10925_v19  ;;  %v11011_v18 = vld [vmem:[%s14515_s1 + $0x1d6c] ss:$16 sps:$4 sm:$0xff]   ;;  %v11006_v19 = vld [vmem:[%s14515_s1 + $0x1d60] ss:$16 sps:$4 sm:$0xff]  }
 0x377   :  { %7190 = vmatpush1.bf16.msra.mxu0 %v10920_v20  ;;  %8006 = vmatpush1.bf16.msra.mxu1 %v10923_v21  ;;  %v11009_v20 = vld [vmem:[%s14515_s1 + $0x1d68] ss:$16 sps:$4 sm:$0xff]   ;;  %v11014_v21 = vld [vmem:[%s14515_s1 + $0x1d84] ss:$16 sps:$4 sm:$0xff]  }
 0x378   :  { %7191 = vmatprep.subr.bf16.mxu0 %v10929_v22  ;;  %8007 = vmatprep.subr.bf16.mxu1 %v10932_v23  ;;  %v11017_v22 = vld [vmem:[%s14515_s1 + $0x1d8c] ss:$16 sps:$4 sm:$0xff]   ;;  %v11012_v23 = vld [vmem:[%s14515_s1 + $0x1d80] ss:$16 sps:$4 sm:$0xff]  }
 0x37b   :  { %7192 = vmatpush1.bf16.msra.mxu0 %v10927_v24  ;;  %8008 = vmatpush1.bf16.msra.mxu1 %v10930_v25  ;;  %v11015_v24 = vld [vmem:[%s14515_s1 + $0x1d88] ss:$16 sps:$4 sm:$0xff]   ;;  %v11020_v25 = vld [vmem:[%s14515_s1 + $0x1da4] ss:$16 sps:$4 sm:$0xff]  }
 0x37c   :  { %7193 = vmatprep.subr.bf16.mxu0 %v10936_v26  ;;  %8009 = vmatprep.subr.bf16.mxu1 %v10939_v27  ;;  %v11023_v26 = vld [vmem:[%s14515_s1 + $0x1dac] ss:$16 sps:$4 sm:$0xff]   ;;  %v11018_v27 = vld [vmem:[%s14515_s1 + $0x1da0] ss:$16 sps:$4 sm:$0xff]  }
 0x37f   :  { %7194 = vmatpush1.bf16.msra.mxu0 %v10934_v28  ;;  %8010 = vmatpush1.bf16.msra.mxu1 %v10937_v29  ;;  %v11021_v28 = vld [vmem:[%s14515_s1 + $0x1da8] ss:$16 sps:$4 sm:$0xff]   ;;  %v11027_v29 = vld [vmem:[%s14515_s1 + $0x1dc4] ss:$16 sps:$4 sm:$0xff]  }
 0x380   :  { %7214 = vmatprep.subr.bf16.mxu0 %v10942_v30  ;;  %8030 = vmatprep.subr.bf16.mxu1 %v10945_v31  ;;  %v11030_v30 = vld [vmem:[%s14515_s1 + $0x1dcc] ss:$16 sps:$4 sm:$0xff]   ;;  %v11025_v31 = vld [vmem:[%s14515_s1 + $0x1dc0] ss:$16 sps:$4 sm:$0xff]  }
 0x382   :  { %7196 = vmatmul.mubr.bf16.vlgmr.msra.gmra.mrb[0].mxu0 %v8244_v32  ;;  %8012 = vmatmul.mubr.bf16.vlgmr.msra.gmra.mrb[0].mxu1 %v8244_v32  ;;  %v11028_v32 = vld [vmem:[%s14515_s1 + $0x1dc8] ss:$16 sps:$4 sm:$0xff]  }
 0x383   :  { %7215 = vmatpush1.bf16.msra.mxu0 %v10940_v34  ;;  %8031 = vmatpush1.bf16.msra.mxu1 %v10943_v35  ;;  %v11037_v34 = vld [vmem:[%s14515_s1 + $0x1dec] ss:$16 sps:$4 sm:$0xff]   ;;  %v11032_v35 = vld [vmem:[%s14515_s1 + $0x1de0] ss:$16 sps:$4 sm:$0xff]  }
 0x384   :  { %7216 = vmatprep.subr.bf16.mxu0 %v10948_v36  ;;  %8032 = vmatprep.subr.bf16.mxu1 %v10951_v37  ;;  %v11035_v36 = vld [vmem:[%s14515_s1 + $0x1de8] ss:$16 sps:$4 sm:$0xff]   ;;  %v11040_v37 = vld [vmem:[%s14515_s1 + $0x1e04] ss:$16 sps:$4 sm:$0xff]  }
 0x385   :  { %7205 = vmatprep.mubr.bf16.mxu0 %v8277_v38  ;;  %8021 = vmatprep.mubr.bf16.mxu1 %v8277_v38  ;;  %v11043_v38 = vld [vmem:[%s14515_s1 + $0x1e0c] ss:$16 sps:$4 sm:$0xff]  }
 0x387   :  { %7217 = vmatpush1.bf16.msra.mxu0 %v10946_v39  ;;  %8033 = vmatpush1.bf16.msra.mxu1 %v10949_v40  ;;  %v8246_v39 = vcombine.low %v14109_v46, %v14114_v44  ;;  %v60_v40 = vld [vmem:[%s14516_s0 + $0x170] sm:$0x33]  ;;  %v11049_v46 = vld [vmem:[%s14515_s1 + $0x1e2c] ss:$16 sps:$4 sm:$0xff]  }
 0x388   :  { %7218 = vmatprep.subr.bf16.mxu0 %v10954_v41  ;;  %8034 = vmatprep.subr.bf16.mxu1 %v10957_v42  ;;  %v11038_v41 = vld [vmem:[%s14515_s1 + $0x1e00] ss:$16 sps:$4 sm:$0xff]   ;;  %v11041_v42 = vld [vmem:[%s14515_s1 + $0x1e08] ss:$16 sps:$4 sm:$0xff]   ;;  %v8279_v44 = vcombine.high %v60_v40, %v60_v40 }
 0x38a   :  { %7206 = vmatmul.mubr.bf16.gmra.mrb[4].mxu0 %v8276_v43  ;;  %8022 = vmatmul.mubr.bf16.gmra.mrb[4].mxu1 %v8276_v43  ;;  %v11046_v43 = vld [vmem:[%s14515_s1 + $0x1e24] ss:$16 sps:$4 sm:$0xff]  }
 0x38b   :  { %7219 = vmatpush1.bf16.msra.mxu0 %v10952_v45  ;;  %8035 = vmatpush1.bf16.msra.mxu1 %v10955_v47  ;;  %v11044_v45 = vld [vmem:[%s14515_s1 + $0x1e20] ss:$16 sps:$4 sm:$0xff]   ;;  %v11047_v47 = vld [vmem:[%s14515_s1 + $0x1e28] ss:$16 sps:$4 sm:$0xff]  }
 0x38c   :  { %7220 = vmatprep.subr.bf16.mxu0 %v10960_v48  ;;  %8036 = vmatprep.subr.bf16.mxu1 %v10963_v49  ;;  %v11052_v48 = vld [vmem:[%s14515_s1 + $0x1e44] ss:$16 sps:$4 sm:$0xff]   ;;  %v11055_v49 = vld [vmem:[%s14515_s1 + $0x1e4c] ss:$16 sps:$4 sm:$0xff]  }
 0x38d   :  { %7246 = vmatprep.mubr.bf16.mxu0 %v8247_v50  ;;  %8062 = vmatprep.mubr.bf16.mxu1 %v8247_v50  ;;  %v8278_v50 = vcombine.low %v60_v40, %v60_v40  ;;  %v11132_v40 = vld [vmem:[%s14515_s1 + $0x1fe4] ss:$16 sps:$4 sm:$0xff]  }
 0x38f   :  { %7221 = vmatpush1.bf16.msra.mxu0 %v10958_v53  ;;  %8037 = vmatpush1.bf16.msra.mxu1 %v10961_v51  ;;  %v14318_v53 = vld [vmem:[%s14516_s0 + $0x78] sm:$0xff] }
 0x390   :  { %7222 = vmatprep.subr.bf16.mxu0 %v10966_v52  ;;  %8038 = vmatprep.subr.bf16.mxu1 %v10969_v54  ;;  %v14323_v51 = vld [vmem:[%s14516_s0 + $0xf8] sm:$0xff]  ;;  %v11050_v52 = vld [vmem:[%s14515_s1 + $0x1e40] ss:$16 sps:$4 sm:$0xff]  }
 0x391   :  { %v11053_v54 = vld [vmem:[%s14515_s1 + $0x1e48] ss:$16 sps:$4 sm:$0xff]  }
 0x393   :  { %7223 = vmatpush1.bf16.msra.mxu0 %v10964_v55  ;;  %8039 = vmatpush1.bf16.msra.mxu1 %v10967_v56  ;;  %v11058_v55 = vld [vmem:[%s14515_s1 + $0x1e64] ss:$16 sps:$4 sm:$0xff]   ;;  %v11061_v56 = vld [vmem:[%s14515_s1 + $0x1e6c] ss:$16 sps:$4 sm:$0xff]  }
 0x394   :  { %7224 = vmatprep.subr.bf16.mxu0 %v10972_v57  ;;  %8040 = vmatprep.subr.bf16.mxu1 %v10975_v60  ;;  %v8249_v57 = vcombine.high %v14318_v53, %v14323_v51  ;;  %v11056_v60 = vld [vmem:[%s14515_s1 + $0x1e60] ss:$16 sps:$4 sm:$0xff]  }
 0x397   :  { %7225 = vmatpush1.bf16.msra.mxu0 %v10970_v58  ;;  %8041 = vmatpush1.bf16.msra.mxu1 %v10973_v59  ;;  %v11059_v58 = vld [vmem:[%s14515_s1 + $0x1e68] ss:$16 sps:$4 sm:$0xff]   ;;  %v11064_v59 = vld [vmem:[%s14515_s1 + $0x1e84] ss:$16 sps:$4 sm:$0xff]  }
 0x398   :  { %7226 = vmatprep.subr.bf16.mxu0 %v10978_v61  ;;  %8042 = vmatprep.subr.bf16.mxu1 %v10981_v62  ;;  %v11067_v61 = vld [vmem:[%s14515_s1 + $0x1e8c] ss:$16 sps:$4 sm:$0xff]   ;;  %v11062_v62 = vld [vmem:[%s14515_s1 + $0x1e80] ss:$16 sps:$4 sm:$0xff]  }
 0x39b   :  { %7227 = vmatpush1.bf16.msra.mxu0 %v10976_v63  ;;  %8043 = vmatpush1.bf16.msra.mxu1 %v10979_v0  ;;  %v11065_v63 = vld [vmem:[%s14515_s1 + $0x1e88] ss:$16 sps:$4 sm:$0xff]   ;;  %v11070_v0 = vld [vmem:[%s14515_s1 + $0x1ea4] ss:$16 sps:$4 sm:$0xff]  }
 0x39c   :  { %7228 = vmatprep.subr.bf16.mxu0 %v10984_v3  ;;  %8044 = vmatprep.subr.bf16.mxu1 %v10987_v1  ;;  %v11073_v3 = vld [vmem:[%s14515_s1 + $0x1eac] ss:$16 sps:$4 sm:$0xff]   ;;  %v11068_v1 = vld [vmem:[%s14515_s1 + $0x1ea0] ss:$16 sps:$4 sm:$0xff]  }
 0x39f   :  { %7229 = vmatpush1.bf16.msra.mxu0 %v10982_v2  ;;  %8045 = vmatpush1.bf16.msra.mxu1 %v10985_v4  ;;  %v11071_v2 = vld [vmem:[%s14515_s1 + $0x1ea8] ss:$16 sps:$4 sm:$0xff]   ;;  %v11076_v4 = vld [vmem:[%s14515_s1 + $0x1ec4] ss:$16 sps:$4 sm:$0xff]  }
 0x3a0   :  { %7230 = vmatprep.subr.bf16.mxu0 %v10990_v5  ;;  %8046 = vmatprep.subr.bf16.mxu1 %v10993_v6  ;;  %v11079_v5 = vld [vmem:[%s14515_s1 + $0x1ecc] ss:$16 sps:$4 sm:$0xff]   ;;  %v11074_v6 = vld [vmem:[%s14515_s1 + $0x1ec0] ss:$16 sps:$4 sm:$0xff]  }
 0x3a3   :  { %7231 = vmatpush1.bf16.msra.mxu0 %v10988_v7  ;;  %8047 = vmatpush1.bf16.msra.mxu1 %v10991_v8  ;;  %v11077_v7 = vld [vmem:[%s14515_s1 + $0x1ec8] ss:$16 sps:$4 sm:$0xff]   ;;  %v11082_v8 = vld [vmem:[%s14515_s1 + $0x1ee4] ss:$16 sps:$4 sm:$0xff]  }
 0x3a4   :  { %7232 = vmatprep.subr.bf16.mxu0 %v10996_v9  ;;  %8048 = vmatprep.subr.bf16.mxu1 %v10999_v10  ;;  %v11085_v9 = vld [vmem:[%s14515_s1 + $0x1eec] ss:$16 sps:$4 sm:$0xff]   ;;  %v11080_v10 = vld [vmem:[%s14515_s1 + $0x1ee0] ss:$16 sps:$4 sm:$0xff]  }
 0x3a7   :  { %7233 = vmatpush1.bf16.msra.mxu0 %v10994_v11  ;;  %8049 = vmatpush1.bf16.msra.mxu1 %v10997_v12  ;;  %v11083_v11 = vld [vmem:[%s14515_s1 + $0x1ee8] ss:$16 sps:$4 sm:$0xff]   ;;  %v11088_v12 = vld [vmem:[%s14515_s1 + $0x1f04] ss:$16 sps:$4 sm:$0xff]  }
 0x3a8   :  { %7234 = vmatprep.subr.bf16.mxu0 %v11002_v13  ;;  %8050 = vmatprep.subr.bf16.mxu1 %v11005_v14  ;;  %v11091_v13 = vld [vmem:[%s14515_s1 + $0x1f0c] ss:$16 sps:$4 sm:$0xff]   ;;  %v11086_v14 = vld [vmem:[%s14515_s1 + $0x1f00] ss:$16 sps:$4 sm:$0xff]  }
 0x3ab   :  { %7235 = vmatpush1.bf16.msra.mxu0 %v11000_v15  ;;  %8051 = vmatpush1.bf16.msra.mxu1 %v11003_v16  ;;  %v11089_v15 = vld [vmem:[%s14515_s1 + $0x1f08] ss:$16 sps:$4 sm:$0xff]   ;;  %v11094_v16 = vld [vmem:[%s14515_s1 + $0x1f24] ss:$16 sps:$4 sm:$0xff]  }
 0x3ac   :  { %7236 = vmatprep.subr.bf16.mxu0 %v11008_v17  ;;  %8052 = vmatprep.subr.bf16.mxu1 %v11011_v18  ;;  %v11097_v17 = vld [vmem:[%s14515_s1 + $0x1f2c] ss:$16 sps:$4 sm:$0xff]   ;;  %v11092_v18 = vld [vmem:[%s14515_s1 + $0x1f20] ss:$16 sps:$4 sm:$0xff]  }
 0x3af   :  { %7237 = vmatpush1.bf16.msra.mxu0 %v11006_v19  ;;  %8053 = vmatpush1.bf16.msra.mxu1 %v11009_v20  ;;  %v11095_v19 = vld [vmem:[%s14515_s1 + $0x1f28] ss:$16 sps:$4 sm:$0xff]   ;;  %v11100_v20 = vld [vmem:[%s14515_s1 + $0x1f44] ss:$16 sps:$4 sm:$0xff]  }
 0x3b0   :  { %7238 = vmatprep.subr.bf16.mxu0 %v11014_v21  ;;  %8054 = vmatprep.subr.bf16.mxu1 %v11017_v22  ;;  %v11103_v21 = vld [vmem:[%s14515_s1 + $0x1f4c] ss:$16 sps:$4 sm:$0xff]   ;;  %v11098_v22 = vld [vmem:[%s14515_s1 + $0x1f40] ss:$16 sps:$4 sm:$0xff]  }
 0x3b3   :  { %7239 = vmatpush1.bf16.msra.mxu0 %v11012_v23  ;;  %8055 = vmatpush1.bf16.msra.mxu1 %v11015_v24  ;;  %v11101_v23 = vld [vmem:[%s14515_s1 + $0x1f48] ss:$16 sps:$4 sm:$0xff]   ;;  %v11106_v24 = vld [vmem:[%s14515_s1 + $0x1f64] ss:$16 sps:$4 sm:$0xff]  }
 0x3b4   :  { %7240 = vmatprep.subr.bf16.mxu0 %v11020_v25  ;;  %8056 = vmatprep.subr.bf16.mxu1 %v11023_v26  ;;  %v11109_v25 = vld [vmem:[%s14515_s1 + $0x1f6c] ss:$16 sps:$4 sm:$0xff]   ;;  %v11104_v26 = vld [vmem:[%s14515_s1 + $0x1f60] ss:$16 sps:$4 sm:$0xff]  }
 0x3b7   :  { %7241 = vmatpush1.bf16.msra.mxu0 %v11018_v27  ;;  %8057 = vmatpush1.bf16.msra.mxu1 %v11021_v28  ;;  %v11107_v27 = vld [vmem:[%s14515_s1 + $0x1f68] ss:$16 sps:$4 sm:$0xff]   ;;  %v11112_v28 = vld [vmem:[%s14515_s1 + $0x1f84] ss:$16 sps:$4 sm:$0xff]  }
 0x3b8   :  { %7242 = vmatprep.subr.bf16.mxu0 %v11027_v29  ;;  %8058 = vmatprep.subr.bf16.mxu1 %v11030_v30  ;;  %v11115_v29 = vld [vmem:[%s14515_s1 + $0x1f8c] ss:$16 sps:$4 sm:$0xff]   ;;  %v11110_v30 = vld [vmem:[%s14515_s1 + $0x1f80] ss:$16 sps:$4 sm:$0xff]  }
 0x3bb   :  { %7243 = vmatpush1.bf16.msra.mxu0 %v11025_v31  ;;  %8059 = vmatpush1.bf16.msra.mxu1 %v11028_v32  ;;  %v11113_v31 = vld [vmem:[%s14515_s1 + $0x1f88] ss:$16 sps:$4 sm:$0xff]   ;;  %v11118_v32 = vld [vmem:[%s14515_s1 + $0x1fa4] ss:$16 sps:$4 sm:$0xff]  }
 0x3bc   :  { %7244 = vmatprep.subr.bf16.mxu0 %v11034_v33  ;;  %8060 = vmatprep.subr.bf16.mxu1 %v11037_v34  ;;  %v11121_v33 = vld [vmem:[%s14515_s1 + $0x1fac] ss:$16 sps:$4 sm:$0xff]   ;;  %v11116_v34 = vld [vmem:[%s14515_s1 + $0x1fa0] ss:$16 sps:$4 sm:$0xff]  }
 0x3bf   :  { %7245 = vmatpush1.bf16.msra.mxu0 %v11032_v35  ;;  %8061 = vmatpush1.bf16.msra.mxu1 %v11035_v36  ;;  %v11119_v35 = vld [vmem:[%s14515_s1 + $0x1fa8] ss:$16 sps:$4 sm:$0xff]   ;;  %v11126_v36 = vld [vmem:[%s14515_s1 + $0x1fc4] ss:$16 sps:$4 sm:$0xff]  }
 0x3c0   :  { %7265 = vmatprep.subr.bf16.mxu0 %v11040_v37  ;;  %8081 = vmatprep.subr.bf16.mxu1 %v11043_v38  ;;  %v11129_v37 = vld [vmem:[%s14515_s1 + $0x1fcc] ss:$16 sps:$4 sm:$0xff]   ;;  %v11124_v38 = vld [vmem:[%s14515_s1 + $0x1fc0] ss:$16 sps:$4 sm:$0xff]  }
 0x3c2   :  { %7247 = vmatmul.mubr.bf16.vlgmr.msra.gmra.mrb[0].mxu0 %v8246_v39  ;;  %8063 = vmatmul.mubr.bf16.vlgmr.msra.gmra.mrb[0].mxu1 %v8246_v39  ;;  %v11127_v39 = vld [vmem:[%s14515_s1 + $0x1fc8] ss:$16 sps:$4 sm:$0xff]  }
 0x3c3   :  { %7266 = vmatpush1.bf16.msra.mxu0 %v11038_v41  ;;  %8082 = vmatpush1.bf16.msra.mxu1 %v11041_v42  ;;  %v11135_v41 = vld [vmem:[%s14515_s1 + $0x1fec] ss:$16 sps:$4 sm:$0xff]   ;;  %v11130_v42 = vld [vmem:[%s14515_s1 + $0x1fe0] ss:$16 sps:$4 sm:$0xff]  }
 0x3c4   :  { %7267 = vmatprep.subr.bf16.mxu0 %v11046_v43  ;;  %8083 = vmatprep.subr.bf16.mxu1 %v11049_v46  ;;  %v11133_v43 = vld [vmem:[%s14515_s1 + $0x1fe8] ss:$16 sps:$4 sm:$0xff]  }
 0x3c5   :  { %7256 = vmatprep.mubr.bf16.mxu0 %v8279_v44  ;;  %8072 = vmatprep.mubr.bf16.mxu1 %v8279_v44  ;;  %v61_v46 = vld [vmem:[%s14516_s0 + $0x178] sm:$0x33]  ;;  %v8248_v44 = vcombine.low %v14318_v53, %v14323_v51 }
 0x3c7   :  { %7268 = vmatpush1.bf16.msra.mxu0 %v11044_v45  ;;  %8084 = vmatpush1.bf16.msra.mxu1 %v11047_v47  ;;  %v8281_v45 = vcombine.high %v61_v46, %v61_v46  ;;  %v8280_v47 = vcombine.low %v61_v46, %v61_v46 }
 0x3c8   :  { %7269 = vmatprep.subr.bf16.mxu0 %v11052_v48  ;;  %8085 = vmatprep.subr.bf16.mxu1 %v11055_v49  ;;  %v1088_v48 = vlaneseq }
 0x3ca   :  { %7257 = vmatmul.mubr.bf16.gmra.mrb[4].mxu0 %v8278_v50  ;;  %8073 = vmatmul.mubr.bf16.gmra.mrb[4].mxu1 %v8278_v50  ;;  %v1089_v49 = vshrl.u32 %v1088_v48, 7 }
 0x3cb   :  { %7270 = vmatpush1.bf16.msra.mxu0 %v11050_v52  ;;  %8086 = vmatpush1.bf16.msra.mxu1 %v11053_v54  ;;  %v1086_v54 = vld [vmem:[%s14517_s2] sm:$0xf] }
 0x3cc   :  { %7271 = vmatprep.subr.bf16.mxu0 %v11058_v55  ;;  %8087 = vmatprep.subr.bf16.mxu1 %v11061_v56  ;;  %v1090_v50 = vsub.s32 0, %v1089_v49  ;;  %v1098_v52 = vsub.s32 2, %v1089_v49  ;;  %v1094_v55 = vsub.s32 1, %v1089_v49  ;;  %v1102_v53 = vsub.s32 3, %v1089_v49 }
 0x3cd   :  { %7297 = vmatprep.mubr.bf16.mxu0 %v8249_v57  ;;  %8113 = vmatprep.mubr.bf16.mxu1 %v8249_v57 }
 0x3ce   :  { %v1091_v51 = vrot.slane %v1086_v54, %v1090_v50  ;;  %v1099_v56 = vrot.slane %v1086_v54, %v1098_v52  ;;  %v1095_v57 = vrot.slane %v1086_v54, %v1094_v55 }
 0x3cf   :  { %7272 = vmatpush1.bf16.msra.mxu0 %v11056_v60  ;;  %8088 = vmatpush1.bf16.msra.mxu1 %v11059_v58  ;;  %v1103_v60 = vrot.slane %v1086_v54, %v1102_v53 }
 0x3d0   :  { %7273 = vmatprep.subr.bf16.mxu0 %v11064_v59  ;;  %8089 = vmatprep.subr.bf16.mxu1 %v11067_v61 }
 0x3d3   :  { %7274 = vmatpush1.bf16.msra.mxu0 %v11062_v62  ;;  %8090 = vmatpush1.bf16.msra.mxu1 %v11065_v63 }
 0x3d4   :  { %7275 = vmatprep.subr.bf16.mxu0 %v11070_v0  ;;  %8091 = vmatprep.subr.bf16.mxu1 %v11073_v3 }
 0x3d7   :  { %7276 = vmatpush1.bf16.msra.mxu0 %v11068_v1  ;;  %8092 = vmatpush1.bf16.msra.mxu1 %v11071_v2 }
 0x3d8   :  { %7277 = vmatprep.subr.bf16.mxu0 %v11076_v4  ;;  %8093 = vmatprep.subr.bf16.mxu1 %v11079_v5 }
 0x3db   :  { %7278 = vmatpush1.bf16.msra.mxu0 %v11074_v6  ;;  %8094 = vmatpush1.bf16.msra.mxu1 %v11077_v7 }
 0x3dc   :  { %7279 = vmatprep.subr.bf16.mxu0 %v11082_v8  ;;  %8095 = vmatprep.subr.bf16.mxu1 %v11085_v9 }
 0x3df   :  { %7280 = vmatpush1.bf16.msra.mxu0 %v11080_v10  ;;  %8096 = vmatpush1.bf16.msra.mxu1 %v11083_v11 }
 0x3e0   :  { %7281 = vmatprep.subr.bf16.mxu0 %v11088_v12  ;;  %8097 = vmatprep.subr.bf16.mxu1 %v11091_v13 }
 0x3e3   :  { %7282 = vmatpush1.bf16.msra.mxu0 %v11086_v14  ;;  %8098 = vmatpush1.bf16.msra.mxu1 %v11089_v15 }
 0x3e4   :  { %7283 = vmatprep.subr.bf16.mxu0 %v11094_v16  ;;  %8099 = vmatprep.subr.bf16.mxu1 %v11097_v17 }
 0x3e7   :  { %7284 = vmatpush1.bf16.msra.mxu0 %v11092_v18  ;;  %8100 = vmatpush1.bf16.msra.mxu1 %v11095_v19 }
 0x3e8   :  { %7285 = vmatprep.subr.bf16.mxu0 %v11100_v20  ;;  %8101 = vmatprep.subr.bf16.mxu1 %v11103_v21 }
 0x3eb   :  { %7286 = vmatpush1.bf16.msra.mxu0 %v11098_v22  ;;  %8102 = vmatpush1.bf16.msra.mxu1 %v11101_v23 }
 0x3ec   :  { %7287 = vmatprep.subr.bf16.mxu0 %v11106_v24  ;;  %8103 = vmatprep.subr.bf16.mxu1 %v11109_v25 }
 0x3ef   :  { %7288 = vmatpush1.bf16.msra.mxu0 %v11104_v26  ;;  %8104 = vmatpush1.bf16.msra.mxu1 %v11107_v27 }
 0x3f0   :  { %7289 = vmatprep.subr.bf16.mxu0 %v11112_v28  ;;  %8105 = vmatprep.subr.bf16.mxu1 %v11115_v29 }
 0x3f3   :  { %7290 = vmatpush1.bf16.msra.mxu0 %v11110_v30  ;;  %8106 = vmatpush1.bf16.msra.mxu1 %v11113_v31 }
 0x3f4   :  { %7291 = vmatprep.subr.bf16.mxu0 %v11118_v32  ;;  %8107 = vmatprep.subr.bf16.mxu1 %v11121_v33 }
 0x3f7   :  { %7292 = vmatpush1.bf16.msra.mxu0 %v11116_v34  ;;  %8108 = vmatpush1.bf16.msra.mxu1 %v11119_v35 }
 0x3f8   :  { %7293 = vmatprep.subr.bf16.mxu0 %v11126_v36  ;;  %8109 = vmatprep.subr.bf16.mxu1 %v11129_v37 }
 0x3fb   :  { %7294 = vmatpush1.bf16.msra.mxu0 %v11124_v38  ;;  %8110 = vmatpush1.bf16.msra.mxu1 %v11127_v39 }
 0x3fc   :  { %7295 = vmatprep.subr.bf16.mxu0 %v11132_v40  ;;  %8111 = vmatprep.subr.bf16.mxu1 %v11135_v41 }
 0x3ff   :  { %7296 = vmatpush1.bf16.msra.mxu0 %v11130_v42  ;;  %8112 = vmatpush1.bf16.msra.mxu1 %v11133_v43 }
 0x402   :  { %7298 = vmatmul.mubr.bf16.vlgmr.msra.gmra.mrb[0].mxu0 %v8248_v44  ;;  %8114 = vmatmul.mubr.bf16.vlgmr.msra.gmra.mrb[0].mxu1 %v8248_v44 }
 0x403   :  { %7307 = vmatprep.mubr.bf16.mxu0 %v8281_v45  ;;  %8123 = vmatprep.mubr.bf16.mxu1 %v8281_v45 }
 0x40a   :  { %7308 = vmatmul.mubr.bf16.gmra.mrb[4].mxu0 %v8280_v47  ;;  %8124 = vmatmul.mubr.bf16.gmra.mrb[4].mxu1 %v8280_v47 }
 0x4d5   :  { %v7299_v58 = vpop.f32.mrb[0].mxu0  ;;  %v8115_v59 = vpop.f32.mrb[0].mxu1 }
 0x4d6   :  { %v9318_v61 = vadd.f32 %v7299_v58, %v1091_v51  ;;  %v9324_v62 = vadd.f32 %v8115_v59, %v1099_v56  ;;  %v7301_v63 = vpop.f32.mrb[1].mxu0  ;;  %v8117_v0 = vpop.f32.mrb[1].mxu1 }
 0x4d7   :  { %v9319_v3 = vadd.f32 %v7301_v63, %v1095_v57  ;;  %v9325_v1 = vadd.f32 %v8117_v0, %v1103_v60  ;;  %v7303_v2 = vpop.f32.mrb[2].mxu0  ;;  %v8119_v4 = vpop.f32.mrb[2].mxu1 }
 0x4d8   :  { %vm8132_vm0 = vcmp.gt.f32.partialorder %v9318_v61, 0.0  ;;  %v8144_v5 = vmul.f32 0.2, %v9318_v61  ;;  %vm8134_vm1 = vcmp.gt.f32.partialorder %v9324_v62, 0.0  ;;  %v8146_v6 = vmul.f32 0.2, %v9324_v62 }
 0x4d9   :  { %vm8133_vm2 = vcmp.gt.f32.partialorder %v9319_v3, 0.0  ;;  %v8145_v7 = vmul.f32 0.2, %v9319_v3  ;;  %vm8135_vm3 = vcmp.gt.f32.partialorder %v9325_v1, 0.0  ;;  %v8147_v8 = vmul.f32 0.2, %v9325_v1 }
 0x4da   :  { %v8156_v9 = vsel %vm8132_vm0, %v9318_v61, %v8144_v5  ;;  %v8158_v10 = vsel %vm8134_vm1, %v9324_v62, %v8146_v6  ;;  %v9320_v11 = vadd.f32 %v7303_v2, %v1091_v51  ;;  %v9326_v12 = vadd.f32 %v8119_v4, %v1099_v56  ;;  %v7305_v13 = vpop.f32.mrb[3].mxu0  ;;  %v8121_v14 = vpop.f32.mrb[3].mxu1 }
 0x4db   :  { %v8157_v15 = vsel %vm8133_vm2, %v9319_v3, %v8145_v7  ;;  %v8159_v16 = vsel %vm8135_vm3, %v9325_v1, %v8147_v8  ;;  %v9321_v17 = vadd.f32 %v7305_v13, %v1095_v57  ;;  %v9327_v18 = vadd.f32 %v8121_v14, %v1103_v60 }
 0x4dc   :  { %v9312_v19 = vpack.c.bf16 %v8157_v15, %v8156_v9  ;;  %v9313_v20 = vpack.c.bf16 %v8159_v16, %v8158_v10  ;;  %vm8136_vm4 = vcmp.gt.f32.partialorder %v9320_v11, 0.0  ;;  %v8148_v21 = vmul.f32 0.2, %v9320_v11 }
 0x4dd   :  { %vm8138_vm5 = vcmp.gt.f32.partialorder %v9326_v12, 0.0  ;;  %v8150_v22 = vmul.f32 0.2, %v9326_v12  ;;  %vm8137_vm6 = vcmp.gt.f32.partialorder %v9321_v17, 0.0  ;;  %v8149_v23 = vmul.f32 0.2, %v9321_v17 }
 0x4de   :  { %8208 = vst [vmem:[%s14518_s3] sm:$0xff] %v9312_v19  ;;  %8209 = vst [vmem:[%s14518_s3 + $0x8] sm:$0xff] %v9313_v20  ;;  %v8160_v24 = vsel %vm8136_vm4, %v9320_v11, %v8148_v21  ;;  %vm8139_vm7 = vcmp.gt.f32.partialorder %v9327_v18, 0.0  ;;  %v8151_v25 = vmul.f32 0.2, %v9327_v18  ;;  %v7309_v26 = vpop.f32.mrb[4].mxu0  ;;  %v8125_v27 = vpop.f32.mrb[4].mxu1 }
 0x4df   :  { %v8162_v28 = vsel %vm8138_vm5, %v9326_v12, %v8150_v22  ;;  %v8161_v29 = vsel %vm8137_vm6, %v9321_v17, %v8149_v23  ;;  %v9322_v30 = vadd.f32 %v7309_v26, %v1091_v51  ;;  %v9328_v31 = vadd.f32 %v8125_v27, %v1099_v56  ;;  %v7311_v32 = vpop.f32.mrb[5].mxu0  ;;  %v8127_v33 = vpop.f32.mrb[5].mxu1 }
 0x4e0   :  { %v9314_v34 = vpack.c.bf16 %v8161_v29, %v8160_v24  ;;  %v8163_v35 = vsel %vm8139_vm7, %v9327_v18, %v8151_v25  ;;  %v9323_v36 = vadd.f32 %v7311_v32, %v1095_v57  ;;  %v9329_v37 = vadd.f32 %v8127_v33, %v1103_v60  ;;  %v7313_v38 = vpop.f32.mrb[6].mxu0  ;;  %v8129_v39 = vpop.f32.mrb[6].mxu1 }
 0x4e1   :  { %v9315_v40 = vpack.c.bf16 %v8163_v35, %v8162_v28  ;;  %vm8140_vm8 = vcmp.gt.f32.partialorder %v9322_v30, 0.0  ;;  %v8152_v41 = vmul.f32 0.2, %v9322_v30  ;;  %vm8142_vm9 = vcmp.gt.f32.partialorder %v9328_v31, 0.0  ;;  %v7314_v42 = vpop.f32.mrb[7].mxu0  ;;  %v8130_v43 = vpop.f32.mrb[7].mxu1 }
 0x4e2   :  { %8210 = vst [vmem:[%s14518_s3 + $0x10] sm:$0xff] %v9314_v34  ;;  %v8154_v46 = vmul.f32 0.2, %v9328_v31  ;;  %vm8141_vm10 = vcmp.gt.f32.partialorder %v9323_v36, 0.0  ;;  %v8153_v44 = vmul.f32 0.2, %v9323_v36 }
 0x4e3   :  { %vm8143_vm11 = vcmp.gt.f32.partialorder %v9329_v37, 0.0  ;;  %8211 = vst [vmem:[%s14518_s3 + $0x18] sm:$0xff] %v9315_v40  ;;  %v8164_v45 = vsel %vm8140_vm8, %v9322_v30, %v8152_v41  ;;  %v8155_v47 = vmul.f32 0.2, %v9329_v37 }
 0x4e4   :  { %v8166_v48 = vsel %vm8142_vm9, %v9328_v31, %v8154_v46  ;;  %v8165_v49 = vsel %vm8141_vm10, %v9323_v36, %v8153_v44 }
 0x4e5   :  { %v9316_v50 = vpack.c.bf16 %v8165_v49, %v8164_v45  ;;  %v8167_v52 = vsel %vm8143_vm11, %v9329_v37, %v8155_v47 }
 0x4e6   :  { %v9317_v54 = vpack.c.bf16 %v8167_v52, %v8166_v48 }
 0x4e7   :  { %8212 = vst [vmem:[%s14518_s3 + $0x20] sm:$0x33] %v9316_v50 }
 0x4e8   :  { %8213 = vst [vmem:[%s14518_s3 + $0x28] sm:$0x33] %v9317_v54 }

</bundles_post_ra>
